<compile_context>
chip_gen: v7x
topology: tpu7x:2x2x1
jax: 0.10.0
libtpu: 0.0.40
codegen_flags: <defaults>
</compile_context>

<pallas_src>
import jax
import jax.numpy as jnp
from jax import lax
from jax.experimental import pallas as pl
from jax.experimental.pallas import tpu as pltpu


_CHUNK = 256  # rows per in-kernel slab; multiple of 8 and >= 2*Wp+2 (tunable;
              # larger (512-1024) amortizes better on v6e's 128 MiB VMEM).


def _round_up(x, m):
    return (x + m - 1) // m * m


def _full_spec(shape):
    zeros = (0,) * len(shape)
    return pl.BlockSpec(shape, lambda i, _z=zeros: _z)


def _make_upconv_kernel(*, chunk, nb, nbx, nbh, lane, cin, wp, hoff,
                        inv_m, eps):
    """Fused up_conv kernel for static geometry.

    Activations are flattened [row, lane] slabs where
    row = n*(Hp*Wp) + h*Wp + w enumerates halo-padded pixel positions, so each
    3x3 tap is a row slice at static offset dh*Wp + dw.
    """
    offs = tuple((t // 3) * wp + (t % 3) for t in range(9))
    f32 = jnp.float32

    def conv9(src_ref, w_ref, base):
        # 9-tap implicit-im2col matmul.  Two independent accumulators so MXU
        # result pops and VPU adds can overlap (MRF drain on v5e/v6e).
        acc_a = jnp.dot(src_ref[pl.ds(base + offs[0], chunk), :], w_ref[0],
                        preferred_element_type=f32)
        acc_b = jnp.dot(src_ref[pl.ds(base + offs[1], chunk), :], w_ref[1],
                        preferred_element_type=f32)
        for t in range(2, 9):
            d = jnp.dot(src_ref[pl.ds(base + offs[t], chunk), :], w_ref[t],
                        preferred_element_type=f32)
            if t % 2 == 0:
                acc_a = acc_a + d
            else:
                acc_b = acc_b + d
        return acc_a + acc_b

    def kernel(x1_ref, x2_ref, mask_ref, wup_ref, w1_ref, w2_ref,
               g1_ref, b1_ref, g2_ref, b2_ref,
               out_ref, xin_ref, hbuf_ref, acc1_ref, acc2_ref):
        # (1) Merged conv1 input = concat([x2, ConvTranspose2d(x1) + F.pad]).
        #     Deconv = 4 per-parity matmuls on the un-expanded replicated x1;
        #     parity one-hots ride in lanes [cin:cin+4] of the same buffer
        #     (wup rows there are zero so they never reach the MXU result);
        #     the deconv bias is pre-folded additively into x2_ref.
        def build_xin(i, _):
            r0 = pl.multiple_of(i * chunk, chunk)
            x1c = x1_ref[pl.ds(r0, chunk), :]
            acc = x2_ref[pl.ds(r0, chunk), :]
            for k in range(4):
                sel = x1c[:, cin + k:cin + k + 1]
                acc = acc + sel * jnp.dot(x1c, wup_ref[k],
                                          preferred_element_type=f32)
            xin_ref[pl.ds(r0, chunk), :] = acc
            return 0
        lax.fori_loop(0, nbx, build_xin, 0)

        # (2) conv1 (3x3, pad=1, no bias) + fused single-pass BN1 statistics
        #     over valid rows only (junk halo rows masked out of the sums).
        zero_c = jnp.zeros((1, lane), f32)

        def conv1_body(i, carry):
            s, ss = carry
            r0 = pl.multiple_of(i * chunk, chunk)
            acc = conv9(xin_ref, w1_ref, r0)
            acc1_ref[pl.ds(r0, chunk), :] = acc
            am = acc * mask_ref[pl.ds(r0, chunk), :]
            return (s + jnp.sum(am, axis=0, keepdims=True),
                    ss + jnp.sum(am * am, axis=0, keepdims=True))
        s1, ss1 = lax.fori_loop(0, nb, conv1_body, (zero_c, zero_c))
        mean1 = s1 * inv_m
        scale1 = g1_ref[...] * lax.rsqrt(ss1 * inv_m - mean1 * mean1 + eps)
        shift1 = b1_ref[...] - mean1 * scale1

        # (3) BN1 + ReLU into the halo-padded conv2 input buffer.  The buffer
        #     is zero-initialized with aligned full-chunk stores (this IS the
        #     3x3 zero-padding ring); BN1 writes land CHUNK-aligned at row
        #     offset `chunk`, the halo shift is moved onto conv2's reads.
        def zero_h(i, _):
            r0 = pl.multiple_of(i * chunk, chunk)
            hbuf_ref[pl.ds(r0, chunk), :] = jnp.zeros((chunk, lane), f32)
            return 0
        lax.fori_loop(0, nbh, zero_h, 0)

        def bn1_body(i, _):
            r0 = pl.multiple_of(i * chunk, chunk)
            x = acc1_ref[pl.ds(r0, chunk), :]
            y = jnp.maximum(x * scale1 + shift1, 0.0)
            hbuf_ref[pl.ds(r0 + chunk, chunk), :] = (
                y * mask_ref[pl.ds(r0, chunk), :])
            return 0
        lax.fori_loop(0, nb, bn1_body, 0)

        # (4) conv2 (3x3, pad=1, no bias) + fused single-pass BN2 statistics.
        def conv2_body(i, carry):
            s, ss = carry
            r0 = pl.multiple_of(i * chunk, chunk)
            acc = conv9(hbuf_ref, w2_ref, r0 + hoff)
            acc2_ref[pl.ds(r0, chunk), :] = acc
            am = acc * mask_ref[pl.ds(r0, chunk), :]
            return (s + jnp.sum(am, axis=0, keepdims=True),
                    ss + jnp.sum(am * am, axis=0, keepdims=True))
        s2, ss2 = lax.fori_loop(0, nb, conv2_body, (zero_c, zero_c))
        mean2 = s2 * inv_m
        scale2 = g2_ref[...] * lax.rsqrt(ss2 * inv_m - mean2 * mean2 + eps)
        shift2 = b2_ref[...] - mean2 * scale2

        # (5) BN2 + ReLU -> output.  No mask: junk halo rows are cropped by
        #     the wrapper, so only lane-dense unmasked full-chunk stores here.
        def bn2_body(i, _):
            r0 = pl.multiple_of(i * chunk, chunk)
            x = acc2_ref[pl.ds(r0, chunk), :]
            out_ref[pl.ds(r0, chunk), :] = jnp.maximum(x * scale2 + shift2, 0.0)
            return 0
        lax.fori_loop(0, nb, bn2_body, 0)

    return kernel


def up_conv_forward(x1_nchw, x2_nchw, params, eps=1e-5):
    """up_conv forward, NCHW in / NCHW out (PyTorch convention)."""
    N, Cin, H1, W1 = x1_nchw.shape
    _, C2, H2, W2 = x2_nchw.shape
    Cup = params["up_w"].shape[1]
    Cmid = params["conv1_w"].shape[0]
    Cout = params["conv2_w"].shape[0]
    Ccat = C2 + Cup
    assert params["conv1_w"].shape[1] == Ccat

    H2p, W2p = 2 * H1, 2 * W1
    DY, DX = H2 - H2p, W2 - W2p
    assert DY >= 0 and DX >= 0
    pt, px = DY // 2, DX // 2
    Hp, Wp = H2 + 2, W2 + 2              # +2: 3x3 conv halo
    Np = Hp * Wp
    Q = N * Np                           # conv output rows (incl. halo junk)
    M2 = N * H2 * W2                     # real pixels (BatchNorm divisor)
    f32 = jnp.float32

    chunk = _CHUNK
    assert chunk % 8 == 0 and chunk >= 2 * Wp + 2
    Qpad = _round_up(Q, chunk)
    NB = Qpad // chunk
    Ntot = Qpad + chunk                  # slack so all 9 tap reads stay in bounds
    NBX = Ntot // chunk
    Htot = Qpad + 2 * chunk              # leading zero block + trailing slack
    NBH = Htot // chunk
    pad_off = Wp + 1                     # conv-row q lives at padded row q+pad_off
    hoff = chunk - pad_off               # conv2 read offset into hbuf

    LANE = _round_up(max(Cin + 4, Ccat, Cmid, Cout, 1), 128)

    x1 = jnp.transpose(x1_nchw, (0, 2, 3, 1)).astype(f32)   # [N,H1,W1,Cin]
    x2 = jnp.transpose(x2_nchw, (0, 2, 3, 1)).astype(f32)   # [N,H2,W2,C2]

    # ---- deconv operand: 2x nearest-replicated x1 (K = Cin, NO parity
    # expansion) + 4-lane output-parity one-hot in spare lanes, placed at the
    # F.pad offset inside the halo frame and flattened to [rows, LANE].
    x1rep = jnp.repeat(jnp.repeat(x1, 2, axis=1), 2, axis=2)   # [N,H2p,W2p,Cin]
    par = (2 * (jnp.arange(H2p) % 2)[:, None]
           + (jnp.arange(W2p) % 2)[None, :])
    ph = jnp.broadcast_to(jax.nn.one_hot(par, 4, dtype=f32)[None],
                          (N, H2p, W2p, 4))
    x1op = jnp.concatenate([x1rep, ph], axis=-1)
    x1op = jnp.pad(x1op, ((0, 0),
                          (1 + pt, Hp - 1 - pt - H2p),
                          (1 + px, Wp - 1 - px - W2p),
                          (0, LANE - (Cin + 4))))
    x1op = jnp.pad(x1op.reshape(Q, LANE), ((0, Ntot - Q), (0, 0)))

    # ---- skip connection + pre-folded deconv bias (bias only on the valid
    # placement region, matching ConvTranspose2d -> F.pad), lane-padded.
    x2pad = jnp.pad(x2, ((0, 0), (1, 1), (1, 1), (0, 0)))
    biasreg = jnp.pad(jnp.broadcast_to(params["up_b"].astype(f32),
                                       (H2p, W2p, Cup)),
                      ((1 + pt, Hp - 1 - pt - H2p),
                       (1 + px, Wp - 1 - px - W2p), (0, 0)))
    biasreg = jnp.broadcast_to(biasreg[None], (N, Hp, Wp, Cup))
    x2f = jnp.concatenate(
        [x2pad, biasreg, jnp.zeros((N, Hp, Wp, LANE - Ccat), f32)], axis=-1)
    x2f = jnp.pad(x2f.reshape(Q, LANE), ((0, Ntot - Q), (0, 0)))

    # ---- validity mask (1 on real output pixels), lane-dense.
    vm = ((jnp.arange(Hp) < H2)[:, None] & (jnp.arange(Wp) < W2)[None, :])
    vm = jnp.broadcast_to(vm[None], (N, Hp, Wp)).reshape(Q, 1).astype(f32)
    mask = jnp.broadcast_to(jnp.pad(vm, ((0, Qpad - Q), (0, 0))), (Qpad, LANE))

    # ---- weights in lane-padded kernel layout.
    upw = params["up_w"].astype(f32)                    # [Cin, Cup, 2, 2]
    wupP = jnp.zeros((4, LANE, LANE), f32)
    for a in range(2):
        for b in range(2):
            wupP = wupP.at[2 * a + b, :Cin, C2:C2 + Cup].set(upw[:, :, a, b])
    w1t = jnp.transpose(params["conv1_w"].astype(f32), (2, 3, 1, 0))
    w1P = jnp.zeros((9, LANE, LANE), f32).at[:, :Ccat, :Cmid].set(
        w1t.reshape(9, Ccat, Cmid))
    w2t = jnp.transpose(params["conv2_w"].astype(f32), (2, 3, 1, 0))
    w2P = jnp.zeros((9, LANE, LANE), f32).at[:, :Cmid, :Cout].set(
        w2t.reshape(9, Cmid, Cout))

    def pad_vec(v, c):
        return jnp.zeros((1, LANE), f32).at[0, :c].set(v.astype(f32))

    g1 = pad_vec(params["bn1_g"], Cmid)
    b1 = pad_vec(params["bn1_b"], Cmid)
    g2 = pad_vec(params["bn2_g"], Cout)
    b2 = pad_vec(params["bn2_b"], Cout)

    kernel = _make_upconv_kernel(chunk=chunk, nb=NB, nbx=NBX, nbh=NBH,
                                 lane=LANE, cin=Cin, wp=Wp, hoff=hoff,
                                 inv_m=1.0 / float(M2), eps=eps)

    inputs = (x1op, x2f, mask, wupP, w1P, w2P, g1, b1, g2, b2)

    out_flat = pl.pallas_call(
        kernel,
        out_shape=jax.ShapeDtypeStruct((Qpad, LANE), f32),
        grid_spec=pltpu.PrefetchScalarGridSpec(
            num_scalar_prefetch=0,
            grid=(1,),                  # demo working set (~5 MiB) fits VMEM
            in_specs=[_full_spec(a.shape) for a in inputs],
            out_specs=_full_spec((Qpad, LANE)),
            scratch_shapes=[
                pltpu.VMEM((Ntot, LANE), f32),   # merged conv1 input (concat)
                pltpu.VMEM((Htot, LANE), f32),   # halo-padded BN1(conv1) buffer
                pltpu.VMEM((Qpad, LANE), f32),   # conv1 accumulator (for BN1)
                pltpu.VMEM((Qpad, LANE), f32),   # conv2 accumulator (for BN2)
            ]),
        compiler_params=pltpu.CompilerParams(
            dimension_semantics=("arbitrary",),
            vmem_limit_bytes=64 * 1024 * 1024),
    )(*inputs)

    # crop halo/junk rows + pad lanes and return NCHW like the PyTorch module.
    out = out_flat[:Q].reshape(N, Hp, Wp, LANE)[:, :H2, :W2, :Cout]
    return jnp.transpose(out, (0, 3, 1, 2))


# ----------------------- pure-JAX reference (for checking) -------------------

def up_conv_reference(x1_nchw, x2_nchw, params, eps=1e-5):
    x1 = jnp.transpose(x1_nchw, (0, 2, 3, 1))
    x2 = jnp.transpose(x2_nchw, (0, 2, 3, 1))
    N, H1, W1, _ = x1.shape
    _, H2, W2, _ = x2.shape
    w, b = params["up_w"], params["up_b"]
    y = jnp.einsum("nijc,cokl->nikjlo", x1, w)        # [N,H1,kh,W1,kw,Cup]
    y = y.reshape(N, 2 * H1, 2 * W1, -1) + b
    DY, DX = H2 - y.shape[1], W2 - y.shape[2]
    y = jnp.pad(y, ((0, 0), (DY // 2, DY - DY // 2),
                    (DX // 2, DX - DX // 2), (0, 0)))
    x = jnp.concatenate([x2, y], axis=-1)

    def conv3x3(x, w):
        n, h, wd, _ = x.shape
        xp = jnp.pad(x, ((0, 0), (1, 1), (1, 1), (0, 0)))
        out = jnp.zeros((n, h, wd, w.shape[0]), jnp.float32)
        for dh in range(3):
            for dw in range(3):
                out = out + jnp.einsum("nhwc,oc->nhwo",
                                       xp[:, dh:dh + h, dw:dw + wd, :],
                                       w[:, :, dh, dw])
        return out

    def bn_relu(x, g, beta):
        m = jnp.mean(x, axis=(0, 1, 2), keepdims=True)
        v = jnp.mean((x - m) ** 2, axis=(0, 1, 2), keepdims=True)
        return jnp.maximum((x - m) * (g / jnp.sqrt(v + eps)) + beta, 0.0)

    h = bn_relu(conv3x3(x, params["conv1_w"]), params["bn1_g"], params["bn1_b"])
    h = bn_relu(conv3x3(h, params["conv2_w"]), params["bn2_g"], params["bn2_b"])
    return jnp.transpose(h, (0, 3, 1, 2))


# ----------------------------------- main ------------------------------------

if __name__ == "__main__":
    C_IN, C_OUT = 4, 4          # up_conv(input=4, output=4)
    N, H1, W1 = 2, 8, 8         # x1 spatial; upsampled to 16x16
    H2, W2 = 16, 16             # x2 spatial (skip connection)

    key = jax.random.PRNGKey(0)
    keys = jax.random.split(key, 8)
    params = {
        "up_w":    0.1 * jax.random.normal(keys[0], (C_IN, C_IN // 2, 2, 2), jnp.float32),
        "up_b":    0.1 * jax.random.normal(keys[1], (C_IN // 2,), jnp.float32),
        "conv1_w": 0.1 * jax.random.normal(keys[2], (C_OUT, C_IN, 3, 3), jnp.float32),
        "conv2_w": 0.1 * jax.random.normal(keys[3], (C_OUT, C_OUT, 3, 3), jnp.float32),
        "bn1_g":   1.0 + 0.01 * jax.random.normal(keys[4], (C_OUT,), jnp.float32),
        "bn1_b":   0.01 * jax.random.normal(keys[5], (C_OUT,), jnp.float32),
        "bn2_g":   1.0 + 0.01 * jax.random.normal(keys[6], (C_OUT,), jnp.float32),
        "bn2_b":   0.01 * jax.random.normal(keys[7], (C_OUT,), jnp.float32),
    }
    x1 = jax.random.normal(jax.random.PRNGKey(1), (N, C_IN, H1, W1), jnp.float32)
    x2 = jax.random.normal(jax.random.PRNGKey(2), (N, C_IN // 2, H2, W2), jnp.float32)

    out = jax.jit(up_conv_forward)(x1, x2, params)
    out = jax.block_until_ready(out)
    assert out.shape == (N, C_OUT, H2, W2), out.shape

    ref = jax.block_until_ready(jax.jit(up_conv_reference)(x1, x2, params))
    err = float(jnp.max(jnp.abs(out - ref)))
    assert err < 5e-2, f"max abs error vs reference: {err}"

    print("KERNEL_OK")
</pallas_src>

<mosaic_0001>
module attributes {stable_mosaic.version = 11 : i64} {
  func.func @kernel(%arg0: i32, %arg1: memref<1024x128xf32, #tpu.memory_space<vmem>>, %arg2: memref<1024x128xf32, #tpu.memory_space<vmem>>, %arg3: memref<768x128xf32, #tpu.memory_space<vmem>>, %arg4: memref<4x128x128xf32, #tpu.memory_space<vmem>>, %arg5: memref<9x128x128xf32, #tpu.memory_space<vmem>>, %arg6: memref<9x128x128xf32, #tpu.memory_space<vmem>>, %arg7: memref<1x128xf32, #tpu.memory_space<vmem>>, %arg8: memref<1x128xf32, #tpu.memory_space<vmem>>, %arg9: memref<1x128xf32, #tpu.memory_space<vmem>>, %arg10: memref<1x128xf32, #tpu.memory_space<vmem>>, %arg11: memref<768x128xf32, #tpu.memory_space<vmem>>, %arg12: memref<1024x128xf32, #tpu.memory_space<vmem>>, %arg13: memref<1280x128xf32, #tpu.memory_space<vmem>>, %arg14: memref<768x128xf32, #tpu.memory_space<vmem>>, %arg15: memref<768x128xf32, #tpu.memory_space<vmem>>) attributes {dimension_semantics = [#tpu.dimension_semantics<arbitrary>], iteration_bounds = array<i64: 1>, scalar_prefetch = 0 : i64, scratch_operands = 4 : i64, tpu.core_type = #tpu.core_type<tc>, window_params = [{pipeline_mode = #tpu.pipeline_mode<synchronous>, transform_indices = @transform_0, window_bounds = array<i64: 1024, 128>}, {pipeline_mode = #tpu.pipeline_mode<synchronous>, transform_indices = @transform_1, window_bounds = array<i64: 1024, 128>}, {pipeline_mode = #tpu.pipeline_mode<synchronous>, transform_indices = @transform_2, window_bounds = array<i64: 768, 128>}, {pipeline_mode = #tpu.pipeline_mode<synchronous>, transform_indices = @transform_3, window_bounds = array<i64: 4, 128, 128>}, {pipeline_mode = #tpu.pipeline_mode<synchronous>, transform_indices = @transform_4, window_bounds = array<i64: 9, 128, 128>}, {pipeline_mode = #tpu.pipeline_mode<synchronous>, transform_indices = @transform_5, window_bounds = array<i64: 9, 128, 128>}, {pipeline_mode = #tpu.pipeline_mode<synchronous>, transform_indices = @transform_6, window_bounds = array<i64: 1, 128>}, {pipeline_mode = #tpu.pipeline_mode<synchronous>, transform_indices = @transform_7, window_bounds = array<i64: 1, 128>}, {pipeline_mode = #tpu.pipeline_mode<synchronous>, transform_indices = @transform_8, window_bounds = array<i64: 1, 128>}, {pipeline_mode = #tpu.pipeline_mode<synchronous>, transform_indices = @transform_9, window_bounds = array<i64: 1, 128>}, {pipeline_mode = #tpu.pipeline_mode<synchronous>, transform_indices = @transform_10, window_bounds = array<i64: 768, 128>}]} {
    %c0_i32 = arith.constant 0 : i32
    %c4_i32 = arith.constant 4 : i32
    %0 = arith.addi %c0_i32, %c4_i32 : i32
    %c1_i32 = arith.constant 1 : i32
    scf.for %arg16 = %c0_i32 to %0 step %c1_i32  : i32 {
      %c256_i32 = arith.constant 256 : i32
      %37 = arith.muli %arg16, %c256_i32 : i32
      %38 = tpu.assume_multiple %37, 256 : i32
      %39 = arith.index_cast %38 : i32 to index
      %c0_32 = arith.constant 0 : index
      %40 = vector.load %arg1[%39, %c0_32] : memref<1024x128xf32, #tpu.memory_space<vmem>>, vector<256x128xf32>
      %41 = arith.index_cast %38 : i32 to index
      %c0_33 = arith.constant 0 : index
      %42 = vector.load %arg2[%41, %c0_33] : memref<1024x128xf32, #tpu.memory_space<vmem>>, vector<256x128xf32>
      %43 = vector.extract_strided_slice %40 {offsets = [0, 4], sizes = [256, 1], strides = [1, 1]} : vector<256x128xf32> to vector<256x1xf32>
      %c0_34 = arith.constant 0 : index
      %c0_35 = arith.constant 0 : index
      %c0_36 = arith.constant 0 : index
      %44 = vector.load %arg4[%c0_34, %c0_35, %c0_36] : memref<4x128x128xf32, #tpu.memory_space<vmem>>, vector<1x128x128xf32>
      %45 = vector.shape_cast %44 : vector<1x128x128xf32> to vector<128x128xf32>
      %cst_37 = arith.constant dense<0.000000e+00> : vector<256x128xf32>
      %46 = tpu.matmul %40, %45, %cst_37 {dimension_numbers = #tpu.dot_dimension_numbers<[1], [0], [0], [1], [0, 0, 1, 1], [], []>} : vector<256x128xf32>, vector<128x128xf32>, vector<256x128xf32> -> vector<256x128xf32>
      %47 = vector.broadcast %43 : vector<256x1xf32> to vector<256x128xf32>
      %48 = arith.mulf %47, %46 : vector<256x128xf32>
      %49 = arith.addf %42, %48 : vector<256x128xf32>
      %50 = vector.extract_strided_slice %40 {offsets = [0, 5], sizes = [256, 1], strides = [1, 1]} : vector<256x128xf32> to vector<256x1xf32>
      %c1 = arith.constant 1 : index
      %c0_38 = arith.constant 0 : index
      %c0_39 = arith.constant 0 : index
      %51 = vector.load %arg4[%c1, %c0_38, %c0_39] : memref<4x128x128xf32, #tpu.memory_space<vmem>>, vector<1x128x128xf32>
      %52 = vector.shape_cast %51 : vector<1x128x128xf32> to vector<128x128xf32>
      %cst_40 = arith.constant dense<0.000000e+00> : vector<256x128xf32>
      %53 = tpu.matmul %40, %52, %cst_40 {dimension_numbers = #tpu.dot_dimension_numbers<[1], [0], [0], [1], [0, 0, 1, 1], [], []>} : vector<256x128xf32>, vector<128x128xf32>, vector<256x128xf32> -> vector<256x128xf32>
      %54 = vector.broadcast %50 : vector<256x1xf32> to vector<256x128xf32>
      %55 = arith.mulf %54, %53 : vector<256x128xf32>
      %56 = arith.addf %49, %55 : vector<256x128xf32>
      %57 = vector.extract_strided_slice %40 {offsets = [0, 6], sizes = [256, 1], strides = [1, 1]} : vector<256x128xf32> to vector<256x1xf32>
      %c2 = arith.constant 2 : index
      %c0_41 = arith.constant 0 : index
      %c0_42 = arith.constant 0 : index
      %58 = vector.load %arg4[%c2, %c0_41, %c0_42] : memref<4x128x128xf32, #tpu.memory_space<vmem>>, vector<1x128x128xf32>
      %59 = vector.shape_cast %58 : vector<1x128x128xf32> to vector<128x128xf32>
      %cst_43 = arith.constant dense<0.000000e+00> : vector<256x128xf32>
      %60 = tpu.matmul %40, %59, %cst_43 {dimension_numbers = #tpu.dot_dimension_numbers<[1], [0], [0], [1], [0, 0, 1, 1], [], []>} : vector<256x128xf32>, vector<128x128xf32>, vector<256x128xf32> -> vector<256x128xf32>
      %61 = vector.broadcast %57 : vector<256x1xf32> to vector<256x128xf32>
      %62 = arith.mulf %61, %60 : vector<256x128xf32>
      %63 = arith.addf %56, %62 : vector<256x128xf32>
      %64 = vector.extract_strided_slice %40 {offsets = [0, 7], sizes = [256, 1], strides = [1, 1]} : vector<256x128xf32> to vector<256x1xf32>
      %c3 = arith.constant 3 : index
      %c0_44 = arith.constant 0 : index
      %c0_45 = arith.constant 0 : index
      %65 = vector.load %arg4[%c3, %c0_44, %c0_45] : memref<4x128x128xf32, #tpu.memory_space<vmem>>, vector<1x128x128xf32>
      %66 = vector.shape_cast %65 : vector<1x128x128xf32> to vector<128x128xf32>
      %cst_46 = arith.constant dense<0.000000e+00> : vector<256x128xf32>
      %67 = tpu.matmul %40, %66, %cst_46 {dimension_numbers = #tpu.dot_dimension_numbers<[1], [0], [0], [1], [0, 0, 1, 1], [], []>} : vector<256x128xf32>, vector<128x128xf32>, vector<256x128xf32> -> vector<256x128xf32>
      %68 = vector.broadcast %64 : vector<256x1xf32> to vector<256x128xf32>
      %69 = arith.mulf %68, %67 : vector<256x128xf32>
      %70 = arith.addf %63, %69 : vector<256x128xf32>
      %71 = arith.index_cast %38 : i32 to index
      %c0_47 = arith.constant 0 : index
      %72 = vector.load %arg12[%71, %c0_47] : memref<1024x128xf32, #tpu.memory_space<vmem>>, vector<256x128xf32>
      tpu.vector_store %arg12[%71, %c0_47], %70 {strides = array<i32>} : memref<1024x128xf32, #tpu.memory_space<vmem>>, vector<256x128xf32>,
    }
    %c4_i32_0 = arith.constant 4 : i32
    %cst = arith.constant 0.000000e+00 : f32
    %1 = vector.broadcast %cst : f32 to vector<1x128xf32>
    %c0_i32_1 = arith.constant 0 : i32
    %c3_i32 = arith.constant 3 : i32
    %2 = arith.addi %c0_i32_1, %c3_i32 : i32
    %c1_i32_2 = arith.constant 1 : i32
    %3:2 = scf.for %arg16 = %c0_i32_1 to %2 step %c1_i32_2 iter_args(%arg17 = %1, %arg18 = %1) -> (vector<1x128xf32>, vector<1x128xf32>)  : i32 {
      %c256_i32 = arith.constant 256 : i32
      %37 = arith.muli %arg16, %c256_i32 : i32
      %38 = tpu.assume_multiple %37, 256 : i32
      %c0_i32_32 = arith.constant 0 : i32
      %39 = arith.addi %38, %c0_i32_32 : i32
      %40 = arith.index_cast %39 : i32 to index
      %c0_33 = arith.constant 0 : index
      %41 = vector.load %arg12[%40, %c0_33] : memref<1024x128xf32, #tpu.memory_space<vmem>>, vector<256x128xf32>
      %c0_34 = arith.constant 0 : index
      %c0_35 = arith.constant 0 : index
      %c0_36 = arith.constant 0 : index
      %42 = vector.load %arg5[%c0_34, %c0_35, %c0_36] : memref<9x128x128xf32, #tpu.memory_space<vmem>>, vector<1x128x128xf32>
      %43 = vector.shape_cast %42 : vector<1x128x128xf32> to vector<128x128xf32>
      %cst_37 = arith.constant dense<0.000000e+00> : vector<256x128xf32>
      %44 = tpu.matmul %41, %43, %cst_37 {dimension_numbers = #tpu.dot_dimension_numbers<[1], [0], [0], [1], [0, 0, 1, 1], [], []>} : vector<256x128xf32>, vector<128x128xf32>, vector<256x128xf32> -> vector<256x128xf32>
      %c1_i32_38 = arith.constant 1 : i32
      %45 = arith.addi %38, %c1_i32_38 : i32
      %46 = arith.index_cast %45 : i32 to index
      %c0_39 = arith.constant 0 : index
      %47 = vector.load %arg12[%46, %c0_39] : memref<1024x128xf32, #tpu.memory_space<vmem>>, vector<256x128xf32>
      %c1 = arith.constant 1 : index
      %c0_40 = arith.constant 0 : index
      %c0_41 = arith.constant 0 : index
      %48 = vector.load %arg5[%c1, %c0_40, %c0_41] : memref<9x128x128xf32, #tpu.memory_space<vmem>>, vector<1x128x128xf32>
      %49 = vector.shape_cast %48 : vector<1x128x128xf32> to vector<128x128xf32>
      %cst_42 = arith.constant dense<0.000000e+00> : vector<256x128xf32>
      %50 = tpu.matmul %47, %49, %cst_42 {dimension_numbers = #tpu.dot_dimension_numbers<[1], [0], [0], [1], [0, 0, 1, 1], [], []>} : vector<256x128xf32>, vector<128x128xf32>, vector<256x128xf32> -> vector<256x128xf32>
      %c2_i32 = arith.constant 2 : i32
      %51 = arith.addi %38, %c2_i32 : i32
      %52 = arith.index_cast %51 : i32 to index
      %c0_43 = arith.constant 0 : index
      %53 = vector.load %arg12[%52, %c0_43] : memref<1024x128xf32, #tpu.memory_space<vmem>>, vector<256x128xf32>
      %c2 = arith.constant 2 : index
      %c0_44 = arith.constant 0 : index
      %c0_45 = arith.constant 0 : index
      %54 = vector.load %arg5[%c2, %c0_44, %c0_45] : memref<9x128x128xf32, #tpu.memory_space<vmem>>, vector<1x128x128xf32>
      %55 = vector.shape_cast %54 : vector<1x128x128xf32> to vector<128x128xf32>
      %cst_46 = arith.constant dense<0.000000e+00> : vector<256x128xf32>
      %56 = tpu.matmul %53, %55, %cst_46 {dimension_numbers = #tpu.dot_dimension_numbers<[1], [0], [0], [1], [0, 0, 1, 1], [], []>} : vector<256x128xf32>, vector<128x128xf32>, vector<256x128xf32> -> vector<256x128xf32>
      %57 = arith.addf %44, %56 : vector<256x128xf32>
      %c18_i32 = arith.constant 18 : i32
      %58 = arith.addi %38, %c18_i32 : i32
      %59 = arith.index_cast %58 : i32 to index
      %c0_47 = arith.constant 0 : index
      %60 = vector.load %arg12[%59, %c0_47] : memref<1024x128xf32, #tpu.memory_space<vmem>>, vector<256x128xf32>
      %c3 = arith.constant 3 : index
      %c0_48 = arith.constant 0 : index
      %c0_49 = arith.constant 0 : index
      %61 = vector.load %arg5[%c3, %c0_48, %c0_49] : memref<9x128x128xf32, #tpu.memory_space<vmem>>, vector<1x128x128xf32>
      %62 = vector.shape_cast %61 : vector<1x128x128xf32> to vector<128x128xf32>
      %cst_50 = arith.constant dense<0.000000e+00> : vector<256x128xf32>
      %63 = tpu.matmul %60, %62, %cst_50 {dimension_numbers = #tpu.dot_dimension_numbers<[1], [0], [0], [1], [0, 0, 1, 1], [], []>} : vector<256x128xf32>, vector<128x128xf32>, vector<256x128xf32> -> vector<256x128xf32>
      %64 = arith.addf %50, %63 : vector<256x128xf32>
      %c19_i32 = arith.constant 19 : i32
      %65 = arith.addi %38, %c19_i32 : i32
      %66 = arith.index_cast %65 : i32 to index
      %c0_51 = arith.constant 0 : index
      %67 = vector.load %arg12[%66, %c0_51] : memref<1024x128xf32, #tpu.memory_space<vmem>>, vector<256x128xf32>
      %c4 = arith.constant 4 : index
      %c0_52 = arith.constant 0 : index
      %c0_53 = arith.constant 0 : index
      %68 = vector.load %arg5[%c4, %c0_52, %c0_53] : memref<9x128x128xf32, #tpu.memory_space<vmem>>, vector<1x128x128xf32>
      %69 = vector.shape_cast %68 : vector<1x128x128xf32> to vector<128x128xf32>
      %cst_54 = arith.constant dense<0.000000e+00> : vector<256x128xf32>
      %70 = tpu.matmul %67, %69, %cst_54 {dimension_numbers = #tpu.dot_dimension_numbers<[1], [0], [0], [1], [0, 0, 1, 1], [], []>} : vector<256x128xf32>, vector<128x128xf32>, vector<256x128xf32> -> vector<256x128xf32>
      %71 = arith.addf %57, %70 : vector<256x128xf32>
      %c20_i32 = arith.constant 20 : i32
      %72 = arith.addi %38, %c20_i32 : i32
      %73 = arith.index_cast %72 : i32 to index
      %c0_55 = arith.constant 0 : index
      %74 = vector.load %arg12[%73, %c0_55] : memref<1024x128xf32, #tpu.memory_space<vmem>>, vector<256x128xf32>
      %c5 = arith.constant 5 : index
      %c0_56 = arith.constant 0 : index
      %c0_57 = arith.constant 0 : index
      %75 = vector.load %arg5[%c5, %c0_56, %c0_57] : memref<9x128x128xf32, #tpu.memory_space<vmem>>, vector<1x128x128xf32>
      %76 = vector.shape_cast %75 : vector<1x128x128xf32> to vector<128x128xf32>
      %cst_58 = arith.constant dense<0.000000e+00> : vector<256x128xf32>
      %77 = tpu.matmul %74, %76, %cst_58 {dimension_numbers = #tpu.dot_dimension_numbers<[1], [0], [0], [1], [0, 0, 1, 1], [], []>} : vector<256x128xf32>, vector<128x128xf32>, vector<256x128xf32> -> vector<256x128xf32>
      %78 = arith.addf %64, %77 : vector<256x128xf32>
      %c36_i32 = arith.constant 36 : i32
      %79 = arith.addi %38, %c36_i32 : i32
      %80 = arith.index_cast %79 : i32 to index
      %c0_59 = arith.constant 0 : index
      %81 = vector.load %arg12[%80, %c0_59] : memref<1024x128xf32, #tpu.memory_space<vmem>>, vector<256x128xf32>
      %c6 = arith.constant 6 : index
      %c0_60 = arith.constant 0 : index
      %c0_61 = arith.constant 0 : index
      %82 = vector.load %arg5[%c6, %c0_60, %c0_61] : memref<9x128x128xf32, #tpu.memory_space<vmem>>, vector<1x128x128xf32>
      %83 = vector.shape_cast %82 : vector<1x128x128xf32> to vector<128x128xf32>
      %cst_62 = arith.constant dense<0.000000e+00> : vector<256x128xf32>
      %84 = tpu.matmul %81, %83, %cst_62 {dimension_numbers = #tpu.dot_dimension_numbers<[1], [0], [0], [1], [0, 0, 1, 1], [], []>} : vector<256x128xf32>, vector<128x128xf32>, vector<256x128xf32> -> vector<256x128xf32>
      %85 = arith.addf %71, %84 : vector<256x128xf32>
      %c37_i32 = arith.constant 37 : i32
      %86 = arith.addi %38, %c37_i32 : i32
      %87 = arith.index_cast %86 : i32 to index
      %c0_63 = arith.constant 0 : index
      %88 = vector.load %arg12[%87, %c0_63] : memref<1024x128xf32, #tpu.memory_space<vmem>>, vector<256x128xf32>
      %c7 = arith.constant 7 : index
      %c0_64 = arith.constant 0 : index
      %c0_65 = arith.constant 0 : index
      %89 = vector.load %arg5[%c7, %c0_64, %c0_65] : memref<9x128x128xf32, #tpu.memory_space<vmem>>, vector<1x128x128xf32>
      %90 = vector.shape_cast %89 : vector<1x128x128xf32> to vector<128x128xf32>
      %cst_66 = arith.constant dense<0.000000e+00> : vector<256x128xf32>
      %91 = tpu.matmul %88, %90, %cst_66 {dimension_numbers = #tpu.dot_dimension_numbers<[1], [0], [0], [1], [0, 0, 1, 1], [], []>} : vector<256x128xf32>, vector<128x128xf32>, vector<256x128xf32> -> vector<256x128xf32>
      %92 = arith.addf %78, %91 : vector<256x128xf32>
      %c38_i32 = arith.constant 38 : i32
      %93 = arith.addi %38, %c38_i32 : i32
      %94 = arith.index_cast %93 : i32 to index
      %c0_67 = arith.constant 0 : index
      %95 = vector.load %arg12[%94, %c0_67] : memref<1024x128xf32, #tpu.memory_space<vmem>>, vector<256x128xf32>
      %c8 = arith.constant 8 : index
      %c0_68 = arith.constant 0 : index
      %c0_69 = arith.constant 0 : index
      %96 = vector.load %arg5[%c8, %c0_68, %c0_69] : memref<9x128x128xf32, #tpu.memory_space<vmem>>, vector<1x128x128xf32>
      %97 = vector.shape_cast %96 : vector<1x128x128xf32> to vector<128x128xf32>
      %cst_70 = arith.constant dense<0.000000e+00> : vector<256x128xf32>
      %98 = tpu.matmul %95, %97, %cst_70 {dimension_numbers = #tpu.dot_dimension_numbers<[1], [0], [0], [1], [0, 0, 1, 1], [], []>} : vector<256x128xf32>, vector<128x128xf32>, vector<256x128xf32> -> vector<256x128xf32>
      %99 = arith.addf %85, %98 : vector<256x128xf32>
      %100 = arith.addf %99, %92 : vector<256x128xf32>
      %101 = arith.index_cast %38 : i32 to index
      %c0_71 = arith.constant 0 : index
      %102 = vector.load %arg14[%101, %c0_71] : memref<768x128xf32, #tpu.memory_space<vmem>>, vector<256x128xf32>
      tpu.vector_store %arg14[%101, %c0_71], %100 {strides = array<i32>} : memref<768x128xf32, #tpu.memory_space<vmem>>, vector<256x128xf32>,
      %103 = arith.index_cast %38 : i32 to index
      %c0_72 = arith.constant 0 : index
      %104 = vector.load %arg3[%103, %c0_72] : memref<768x128xf32, #tpu.memory_space<vmem>>, vector<256x128xf32>
      %105 = arith.mulf %100, %104 : vector<256x128xf32>
      %cst_73 = arith.constant dense<0.000000e+00> : vector<128xf32>
      %106 = vector.multi_reduction <add>, %105, %cst_73 [0] : vector<256x128xf32> to vector<128xf32>
      %107 = vector.shape_cast %106 : vector<128xf32> to vector<1x128xf32>
      %108 = arith.addf %arg17, %107 : vector<1x128xf32>
      %109 = arith.mulf %105, %105 : vector<256x128xf32>
      %cst_74 = arith.constant dense<0.000000e+00> : vector<128xf32>
      %110 = vector.multi_reduction <add>, %109, %cst_74 [0] : vector<256x128xf32> to vector<128xf32>
      %111 = vector.shape_cast %110 : vector<128xf32> to vector<1x128xf32>
      %112 = arith.addf %arg18, %111 : vector<1x128xf32>
      scf.yield %108, %112 : vector<1x128xf32>, vector<1x128xf32>
    }
    %c3_i32_3 = arith.constant 3 : i32
    %cst_4 = arith.constant 0.001953125 : f32
    %4 = vector.broadcast %cst_4 : f32 to vector<1x128xf32>
    %5 = arith.mulf %3#0, %4 : vector<1x128xf32>
    %c0 = arith.constant 0 : index
    %c0_5 = arith.constant 0 : index
    %6 = vector.load %arg7[%c0, %c0_5] : memref<1x128xf32, #tpu.memory_space<vmem>>, vector<1x128xf32>
    %cst_6 = arith.constant 0.001953125 : f32
    %7 = vector.broadcast %cst_6 : f32 to vector<1x128xf32>
    %8 = arith.mulf %3#1, %7 : vector<1x128xf32>
    %9 = arith.mulf %5, %5 : vector<1x128xf32>
    %10 = arith.subf %8, %9 : vector<1x128xf32>
    %cst_7 = arith.constant 9.99999974E-6 : f32
    %11 = vector.broadcast %cst_7 : f32 to vector<1x128xf32>
    %12 = arith.addf %10, %11 : vector<1x128xf32>
    %13 = math.rsqrt %12 : vector<1x128xf32>
    %14 = arith.mulf %6, %13 : vector<1x128xf32>
    %c0_8 = arith.constant 0 : index
    %c0_9 = arith.constant 0 : index
    %15 = vector.load %arg8[%c0_8, %c0_9] : memref<1x128xf32, #tpu.memory_space<vmem>>, vector<1x128xf32>
    %16 = arith.mulf %5, %14 : vector<1x128xf32>
    %17 = arith.subf %15, %16 : vector<1x128xf32>
    %c0_i32_10 = arith.constant 0 : i32
    %c5_i32 = arith.constant 5 : i32
    %18 = arith.addi %c0_i32_10, %c5_i32 : i32
    %c1_i32_11 = arith.constant 1 : i32
    scf.for %arg16 = %c0_i32_10 to %18 step %c1_i32_11  : i32 {
      %c256_i32 = arith.constant 256 : i32
      %37 = arith.muli %arg16, %c256_i32 : i32
      %38 = tpu.assume_multiple %37, 256 : i32
      %cst_32 = arith.constant 0.000000e+00 : f32
      %39 = vector.broadcast %cst_32 : f32 to vector<256x128xf32>
      %40 = arith.index_cast %38 : i32 to index
      %c0_33 = arith.constant 0 : index
      %41 = vector.load %arg13[%40, %c0_33] : memref<1280x128xf32, #tpu.memory_space<vmem>>, vector<256x128xf32>
      tpu.vector_store %arg13[%40, %c0_33], %39 {strides = array<i32>} : memref<1280x128xf32, #tpu.memory_space<vmem>>, vector<256x128xf32>,
    }
    %c5_i32_12 = arith.constant 5 : i32
    %c0_i32_13 = arith.constant 0 : i32
    %c3_i32_14 = arith.constant 3 : i32
    %19 = arith.addi %c0_i32_13, %c3_i32_14 : i32
    %c1_i32_15 = arith.constant 1 : i32
    scf.for %arg16 = %c0_i32_13 to %19 step %c1_i32_15  : i32 {
      %c256_i32 = arith.constant 256 : i32
      %37 = arith.muli %arg16, %c256_i32 : i32
      %38 = tpu.assume_multiple %37, 256 : i32
      %39 = arith.index_cast %38 : i32 to index
      %c0_32 = arith.constant 0 : index
      %40 = vector.load %arg14[%39, %c0_32] : memref<768x128xf32, #tpu.memory_space<vmem>>, vector<256x128xf32>
      %41 = vector.broadcast %14 : vector<1x128xf32> to vector<256x128xf32>
      %42 = arith.mulf %40, %41 : vector<256x128xf32>
      %43 = vector.broadcast %17 : vector<1x128xf32> to vector<256x128xf32>
      %44 = arith.addf %42, %43 : vector<256x128xf32>
      %cst_33 = arith.constant 0.000000e+00 : f32
      %45 = vector.broadcast %cst_33 : f32 to vector<256x128xf32>
      %46 = arith.maximumf %44, %45 : vector<256x128xf32>
      %47 = arith.index_cast %38 : i32 to index
      %c0_34 = arith.constant 0 : index
      %48 = vector.load %arg3[%47, %c0_34] : memref<768x128xf32, #tpu.memory_space<vmem>>, vector<256x128xf32>
      %49 = arith.mulf %46, %48 : vector<256x128xf32>
      %c256_i32_35 = arith.constant 256 : i32
      %50 = arith.addi %38, %c256_i32_35 : i32
      %51 = arith.index_cast %50 : i32 to index
      %c0_36 = arith.constant 0 : index
      %52 = vector.load %arg13[%51, %c0_36] : memref<1280x128xf32, #tpu.memory_space<vmem>>, vector<256x128xf32>
      tpu.vector_store %arg13[%51, %c0_36], %49 {strides = array<i32>} : memref<1280x128xf32, #tpu.memory_space<vmem>>, vector<256x128xf32>,
    }
    %c3_i32_16 = arith.constant 3 : i32
    %c0_i32_17 = arith.constant 0 : i32
    %c3_i32_18 = arith.constant 3 : i32
    %20 = arith.addi %c0_i32_17, %c3_i32_18 : i32
    %c1_i32_19 = arith.constant 1 : i32
    %21:2 = scf.for %arg16 = %c0_i32_17 to %20 step %c1_i32_19 iter_args(%arg17 = %1, %arg18 = %1) -> (vector<1x128xf32>, vector<1x128xf32>)  : i32 {
      %c256_i32 = arith.constant 256 : i32
      %37 = arith.muli %arg16, %c256_i32 : i32
      %38 = tpu.assume_multiple %37, 256 : i32
      %c237_i32 = arith.constant 237 : i32
      %39 = arith.addi %38, %c237_i32 : i32
      %c0_i32_32 = arith.constant 0 : i32
      %40 = arith.addi %39, %c0_i32_32 : i32
      %41 = arith.index_cast %40 : i32 to index
      %c0_33 = arith.constant 0 : index
      %42 = vector.load %arg13[%41, %c0_33] : memref<1280x128xf32, #tpu.memory_space<vmem>>, vector<256x128xf32>
      %c0_34 = arith.constant 0 : index
      %c0_35 = arith.constant 0 : index
      %c0_36 = arith.constant 0 : index
      %43 = vector.load %arg6[%c0_34, %c0_35, %c0_36] : memref<9x128x128xf32, #tpu.memory_space<vmem>>, vector<1x128x128xf32>
      %44 = vector.shape_cast %43 : vector<1x128x128xf32> to vector<128x128xf32>
      %cst_37 = arith.constant dense<0.000000e+00> : vector<256x128xf32>
      %45 = tpu.matmul %42, %44, %cst_37 {dimension_numbers = #tpu.dot_dimension_numbers<[1], [0], [0], [1], [0, 0, 1, 1], [], []>} : vector<256x128xf32>, vector<128x128xf32>, vector<256x128xf32> -> vector<256x128xf32>
      %c1_i32_38 = arith.constant 1 : i32
      %46 = arith.addi %39, %c1_i32_38 : i32
      %47 = arith.index_cast %46 : i32 to index
      %c0_39 = arith.constant 0 : index
      %48 = vector.load %arg13[%47, %c0_39] : memref<1280x128xf32, #tpu.memory_space<vmem>>, vector<256x128xf32>
      %c1 = arith.constant 1 : index
      %c0_40 = arith.constant 0 : index
      %c0_41 = arith.constant 0 : index
      %49 = vector.load %arg6[%c1, %c0_40, %c0_41] : memref<9x128x128xf32, #tpu.memory_space<vmem>>, vector<1x128x128xf32>
      %50 = vector.shape_cast %49 : vector<1x128x128xf32> to vector<128x128xf32>
      %cst_42 = arith.constant dense<0.000000e+00> : vector<256x128xf32>
      %51 = tpu.matmul %48, %50, %cst_42 {dimension_numbers = #tpu.dot_dimension_numbers<[1], [0], [0], [1], [0, 0, 1, 1], [], []>} : vector<256x128xf32>, vector<128x128xf32>, vector<256x128xf32> -> vector<256x128xf32>
      %c2_i32 = arith.constant 2 : i32
      %52 = arith.addi %39, %c2_i32 : i32
      %53 = arith.index_cast %52 : i32 to index
      %c0_43 = arith.constant 0 : index
      %54 = vector.load %arg13[%53, %c0_43] : memref<1280x128xf32, #tpu.memory_space<vmem>>, vector<256x128xf32>
      %c2 = arith.constant 2 : index
      %c0_44 = arith.constant 0 : index
      %c0_45 = arith.constant 0 : index
      %55 = vector.load %arg6[%c2, %c0_44, %c0_45] : memref<9x128x128xf32, #tpu.memory_space<vmem>>, vector<1x128x128xf32>
      %56 = vector.shape_cast %55 : vector<1x128x128xf32> to vector<128x128xf32>
      %cst_46 = arith.constant dense<0.000000e+00> : vector<256x128xf32>
      %57 = tpu.matmul %54, %56, %cst_46 {dimension_numbers = #tpu.dot_dimension_numbers<[1], [0], [0], [1], [0, 0, 1, 1], [], []>} : vector<256x128xf32>, vector<128x128xf32>, vector<256x128xf32> -> vector<256x128xf32>
      %58 = arith.addf %45, %57 : vector<256x128xf32>
      %c18_i32 = arith.constant 18 : i32
      %59 = arith.addi %39, %c18_i32 : i32
      %60 = arith.index_cast %59 : i32 to index
      %c0_47 = arith.constant 0 : index
      %61 = vector.load %arg13[%60, %c0_47] : memref<1280x128xf32, #tpu.memory_space<vmem>>, vector<256x128xf32>
      %c3 = arith.constant 3 : index
      %c0_48 = arith.constant 0 : index
      %c0_49 = arith.constant 0 : index
      %62 = vector.load %arg6[%c3, %c0_48, %c0_49] : memref<9x128x128xf32, #tpu.memory_space<vmem>>, vector<1x128x128xf32>
      %63 = vector.shape_cast %62 : vector<1x128x128xf32> to vector<128x128xf32>
      %cst_50 = arith.constant dense<0.000000e+00> : vector<256x128xf32>
      %64 = tpu.matmul %61, %63, %cst_50 {dimension_numbers = #tpu.dot_dimension_numbers<[1], [0], [0], [1], [0, 0, 1, 1], [], []>} : vector<256x128xf32>, vector<128x128xf32>, vector<256x128xf32> -> vector<256x128xf32>
      %65 = arith.addf %51, %64 : vector<256x128xf32>
      %c19_i32 = arith.constant 19 : i32
      %66 = arith.addi %39, %c19_i32 : i32
      %67 = arith.index_cast %66 : i32 to index
      %c0_51 = arith.constant 0 : index
      %68 = vector.load %arg13[%67, %c0_51] : memref<1280x128xf32, #tpu.memory_space<vmem>>, vector<256x128xf32>
      %c4 = arith.constant 4 : index
      %c0_52 = arith.constant 0 : index
      %c0_53 = arith.constant 0 : index
      %69 = vector.load %arg6[%c4, %c0_52, %c0_53] : memref<9x128x128xf32, #tpu.memory_space<vmem>>, vector<1x128x128xf32>
      %70 = vector.shape_cast %69 : vector<1x128x128xf32> to vector<128x128xf32>
      %cst_54 = arith.constant dense<0.000000e+00> : vector<256x128xf32>
      %71 = tpu.matmul %68, %70, %cst_54 {dimension_numbers = #tpu.dot_dimension_numbers<[1], [0], [0], [1], [0, 0, 1, 1], [], []>} : vector<256x128xf32>, vector<128x128xf32>, vector<256x128xf32> -> vector<256x128xf32>
      %72 = arith.addf %58, %71 : vector<256x128xf32>
      %c20_i32 = arith.constant 20 : i32
      %73 = arith.addi %39, %c20_i32 : i32
      %74 = arith.index_cast %73 : i32 to index
      %c0_55 = arith.constant 0 : index
      %75 = vector.load %arg13[%74, %c0_55] : memref<1280x128xf32, #tpu.memory_space<vmem>>, vector<256x128xf32>
      %c5 = arith.constant 5 : index
      %c0_56 = arith.constant 0 : index
      %c0_57 = arith.constant 0 : index
      %76 = vector.load %arg6[%c5, %c0_56, %c0_57] : memref<9x128x128xf32, #tpu.memory_space<vmem>>, vector<1x128x128xf32>
      %77 = vector.shape_cast %76 : vector<1x128x128xf32> to vector<128x128xf32>
      %cst_58 = arith.constant dense<0.000000e+00> : vector<256x128xf32>
      %78 = tpu.matmul %75, %77, %cst_58 {dimension_numbers = #tpu.dot_dimension_numbers<[1], [0], [0], [1], [0, 0, 1, 1], [], []>} : vector<256x128xf32>, vector<128x128xf32>, vector<256x128xf32> -> vector<256x128xf32>
      %79 = arith.addf %65, %78 : vector<256x128xf32>
      %c36_i32 = arith.constant 36 : i32
      %80 = arith.addi %39, %c36_i32 : i32
      %81 = arith.index_cast %80 : i32 to index
      %c0_59 = arith.constant 0 : index
      %82 = vector.load %arg13[%81, %c0_59] : memref<1280x128xf32, #tpu.memory_space<vmem>>, vector<256x128xf32>
      %c6 = arith.constant 6 : index
      %c0_60 = arith.constant 0 : index
      %c0_61 = arith.constant 0 : index
      %83 = vector.load %arg6[%c6, %c0_60, %c0_61] : memref<9x128x128xf32, #tpu.memory_space<vmem>>, vector<1x128x128xf32>
      %84 = vector.shape_cast %83 : vector<1x128x128xf32> to vector<128x128xf32>
      %cst_62 = arith.constant dense<0.000000e+00> : vector<256x128xf32>
      %85 = tpu.matmul %82, %84, %cst_62 {dimension_numbers = #tpu.dot_dimension_numbers<[1], [0], [0], [1], [0, 0, 1, 1], [], []>} : vector<256x128xf32>, vector<128x128xf32>, vector<256x128xf32> -> vector<256x128xf32>
      %86 = arith.addf %72, %85 : vector<256x128xf32>
      %c37_i32 = arith.constant 37 : i32
      %87 = arith.addi %39, %c37_i32 : i32
      %88 = arith.index_cast %87 : i32 to index
      %c0_63 = arith.constant 0 : index
      %89 = vector.load %arg13[%88, %c0_63] : memref<1280x128xf32, #tpu.memory_space<vmem>>, vector<256x128xf32>
      %c7 = arith.constant 7 : index
      %c0_64 = arith.constant 0 : index
      %c0_65 = arith.constant 0 : index
      %90 = vector.load %arg6[%c7, %c0_64, %c0_65] : memref<9x128x128xf32, #tpu.memory_space<vmem>>, vector<1x128x128xf32>
      %91 = vector.shape_cast %90 : vector<1x128x128xf32> to vector<128x128xf32>
      %cst_66 = arith.constant dense<0.000000e+00> : vector<256x128xf32>
      %92 = tpu.matmul %89, %91, %cst_66 {dimension_numbers = #tpu.dot_dimension_numbers<[1], [0], [0], [1], [0, 0, 1, 1], [], []>} : vector<256x128xf32>, vector<128x128xf32>, vector<256x128xf32> -> vector<256x128xf32>
      %93 = arith.addf %79, %92 : vector<256x128xf32>
      %c38_i32 = arith.constant 38 : i32
      %94 = arith.addi %39, %c38_i32 : i32
      %95 = arith.index_cast %94 : i32 to index
      %c0_67 = arith.constant 0 : index
      %96 = vector.load %arg13[%95, %c0_67] : memref<1280x128xf32, #tpu.memory_space<vmem>>, vector<256x128xf32>
      %c8 = arith.constant 8 : index
      %c0_68 = arith.constant 0 : index
      %c0_69 = arith.constant 0 : index
      %97 = vector.load %arg6[%c8, %c0_68, %c0_69] : memref<9x128x128xf32, #tpu.memory_space<vmem>>, vector<1x128x128xf32>
      %98 = vector.shape_cast %97 : vector<1x128x128xf32> to vector<128x128xf32>
      %cst_70 = arith.constant dense<0.000000e+00> : vector<256x128xf32>
      %99 = tpu.matmul %96, %98, %cst_70 {dimension_numbers = #tpu.dot_dimension_numbers<[1], [0], [0], [1], [0, 0, 1, 1], [], []>} : vector<256x128xf32>, vector<128x128xf32>, vector<256x128xf32> -> vector<256x128xf32>
      %100 = arith.addf %86, %99 : vector<256x128xf32>
      %101 = arith.addf %100, %93 : vector<256x128xf32>
      %102 = arith.index_cast %38 : i32 to index
      %c0_71 = arith.constant 0 : index
      %103 = vector.load %arg15[%102, %c0_71] : memref<768x128xf32, #tpu.memory_space<vmem>>, vector<256x128xf32>
      tpu.vector_store %arg15[%102, %c0_71], %101 {strides = array<i32>} : memref<768x128xf32, #tpu.memory_space<vmem>>, vector<256x128xf32>,
      %104 = arith.index_cast %38 : i32 to index
      %c0_72 = arith.constant 0 : index
      %105 = vector.load %arg3[%104, %c0_72] : memref<768x128xf32, #tpu.memory_space<vmem>>, vector<256x128xf32>
      %106 = arith.mulf %101, %105 : vector<256x128xf32>
      %cst_73 = arith.constant dense<0.000000e+00> : vector<128xf32>
      %107 = vector.multi_reduction <add>, %106, %cst_73 [0] : vector<256x128xf32> to vector<128xf32>
      %108 = vector.shape_cast %107 : vector<128xf32> to vector<1x128xf32>
      %109 = arith.addf %arg17, %108 : vector<1x128xf32>
      %110 = arith.mulf %106, %106 : vector<256x128xf32>
      %cst_74 = arith.constant dense<0.000000e+00> : vector<128xf32>
      %111 = vector.multi_reduction <add>, %110, %cst_74 [0] : vector<256x128xf32> to vector<128xf32>
      %112 = vector.shape_cast %111 : vector<128xf32> to vector<1x128xf32>
      %113 = arith.addf %arg18, %112 : vector<1x128xf32>
      scf.yield %109, %113 : vector<1x128xf32>, vector<1x128xf32>
    }
    %c3_i32_20 = arith.constant 3 : i32
    %cst_21 = arith.constant 0.001953125 : f32
    %22 = vector.broadcast %cst_21 : f32 to vector<1x128xf32>
    %23 = arith.mulf %21#0, %22 : vector<1x128xf32>
    %c0_22 = arith.constant 0 : index
    %c0_23 = arith.constant 0 : index
    %24 = vector.load %arg9[%c0_22, %c0_23] : memref<1x128xf32, #tpu.memory_space<vmem>>, vector<1x128xf32>
    %cst_24 = arith.constant 0.001953125 : f32
    %25 = vector.broadcast %cst_24 : f32 to vector<1x128xf32>
    %26 = arith.mulf %21#1, %25 : vector<1x128xf32>
    %27 = arith.mulf %23, %23 : vector<1x128xf32>
    %28 = arith.subf %26, %27 : vector<1x128xf32>
    %cst_25 = arith.constant 9.99999974E-6 : f32
    %29 = vector.broadcast %cst_25 : f32 to vector<1x128xf32>
    %30 = arith.addf %28, %29 : vector<1x128xf32>
    %31 = math.rsqrt %30 : vector<1x128xf32>
    %32 = arith.mulf %24, %31 : vector<1x128xf32>
    %c0_26 = arith.constant 0 : index
    %c0_27 = arith.constant 0 : index
    %33 = vector.load %arg10[%c0_26, %c0_27] : memref<1x128xf32, #tpu.memory_space<vmem>>, vector<1x128xf32>
    %34 = arith.mulf %23, %32 : vector<1x128xf32>
    %35 = arith.subf %33, %34 : vector<1x128xf32>
    %c0_i32_28 = arith.constant 0 : i32
    %c3_i32_29 = arith.constant 3 : i32
    %36 = arith.addi %c0_i32_28, %c3_i32_29 : i32
    %c1_i32_30 = arith.constant 1 : i32
    scf.for %arg16 = %c0_i32_28 to %36 step %c1_i32_30  : i32 {
      %c256_i32 = arith.constant 256 : i32
      %37 = arith.muli %arg16, %c256_i32 : i32
      %38 = tpu.assume_multiple %37, 256 : i32
      %39 = arith.index_cast %38 : i32 to index
      %c0_32 = arith.constant 0 : index
      %40 = vector.load %arg15[%39, %c0_32] : memref<768x128xf32, #tpu.memory_space<vmem>>, vector<256x128xf32>
      %41 = vector.broadcast %32 : vector<1x128xf32> to vector<256x128xf32>
      %42 = arith.mulf %40, %41 : vector<256x128xf32>
      %43 = vector.broadcast %35 : vector<1x128xf32> to vector<256x128xf32>
      %44 = arith.addf %42, %43 : vector<256x128xf32>
      %cst_33 = arith.constant 0.000000e+00 : f32
      %45 = vector.broadcast %cst_33 : f32 to vector<256x128xf32>
      %46 = arith.maximumf %44, %45 : vector<256x128xf32>
      %47 = arith.index_cast %38 : i32 to index
      %c0_34 = arith.constant 0 : index
      %48 = vector.load %arg11[%47, %c0_34] : memref<768x128xf32, #tpu.memory_space<vmem>>, vector<256x128xf32>
      tpu.vector_store %arg11[%47, %c0_34], %46 {strides = array<i32>} : memref<768x128xf32, #tpu.memory_space<vmem>>, vector<256x128xf32>,
    }
    %c3_i32_31 = arith.constant 3 : i32
    return
  }
  func.func @transform_0(%arg0: i32) -> (i32, i32) {
    %c0_i32 = arith.constant 0 : i32
    %c0_i32_0 = arith.constant 0 : i32
    %c0_i32_1 = arith.constant 0 : i32
    return %c0_i32, %c0_i32_0 : i32, i32
  }
  func.func @transform_1(%arg0: i32) -> (i32, i32) {
    %c0_i32 = arith.constant 0 : i32
    %c0_i32_0 = arith.constant 0 : i32
    %c0_i32_1 = arith.constant 0 : i32
    return %c0_i32, %c0_i32_0 : i32, i32
  }
  func.func @transform_2(%arg0: i32) -> (i32, i32) {
    %c0_i32 = arith.constant 0 : i32
    %c0_i32_0 = arith.constant 0 : i32
    %c0_i32_1 = arith.constant 0 : i32
    return %c0_i32, %c0_i32_0 : i32, i32
  }
  func.func @transform_3(%arg0: i32) -> (i32, i32, i32) {
    %c0_i32 = arith.constant 0 : i32
    %c0_i32_0 = arith.constant 0 : i32
    %c0_i32_1 = arith.constant 0 : i32
    %c0_i32_2 = arith.constant 0 : i32
    return %c0_i32, %c0_i32_0, %c0_i32_1 : i32, i32, i32
  }
  func.func @transform_4(%arg0: i32) -> (i32, i32, i32) {
    %c0_i32 = arith.constant 0 : i32
    %c0_i32_0 = arith.constant 0 : i32
    %c0_i32_1 = arith.constant 0 : i32
    %c0_i32_2 = arith.constant 0 : i32
    return %c0_i32, %c0_i32_0, %c0_i32_1 : i32, i32, i32
  }
  func.func @transform_5(%arg0: i32) -> (i32, i32, i32) {
    %c0_i32 = arith.constant 0 : i32
    %c0_i32_0 = arith.constant 0 : i32
    %c0_i32_1 = arith.constant 0 : i32
    %c0_i32_2 = arith.constant 0 : i32
    return %c0_i32, %c0_i32_0, %c0_i32_1 : i32, i32, i32
  }
  func.func @transform_6(%arg0: i32) -> (i32, i32) {
    %c0_i32 = arith.constant 0 : i32
    %c0_i32_0 = arith.constant 0 : i32
    %c0_i32_1 = arith.constant 0 : i32
    return %c0_i32, %c0_i32_0 : i32, i32
  }
  func.func @transform_7(%arg0: i32) -> (i32, i32) {
    %c0_i32 = arith.constant 0 : i32
    %c0_i32_0 = arith.constant 0 : i32
    %c0_i32_1 = arith.constant 0 : i32
    return %c0_i32, %c0_i32_0 : i32, i32
  }
  func.func @transform_8(%arg0: i32) -> (i32, i32) {
    %c0_i32 = arith.constant 0 : i32
    %c0_i32_0 = arith.constant 0 : i32
    %c0_i32_1 = arith.constant 0 : i32
    return %c0_i32, %c0_i32_0 : i32, i32
  }
  func.func @transform_9(%arg0: i32) -> (i32, i32) {
    %c0_i32 = arith.constant 0 : i32
    %c0_i32_0 = arith.constant 0 : i32
    %c0_i32_1 = arith.constant 0 : i32
    return %c0_i32, %c0_i32_0 : i32, i32
  }
  func.func @transform_10(%arg0: i32) -> (i32, i32) {
    %c0_i32 = arith.constant 0 : i32
    %c0_i32_0 = arith.constant 0 : i32
    %c0_i32_1 = arith.constant 0 : i32
    return %c0_i32, %c0_i32_0 : i32, i32
  }
}

</mosaic_0001>

<bundles_post_ra>
// kernel: up_conv_forward.1
= control target key start
LH: loop header
LB: loop body
LE: loop exit
PB: predicated region body
PF: predicated region fallthrough
CT: control target
= control target key end

     0   :  { %15 = vsyncpa [#allocation7], 0  ;;  %s16400_s0 = inlined_call_operand.hbm [shape: f32[1024,128], index: 0, kind: input, shape index: {}]   ;;  %s16401_s1 = inlined_call_operand.hbm [shape: f32[1024,128], index: 1, kind: input, shape index: {}]   ;;  %s16402_s2 = inlined_call_operand.hbm [shape: f32[768,128], index: 2, kind: input, shape index: {}]   ;;  %s16403_s3 = inlined_call_operand.hbm [shape: f32[4,128,128], index: 3, kind: input, shape index: {}]   ;;  %s16404_s4 = inlined_call_operand.hbm [shape: f32[9,128,128], index: 4, kind: input, shape index: {}]   ;;  %s16405_s5 = inlined_call_operand.hbm [shape: f32[9,128,128], index: 5, kind: input, shape index: {}]   ;;  %s16406_s6 = inlined_call_operand.hbm [shape: f32[1,128], index: 6, kind: input, shape index: {}]   ;;  %s16407_s7 = inlined_call_operand.hbm [shape: f32[1,128], index: 7, kind: input, shape index: {}]   ;;  %s16408_s8 = inlined_call_operand.hbm [shape: f32[1,128], index: 8, kind: input, shape index: {}]   ;;  %s16409_s9 = inlined_call_operand.hbm [shape: f32[1,128], index: 9, kind: input, shape index: {}]   ;;  %s16410_s10 = inlined_call_operand.hbm [shape: f32[768,128], index: 10, kind: output, shape index: {}]  }
   0x1   :  { %16 = vsyncpa [#allocation10], 0 }
   0x2   :  { %17 = vsyncpa [#allocation13], 0 }
   0x3   :  { %18 = vsyncpa [#allocation16], 0 }
   0x4   :  { %19 = vsyncpa [#allocation19], 0 }
   0x5   :  { %20 = vsyncpa [#allocation22], 0 }
   0x6   :  { %21 = vsyncpa [#allocation8], 0  ;;  %s13560_s13 = smov [#allocation9]   ;;  %s13561_s15 = smov [#allocation12]  }
   0x7   :  { %s39_s14 = sshll.u32 %s13560_s13, 4  ;;  %s63_s16 = sshll.u32 %s13561_s15, 4  ;;  %s40_s14 = int_to_ptr.vmem [resolvable:$true] %s39_s14  ;;  %s13633_s16 = int_to_ptr.vmem [resolvable:$true] %s63_s16 }
   0x8   :  { %s13224_s19 = scalar_lea.hbm %s16401_s1, 16384 }
   0x9   :  { %p13225_p0 = scmp.ne.s32.totalorder %s16401_s1, %s13224_s19  ;;  %p13228_p1 = scmp.lt.u32.totalorder %s13224_s19, %s16401_s1 }
   0xb   :  { %p13230_p2 = pnand %p13228_p1, %p13225_p0 }
   0xd   :  { %13233 = shalt.err (!%p13230_p2)
}
   0xe   :  { %s13234_s24 = scalar_lea.vmem %s40_s14, 16384  ;;  %p13239_p4 = scmp.lt.s32.totalorder %s40_s14, %s40_s14 }
   0xf   :  { %p13235_p3 = scmp.ne.s32.totalorder %s40_s14, %s13234_s24  ;;  %p13240_p5 = scmp.lt.s32.totalorder %s13234_s24, %s13234_s24 }
  0x11   :  { %p13241_p6 = por %p13240_p5, %p13239_p4 }
  0x13   :  { %p13242_p7 = pnand %p13241_p6, %p13235_p3 }
  0x15   :  { %13245 = shalt.err (!%p13242_p7)
}
  0x16   :  { %s13562_s25 = smov 128   ;;  %s13563_s26 = smov 8  }
  0x17   :  { %45 = dma.hbm_to_vmem [thread:$0]  %s16401_s1, 16384, %s40_s14, [#allocation10], %s13562_s25, %s13562_s25, %s13563_s26  }
  0x18   :  { %s13246_s11 = scalar_lea.hbm %s16403_s3, 8192 }
  0x19   :  { %p13247_p8 = scmp.ne.s32.totalorder %s16403_s3, %s13246_s11  ;;  %p13250_p9 = scmp.lt.u32.totalorder %s13246_s11, %s16403_s3 }
  0x1b   :  { %p13252_p10 = pnand %p13250_p9, %p13247_p8 }
  0x1d   :  { %13255 = shalt.err (!%p13252_p10)
}
  0x1e   :  { %s13256_s18 = scalar_lea.vmem %s13633_s16, 8192  ;;  %p13261_p12 = scmp.lt.s32.totalorder %s13633_s16, %s13633_s16 }
  0x1f   :  { %p13257_p11 = scmp.ne.s32.totalorder %s13633_s16, %s13256_s18  ;;  %p13262_p13 = scmp.lt.s32.totalorder %s13256_s18, %s13256_s18 }
  0x21   :  { %p13263_p0 = por %p13262_p13, %p13261_p12 }
  0x23   :  { %p13264_p1 = pnand %p13263_p0, %p13257_p11 }
  0x25   :  { %13267 = shalt.err (!%p13264_p1)
}
  0x26   :  { %69 = dma.hbm_to_vmem [thread:$0]  %s16403_s3, 8192, %s13633_s16, [#allocation13], %s13562_s25, %s13562_s25, %s13563_s26  }
  0x27   :  { %s13564_s19 = smov [#allocation15]   ;;  %s13565_s21 = smov [#allocation18]  }
  0x28   :  { %s87_s20 = sshll.u32 %s13564_s19, 4  ;;  %s110_s22 = sshll.u32 %s13565_s21, 4  ;;  %s88_s20 = int_to_ptr.vmem [resolvable:$true] %s87_s20  ;;  %s111_s22 = int_to_ptr.vmem [resolvable:$true] %s110_s22 }
  0x29   :  { %s13268_s27 = scalar_lea.hbm %s16405_s5, 18432 }
  0x2a   :  { %p13269_p2 = scmp.ne.s32.totalorder %s16405_s5, %s13268_s27  ;;  %p13272_p3 = scmp.lt.u32.totalorder %s13268_s27, %s16405_s5 }
  0x2c   :  { %p13274_p4 = pnand %p13272_p3, %p13269_p2 }
  0x2e   :  { %13277 = shalt.err (!%p13274_p4)
}
  0x2f   :  { %s13278_s3 = scalar_lea.vmem %s88_s20, 18432  ;;  %p13283_p6 = scmp.lt.s32.totalorder %s88_s20, %s88_s20 }
  0x30   :  { %p13279_p5 = scmp.ne.s32.totalorder %s88_s20, %s13278_s3  ;;  %p13284_p7 = scmp.lt.s32.totalorder %s13278_s3, %s13278_s3 }
  0x32   :  { %p13285_p8 = por %p13284_p7, %p13283_p6 }
  0x34   :  { %p13286_p9 = pnand %p13285_p8, %p13279_p5 }
  0x36   :  { %13289 = shalt.err (!%p13286_p9)
}
  0x37   :  { %93 = dma.hbm_to_vmem [thread:$0]  %s16405_s5, 18432, %s88_s20, [#allocation16], %s13562_s25, %s13562_s25, %s13563_s26  }
  0x38   :  { %s13290_s17 = scalar_lea.hbm %s16407_s7, 16 }
  0x39   :  { %p13291_p10 = scmp.ne.s32.totalorder %s16407_s7, %s13290_s17  ;;  %p13294_p11 = scmp.lt.u32.totalorder %s13290_s17, %s16407_s7 }
  0x3b   :  { %p13296_p12 = pnand %p13294_p11, %p13291_p10 }
  0x3d   :  { %13299 = shalt.err (!%p13296_p12)
}
  0x3e   :  { %s13300_s21 = scalar_lea.vmem %s111_s22, 16  ;;  %s13304_s23 = scalar_lea.vmem %s111_s22, 32 }
  0x3f   :  { %p13301_p13 = scmp.ne.s32.totalorder %s111_s22, %s13300_s21  ;;  %p13305_p0 = scmp.lt.s32.totalorder %s111_s22, %s111_s22 }
  0x40   :  { %p13306_p1 = scmp.lt.s32.totalorder %s13304_s23, %s13300_s21 }
  0x42   :  { %p13307_p2 = por %p13306_p1, %p13305_p0 }
  0x44   :  { %p13308_p3 = pnand %p13307_p2, %p13301_p13 }
  0x46   :  { %13311 = shalt.err (!%p13308_p3)
}
  0x47   :  { %113 = dma.hbm_to_vmem [thread:$0]  %s16407_s7, 16, %s111_s22, [#allocation19]  }
  0x48   :  { %s13566_s24 = smov [#allocation6]   ;;  %s13567_s28 = smov [#allocation11]  }
  0x49   :  { %s27_s27 = sshll.u32 %s13566_s24, 4  ;;  %s51_s29 = sshll.u32 %s13567_s28, 4  ;;  %s28_s27 = int_to_ptr.vmem [resolvable:$true] %s27_s27  ;;  %s13697_s29 = int_to_ptr.vmem [resolvable:$true] %s51_s29 }
  0x4a   :  { %s13312_s3 = scalar_lea.hbm %s16400_s0, 16384 }
  0x4b   :  { %p13313_p4 = scmp.ne.s32.totalorder %s16400_s0, %s13312_s3  ;;  %p13316_p5 = scmp.lt.u32.totalorder %s13312_s3, %s16400_s0 }
  0x4d   :  { %p13318_p6 = pnand %p13316_p5, %p13313_p4 }
  0x4f   :  { %13321 = shalt.err (!%p13318_p6)
}
  0x50   :  { %s13322_s7 = scalar_lea.vmem %s28_s27, 16384  ;;  %p13327_p8 = scmp.lt.s32.totalorder %s28_s27, %s28_s27 }
  0x51   :  { %p13323_p7 = scmp.ne.s32.totalorder %s28_s27, %s13322_s7  ;;  %p13328_p9 = scmp.lt.s32.totalorder %s13322_s7, %s13322_s7 }
  0x53   :  { %p13329_p10 = por %p13328_p9, %p13327_p8 }
  0x55   :  { %p13330_p11 = pnand %p13329_p10, %p13323_p7 }
  0x57   :  { %13333 = shalt.err (!%p13330_p11)
}
  0x58   :  { %33 = dma.hbm_to_vmem [thread:$0]  %s16400_s0, 16384, %s28_s27, [#allocation7], %s13562_s25, %s13562_s25, %s13563_s26  }
  0x59   :  { %s13334_s14 = scalar_lea.hbm %s16402_s2, 12288 }
  0x5a   :  { %p13335_p12 = scmp.ne.s32.totalorder %s16402_s2, %s13334_s14  ;;  %p13338_p13 = scmp.lt.u32.totalorder %s13334_s14, %s16402_s2 }
  0x5c   :  { %p13340_p0 = pnand %p13338_p13, %p13335_p12 }
  0x5e   :  { %13343 = shalt.err (!%p13340_p0)
}
  0x5f   :  { %s13344_s20 = scalar_lea.vmem %s13697_s29, 12288  ;;  %p13349_p2 = scmp.lt.s32.totalorder %s13697_s29, %s13697_s29 }
  0x60   :  { %p13345_p1 = scmp.ne.s32.totalorder %s13697_s29, %s13344_s20  ;;  %p13350_p3 = scmp.lt.s32.totalorder %s13344_s20, %s13344_s20 }
  0x62   :  { %p13351_p4 = por %p13350_p3, %p13349_p2 }
  0x64   :  { %p13352_p5 = pnand %p13351_p4, %p13345_p1 }
  0x66   :  { %13355 = shalt.err (!%p13352_p5)
}
  0x67   :  { %57 = dma.hbm_to_vmem [thread:$0]  %s16402_s2, 12288, %s13697_s29, [#allocation10], %s13562_s25, %s13562_s25, %s13563_s26  }
  0x68   :  { %s13568_s27 = smov [#allocation14]   ;;  %s13569_s30 = smov [#allocation17]  }
  0x69   :  { %s75_s28 = sshll.u32 %s13568_s27, 4  ;;  %s100_s11 = sshll.u32 %s13569_s30, 4  ;;  %s76_s28 = int_to_ptr.vmem [resolvable:$true] %s75_s28  ;;  %s101_s11 = int_to_ptr.vmem [resolvable:$true] %s100_s11 }
  0x6a   :  { %s13356_s12 = scalar_lea.hbm %s16404_s4, 18432 }
  0x6b   :  { %p13357_p6 = scmp.ne.s32.totalorder %s16404_s4, %s13356_s12  ;;  %p13360_p7 = scmp.lt.u32.totalorder %s13356_s12, %s16404_s4 }
  0x6d   :  { %p13362_p8 = pnand %p13360_p7, %p13357_p6 }
  0x6f   :  { %13365 = shalt.err (!%p13362_p8)
}
  0x70   :  { %s13366_s2 = scalar_lea.vmem %s76_s28, 18432  ;;  %p13371_p10 = scmp.lt.s32.totalorder %s76_s28, %s76_s28 }
  0x71   :  { %p13367_p9 = scmp.ne.s32.totalorder %s76_s28, %s13366_s2  ;;  %p13372_p11 = scmp.lt.s32.totalorder %s13366_s2, %s13366_s2 }
  0x73   :  { %p13373_p12 = por %p13372_p11, %p13371_p10 }
  0x75   :  { %p13374_p13 = pnand %p13373_p12, %p13367_p9 }
  0x77   :  { %13377 = shalt.err (!%p13374_p13)
}
  0x78   :  { %81 = dma.hbm_to_vmem [thread:$0]  %s16404_s4, 18432, %s76_s28, [#allocation13], %s13562_s25, %s13562_s25, %s13563_s26  }
  0x79   :  { %s13378_s14 = scalar_lea.hbm %s16406_s6, 16 }
  0x7a   :  { %p13379_p0 = scmp.ne.s32.totalorder %s16406_s6, %s13378_s14  ;;  %p13382_p1 = scmp.lt.u32.totalorder %s13378_s14, %s16406_s6 }
  0x7c   :  { %p13384_p2 = pnand %p13382_p1, %p13379_p0 }
  0x7e   :  { %13387 = shalt.err (!%p13384_p2)
}
  0x7f   :  { %s13388_s20 = scalar_lea.vmem %s101_s11, 16  ;;  %s13392_s0 = scalar_lea.vmem %s101_s11, 32 }
  0x80   :  { %p13389_p3 = scmp.ne.s32.totalorder %s101_s11, %s13388_s20  ;;  %p13393_p4 = scmp.lt.s32.totalorder %s101_s11, %s101_s11 }
  0x81   :  { %p13394_p5 = scmp.lt.s32.totalorder %s13392_s0, %s13388_s20 }
  0x83   :  { %p13395_p6 = por %p13394_p5, %p13393_p4 }
  0x85   :  { %p13396_p7 = pnand %p13395_p6, %p13389_p3 }
  0x87   :  { %13399 = shalt.err (!%p13396_p7)
}
  0x88   :  { %103 = dma.hbm_to_vmem [thread:$0]  %s16406_s6, 16, %s101_s11, [#allocation16]  }
  0x89   :  { %s13570_s27 = smov [#allocation20]   ;;  %s13571_s30 = smov [#allocation21]  }
  0x8a   :  { %s120_s28 = sshll.u32 %s13570_s27, 4  ;;  %s130_s3 = sshll.u32 %s13571_s30, 4  ;;  %s121_s28 = int_to_ptr.vmem [resolvable:$true] %s120_s28  ;;  %s131_s3 = int_to_ptr.vmem [resolvable:$true] %s130_s3 }
  0x8b   :  { %s13400_s13 = scalar_lea.hbm %s16408_s8, 16 }
  0x8c   :  { %p13401_p8 = scmp.ne.s32.totalorder %s16408_s8, %s13400_s13  ;;  %p13404_p9 = scmp.lt.u32.totalorder %s13400_s13, %s16408_s8 }
  0x8e   :  { %p13406_p10 = pnand %p13404_p9, %p13401_p8 }
  0x90   :  { %13409 = shalt.err (!%p13406_p10)
}
  0x91   :  { %s13410_s6 = scalar_lea.vmem %s121_s28, 16  ;;  %s13414_s11 = scalar_lea.vmem %s121_s28, 32 }
  0x92   :  { %p13411_p11 = scmp.ne.s32.totalorder %s121_s28, %s13410_s6  ;;  %p13415_p12 = scmp.lt.s32.totalorder %s121_s28, %s121_s28 }
  0x93   :  { %p13416_p13 = scmp.lt.s32.totalorder %s13414_s11, %s13410_s6 }
  0x95   :  { %p13417_p0 = por %p13416_p13, %p13415_p12 }
  0x97   :  { %p13418_p1 = pnand %p13417_p0, %p13411_p11 }
  0x99   :  { %13421 = shalt.err (!%p13418_p1)
}
  0x9a   :  { %123 = dma.hbm_to_vmem [thread:$0]  %s16408_s8, 16, %s121_s28, [#allocation19]  }
  0x9b   :  { %s13422_s14 = scalar_lea.hbm %s16409_s9, 16 }
  0x9c   :  { %p13423_p2 = scmp.ne.s32.totalorder %s16409_s9, %s13422_s14  ;;  %p13426_p3 = scmp.lt.u32.totalorder %s13422_s14, %s16409_s9 }
  0x9e   :  { %p13428_p4 = pnand %p13426_p3, %p13423_p2 }
  0xa0   :  { %13431 = shalt.err (!%p13428_p4)
}
  0xa1   :  { %s13432_s20 = scalar_lea.vmem %s131_s3, 16  ;;  %s13436_s0 = scalar_lea.vmem %s131_s3, 32 }
  0xa2   :  { %p13433_p5 = scmp.ne.s32.totalorder %s131_s3, %s13432_s20  ;;  %p13437_p6 = scmp.lt.s32.totalorder %s131_s3, %s131_s3 }
  0xa3   :  { %p13438_p7 = scmp.lt.s32.totalorder %s13436_s0, %s13432_s20 }
  0xa5   :  { %p13439_p8 = por %p13438_p7, %p13437_p6 }
  0xa7   :  { %p13440_p9 = pnand %p13439_p8, %p13433_p5 }
  0xa9   :  { %13443 = shalt.err (!%p13440_p9)
}
  0xaa   :  { %133 = dma.hbm_to_vmem [thread:$0]  %s16409_s9, 16, %s131_s3, [#allocation22]  }
  0xab   :  { %13506 = dma.done.wait [#allocation7], 16384  }
  0xac   :  { %13507 = vsyncadd [#allocation7], 4294950912 }
  0xad   :  { %13508 = dma.done.wait [#allocation10], 28672  }
  0xae   :  { %13509 = vsyncadd [#allocation10], 4294938624 }
  0xaf   :  { %13510 = dma.done.wait [#allocation13], 26624  }
  0xb0   :  { %13511 = vsyncadd [#allocation13], 4294940672 }
  0xb1   :  { %13512 = dma.done.wait [#allocation16], 18448  }
  0xb2   :  { %13513 = vsyncadd [#allocation16], 4294948848 }
  0xb3   :  { %13514 = dma.done.wait [#allocation19], 32  }
  0xb4   :  { %13515 = vsyncadd [#allocation19], 4294967264 }
  0xb5   :  { %13516 = dma.done.wait [#allocation22], 16  }
  0xb6   :  { %13517 = vsyncadd [#allocation22], 4294967280  ;;  %s13785_s24 = smov 0  }
  0xb7 LB: > { %v237_v0 = vld [vmem:[#allocation12] sm:$0xff]  ;;  %v238_v1 = vld [vmem:[#allocation12 + $0x8] sm:$0xff]  ;;  %v13572_v5 = vmov 4   ;;  %v239_v6 = vld [vmem:[#allocation12 + $0x10] sm:$0xff]  ;;  %s13791_s9 = sshll.u32 %s13522_s24, 8  ;;  %s169_s24 = sadd.s32 1, %s13522_s24   ;;  %s13522_s24 = sphi %s13785_s24, %s169_s24  }
  0xb8   : > { %v703_v2 = vld [vmem:[#allocation12 + $0x80] sm:$0xff]  ;;  %v11866_v3 = vpack.c.bf16 %v238_v1, %v237_v0  ;;  %v704_v4 = vld [vmem:[#allocation12 + $0x88] sm:$0xff]  ;;  %13213 = vset.pattern.permute.xlu1 %v13572_v5  ;;  %13212 = vset.pattern.permute.xlu0 %v13572_v5  ;;  %v240_v7 = vld [vmem:[#allocation12 + $0x18] sm:$0xff]  ;;  %s13794_s27 = scalar_lea.vmem [#allocation6], %s13791_s9  ;;  %s14253_s28 = scalar_lea.vmem [#allocation9], %s13791_s9 }
  0xb9   : > { %v11898_v8 = vpack.c.bf16 %v704_v4, %v703_v2  ;;  %v11870_v9 = vpack.c.bf16 %v240_v7, %v239_v6  ;;  %v705_v10 = vld [vmem:[#allocation12 + $0x90] sm:$0xff]  ;;  %v706_v11 = vld [vmem:[#allocation12 + $0x98] sm:$0xff]  ;;  %v241_v13 = vld [vmem:[#allocation12 + $0x20] sm:$0xff]  ;;  %s14526_s30 = scalar_lea.vmem [#allocation2], %s13791_s9  ;;  %p166_p10 = scmp.ge.s32.totalorder %s169_s24, 4  }
  0xba   : > { %11867 = vmatprep.subr.bf16.mxu0 %v11866_v3  ;;  %v11902_v12 = vpack.c.bf16 %v706_v11, %v705_v10  ;;  %v242_v14 = vld [vmem:[#allocation12 + $0x28] sm:$0xff]  ;;  %v707_v15 = vld [vmem:[#allocation12 + $0xa0] sm:$0xff]  ;;  %v13797_v16 = vld [vmem:[%s13794_s27 + $0x10] sm:$0xff]  ;;  %s14669_s3 = smov (%p166_p10), 0  }
  0xbb   : > { %11899 = vmatprep.subr.bf16.mxu1 %v11898_v8  ;;  %11869 = vmatpush3.bf16.msra.mxu0 %v11866_v3  ;;  %v13800_v17 = vld [vmem:[%s13794_s27] sm:$0xff]  ;;  %v708_v18 = vld [vmem:[#allocation12 + $0xa8] sm:$0xff]  ;;  %v13805_v19 = vld [vmem:[%s13794_s27 + $0x18] sm:$0xff]  ;;  %v11874_v20 = vpack.c.bf16 %v242_v14, %v241_v13 }
  0xbc   : > { %11901 = vmatpush3.bf16.msra.mxu1 %v11898_v8  ;;  %490 = vperm.xlu1 %13213, %v13797_v16   ;;  %v13808_v21 = vld [vmem:[%s13794_s27 + $0x8] sm:$0xff]  ;;  %v11906_v22 = vpack.c.bf16 %v708_v18, %v707_v15  ;;  %v243_v23 = vld [vmem:[#allocation12 + $0x30] sm:$0xff]  ;;  %v244_v24 = vld [vmem:[#allocation12 + $0x38] sm:$0xff] }
  0xbd   : > { %480 = vperm.xlu0 %13212, %v13800_v17   ;;  %11871 = vmatprep.subr.bf16.mxu0 %v11870_v9  ;;  %v709_v25 = vld [vmem:[#allocation12 + $0xb0] sm:$0xff]  ;;  %v710_v26 = vld [vmem:[#allocation12 + $0xb8] sm:$0xff]  ;;  %v13815_v27 = vld [vmem:[%s13794_s27 + $0x28] sm:$0xff]  ;;  %v11878_v28 = vpack.c.bf16 %v244_v24, %v243_v23 }
  0xbe   : > { %11903 = vmatprep.subr.bf16.mxu1 %v11902_v12  ;;  %10138 = vmatprep.mubr.f32.mxu0 %v13800_v17  ;;  %v13818_v29 = vld [vmem:[%s13794_s27 + $0x20] sm:$0xff]  ;;  %v11910_v30 = vpack.c.bf16 %v710_v26, %v709_v25  ;;  %v246_v32 = vld [vmem:[#allocation12 + $0x48] sm:$0xff]  ;;  %v13823_v35 = vld [vmem:[%s13794_s27 + $0x38] sm:$0xff] }
  0xbf   : > { %11873 = vmatpush3.bf16.msra.mxu0 %v11870_v9  ;;  %10218 = vmatprep.mubr.f32.mxu1 %v13800_v17  ;;  %v245_v31 = vld [vmem:[#allocation12 + $0x40] sm:$0xff]  ;;  %v712_v34 = vld [vmem:[#allocation12 + $0xc8] sm:$0xff]  ;;  %v13826_v37 = vld [vmem:[%s13794_s27 + $0x30] sm:$0xff] }
  0xc0   : > { %11905 = vmatpush3.bf16.msra.mxu1 %v11902_v12  ;;  %495 = vperm.xlu1 %13213, %v13805_v19   ;;  %v711_v33 = vld [vmem:[#allocation12 + $0xc0] sm:$0xff]  ;;  %v11882_v36 = vpack.c.bf16 %v246_v32, %v245_v31  ;;  %v247_v39 = vld [vmem:[#allocation12 + $0x50] sm:$0xff]  ;;  %v248_v40 = vld [vmem:[#allocation12 + $0x58] sm:$0xff] }
  0xc1   : > { %485 = vperm.xlu0 %13212, %v13808_v21   ;;  %11875 = vmatprep.subr.bf16.mxu0 %v11874_v20  ;;  %v11914_v38 = vpack.c.bf16 %v712_v34, %v711_v33  ;;  %v713_v41 = vld [vmem:[#allocation12 + $0xd0] sm:$0xff]  ;;  %v714_v42 = vld [vmem:[#allocation12 + $0xd8] sm:$0xff]  ;;  %v13831_v43 = vld [vmem:[%s13794_s27 + $0x48] sm:$0xff]  ;;  %v11886_v44 = vpack.c.bf16 %v248_v40, %v247_v39 }
  0xc2   : > { %11907 = vmatprep.subr.bf16.mxu1 %v11906_v22  ;;  %v13834_v45 = vld [vmem:[%s13794_s27 + $0x40] sm:$0xff]  ;;  %v11918_v46 = vpack.c.bf16 %v714_v42, %v713_v41  ;;  %v250_v48 = vld [vmem:[#allocation12 + $0x68] sm:$0xff]  ;;  %v13839_v51 = vld [vmem:[%s13794_s27 + $0x58] sm:$0xff] }
  0xc3   : > { %11877 = vmatpush3.bf16.msra.mxu0 %v11874_v20  ;;  %v249_v47 = vld [vmem:[#allocation12 + $0x60] sm:$0xff]  ;;  %v716_v50 = vld [vmem:[#allocation12 + $0xe8] sm:$0xff]  ;;  %v13842_v53 = vld [vmem:[%s13794_s27 + $0x50] sm:$0xff] }
  0xc4   : > { %11909 = vmatpush3.bf16.msra.mxu1 %v11906_v22  ;;  %505 = vperm.xlu1 %13213, %v13815_v27   ;;  %v715_v49 = vld [vmem:[#allocation12 + $0xe0] sm:$0xff]  ;;  %v11890_v52 = vpack.c.bf16 %v250_v48, %v249_v47  ;;  %v251_v55 = vld [vmem:[#allocation12 + $0x70] sm:$0xff]  ;;  %v252_v56 = vld [vmem:[#allocation12 + $0x78] sm:$0xff] }
  0xc5   : > { %500 = vperm.xlu0 %13212, %v13818_v29   ;;  %11879 = vmatprep.subr.bf16.mxu0 %v11878_v28  ;;  %v11922_v54 = vpack.c.bf16 %v716_v50, %v715_v49  ;;  %v717_v57 = vld [vmem:[#allocation12 + $0xf0] sm:$0xff]  ;;  %v718_v58 = vld [vmem:[#allocation12 + $0xf8] sm:$0xff]  ;;  %v13847_v59 = vld [vmem:[%s13794_s27 + $0x68] sm:$0xff]  ;;  %v11894_v60 = vpack.c.bf16 %v252_v56, %v251_v55 }
  0xc6   : > { %11911 = vmatprep.subr.bf16.mxu1 %v11910_v30  ;;  %v13850_v61 = vld [vmem:[%s13794_s27 + $0x60] sm:$0xff]  ;;  %v11926_v62 = vpack.c.bf16 %v718_v58, %v717_v57  ;;  %v1138_v0 = vld [vmem:[#allocation12 + $0x108] sm:$0xff]  ;;  %v13855_v3 = vld [vmem:[%s13794_s27 + $0x78] sm:$0xff] }
  0xc7   : > { %11881 = vmatpush3.bf16.msra.mxu0 %v11878_v28  ;;  %v1137_v63 = vld [vmem:[#allocation12 + $0x100] sm:$0xff]  ;;  %v1572_v2 = vld [vmem:[#allocation12 + $0x188] sm:$0xff]  ;;  %v13858_v5 = vld [vmem:[%s13794_s27 + $0x70] sm:$0xff] }
  0xc8   : > { %11913 = vmatpush3.bf16.msra.mxu1 %v11910_v30  ;;  %515 = vperm.xlu1 %13213, %v13823_v35   ;;  %v1571_v1 = vld [vmem:[#allocation12 + $0x180] sm:$0xff]  ;;  %v11930_v4 = vpack.c.bf16 %v1138_v0, %v1137_v63  ;;  %v13863_v7 = vld [vmem:[%s13794_s27 + $0x88] sm:$0xff]  ;;  %v1139_v9 = vld [vmem:[#allocation12 + $0x110] sm:$0xff]  ;;  %v13573_v63 = vmov 5  }
  0xc9   : > { %510 = vperm.xlu0 %13212, %v13826_v37   ;;  %11883 = vmatprep.subr.bf16.mxu0 %v11882_v36  ;;  %v11962_v6 = vpack.c.bf16 %v1572_v2, %v1571_v1  ;;  %v13867_v8 = vld [vmem:[%s13794_s27 + $0x80] sm:$0xff]  ;;  %v1140_v10 = vld [vmem:[#allocation12 + $0x118] sm:$0xff]  ;;  %v1573_v11 = vld [vmem:[#allocation12 + $0x190] sm:$0xff] }
  0xca   : > { %11915 = vmatprep.subr.bf16.mxu1 %v11914_v38  ;;  %v1574_v12 = vld [vmem:[#allocation12 + $0x198] sm:$0xff]  ;;  %v11934_v14 = vpack.c.bf16 %v1140_v10, %v1139_v9  ;;  %v13879_v15 = vld [vmem:[%s13794_s27 + $0x90] sm:$0xff]  ;;  %v13887_v20 = vld [vmem:[%s13794_s27 + $0xa8] sm:$0xff] }
  0xcb   : > { %11885 = vmatpush3.bf16.msra.mxu0 %v11882_v36  ;;  %v13875_v13 = vld [vmem:[%s13794_s27 + $0x98] sm:$0xff]  ;;  %v11966_v18 = vpack.c.bf16 %v1574_v12, %v1573_v11  ;;  %v13891_v22 = vld [vmem:[%s13794_s27 + $0xa0] sm:$0xff]  ;;  %v1142_v24 = vld [vmem:[#allocation12 + $0x128] sm:$0xff] }
  0xcc   : > { %11917 = vmatpush3.bf16.msra.mxu1 %v11914_v38  ;;  %525 = vperm.xlu1 %13213, %v13831_v43   ;;  %v1141_v23 = vld [vmem:[#allocation12 + $0x120] sm:$0xff]  ;;  %v1576_v26 = vld [vmem:[#allocation12 + $0x1a8] sm:$0xff]  ;;  %v13899_v28 = vld [vmem:[%s13794_s27 + $0xb8] sm:$0xff] }
  0xcd   : > { %520 = vperm.xlu0 %13212, %v13834_v45   ;;  %11887 = vmatprep.subr.bf16.mxu0 %v11886_v44  ;;  %v1575_v25 = vld [vmem:[#allocation12 + $0x1a0] sm:$0xff]  ;;  %v11938_v30 = vpack.c.bf16 %v1142_v24, %v1141_v23  ;;  %v13903_v31 = vld [vmem:[%s13794_s27 + $0xb0] sm:$0xff]  ;;  %v13911_v33 = vld [vmem:[%s13794_s27 + $0xc8] sm:$0xff] }
  0xce   : > { %11919 = vmatprep.subr.bf16.mxu1 %v11918_v46  ;;  %v11970_v32 = vpack.c.bf16 %v1576_v26, %v1575_v25  ;;  %v13915_v34 = vld [vmem:[%s13794_s27 + $0xc0] sm:$0xff]  ;;  %v1143_v36 = vld [vmem:[#allocation12 + $0x130] sm:$0xff]  ;;  %v1144_v38 = vld [vmem:[#allocation12 + $0x138] sm:$0xff] }
  0xcf   : > { %11889 = vmatpush3.bf16.msra.mxu0 %v11886_v44  ;;  %v1577_v39 = vld [vmem:[#allocation12 + $0x1b0] sm:$0xff]  ;;  %v1578_v40 = vld [vmem:[#allocation12 + $0x1b8] sm:$0xff]  ;;  %v11942_v42 = vpack.c.bf16 %v1144_v38, %v1143_v36  ;;  %v13935_v47 = vld [vmem:[%s13794_s27 + $0xe8] sm:$0xff]  ;;  %v13574_v38 = vmov 6  }
  0xd0   : > { %11921 = vmatpush3.bf16.msra.mxu1 %v11918_v46  ;;  %535 = vperm.xlu1 %13213, %v13839_v51   ;;  %v13923_v41 = vld [vmem:[%s13794_s27 + $0xd8] sm:$0xff]  ;;  %v13927_v44 = vld [vmem:[%s13794_s27 + $0xd0] sm:$0xff]  ;;  %v11974_v46 = vpack.c.bf16 %v1578_v40, %v1577_v39  ;;  %v13939_v48 = vld [vmem:[%s13794_s27 + $0xe0] sm:$0xff] }
  0xd1   : > { %530 = vperm.xlu0 %13212, %v13842_v53   ;;  %11891 = vmatprep.subr.bf16.mxu0 %v11890_v52  ;;  %v1145_v49 = vld [vmem:[#allocation12 + $0x140] sm:$0xff]  ;;  %v1146_v50 = vld [vmem:[#allocation12 + $0x148] sm:$0xff]  ;;  %v13947_v55 = vld [vmem:[%s13794_s27 + $0xf8] sm:$0xff] }
  0xd2   : > { %11923 = vmatprep.subr.bf16.mxu1 %v11922_v54  ;;  %v11946_v56 = vpack.c.bf16 %v1146_v50, %v1145_v49  ;;  %v13951_v57 = vld [vmem:[%s13794_s27 + $0xf0] sm:$0xff]  ;;  %v1149_v1 = vld [vmem:[#allocation12 + $0x160] sm:$0xff]  ;;  %v1150_v2 = vld [vmem:[#allocation12 + $0x168] sm:$0xff] }
  0xd3   : > { %11893 = vmatpush3.bf16.msra.mxu0 %v11890_v52  ;;  %v1579_v52 = vld [vmem:[#allocation12 + $0x1c0] sm:$0xff]  ;;  %v1582_v9 = vld [vmem:[#allocation12 + $0x1d8] sm:$0xff]  ;;  %v1151_v10 = vld [vmem:[#allocation12 + $0x170] sm:$0xff] }
  0xd4   : > { %11925 = vmatpush3.bf16.msra.mxu1 %v11922_v54  ;;  %545 = vperm.xlu1 %13213, %v13847_v59   ;;  %v1580_v54 = vld [vmem:[#allocation12 + $0x1c8] sm:$0xff]  ;;  %v1152_v11 = vld [vmem:[#allocation12 + $0x178] sm:$0xff]  ;;  %v1585_v25 = vld [vmem:[#allocation12 + $0x1f0] sm:$0xff] }
  0xd5   : > { %540 = vperm.xlu0 %13212, %v13850_v61   ;;  %11895 = vmatprep.subr.bf16.mxu0 %v11894_v60  ;;  %v11978_v58 = vpack.c.bf16 %v1580_v54, %v1579_v52  ;;  %v1584_v23 = vld [vmem:[#allocation12 + $0x1e8] sm:$0xff]  ;;  %v1586_v26 = vld [vmem:[#allocation12 + $0x1f8] sm:$0xff] }
  0xd6   : > { %11927 = vmatprep.subr.bf16.mxu1 %v11926_v62 }
  0xd7   : > { %11897 = vmatpush3.bf16.msra.mxu0 %v11894_v60  ;;  %v1147_v60 = vld [vmem:[#allocation12 + $0x150] sm:$0xff] }
  0xd8   : > { %11929 = vmatpush3.bf16.msra.mxu1 %v11926_v62  ;;  %555 = vperm.xlu1 %13213, %v13855_v3   ;;  %v1148_v62 = vld [vmem:[#allocation12 + $0x158] sm:$0xff] }
  0xd9   : > { %550 = vperm.xlu0 %13212, %v13858_v5   ;;  %11931 = vmatprep.subr.bf16.mxu0 %v11930_v4  ;;  %v11950_v0 = vpack.c.bf16 %v1148_v62, %v1147_v60 }
  0xda   : > { %10139 = vmatmul.mubr.f32.vlgmr.msra.gmra.mrb[0].mxu0 %v13808_v21  ;;  %11963 = vmatprep.subr.bf16.mxu1 %v11962_v6 }
  0xdb   : > { %10219 = vmatmul.mubr.f32.vlgmr.msra.gmra.mrb[0].mxu1 %v13808_v21  ;;  %10141 = vmatprep.mubr.f32.mxu0 %v13797_v16 }
  0xdc   : > { %565 = vperm.xlu1 %13213, %v13863_v7   ;;  %10221 = vmatprep.mubr.f32.mxu1 %v13797_v16 }
  0xdd   : > { %560 = vperm.xlu0 %13212, %v13867_v8   ;;  %11933 = vmatpush3.bf16.msra.mxu0 %v11930_v4  ;;  %v11954_v4 = vpack.c.bf16 %v1150_v2, %v1149_v1 }
  0xde   : > { %10142 = vmatmul.mubr.f32.gmra.mrb[2].mxu0 %v13805_v19  ;;  %11965 = vmatpush3.bf16.msra.mxu1 %v11962_v6  ;;  %v1581_v6 = vld [vmem:[#allocation12 + $0x1d0] sm:$0xff] }
  0xdf   : > { %10222 = vmatmul.mubr.f32.gmra.mrb[2].mxu1 %v13805_v19  ;;  %10144 = vmatprep.mubr.f32.mxu0 %v13818_v29  ;;  %v11982_v12 = vpack.c.bf16 %v1582_v9, %v1581_v6 }
  0xe0   : > { %575 = vperm.xlu1 %13213, %v13875_v13   ;;  %10224 = vmatprep.mubr.f32.mxu1 %v13818_v29 }
  0xe1   : > { %570 = vperm.xlu0 %13212, %v13879_v15   ;;  %11935 = vmatprep.subr.bf16.mxu0 %v11934_v14 }
  0xe2   : > { %10145 = vmatmul.mubr.f32.gmra.mrb[4].mxu0 %v13815_v27  ;;  %11967 = vmatprep.subr.bf16.mxu1 %v11966_v18 }
  0xe3   : > { %10225 = vmatmul.mubr.f32.gmra.mrb[4].mxu1 %v13815_v27  ;;  %10147 = vmatprep.mubr.f32.mxu0 %v13826_v37 }
  0xe4   : > { %585 = vperm.xlu1 %13213, %v13887_v20   ;;  %10227 = vmatprep.mubr.f32.mxu1 %v13826_v37 }
  0xe5   : > { %580 = vperm.xlu0 %13212, %v13891_v22   ;;  %11937 = vmatpush3.bf16.msra.mxu0 %v11934_v14  ;;  %v11958_v14 = vpack.c.bf16 %v1152_v11, %v1151_v10 }
  0xe6   : > { %10148 = vmatmul.mubr.f32.gmra.mrb[6].mxu0 %v13823_v35  ;;  %11969 = vmatpush3.bf16.msra.mxu1 %v11966_v18  ;;  %v1583_v18 = vld [vmem:[#allocation12 + $0x1e0] sm:$0xff] }
  0xe7   : > { %10228 = vmatmul.mubr.f32.gmra.mrb[6].mxu1 %v13823_v35  ;;  %10150 = vmatprep.mubr.f32.mxu0 %v13834_v45  ;;  %v11986_v24 = vpack.c.bf16 %v1584_v23, %v1583_v18 }
  0xe8   : > { %595 = vperm.xlu1 %13213, %v13899_v28   ;;  %10230 = vmatprep.mubr.f32.mxu1 %v13834_v45 }
  0xe9   : > { %590 = vperm.xlu0 %13212, %v13903_v31   ;;  %11939 = vmatprep.subr.bf16.mxu0 %v11938_v30 }
  0xea   : > { %10151 = vmatmul.mubr.f32.gmra.mrb[8].mxu0 %v13831_v43  ;;  %11971 = vmatprep.subr.bf16.mxu1 %v11970_v32 }
  0xeb   : > { %10231 = vmatmul.mubr.f32.gmra.mrb[8].mxu1 %v13831_v43  ;;  %10153 = vmatprep.mubr.f32.mxu0 %v13842_v53 }
  0xec   : > { %605 = vperm.xlu1 %13213, %v13911_v33   ;;  %10233 = vmatprep.mubr.f32.mxu1 %v13842_v53 }
  0xed   : > { %600 = vperm.xlu0 %13212, %v13915_v34   ;;  %11941 = vmatpush3.bf16.msra.mxu0 %v11938_v30  ;;  %v11990_v30 = vpack.c.bf16 %v1586_v26, %v1585_v25 }
  0xee   : > { %10154 = vmatmul.mubr.f32.gmra.mrb[10].mxu0 %v13839_v51  ;;  %11973 = vmatpush3.bf16.msra.mxu1 %v11970_v32 }
  0xef   : > { %10234 = vmatmul.mubr.f32.gmra.mrb[10].mxu1 %v13839_v51  ;;  %10156 = vmatprep.mubr.f32.mxu0 %v13850_v61 }
  0xf0   : > { %615 = vperm.xlu1 %13213, %v13923_v41   ;;  %10236 = vmatprep.mubr.f32.mxu1 %v13850_v61 }
  0xf1   : > { %610 = vperm.xlu0 %13212, %v13927_v44   ;;  %11943 = vmatprep.subr.bf16.mxu0 %v11942_v42 }
  0xf2   : > { %10157 = vmatmul.mubr.f32.gmra.mrb[12].mxu0 %v13847_v59  ;;  %11975 = vmatprep.subr.bf16.mxu1 %v11974_v46 }
  0xf3   : > { %10237 = vmatmul.mubr.f32.gmra.mrb[12].mxu1 %v13847_v59  ;;  %10159 = vmatprep.mubr.f32.mxu0 %v13858_v5 }
  0xf4   : > { %625 = vperm.xlu1 %13213, %v13935_v47   ;;  %10239 = vmatprep.mubr.f32.mxu1 %v13858_v5 }
  0xf5   : > { %620 = vperm.xlu0 %13212, %v13939_v48   ;;  %11945 = vmatpush3.bf16.msra.mxu0 %v11942_v42 }
  0xf6   : > { %10160 = vmatmul.mubr.f32.gmra.mrb[14].mxu0 %v13855_v3  ;;  %11977 = vmatpush3.bf16.msra.mxu1 %v11974_v46 }
  0xf7   : > { %10240 = vmatmul.mubr.f32.gmra.mrb[14].mxu1 %v13855_v3  ;;  %10162 = vmatprep.mubr.f32.mxu0 %v13867_v8 }
  0xf8   : > { %635 = vperm.xlu1 %13213, %v13947_v55   ;;  %10242 = vmatprep.mubr.f32.mxu1 %v13867_v8 }
  0xf9   : > { %630 = vperm.xlu0 %13212, %v13951_v57   ;;  %11947 = vmatprep.subr.bf16.mxu0 %v11946_v56 }
  0xfa   : > { %10163 = vmatmul.mubr.f32.gmra.mrb[16].mxu0 %v13863_v7  ;;  %11979 = vmatprep.subr.bf16.mxu1 %v11978_v58 }
  0xfb   : > { %10243 = vmatmul.mubr.f32.gmra.mrb[16].mxu1 %v13863_v7  ;;  %10165 = vmatprep.mubr.f32.mxu0 %v13879_v15 }
  0xfc   : > { %13215 = vset.pattern.permute.xlu1 %v13573_v63  ;;  %10245 = vmatprep.mubr.f32.mxu1 %v13879_v15 }
  0xfd   : > { %13214 = vset.pattern.permute.xlu0 %v13573_v63  ;;  %949 = vperm.xlu1 %13215, %v13808_v21  }
  0xfe   : > { %945 = vperm.xlu0 %13214, %v13800_v17   ;;  %10166 = vmatmul.mubr.f32.gmra.mrb[18].mxu0 %v13875_v13 }
  0xff   : > { %10246 = vmatmul.mubr.f32.gmra.mrb[18].mxu1 %v13875_v13  ;;  %10168 = vmatprep.mubr.f32.mxu0 %v13891_v22 }
 0x100   : > { %10248 = vmatprep.mubr.f32.mxu1 %v13891_v22  ;;  %11949 = vmatpush3.bf16.msra.mxu0 %v11946_v56 }
 0x101   : > { %953 = vperm.xlu1 %13215, %v13797_v16   ;;  %11951 = vmatprep.subr.bf16.mxu0 %v11950_v0 }
 0x102   : > { %957 = vperm.xlu0 %13214, %v13805_v19   ;;  %10169 = vmatmul.mubr.f32.gmra.mrb[20].mxu0 %v13887_v20 }
 0x103   : > { %10249 = vmatmul.mubr.f32.gmra.mrb[20].mxu1 %v13887_v20  ;;  %10171 = vmatprep.mubr.f32.mxu0 %v13903_v31 }
 0x104   : > { %10251 = vmatprep.mubr.f32.mxu1 %v13903_v31  ;;  %11981 = vmatpush3.bf16.msra.mxu1 %v11978_v58 }
 0x105   : > { %961 = vperm.xlu1 %13215, %v13818_v29   ;;  %11953 = vmatpush3.bf16.msra.mxu0 %v11950_v0 }
 0x106   : > { %965 = vperm.xlu0 %13214, %v13815_v27   ;;  %10172 = vmatmul.mubr.f32.gmra.mrb[22].mxu0 %v13899_v28 }
 0x107   : > { %10252 = vmatmul.mubr.f32.gmra.mrb[22].mxu1 %v13899_v28  ;;  %10174 = vmatprep.mubr.f32.mxu0 %v13915_v34 }
 0x108   : > { %10254 = vmatprep.mubr.f32.mxu1 %v13915_v34  ;;  %11955 = vmatprep.subr.bf16.mxu0 %v11954_v4 }
 0x109   : > { %969 = vperm.xlu1 %13215, %v13826_v37   ;;  %11957 = vmatpush3.bf16.msra.mxu0 %v11954_v4 }
 0x10a   : > { %973 = vperm.xlu0 %13214, %v13823_v35   ;;  %10175 = vmatmul.mubr.f32.gmra.mrb[24].mxu0 %v13911_v33 }
 0x10b   : > { %10255 = vmatmul.mubr.f32.gmra.mrb[24].mxu1 %v13911_v33  ;;  %10177 = vmatprep.mubr.f32.mxu0 %v13927_v44 }
 0x10c   : > { %10257 = vmatprep.mubr.f32.mxu1 %v13927_v44  ;;  %11983 = vmatprep.subr.bf16.mxu1 %v11982_v12 }
 0x10d   : > { %977 = vperm.xlu1 %13215, %v13834_v45   ;;  %11959 = vmatprep.subr.bf16.mxu0 %v11958_v14 }
 0x10e   : > { %981 = vperm.xlu0 %13214, %v13831_v43   ;;  %10178 = vmatmul.mubr.f32.gmra.mrb[26].mxu0 %v13923_v41 }
 0x10f   : > { %10258 = vmatmul.mubr.f32.gmra.mrb[26].mxu1 %v13923_v41  ;;  %10180 = vmatprep.mubr.f32.mxu0 %v13939_v48 }
 0x110   : > { %10260 = vmatprep.mubr.f32.mxu1 %v13939_v48  ;;  %11985 = vmatpush3.bf16.msra.mxu1 %v11982_v12 }
 0x111   : > { %985 = vperm.xlu1 %13215, %v13842_v53   ;;  %11961 = vmatpush3.bf16.msra.mxu0 %v11958_v14 }
 0x112   : > { %989 = vperm.xlu0 %13214, %v13839_v51   ;;  %10181 = vmatmul.mubr.f32.gmra.mrb[28].mxu0 %v13935_v47 }
 0x113   : > { %10261 = vmatmul.mubr.f32.gmra.mrb[28].mxu1 %v13935_v47  ;;  %10183 = vmatprep.mubr.f32.mxu0 %v13951_v57 }
 0x114   : > { %10263 = vmatprep.mubr.f32.mxu1 %v13951_v57  ;;  %11987 = vmatprep.subr.bf16.mxu1 %v11986_v24 }
 0x115   : > { %993 = vperm.xlu1 %13215, %v13850_v61   ;;  %11989 = vmatpush3.bf16.msra.mxu1 %v11986_v24 }
 0x116   : > { %997 = vperm.xlu0 %13214, %v13847_v59   ;;  %10184 = vmatmul.mubr.f32.gmra.mrb[30].mxu0 %v13947_v55 }
 0x117   : > { %10264 = vmatmul.mubr.f32.gmra.mrb[30].mxu1 %v13947_v55  ;;  %10298 = vmatprep.mubr.f32.mxu0 %v13800_v17 }
 0x118   : > { %11991 = vmatprep.subr.bf16.mxu1 %v11990_v30  ;;  %10378 = vmatprep.mubr.f32.mxu1 %v13800_v17 }
 0x119   : > { %1001 = vperm.xlu1 %13215, %v13858_v5   ;;  %11993 = vmatpush3.bf16.msra.mxu1 %v11990_v30 }
 0x11a   : > { %1005 = vperm.xlu0 %13214, %v13855_v3   ;;  %10299 = vmatmul.mubr.f32.vlgmr.msra.gmra.mrb[32].mxu0 %v13808_v21 }
 0x11b   : > { %10301 = vmatprep.mubr.f32.mxu0 %v13797_v16 }
 0x11c   : > { %10379 = vmatmul.mubr.f32.vlgmr.msra.gmra.mrb[32].mxu1 %v13808_v21 }
 0x11d   : > { %1009 = vperm.xlu1 %13215, %v13867_v8   ;;  %10381 = vmatprep.mubr.f32.mxu1 %v13797_v16 }
 0x11e   : > { %1013 = vperm.xlu0 %13214, %v13863_v7   ;;  %10302 = vmatmul.mubr.f32.gmra.mrb[34].mxu0 %v13805_v19 }
 0x11f   : > { %10304 = vmatprep.mubr.f32.mxu0 %v13818_v29 }
 0x120   : > { %10382 = vmatmul.mubr.f32.gmra.mrb[34].mxu1 %v13805_v19 }
 0x121   : > { %1017 = vperm.xlu1 %13215, %v13879_v15   ;;  %10384 = vmatprep.mubr.f32.mxu1 %v13818_v29 }
 0x122   : > { %1021 = vperm.xlu0 %13214, %v13875_v13   ;;  %10305 = vmatmul.mubr.f32.gmra.mrb[36].mxu0 %v13815_v27 }
 0x123   : > { %10307 = vmatprep.mubr.f32.mxu0 %v13826_v37 }
 0x124   : > { %10385 = vmatmul.mubr.f32.gmra.mrb[36].mxu1 %v13815_v27 }
 0x125   : > { %1025 = vperm.xlu1 %13215, %v13891_v22   ;;  %10387 = vmatprep.mubr.f32.mxu1 %v13826_v37 }
 0x126   : > { %1029 = vperm.xlu0 %13214, %v13887_v20   ;;  %10308 = vmatmul.mubr.f32.gmra.mrb[38].mxu0 %v13823_v35 }
 0x127   : > { %10310 = vmatprep.mubr.f32.mxu0 %v13834_v45 }
 0x128   : > { %10388 = vmatmul.mubr.f32.gmra.mrb[38].mxu1 %v13823_v35 }
 0x129   : > { %1033 = vperm.xlu1 %13215, %v13903_v31   ;;  %10390 = vmatprep.mubr.f32.mxu1 %v13834_v45 }
 0x12a   : > { %1037 = vperm.xlu0 %13214, %v13899_v28   ;;  %10311 = vmatmul.mubr.f32.gmra.mrb[40].mxu0 %v13831_v43 }
 0x12b   : > { %10313 = vmatprep.mubr.f32.mxu0 %v13842_v53 }
 0x12c   : > { %10391 = vmatmul.mubr.f32.gmra.mrb[40].mxu1 %v13831_v43 }
 0x12d   : > { %1041 = vperm.xlu1 %13215, %v13915_v34   ;;  %10393 = vmatprep.mubr.f32.mxu1 %v13842_v53 }
 0x12e   : > { %1045 = vperm.xlu0 %13214, %v13911_v33   ;;  %10314 = vmatmul.mubr.f32.gmra.mrb[42].mxu0 %v13839_v51 }
 0x12f   : > { %10316 = vmatprep.mubr.f32.mxu0 %v13850_v61 }
 0x130   : > { %10394 = vmatmul.mubr.f32.gmra.mrb[42].mxu1 %v13839_v51 }
 0x131   : > { %1049 = vperm.xlu1 %13215, %v13927_v44   ;;  %10396 = vmatprep.mubr.f32.mxu1 %v13850_v61 }
 0x132   : > { %1053 = vperm.xlu0 %13214, %v13923_v41   ;;  %10317 = vmatmul.mubr.f32.gmra.mrb[44].mxu0 %v13847_v59 }
 0x133   : > { %10319 = vmatprep.mubr.f32.mxu0 %v13858_v5 }
 0x134   : > { %10397 = vmatmul.mubr.f32.gmra.mrb[44].mxu1 %v13847_v59 }
 0x135   : > { %1057 = vperm.xlu1 %13215, %v13939_v48   ;;  %10399 = vmatprep.mubr.f32.mxu1 %v13858_v5 }
 0x136   : > { %1061 = vperm.xlu0 %13214, %v13935_v47   ;;  %10320 = vmatmul.mubr.f32.gmra.mrb[46].mxu0 %v13855_v3 }
 0x137   : > { %10322 = vmatprep.mubr.f32.mxu0 %v13867_v8 }
 0x138   : > { %10400 = vmatmul.mubr.f32.gmra.mrb[46].mxu1 %v13855_v3 }
 0x139   : > { %1065 = vperm.xlu1 %13215, %v13951_v57   ;;  %10402 = vmatprep.mubr.f32.mxu1 %v13867_v8 }
 0x13a   : > { %1069 = vperm.xlu0 %13214, %v13947_v55   ;;  %10323 = vmatmul.mubr.f32.gmra.mrb[48].mxu0 %v13863_v7 }
 0x13b   : > { %v14055_v32 = vpop.permute.xlu1 %490  ;;  %10325 = vmatprep.mubr.f32.mxu0 %v13879_v15 }
 0x13c   : > { %v14058_v36 = vpop.permute.xlu0 %480  ;;  %10403 = vmatmul.mubr.f32.gmra.mrb[48].mxu1 %v13863_v7 }
 0x13d   : > { %13216 = vset.pattern.permute.xlu1 %v13574_v38  ;;  %10405 = vmatprep.mubr.f32.mxu1 %v13879_v15 }
 0x13e   : > { %13217 = vset.pattern.permute.xlu0 %v13574_v38  ;;  %1379 = vperm.xlu1 %13216, %v13800_v17  }
 0x13f   : > { %1383 = vperm.xlu0 %13217, %v13808_v21   ;;  %10326 = vmatmul.mubr.f32.gmra.mrb[50].mxu0 %v13875_v13  ;;  %v14065_v39 = vpop.permute.xlu1 %495 }
 0x140   : > { %v14067_v40 = vpop.permute.xlu0 %485  ;;  %10328 = vmatprep.mubr.f32.mxu0 %v13891_v22  ;;  %10406 = vmatmul.mubr.f32.gmra.mrb[50].mxu1 %v13875_v13 }
 0x141   : > { %10408 = vmatprep.mubr.f32.mxu1 %v13891_v22 }
 0x142   : > { %1387 = vperm.xlu1 %13216, %v13797_v16  }
 0x143   : > { %1395 = vperm.xlu0 %13217, %v13818_v29   ;;  %10329 = vmatmul.mubr.f32.gmra.mrb[52].mxu0 %v13887_v20  ;;  %v14075_v42 = vpop.permute.xlu1 %505 }
 0x144   : > { %v14077_v46 = vpop.permute.xlu0 %500  ;;  %10331 = vmatprep.mubr.f32.mxu0 %v13903_v31  ;;  %10409 = vmatmul.mubr.f32.gmra.mrb[52].mxu1 %v13887_v20 }
 0x145   : > { %10411 = vmatprep.mubr.f32.mxu1 %v13903_v31 }
 0x146   : > { %1391 = vperm.xlu1 %13216, %v13805_v19  }
 0x147   : > { %1403 = vperm.xlu0 %13217, %v13826_v37   ;;  %10332 = vmatmul.mubr.f32.gmra.mrb[54].mxu0 %v13899_v28  ;;  %v14085_v49 = vpop.permute.xlu1 %515 }
 0x148   : > { %v14087_v50 = vpop.permute.xlu0 %510  ;;  %10334 = vmatprep.mubr.f32.mxu0 %v13915_v34  ;;  %10412 = vmatmul.mubr.f32.gmra.mrb[54].mxu1 %v13899_v28 }
 0x149   : > { %10414 = vmatprep.mubr.f32.mxu1 %v13915_v34 }
 0x14a   : > { %1399 = vperm.xlu1 %13216, %v13815_v27  }
 0x14b   : > { %1411 = vperm.xlu0 %13217, %v13834_v45   ;;  %10335 = vmatmul.mubr.f32.gmra.mrb[56].mxu0 %v13911_v33  ;;  %v14095_v52 = vpop.permute.xlu1 %525 }
 0x14c   : > { %v14097_v54 = vpop.permute.xlu0 %520  ;;  %10337 = vmatprep.mubr.f32.mxu0 %v13927_v44  ;;  %10415 = vmatmul.mubr.f32.gmra.mrb[56].mxu1 %v13911_v33 }
 0x14d   : > { %10417 = vmatprep.mubr.f32.mxu1 %v13927_v44 }
 0x14e   : > { %1407 = vperm.xlu1 %13216, %v13823_v35  }
 0x14f   : > { %1419 = vperm.xlu0 %13217, %v13842_v53   ;;  %10338 = vmatmul.mubr.f32.gmra.mrb[58].mxu0 %v13923_v41  ;;  %v14105_v56 = vpop.permute.xlu1 %535 }
 0x150   : > { %v14107_v58 = vpop.permute.xlu0 %530  ;;  %10340 = vmatprep.mubr.f32.mxu0 %v13939_v48  ;;  %10418 = vmatmul.mubr.f32.gmra.mrb[58].mxu1 %v13923_v41 }
 0x151   : > { %10420 = vmatprep.mubr.f32.mxu1 %v13939_v48 }
 0x152   : > { %1415 = vperm.xlu1 %13216, %v13831_v43  }
 0x153   : > { %1427 = vperm.xlu0 %13217, %v13850_v61   ;;  %10341 = vmatmul.mubr.f32.gmra.mrb[60].mxu0 %v13935_v47  ;;  %v14115_v60 = vpop.permute.xlu1 %545 }
 0x154   : > { %v14117_v62 = vpop.permute.xlu0 %540  ;;  %10343 = vmatprep.mubr.f32.mxu0 %v13951_v57  ;;  %10421 = vmatmul.mubr.f32.gmra.mrb[60].mxu1 %v13935_v47 }
 0x155   : > { %10423 = vmatprep.mubr.f32.mxu1 %v13951_v57 }
 0x156   : > { %1423 = vperm.xlu1 %13216, %v13839_v51  }
 0x157   : > { %1435 = vperm.xlu0 %13217, %v13858_v5   ;;  %10344 = vmatmul.mubr.f32.gmra.mrb[62].mxu0 %v13947_v55  ;;  %v14125_v63 = vpop.permute.xlu1 %555 }
 0x158   : > { %v14127_v0 = vpop.permute.xlu0 %550  ;;  %10424 = vmatmul.mubr.f32.gmra.mrb[62].mxu1 %v13947_v55 }
 0x15a   : > { %1431 = vperm.xlu1 %13216, %v13847_v59  }
 0x15b   : > { %1443 = vperm.xlu0 %13217, %v13867_v8   ;;  %v14132_v1 = vpop.permute.xlu1 %565 }
 0x15c   : > { %v14134_v2 = vpop.permute.xlu0 %560 }
 0x15e   : > { %1439 = vperm.xlu1 %13216, %v13855_v3  }
 0x15f   : > { %1451 = vperm.xlu0 %13217, %v13879_v15   ;;  %v14138_v4 = vpop.permute.xlu1 %575 }
 0x160   : > { %v14140_v6 = vpop.permute.xlu0 %570 }
 0x162   : > { %1447 = vperm.xlu1 %13216, %v13863_v7  }
 0x163   : > { %1459 = vperm.xlu0 %13217, %v13891_v22   ;;  %v14144_v9 = vpop.permute.xlu1 %585 }
 0x164   : > { %v14146_v10 = vpop.permute.xlu0 %580 }
 0x165   : > { %16461 = vst [vmem:[#allocation31_spill] sm:$0xff] %v14146_v10 }
 0x166   : > { %1455 = vperm.xlu1 %13216, %v13875_v13  }
 0x167   : > { %1467 = vperm.xlu0 %13217, %v13903_v31   ;;  %v14150_v11 = vpop.permute.xlu1 %595 }
 0x168   : > { %16462 = vst [vmem:[#allocation32_spill] sm:$0xff] %v14150_v11  ;;  %v14152_v12 = vpop.permute.xlu0 %590 }
 0x169   : > { %16463 = vst [vmem:[#allocation33_spill] sm:$0xff] %v14152_v12 }
 0x16a   : > { %1463 = vperm.xlu1 %13216, %v13887_v20  }
 0x16b   : > { %1475 = vperm.xlu0 %13217, %v13915_v34   ;;  %v14156_v14 = vpop.permute.xlu1 %605 }
 0x16c   : > { %16464 = vst [vmem:[#allocation34_spill] sm:$0xff] %v14156_v14  ;;  %v14158_v18 = vpop.permute.xlu0 %600 }
 0x16d   : > { %16465 = vst [vmem:[#allocation35_spill] sm:$0xff] %v14158_v18 }
 0x16e   : > { %1471 = vperm.xlu1 %13216, %v13899_v28  }
 0x16f   : > { %1483 = vperm.xlu0 %13217, %v13927_v44   ;;  %v14162_v23 = vpop.permute.xlu1 %615 }
 0x170   : > { %16466 = vst [vmem:[#allocation36_spill] sm:$0xff] %v14162_v23  ;;  %v14164_v24 = vpop.permute.xlu0 %610  ;;  %v13575_v23 = vmov 7  }
 0x171   : > { %16467 = vst [vmem:[#allocation37_spill] sm:$0xff] %v14164_v24 }
 0x172   : > { %1479 = vperm.xlu1 %13216, %v13911_v33  }
 0x173   : > { %1491 = vperm.xlu0 %13217, %v13939_v48   ;;  %v14168_v25 = vpop.permute.xlu1 %625 }
 0x174   : > { %16468 = vst [vmem:[#allocation38_spill] sm:$0xff] %v14168_v25  ;;  %v14170_v26 = vpop.permute.xlu0 %620 }
 0x175   : > { %16469 = vst [vmem:[#allocation39_spill] sm:$0xff] %v14170_v26 }
 0x176   : > { %1487 = vperm.xlu1 %13216, %v13923_v41  }
 0x177   : > { %1499 = vperm.xlu0 %13217, %v13951_v57   ;;  %v14174_v30 = vpop.permute.xlu1 %635 }
 0x178   : > { %16470 = vst [vmem:[#allocation40_spill] sm:$0xff] %v14174_v30  ;;  %v14176_v38 = vpop.permute.xlu0 %630 }
 0x179   : > { %16471 = vst [vmem:[#allocation41_spill] sm:$0xff] %v14176_v38 }
 0x17a   : > { %1495 = vperm.xlu1 %13216, %v13935_v47  }
 0x17b   : > { %13218 = vset.pattern.permute.xlu0 %v13575_v23 }
 0x17c   : > { %1813 = vperm.xlu0 %13218, %v13800_v17   ;;  %v950_v24 = vpop.permute.xlu1 %949 }
 0x17d   : > { %v946_v18 = vpop.permute.xlu0 %945 }
 0x17e   : > { %1503 = vperm.xlu1 %13216, %v13947_v55  }
 0x180   : > { %1825 = vperm.xlu0 %13218, %v13805_v19   ;;  %v14182_v26 = vpop.permute.xlu1 %953 }
 0x181   : > { %v14184_v25 = vpop.permute.xlu0 %957 }
 0x182   : > { %13219 = vset.pattern.permute.xlu1 %v13575_v23 }
 0x183   : > { %1817 = vperm.xlu1 %13219, %v13808_v21  }
 0x184   : > { %1833 = vperm.xlu0 %13218, %v13815_v27   ;;  %v14188_v38 = vpop.permute.xlu1 %961 }
 0x185   : > { %v14190_v30 = vpop.permute.xlu0 %965 }
 0x187   : > { %1821 = vperm.xlu1 %13219, %v13797_v16  }
 0x188   : > { %1841 = vperm.xlu0 %13218, %v13823_v35   ;;  %v14194_v17 = vpop.permute.xlu1 %969 }
 0x189   : > { %v14196_v19 = vpop.permute.xlu0 %973 }
 0x18b   : > { %1829 = vperm.xlu1 %13219, %v13818_v29  }
 0x18c   : > { %1849 = vperm.xlu0 %13218, %v13831_v43   ;;  %v14200_v23 = vpop.permute.xlu1 %977 }
 0x18d   : > { %v14202_v21 = vpop.permute.xlu0 %981 }
 0x18f   : > { %1837 = vperm.xlu1 %13219, %v13826_v37  }
 0x190   : > { %1857 = vperm.xlu0 %13218, %v13839_v51   ;;  %v14206_v27 = vpop.permute.xlu1 %985 }
 0x191   : > { %v14208_v16 = vpop.permute.xlu0 %989 }
 0x193   : > { %1845 = vperm.xlu1 %13219, %v13834_v45  }
 0x194   : > { %1865 = vperm.xlu0 %13218, %v13847_v59   ;;  %v14212_v35 = vpop.permute.xlu1 %993 }
 0x195   : > { %v14214_v29 = vpop.permute.xlu0 %997 }
 0x197   : > { %1853 = vperm.xlu1 %13219, %v13842_v53  }
 0x198   : > { %1873 = vperm.xlu0 %13218, %v13855_v3   ;;  %v14218_v43 = vpop.permute.xlu1 %1001 }
 0x199   : > { %v14220_v37 = vpop.permute.xlu0 %1005 }
 0x19b   : > { %1861 = vperm.xlu1 %13219, %v13850_v61  }
 0x19c   : > { %1881 = vperm.xlu0 %13218, %v13863_v7   ;;  %v14224_v51 = vpop.permute.xlu1 %1009 }
 0x19d   : > { %v14226_v45 = vpop.permute.xlu0 %1013 }
 0x19f   : > { %1869 = vperm.xlu1 %13219, %v13858_v5  }
 0x1a0   : > { %1889 = vperm.xlu0 %13218, %v13875_v13   ;;  %v14230_v53 = vpop.permute.xlu1 %1017 }
 0x1a1   : > { %v14232_v59 = vpop.permute.xlu0 %1021 }
 0x1a3   : > { %1877 = vperm.xlu1 %13219, %v13867_v8  }
 0x1a4   : > { %1897 = vperm.xlu0 %13218, %v13887_v20   ;;  %v14236_v61 = vpop.permute.xlu1 %1025  ;;  %v206_v20 = vld [vmem:[%s14253_s28 + $0x8] sm:$0xff] }
 0x1a5   : > { %16472 = vst [vmem:[#allocation42_spill] sm:$0xff] %v14236_v61  ;;  %v14238_v3 = vpop.permute.xlu0 %1029 }
 0x1a6   : > { %16473 = vst [vmem:[#allocation43_spill] sm:$0xff] %v14238_v3 }
 0x1a7   : > { %1885 = vperm.xlu1 %13219, %v13879_v15  }
 0x1a8   : > { %1905 = vperm.xlu0 %13218, %v13899_v28   ;;  %v14242_v5 = vpop.permute.xlu1 %1033 }
 0x1a9   : > { %16474 = vst [vmem:[#allocation44_spill] sm:$0xff] %v14242_v5  ;;  %v14244_v7 = vpop.permute.xlu0 %1037  ;;  %v205_v5 = vld [vmem:[%s14253_s28] sm:$0xff] }
 0x1aa   : > { %16475 = vst [vmem:[#allocation45_spill] sm:$0xff] %v14244_v7 }
 0x1ab   : > { %1893 = vperm.xlu1 %13219, %v13891_v22  }
 0x1ac   : > { %1913 = vperm.xlu0 %13218, %v13911_v33   ;;  %v14248_v13 = vpop.permute.xlu1 %1041 }
 0x1ad   : > { %16476 = vst [vmem:[#allocation46_spill] sm:$0xff] %v14248_v13  ;;  %v14250_v8 = vpop.permute.xlu0 %1045  ;;  %v10140_v15 = vpop.f32.mrb[0].mxu0 }
 0x1ae   : > { %16477 = vst [vmem:[#allocation47_spill] sm:$0xff] %v14250_v8  ;;  %v639_v28 = vmul.f32 %v10140_v15, %v14067_v40  ;;  %v10220_v14 = vpop.f32.mrb[0].mxu1  ;;  %v319_v12 = vpop.f32.mrb[1].mxu0  ;;  %v208_v40 = vld [vmem:[%s14253_s28 + $0x18] sm:$0xff] }
 0x1af   : > { %v1073_v22 = vmul.f32 %v10220_v14, %v950_v24  ;;  %v638_v33 = vmul.f32 %v14058_v36, %v319_v12  ;;  %v785_v7 = vpop.f32.mrb[1].mxu1  ;;  %1901 = vperm.xlu1 %13219, %v13903_v31   ;;  %v207_v12 = vld [vmem:[%s14253_s28 + $0x10] sm:$0xff] }
 0x1b0   : > { %v671_v13 = vadd.f32 %v639_v28, %v206_v20  ;;  %v1072_v8 = vmul.f32 %v946_v18, %v785_v7  ;;  %1921 = vperm.xlu0 %13218, %v13923_v41   ;;  %v14261_v11 = vpop.permute.xlu1 %1049 }
 0x1b1   : > { %v670_v61 = vadd.f32 %v638_v33, %v205_v5  ;;  %v14263_v10 = vpop.permute.xlu0 %1053  ;;  %v10143_v15 = vpop.f32.mrb[2].mxu0  ;;  %v209_v33 = vld [vmem:[%s14253_s28 + $0x20] sm:$0xff] }
 0x1b2   : > { %v14266_v3 = vadd.f32 %v1073_v22, %v671_v13  ;;  %v641_v14 = vmul.f32 %v10143_v15, %v14065_v39  ;;  %v10223_v36 = vpop.f32.mrb[2].mxu1  ;;  %v329_v24 = vpop.f32.mrb[3].mxu0 }
 0x1b3   : > { %v14270_v31 = vadd.f32 %v1072_v8, %v670_v61  ;;  %v1075_v41 = vmul.f32 %v10223_v36, %v14184_v25  ;;  %v640_v18 = vmul.f32 %v14055_v32, %v329_v24  ;;  %v795_v5 = vpop.f32.mrb[3].mxu1  ;;  %1909 = vperm.xlu1 %13219, %v13915_v34   ;;  %v210_v61 = vld [vmem:[%s14253_s28 + $0x28] sm:$0xff] }
 0x1b4   : > { %v673_v7 = vadd.f32 %v641_v14, %v208_v40  ;;  %v1074_v13 = vmul.f32 %v14182_v26, %v795_v5  ;;  %1929 = vperm.xlu0 %13218, %v13935_v47   ;;  %v14277_v20 = vpop.permute.xlu1 %1057 }
 0x1b5   : > { %v672_v39 = vadd.f32 %v640_v18, %v207_v12  ;;  %v14279_v28 = vpop.permute.xlu0 %1061  ;;  %v10146_v8 = vpop.f32.mrb[4].mxu0 }
 0x1b6   : > { %v14282_v22 = vadd.f32 %v1075_v41, %v673_v7  ;;  %v643_v32 = vmul.f32 %v10146_v8, %v14075_v42  ;;  %v10226_v25 = vpop.f32.mrb[4].mxu1  ;;  %v339_v34 = vpop.f32.mrb[5].mxu0  ;;  %v212_v41 = vld [vmem:[%s14253_s28 + $0x38] sm:$0xff]  ;;  %v211_v7 = vld [vmem:[%s14253_s28 + $0x30] sm:$0xff] }
 0x1b7   : > { %v14286_v40 = vadd.f32 %v1074_v13, %v672_v39  ;;  %v1077_v47 = vmul.f32 %v10226_v25, %v14190_v30  ;;  %v642_v26 = vmul.f32 %v14077_v46, %v339_v34  ;;  %v805_v15 = vpop.f32.mrb[5].mxu1  ;;  %1917 = vperm.xlu1 %13219, %v13927_v44  }
 0x1b8   : > { %v675_v14 = vadd.f32 %v643_v32, %v210_v61  ;;  %v1076_v36 = vmul.f32 %v14188_v38, %v805_v15  ;;  %1937 = vperm.xlu0 %13218, %v13947_v55   ;;  %v14293_v12 = vpop.permute.xlu1 %1065  ;;  %v213_v15 = vld [vmem:[%s14253_s28 + $0x40] sm:$0xff] }
 0x1b9   : > { %v674_v42 = vadd.f32 %v642_v26, %v209_v33  ;;  %v14295_v24 = vpop.permute.xlu0 %1069  ;;  %v10149_v18 = vpop.f32.mrb[6].mxu0 }
 0x1ba   : > { %v14298_v5 = vadd.f32 %v1077_v47, %v675_v14  ;;  %v645_v46 = vmul.f32 %v10149_v18, %v14085_v49  ;;  %v10229_v30 = vpop.f32.mrb[6].mxu1  ;;  %v349_v44 = vpop.f32.mrb[7].mxu0  ;;  %v214_v49 = vld [vmem:[%s14253_s28 + $0x48] sm:$0xff] }
 0x1bb   : > { %v14302_v13 = vadd.f32 %v1076_v36, %v674_v42  ;;  %v1079_v38 = vmul.f32 %v10229_v30, %v14196_v19  ;;  %v644_v55 = vmul.f32 %v14087_v50, %v349_v44  ;;  %v815_v39 = vpop.f32.mrb[7].mxu1  ;;  %1925 = vperm.xlu1 %13219, %v13939_v48  }
 0x1bc   : > { %v677_v61 = vadd.f32 %v645_v46, %v212_v41  ;;  %v1078_v8 = vmul.f32 %v14194_v17, %v815_v39  ;;  %v216_v46 = vld [vmem:[%s14253_s28 + $0x58] sm:$0xff] }
 0x1bd   : > { %v676_v32 = vadd.f32 %v644_v55, %v211_v7  ;;  %v14308_v25 = vpop.permute.xlu1 %1379  ;;  %v10152_v33 = vpop.f32.mrb[8].mxu0  ;;  %v215_v55 = vld [vmem:[%s14253_s28 + $0x50] sm:$0xff] }
 0x1be   : > { %v14311_v34 = vadd.f32 %v1079_v38, %v677_v61  ;;  %v14313_v47 = vpop.permute.xlu0 %1383  ;;  %v647_v19 = vmul.f32 %v10152_v33, %v14095_v52  ;;  %v10232_v26 = vpop.f32.mrb[8].mxu1  ;;  %v218_v33 = vld [vmem:[%s14253_s28 + $0x68] sm:$0xff] }
 0x1bf   : > { %v14316_v50 = vadd.f32 %v1078_v8, %v676_v32  ;;  %v1081_v48 = vmul.f32 %v10232_v26, %v14202_v21  ;;  %v359_v17 = vpop.f32.mrb[9].mxu0  ;;  %v825_v14 = vpop.f32.mrb[9].mxu1  ;;  %1933 = vperm.xlu1 %13219, %v13951_v57  }
 0x1c0   : > { %v679_v36 = vadd.f32 %v647_v19, %v214_v49  ;;  %v646_v42 = vmul.f32 %v14097_v54, %v359_v17  ;;  %v1080_v41 = vmul.f32 %v14200_v23, %v825_v14  ;;  %v217_v14 = vld [vmem:[%s14253_s28 + $0x60] sm:$0xff] }
 0x1c1   : > { %v14323_v18 = vpop.permute.xlu1 %1387  ;;  %v10155_v52 = vpop.f32.mrb[10].mxu0 }
 0x1c2   : > { %v14326_v30 = vadd.f32 %v1081_v48, %v679_v36  ;;  %v678_v7 = vadd.f32 %v646_v42, %v213_v15  ;;  %v14328_v21 = vpop.permute.xlu0 %1395  ;;  %v649_v44 = vmul.f32 %v10155_v52, %v14105_v56  ;;  %v10235_v38 = vpop.f32.mrb[10].mxu1 }
 0x1c3   : > { %v1083_v57 = vmul.f32 %v10235_v38, %v14208_v16  ;;  %v369_v54 = vpop.f32.mrb[11].mxu0  ;;  %v835_v39 = vpop.f32.mrb[11].mxu1 }
 0x1c4   : > { %v14333_v23 = vadd.f32 %v1080_v41, %v678_v7  ;;  %v681_v61 = vadd.f32 %v649_v44, %v216_v46  ;;  %v648_v8 = vmul.f32 %v14107_v58, %v369_v54  ;;  %v1082_v32 = vmul.f32 %v14206_v27, %v835_v39  ;;  %v220_v7 = vld [vmem:[%s14253_s28 + $0x78] sm:$0xff]  ;;  %v219_v39 = vld [vmem:[%s14253_s28 + $0x70] sm:$0xff] }
 0x1c5   : > { %v14337_v49 = vpop.permute.xlu1 %1391  ;;  %v10158_v19 = vpop.f32.mrb[12].mxu0 }
 0x1c6   : > { %v14340_v56 = vadd.f32 %v1083_v57, %v681_v61  ;;  %v680_v26 = vadd.f32 %v648_v8, %v215_v55  ;;  %v14342_v16 = vpop.permute.xlu0 %1403  ;;  %v651_v48 = vmul.f32 %v10158_v19, %v14115_v60  ;;  %v10238_v15 = vpop.f32.mrb[12].mxu1 }
 0x1c7   : > { %v1085_v17 = vmul.f32 %v10238_v15, %v14214_v29  ;;  %v379_v58 = vpop.f32.mrb[13].mxu0  ;;  %v845_v36 = vpop.f32.mrb[13].mxu1 }
 0x1c8   : > { %v14347_v27 = vadd.f32 %v1082_v32, %v680_v26  ;;  %v683_v42 = vadd.f32 %v651_v48, %v218_v33  ;;  %v650_v41 = vmul.f32 %v14117_v62, %v379_v58  ;;  %v1084_v46 = vmul.f32 %v14212_v35, %v845_v36  ;;  %v222_v26 = vld [vmem:[%s14253_s28 + $0x88] sm:$0xff]  ;;  %v221_v36 = vld [vmem:[%s14253_s28 + $0x80] sm:$0xff] }
 0x1c9   : > { %v14351_v52 = vpop.permute.xlu1 %1399  ;;  %v10161_v44 = vpop.f32.mrb[14].mxu0 }
 0x1ca   : > { %v14354_v60 = vadd.f32 %v1085_v17, %v683_v42  ;;  %v682_v38 = vadd.f32 %v650_v41, %v217_v14  ;;  %v14356_v29 = vpop.permute.xlu0 %1411  ;;  %v653_v57 = vmul.f32 %v10161_v44, %v14125_v63  ;;  %v10241_v55 = vpop.f32.mrb[14].mxu1 }
 0x1cb   : > { %v1087_v54 = vmul.f32 %v10241_v55, %v14220_v37  ;;  %v389_v62 = vpop.f32.mrb[15].mxu0  ;;  %v855_v61 = vpop.f32.mrb[15].mxu1 }
 0x1cc   : > { %v14361_v35 = vadd.f32 %v1084_v46, %v682_v38  ;;  %v685_v8 = vadd.f32 %v653_v57, %v220_v7  ;;  %v652_v32 = vmul.f32 %v14127_v0, %v389_v62  ;;  %v1086_v33 = vmul.f32 %v14218_v43, %v855_v61  ;;  %v224_v38 = vld [vmem:[%s14253_s28 + $0x98] sm:$0xff]  ;;  %v223_v61 = vld [vmem:[%s14253_s28 + $0x90] sm:$0xff] }
 0x1cd   : > { %v14365_v19 = vpop.permute.xlu1 %1407  ;;  %v10164_v48 = vpop.f32.mrb[16].mxu0 }
 0x1ce   : > { %v14368_v63 = vadd.f32 %v1087_v54, %v685_v8  ;;  %v684_v15 = vadd.f32 %v652_v32, %v219_v39  ;;  %v14370_v37 = vpop.permute.xlu0 %1419  ;;  %v655_v17 = vmul.f32 %v10164_v48, %v14132_v1  ;;  %v10244_v14 = vpop.f32.mrb[16].mxu1 }
 0x1cf   : > { %v1089_v58 = vmul.f32 %v10244_v14, %v14226_v45  ;;  %v399_v0 = vpop.f32.mrb[17].mxu0  ;;  %v865_v42 = vpop.f32.mrb[17].mxu1 }
 0x1d0   : > { %v14375_v43 = vadd.f32 %v1086_v33, %v684_v15  ;;  %v687_v41 = vadd.f32 %v655_v17, %v222_v26  ;;  %v654_v46 = vmul.f32 %v14134_v2, %v399_v0  ;;  %v1088_v7 = vmul.f32 %v14224_v51, %v865_v42  ;;  %v226_v15 = vld [vmem:[%s14253_s28 + $0xa8] sm:$0xff]  ;;  %v16479_v0 = vld [vmem:[#allocation43_spill] sm:$0xff] }
 0x1d1   : > { %v14379_v44 = vpop.permute.xlu1 %1415  ;;  %v10167_v57 = vpop.f32.mrb[18].mxu0 }
 0x1d2   : > { %v14382_v1 = vadd.f32 %v1089_v58, %v687_v41  ;;  %v686_v55 = vadd.f32 %v654_v46, %v221_v36  ;;  %v14384_v45 = vpop.permute.xlu0 %1427  ;;  %v657_v54 = vmul.f32 %v10167_v57, %v14138_v4  ;;  %v10247_v39 = vpop.f32.mrb[18].mxu1  ;;  %v225_v41 = vld [vmem:[%s14253_s28 + $0xa0] sm:$0xff] }
 0x1d3   : > { %v1091_v62 = vmul.f32 %v10247_v39, %v14232_v59  ;;  %v409_v2 = vpop.f32.mrb[19].mxu0  ;;  %v875_v8 = vpop.f32.mrb[19].mxu1 }
 0x1d4   : > { %v14389_v51 = vadd.f32 %v1088_v7, %v686_v55  ;;  %v689_v32 = vadd.f32 %v657_v54, %v224_v38  ;;  %v656_v33 = vmul.f32 %v14140_v6, %v409_v2  ;;  %v1090_v26 = vmul.f32 %v14230_v53, %v875_v8  ;;  %v16481_v38 = vld [vmem:[#allocation31_spill] sm:$0xff]  ;;  %v16482_v55 = vld [vmem:[#allocation42_spill] sm:$0xff] }
 0x1d5   : > { %v14393_v48 = vpop.permute.xlu1 %1423  ;;  %v10170_v17 = vpop.f32.mrb[20].mxu0 }
 0x1d6   : > { %v14396_v4 = vadd.f32 %v1091_v62, %v689_v32  ;;  %v688_v14 = vadd.f32 %v656_v33, %v223_v61  ;;  %v14398_v59 = vpop.permute.xlu0 %1435  ;;  %v659_v58 = vmul.f32 %v10170_v17, %v14144_v9  ;;  %v10250_v36 = vpop.f32.mrb[20].mxu1  ;;  %v228_v62 = vld [vmem:[%s14253_s28 + $0xb8] sm:$0xff] }
 0x1d7   : > { %v1093_v42 = vmul.f32 %v10250_v36, %v16479_v0  ;;  %v419_v6 = vpop.f32.mrb[21].mxu0  ;;  %v885_v46 = vpop.f32.mrb[21].mxu1  ;;  %v16484_v32 = vld [vmem:[#allocation32_spill] sm:$0xff] }
 0x1d8   : > { %16478 = vst [vmem:[#allocation48_spill] sm:$0xff] %v14396_v4  ;;  %v14403_v53 = vadd.f32 %v1090_v26, %v688_v14  ;;  %v691_v7 = vadd.f32 %v659_v58, %v226_v15  ;;  %v658_v57 = vmul.f32 %v16481_v38, %v419_v6  ;;  %v1092_v54 = vmul.f32 %v16482_v55, %v885_v46  ;;  %v16485_v26 = vld [vmem:[#allocation45_spill] sm:$0xff]  ;;  %v227_v15 = vld [vmem:[%s14253_s28 + $0xb0] sm:$0xff]  ;;  %v16488_v55 = vld [vmem:[#allocation44_spill] sm:$0xff] }
 0x1d9   : > { %v14407_v39 = vpop.permute.xlu1 %1431  ;;  %v10173_v61 = vpop.f32.mrb[22].mxu0  ;;  %v16487_v46 = vld [vmem:[#allocation33_spill] sm:$0xff]  ;;  %v16495_v4 = vld [vmem:[#allocation46_spill] sm:$0xff] }
 0x1da   : > { %16480 = vst [vmem:[#allocation43_spill] sm:$0xff] %v14403_v53  ;;  %v14410_v9 = vadd.f32 %v1093_v42, %v691_v7  ;;  %v690_v2 = vadd.f32 %v658_v57, %v225_v41  ;;  %v14412_v8 = vpop.permute.xlu0 %1443  ;;  %v661_v33 = vmul.f32 %v10173_v61, %v16484_v32  ;;  %v10253_v17 = vpop.f32.mrb[22].mxu1  ;;  %v230_v41 = vld [vmem:[%s14253_s28 + $0xc8] sm:$0xff] }
 0x1db   : > { %v1095_v14 = vmul.f32 %v10253_v17, %v16485_v26  ;;  %v429_v58 = vpop.f32.mrb[23].mxu0  ;;  %v895_v36 = vpop.f32.mrb[23].mxu1  ;;  %v16491_v26 = vld [vmem:[#allocation34_spill] sm:$0xff] }
 0x1dc   : > { %16483 = vst [vmem:[#allocation31_spill] sm:$0xff] %v14410_v9  ;;  %v14417_v0 = vadd.f32 %v1092_v54, %v690_v2  ;;  %v693_v6 = vadd.f32 %v661_v33, %v228_v62  ;;  %v660_v38 = vmul.f32 %v16487_v46, %v429_v58  ;;  %v1094_v42 = vmul.f32 %v16488_v55, %v895_v36  ;;  %v16492_v54 = vld [vmem:[#allocation47_spill] sm:$0xff]  ;;  %v229_v62 = vld [vmem:[%s14253_s28 + $0xc0] sm:$0xff] }
 0x1dd   : > { %v14421_v7 = vpop.permute.xlu1 %1439  ;;  %v10176_v57 = vpop.f32.mrb[24].mxu0  ;;  %v16494_v55 = vld [vmem:[#allocation35_spill] sm:$0xff] }
 0x1de   : > { %16486 = vst [vmem:[#allocation42_spill] sm:$0xff] %v14417_v0  ;;  %v14424_v61 = vadd.f32 %v1095_v14, %v693_v6  ;;  %v692_v32 = vadd.f32 %v660_v38, %v227_v15  ;;  %v14426_v17 = vpop.permute.xlu0 %1451  ;;  %v663_v9 = vmul.f32 %v10176_v57, %v16491_v26  ;;  %v10256_v53 = vpop.f32.mrb[24].mxu1  ;;  %v232_v15 = vld [vmem:[%s14253_s28 + $0xd8] sm:$0xff] }
 0x1df   : > { %16490 = vst [vmem:[#allocation45_spill] sm:$0xff] %v14426_v17  ;;  %v1097_v2 = vmul.f32 %v10256_v53, %v16492_v54  ;;  %v439_v33 = vpop.f32.mrb[25].mxu0  ;;  %v905_v58 = vpop.f32.mrb[25].mxu1  ;;  %v16497_v54 = vld [vmem:[#allocation36_spill] sm:$0xff] }
 0x1e0   : > { %16489 = vst [vmem:[#allocation32_spill] sm:$0xff] %v14424_v61  ;;  %v14431_v36 = vadd.f32 %v1094_v42, %v692_v32  ;;  %v695_v46 = vadd.f32 %v663_v9, %v230_v41  ;;  %v662_v0 = vmul.f32 %v16494_v55, %v439_v33  ;;  %v1096_v14 = vmul.f32 %v16495_v4, %v905_v58  ;;  %v231_v9 = vld [vmem:[%s14253_s28 + $0xd0] sm:$0xff]  ;;  %v16499_v58 = vld [vmem:[#allocation37_spill] sm:$0xff] }
 0x1e1   : > { %v14435_v6 = vpop.permute.xlu1 %1447  ;;  %v10179_v38 = vpop.f32.mrb[26].mxu0 }
 0x1e2   : > { %16493 = vst [vmem:[#allocation33_spill] sm:$0xff] %v14431_v36  ;;  %v14438_v57 = vadd.f32 %v1097_v2, %v695_v46  ;;  %v694_v26 = vadd.f32 %v662_v0, %v229_v62  ;;  %v14440_v53 = vpop.permute.xlu0 %1459  ;;  %v665_v61 = vmul.f32 %v10179_v38, %v16497_v54  ;;  %v10259_v17 = vpop.f32.mrb[26].mxu1  ;;  %v234_v0 = vld [vmem:[%s14253_s28 + $0xe8] sm:$0xff] }
 0x1e3   : > { %v1099_v42 = vmul.f32 %v10259_v17, %v14263_v10  ;;  %v449_v41 = vpop.f32.mrb[27].mxu0  ;;  %v915_v32 = vpop.f32.mrb[27].mxu1  ;;  %v16501_v17 = vld [vmem:[#allocation38_spill] sm:$0xff] }
 0x1e4   : > { %16496 = vst [vmem:[#allocation44_spill] sm:$0xff] %v14438_v57  ;;  %v14445_v4 = vadd.f32 %v1096_v14, %v694_v26  ;;  %v697_v33 = vadd.f32 %v665_v61, %v232_v15  ;;  %v664_v55 = vmul.f32 %v16499_v58, %v449_v41  ;;  %v1098_v2 = vmul.f32 %v14261_v11, %v915_v32  ;;  %v233_v61 = vld [vmem:[%s14253_s28 + $0xe0] sm:$0xff]  ;;  %v16503_v32 = vld [vmem:[#allocation39_spill] sm:$0xff] }
 0x1e5   : > { %v14449_v46 = vpop.permute.xlu1 %1455  ;;  %v10182_v62 = vpop.f32.mrb[28].mxu0 }
 0x1e6   : > { %16498 = vst [vmem:[#allocation34_spill] sm:$0xff] %v14445_v4  ;;  %v14452_v38 = vadd.f32 %v1099_v42, %v697_v33  ;;  %v696_v54 = vadd.f32 %v664_v55, %v231_v9  ;;  %v14454_v10 = vpop.permute.xlu0 %1467  ;;  %v667_v57 = vmul.f32 %v10182_v62, %v16501_v17  ;;  %v10262_v36 = vpop.f32.mrb[28].mxu1  ;;  %v236_v9 = vld [vmem:[%s14253_s28 + $0xf8] sm:$0xff] }
 0x1e7   : > { %v1101_v14 = vmul.f32 %v10262_v36, %v14279_v28  ;;  %v459_v15 = vpop.f32.mrb[29].mxu0  ;;  %v925_v26 = vpop.f32.mrb[29].mxu1  ;;  %v16504_v28 = vld [vmem:[#allocation40_spill] sm:$0xff] }
 0x1e8   : > { %16500 = vst [vmem:[#allocation47_spill] sm:$0xff] %v14452_v38  ;;  %v14459_v11 = vadd.f32 %v1098_v2, %v696_v54  ;;  %v699_v41 = vadd.f32 %v667_v57, %v234_v0  ;;  %v666_v58 = vmul.f32 %v16503_v32, %v459_v15  ;;  %v1100_v42 = vmul.f32 %v14277_v20, %v925_v26  ;;  %v235_v54 = vld [vmem:[%s14253_s28 + $0xf0] sm:$0xff]  ;;  %v16505_v26 = vld [vmem:[#allocation41_spill] sm:$0xff] }
 0x1e9   : > { %v14463_v33 = vpop.permute.xlu1 %1463  ;;  %v10185_v55 = vpop.f32.mrb[30].mxu0 }
 0x1ea   : > { %16502 = vst [vmem:[#allocation35_spill] sm:$0xff] %v14459_v11  ;;  %v14466_v38 = vadd.f32 %v1101_v14, %v699_v41  ;;  %v698_v62 = vadd.f32 %v666_v58, %v233_v61  ;;  %v14468_v17 = vpop.permute.xlu0 %1475  ;;  %v669_v36 = vmul.f32 %v10185_v55, %v16504_v28  ;;  %v10265_v4 = vpop.f32.mrb[30].mxu1 }
 0x1eb   : > { %v1103_v2 = vmul.f32 %v10265_v4, %v14295_v24  ;;  %v469_v57 = vpop.f32.mrb[31].mxu0  ;;  %v935_v0 = vpop.f32.mrb[31].mxu1 }
 0x1ec   : > { %v14473_v15 = vadd.f32 %v1100_v42, %v698_v62  ;;  %v701_v20 = vadd.f32 %v669_v36, %v236_v9  ;;  %v668_v32 = vmul.f32 %v16505_v26, %v469_v57  ;;  %v1102_v11 = vmul.f32 %v14293_v12, %v935_v0 }
 0x1ed   : > { %v14477_v14 = vpop.permute.xlu1 %1471  ;;  %v10300_v61 = vpop.f32.mrb[32].mxu0 }
 0x1ee   : > { %v14479_v41 = vadd.f32 %v1103_v2, %v701_v20  ;;  %v700_v58 = vadd.f32 %v668_v32, %v235_v54  ;;  %v14481_v55 = vpop.permute.xlu0 %1483  ;;  %v1507_v24 = vmul.f32 %v10300_v61, %v14313_v47  ;;  %v1219_v4 = vpop.f32.mrb[33].mxu0 }
 0x1ef   : > { %v1506_v28 = vmul.f32 %v14308_v25, %v1219_v4  ;;  %v10380_v42 = vpop.f32.mrb[32].mxu1 }
 0x1f0   : > { %16506 = vst [vmem:[#allocation46_spill] sm:$0xff] %v14479_v41  ;;  %v14485_v62 = vadd.f32 %v1102_v11, %v700_v58  ;;  %v1539_v9 = vadd.f32 %v1507_v24, %v14266_v3  ;;  %v1653_v36 = vpop.f32.mrb[33].mxu1 }
 0x1f1   : > { %v1538_v12 = vadd.f32 %v1506_v28, %v14270_v31  ;;  %v14489_v57 = vpop.permute.xlu1 %1479  ;;  %v10303_v2 = vpop.f32.mrb[34].mxu0 }
 0x1f2   : > { %16507 = vst [vmem:[#allocation36_spill] sm:$0xff] %v14485_v62  ;;  %v14491_v0 = vpop.permute.xlu0 %1491  ;;  %v1509_v54 = vmul.f32 %v10303_v2, %v14337_v49  ;;  %v1229_v20 = vpop.f32.mrb[35].mxu0 }
 0x1f3   : > { %v1508_v47 = vmul.f32 %v14323_v18, %v1229_v20  ;;  %v10383_v26 = vpop.f32.mrb[34].mxu1 }
 0x1f4   : > { %v1541_v25 = vadd.f32 %v1509_v54, %v14282_v22  ;;  %v1663_v11 = vpop.f32.mrb[35].mxu1 }
 0x1f5   : > { %v14497_v32 = vadd.f32 %v1508_v47, %v14286_v40  ;;  %v14499_v3 = vpop.permute.xlu1 %1487  ;;  %v10306_v31 = vpop.f32.mrb[36].mxu0 }
 0x1f6   : > { %v14501_v61 = vpop.permute.xlu0 %1499  ;;  %v1511_v58 = vmul.f32 %v10306_v31, %v14351_v52  ;;  %v1239_v24 = vpop.f32.mrb[37].mxu0 }
 0x1f7   : > { %16508 = vst [vmem:[#allocation37_spill] sm:$0xff] %v14501_v61  ;;  %v1510_v49 = vmul.f32 %v14328_v21, %v1239_v24  ;;  %v10386_v4 = vpop.f32.mrb[36].mxu1 }
 0x1f8   : > { %v1543_v18 = vadd.f32 %v1511_v58, %v14298_v5  ;;  %v14506_v28 = vpop.f32.mrb[37].mxu1 }
 0x1f9   : > { %v14509_v22 = vadd.f32 %v1510_v49, %v14302_v13  ;;  %v14511_v40 = vpop.permute.xlu1 %1495  ;;  %v10309_v2 = vpop.f32.mrb[38].mxu0 }
 0x1fa   : > { %v1513_v54 = vmul.f32 %v10309_v2, %v14365_v19  ;;  %v1249_v20 = vpop.f32.mrb[39].mxu0 }
 0x1fb   : > { %v1814_v47 = vpop.permute.xlu0 %1813  ;;  %v1512_v52 = vmul.f32 %v14342_v16, %v1249_v20  ;;  %v10389_v31 = vpop.f32.mrb[38].mxu1 }
 0x1fc   : > { %v1545_v21 = vadd.f32 %v1513_v54, %v14311_v34  ;;  %v1940_v24 = vmul.f32 %v1814_v47, %v1653_v36  ;;  %v14516_v5 = vpop.f32.mrb[39].mxu1 }
 0x1fd   : > { %v14519_v58 = vadd.f32 %v1512_v52, %v14316_v50  ;;  %v14521_v13 = vpop.permute.xlu1 %1503  ;;  %v10312_v49 = vpop.f32.mrb[40].mxu0 }
 0x1fe   : > { %v1972_v62 = vadd.f32 %v1940_v24, %v1538_v12  ;;  %v1515_v19 = vmul.f32 %v10312_v49, %v14379_v44  ;;  %v1259_v2 = vpop.f32.mrb[41].mxu0 }
 0x1ff   : > { %v1826_v41 = vpop.permute.xlu0 %1825  ;;  %v1514_v61 = vmul.f32 %v14356_v29, %v1259_v2  ;;  %v10392_v16 = vpop.f32.mrb[40].mxu1 }
 0x200   : > { %2005 = vst [vmem:[%s14526_s30] sm:$0xff] %v1972_v62  ;;  %v1547_v34 = vadd.f32 %v1515_v19, %v14326_v30  ;;  %v1943_v50 = vmul.f32 %v10383_v26, %v1826_v41  ;;  %v14530_v36 = vpop.f32.mrb[41].mxu1 }
 0x201   : > { %v14533_v54 = vadd.f32 %v1514_v61, %v14333_v23  ;;  %v10315_v12 = vpop.f32.mrb[42].mxu0 }
 0x202   : > { %v1975_v44 = vadd.f32 %v1943_v50, %v1541_v25  ;;  %v1517_v20 = vmul.f32 %v10315_v12, %v14393_v48  ;;  %v1818_v47 = vpop.permute.xlu1 %1817  ;;  %v1269_v29 = vpop.f32.mrb[43].mxu0 }
 0x203   : > { %v1941_v52 = vmul.f32 %v10380_v42, %v1818_v47  ;;  %v1834_v24 = vpop.permute.xlu0 %1833  ;;  %v1516_v49 = vmul.f32 %v14370_v37, %v1269_v29  ;;  %v10395_v62 = vpop.f32.mrb[42].mxu1 }
 0x204   : > { %2008 = vst [vmem:[%s14526_s30 + $0x18] sm:$0xff] %v1975_v44  ;;  %v1549_v30 = vadd.f32 %v1517_v20, %v14340_v56  ;;  %v1945_v41 = vmul.f32 %v10386_v4, %v1834_v24  ;;  %v14539_v26 = vpop.f32.mrb[43].mxu1 }
 0x205   : > { %v1973_v23 = vadd.f32 %v1941_v52, %v1539_v9  ;;  %v14542_v25 = vadd.f32 %v1516_v49, %v14347_v27  ;;  %v10318_v48 = vpop.f32.mrb[44].mxu0 }
 0x206   : > { %v1977_v61 = vadd.f32 %v1945_v41, %v1543_v18  ;;  %v1519_v19 = vmul.f32 %v10318_v48, %v14407_v39  ;;  %v1822_v42 = vpop.permute.xlu1 %1821  ;;  %v1279_v2 = vpop.f32.mrb[45].mxu0 }
 0x207   : > { %2006 = vst [vmem:[%s14526_s30 + $0x8] sm:$0xff] %v1973_v23  ;;  %v1942_v37 = vmul.f32 %v1822_v42, %v1663_v11  ;;  %v1842_v50 = vpop.permute.xlu0 %1841  ;;  %v1518_v12 = vmul.f32 %v14384_v45, %v1279_v2  ;;  %v10398_v56 = vpop.f32.mrb[44].mxu1 }
 0x208   : > { %2010 = vst [vmem:[%s14526_s30 + $0x28] sm:$0xff] %v1977_v61  ;;  %v1551_v9 = vadd.f32 %v1519_v19, %v14354_v60  ;;  %v1947_v4 = vmul.f32 %v10389_v31, %v1842_v50  ;;  %v14549_v27 = vpop.f32.mrb[45].mxu1 }
 0x209   : > { %v1974_v18 = vadd.f32 %v1942_v37, %v14497_v32  ;;  %v14553_v39 = vadd.f32 %v1518_v12, %v14361_v35  ;;  %v10321_v44 = vpop.f32.mrb[46].mxu0 }
 0x20a   : > { %v1979_v20 = vadd.f32 %v1947_v4, %v1545_v21  ;;  %v1521_v11 = vmul.f32 %v10321_v44, %v14421_v7  ;;  %v1830_v47 = vpop.permute.xlu1 %1829  ;;  %v1289_v29 = vpop.f32.mrb[47].mxu0 }
 0x20b   : > { %2007 = vst [vmem:[%s14526_s30 + $0x10] sm:$0xff] %v1974_v18  ;;  %v1944_v45 = vmul.f32 %v1830_v47, %v14506_v28  ;;  %v1850_v52 = vpop.permute.xlu0 %1849  ;;  %v1520_v60 = vmul.f32 %v14398_v59, %v1289_v29  ;;  %v10401_v31 = vpop.f32.mrb[46].mxu1  ;;  %v16510_v18 = vld [vmem:[#allocation48_spill] sm:$0xff] }
 0x20c   : > { %2012 = vst [vmem:[%s14526_s30 + $0x38] sm:$0xff] %v1979_v20  ;;  %v1553_v32 = vadd.f32 %v1521_v11, %v14368_v63  ;;  %v1949_v35 = vmul.f32 %v10392_v16, %v1850_v52  ;;  %v14561_v24 = vpop.f32.mrb[47].mxu1  ;;  %v16511_v20 = vld [vmem:[#allocation43_spill] sm:$0xff] }
 0x20d   : > { %v1976_v21 = vadd.f32 %v1944_v45, %v14509_v22  ;;  %v14565_v7 = vadd.f32 %v1520_v60, %v14375_v43  ;;  %v10324_v49 = vpop.f32.mrb[48].mxu0 }
 0x20e   : > { %v1981_v41 = vadd.f32 %v1949_v35, %v1547_v34  ;;  %v1523_v28 = vmul.f32 %v10324_v49, %v14435_v6  ;;  %v1838_v23 = vpop.permute.xlu1 %1837  ;;  %v1299_v59 = vpop.f32.mrb[49].mxu0 }
 0x20f   : > { %2009 = vst [vmem:[%s14526_s30 + $0x20] sm:$0xff] %v1976_v21  ;;  %v1946_v48 = vmul.f32 %v1838_v23, %v14516_v5  ;;  %v1858_v61 = vpop.permute.xlu0 %1857  ;;  %v1522_v63 = vmul.f32 %v14412_v8, %v1299_v59  ;;  %v10404_v16 = vpop.f32.mrb[48].mxu1  ;;  %v16512_v21 = vld [vmem:[#allocation31_spill] sm:$0xff] }
 0x210   : > { %2014 = vst [vmem:[%s14526_s30 + $0x48] sm:$0xff] %v1981_v41  ;;  %v1555_v22 = vadd.f32 %v1523_v28, %v14382_v1  ;;  %v1951_v43 = vmul.f32 %v10395_v62, %v1858_v61  ;;  %v14573_v19 = vpop.f32.mrb[49].mxu1  ;;  %v16509_v1 = vld [vmem:[#allocation45_spill] sm:$0xff]  ;;  %v16513_v28 = vld [vmem:[#allocation42_spill] sm:$0xff] }
 0x211   : > { %v1978_v34 = vadd.f32 %v1946_v48, %v14519_v58  ;;  %v14577_v6 = vadd.f32 %v1522_v63, %v14389_v51 }
 0x212   : > { %v1983_v42 = vadd.f32 %v1951_v43, %v1549_v30  ;;  %v10327_v2 = vpop.f32.mrb[50].mxu0  ;;  %v1846_v37 = vpop.permute.xlu1 %1845 }
 0x213   : > { %2011 = vst [vmem:[%s14526_s30 + $0x30] sm:$0xff] %v1978_v34  ;;  %v1525_v8 = vmul.f32 %v10327_v2, %v14449_v46  ;;  %v1948_v5 = vmul.f32 %v1846_v37, %v14530_v36  ;;  %v1866_v50 = vpop.permute.xlu0 %1865  ;;  %v1309_v12 = vpop.f32.mrb[51].mxu0  ;;  %v16514_v34 = vld [vmem:[#allocation32_spill] sm:$0xff]  ;;  %v16515_v37 = vld [vmem:[#allocation33_spill] sm:$0xff] }
 0x214   : > { %2016 = vst [vmem:[%s14526_s30 + $0x58] sm:$0xff] %v1983_v42  ;;  %v1524_v62 = vmul.f32 %v16509_v1, %v1309_v12  ;;  %v1953_v4 = vmul.f32 %v10398_v56, %v1866_v50  ;;  %v10407_v58 = vpop.f32.mrb[50].mxu1 }
 0x215   : > { %v1557_v51 = vadd.f32 %v1525_v8, %v16510_v18  ;;  %v1980_v30 = vadd.f32 %v1948_v5, %v14533_v54  ;;  %v14586_v44 = vpop.f32.mrb[51].mxu1 }
 0x216   : > { %v14589_v11 = vadd.f32 %v1524_v62, %v16511_v20  ;;  %v1985_v46 = vadd.f32 %v1953_v4, %v1551_v9  ;;  %v10330_v47 = vpop.f32.mrb[52].mxu0  ;;  %v1854_v36 = vpop.permute.xlu1 %1853  ;;  %v16516_v4 = vld [vmem:[#allocation44_spill] sm:$0xff]  ;;  %v16517_v20 = vld [vmem:[#allocation34_spill] sm:$0xff] }
 0x217   : > { %2013 = vst [vmem:[%s14526_s30 + $0x40] sm:$0xff] %v1980_v30  ;;  %v1527_v29 = vmul.f32 %v10330_v47, %v14463_v33  ;;  %v1950_v45 = vmul.f32 %v1854_v36, %v14539_v26  ;;  %v1874_v56 = vpop.permute.xlu0 %1873  ;;  %v1319_v52 = vpop.f32.mrb[53].mxu0 }
 0x218   : > { %2018 = vst [vmem:[%s14526_s30 + $0x68] sm:$0xff] %v1985_v46  ;;  %v1526_v54 = vmul.f32 %v14440_v53, %v1319_v52  ;;  %v1955_v60 = vmul.f32 %v10401_v31, %v1874_v56  ;;  %v10410_v35 = vpop.f32.mrb[52].mxu1  ;;  %v16518_v52 = vld [vmem:[#allocation47_spill] sm:$0xff] }
 0x219   : > { %v1559_v49 = vadd.f32 %v1527_v29, %v16512_v21  ;;  %v1982_v9 = vadd.f32 %v1950_v45, %v14542_v25  ;;  %v14598_v41 = vpop.f32.mrb[53].mxu1  ;;  %v16519_v21 = vld [vmem:[#allocation35_spill] sm:$0xff] }
 0x21a   : > { %v14601_v23 = vadd.f32 %v1526_v54, %v16513_v28  ;;  %v1987_v33 = vadd.f32 %v1955_v60, %v1553_v32  ;;  %v10333_v59 = vpop.f32.mrb[54].mxu0  ;;  %v1862_v26 = vpop.permute.xlu1 %1861 }
 0x21b   : > { %2015 = vst [vmem:[%s14526_s30 + $0x50] sm:$0xff] %v1982_v9  ;;  %v1529_v48 = vmul.f32 %v10333_v59, %v14477_v14  ;;  %v1952_v53 = vmul.f32 %v1862_v26, %v14549_v27  ;;  %v1882_v31 = vpop.permute.xlu0 %1881  ;;  %v1329_v61 = vpop.f32.mrb[55].mxu0 }
 0x21c   : > { %2020 = vst [vmem:[%s14526_s30 + $0x78] sm:$0xff] %v1987_v33  ;;  %v1528_v25 = vmul.f32 %v14454_v10, %v1329_v61  ;;  %v1957_v63 = vmul.f32 %v10404_v16, %v1882_v31  ;;  %v10413_v43 = vpop.f32.mrb[54].mxu1 }
 0x21d   : > { %v1561_v42 = vadd.f32 %v1529_v48, %v16514_v34  ;;  %v1984_v32 = vadd.f32 %v1952_v53, %v14553_v39  ;;  %v14610_v2 = vpop.f32.mrb[55].mxu1 }
 0x21e   : > { %v14613_v8 = vadd.f32 %v1528_v25, %v16515_v37  ;;  %v1989_v14 = vadd.f32 %v1957_v63, %v1555_v22  ;;  %v10336_v5 = vpop.f32.mrb[56].mxu0  ;;  %v1870_v27 = vpop.permute.xlu1 %1869 }
 0x21f   : > { %2017 = vst [vmem:[%s14526_s30 + $0x60] sm:$0xff] %v1984_v32  ;;  %v1531_v50 = vmul.f32 %v10336_v5, %v14489_v57  ;;  %v1954_v10 = vmul.f32 %v1870_v27, %v14561_v24  ;;  %v1890_v16 = vpop.permute.xlu0 %1889  ;;  %v1339_v12 = vpop.f32.mrb[57].mxu0  ;;  %v16520_v32 = vld [vmem:[#allocation37_spill] sm:$0xff]  ;;  %v16522_v27 = vld [vmem:[#allocation36_spill] sm:$0xff] }
 0x220   : > { %2022 = vst [vmem:[%s14526_s30 + $0x88] sm:$0xff] %v1989_v14  ;;  %v1530_v39 = vmul.f32 %v14468_v17, %v1339_v12  ;;  %v1959_v1 = vmul.f32 %v10407_v58, %v1890_v16  ;;  %v10416_v62 = vpop.f32.mrb[56].mxu1  ;;  %v16521_v14 = vld [vmem:[#allocation46_spill] sm:$0xff] }
 0x221   : > { %v1563_v18 = vadd.f32 %v1531_v50, %v16516_v4  ;;  %v1986_v22 = vadd.f32 %v1954_v10, %v14565_v7  ;;  %v1773_v30 = vpop.f32.mrb[57].mxu1 }
 0x222   : > { %v14623_v46 = vadd.f32 %v1530_v39, %v16517_v20  ;;  %v1991_v47 = vadd.f32 %v1959_v1, %v1557_v51  ;;  %v10339_v57 = vpop.f32.mrb[58].mxu0  ;;  %v1878_v36 = vpop.permute.xlu1 %1877 }
 0x223   : > { %2019 = vst [vmem:[%s14526_s30 + $0x70] sm:$0xff] %v1986_v22  ;;  %v1533_v24 = vmul.f32 %v10339_v57, %v14499_v3  ;;  %v1956_v29 = vmul.f32 %v1878_v36, %v14573_v19  ;;  %v1898_v17 = vpop.permute.xlu0 %1897  ;;  %v1349_v58 = vpop.f32.mrb[59].mxu0 }
 0x224   : > { %2024 = vst [vmem:[%s14526_s30 + $0x98] sm:$0xff] %v1991_v47  ;;  %v1532_v45 = vmul.f32 %v14481_v55, %v1349_v58  ;;  %v1961_v7 = vmul.f32 %v10410_v35, %v1898_v17  ;;  %v10419_v56 = vpop.f32.mrb[58].mxu1 }
 0x225   : > { %v1565_v54 = vadd.f32 %v1533_v24, %v16518_v52  ;;  %v1988_v51 = vadd.f32 %v1956_v29, %v14577_v6  ;;  %v1783_v60 = vpop.f32.mrb[59].mxu1 }
 0x226   : > { %v1564_v9 = vadd.f32 %v1532_v45, %v16519_v21  ;;  %v1993_v28 = vadd.f32 %v1961_v7, %v1559_v49  ;;  %v10342_v33 = vpop.f32.mrb[60].mxu0  ;;  %v1886_v3 = vpop.permute.xlu1 %1885  ;;  %v14665_v7 = vmov (%p166_p10), 0.0  }
 0x227   : > { %2021 = vst [vmem:[%s14526_s30 + $0x80] sm:$0xff] %v1988_v51  ;;  %v1535_v19 = vmul.f32 %v10342_v33, %v14511_v40  ;;  %v1958_v59 = vmul.f32 %v1886_v3, %v14586_v44  ;;  %v1906_v26 = vpop.permute.xlu0 %1905  ;;  %v1359_v55 = vpop.f32.mrb[61].mxu0 }
 0x228   : > { %2026 = vst [vmem:[%s14526_s30 + $0xa8] sm:$0xff] %v1993_v28  ;;  %v1534_v35 = vmul.f32 %v14491_v0, %v1359_v55  ;;  %v1963_v48 = vmul.f32 %v10413_v43, %v1906_v26  ;;  %v10422_v6 = vpop.f32.mrb[60].mxu1 }
 0x229   : > { %v1567_v53 = vadd.f32 %v1535_v19, %v14466_v38  ;;  %v1990_v49 = vadd.f32 %v1958_v59, %v14589_v11  ;;  %v1793_v31 = vpop.f32.mrb[61].mxu1 }
 0x22a   : > { %v1566_v61 = vadd.f32 %v1534_v35, %v14473_v15  ;;  %v1995_v25 = vadd.f32 %v1963_v48, %v1561_v42  ;;  %v10345_v63 = vpop.f32.mrb[62].mxu0  ;;  %v1894_v40 = vpop.permute.xlu1 %1893 }
 0x22b   : > { %2023 = vst [vmem:[%s14526_s30 + $0x90] sm:$0xff] %v1990_v49  ;;  %v1537_v44 = vmul.f32 %v10345_v63, %v14521_v13  ;;  %v1960_v34 = vmul.f32 %v1894_v40, %v14598_v41  ;;  %v1914_v0 = vpop.permute.xlu0 %1913  ;;  %v1369_v43 = vpop.f32.mrb[63].mxu0 }
 0x22c   : > { %2028 = vst [vmem:[%s14526_s30 + $0xb8] sm:$0xff] %v1995_v25  ;;  %v1536_v38 = vmul.f32 %v16520_v32, %v1369_v43  ;;  %v1965_v37 = vmul.f32 %v10416_v62, %v1914_v0  ;;  %v10425_v11 = vpop.f32.mrb[62].mxu1 }
 0x22d   : > { %v1569_v15 = vadd.f32 %v1537_v44, %v16521_v14  ;;  %v1992_v42 = vadd.f32 %v1960_v34, %v14601_v23  ;;  %v1803_v5 = vpop.f32.mrb[63].mxu1 }
 0x22e   : > { %v1568_v50 = vadd.f32 %v1536_v38, %v16522_v27  ;;  %v1997_v13 = vadd.f32 %v1965_v37, %v1563_v18  ;;  %v1902_v10 = vpop.permute.xlu1 %1901 }
 0x22f   : > { %2025 = vst [vmem:[%s14526_s30 + $0xa0] sm:$0xff] %v1992_v42  ;;  %v1962_v41 = vmul.f32 %v1902_v10, %v14610_v2  ;;  %v1922_v16 = vpop.permute.xlu0 %1921 }
 0x230   : > { %2030 = vst [vmem:[%s14526_s30 + $0xc8] sm:$0xff] %v1997_v13  ;;  %v1967_v12 = vmul.f32 %v10419_v56, %v1922_v16  ;;  %v14667_v56 = vmov (%p166_p10), 0.0  }
 0x231   : > { %v1994_v39 = vadd.f32 %v1962_v41, %v14613_v8 }
 0x232   : > { %v1999_v1 = vadd.f32 %v1967_v12, %v1565_v54  ;;  %v1910_v62 = vpop.permute.xlu1 %1909 }
 0x233   : > { %2027 = vst [vmem:[%s14526_s30 + $0xb0] sm:$0xff] %v1994_v39  ;;  %v1964_v23 = vmul.f32 %v1910_v62, %v1773_v30  ;;  %v1930_v4 = vpop.permute.xlu0 %1929 }
 0x234   : > { %2032 = vst [vmem:[%s14526_s30 + $0xd8] sm:$0xff] %v1999_v1  ;;  %v1969_v18 = vmul.f32 %v10422_v6, %v1930_v4 }
 0x235   : > { %v1996_v22 = vadd.f32 %v1964_v23, %v14623_v46 }
 0x236   : > { %v2001_v20 = vadd.f32 %v1969_v18, %v1567_v53  ;;  %v1918_v2 = vpop.permute.xlu1 %1917 }
 0x237   : > { %2029 = vst [vmem:[%s14526_s30 + $0xc0] sm:$0xff] %v1996_v22  ;;  %v1966_v47 = vmul.f32 %v1918_v2, %v1783_v60  ;;  %v1938_v57 = vpop.permute.xlu0 %1937 }
 0x238   : > { %2034 = vst [vmem:[%s14526_s30 + $0xe8] sm:$0xff] %v2001_v20  ;;  %v1971_v8 = vmul.f32 %v10425_v11, %v1938_v57 }
 0x239   : > { %v1998_v36 = vadd.f32 %v1966_v47, %v1564_v9 }
 0x23a   : > { %v2003_v24 = vadd.f32 %v1971_v8, %v1569_v15  ;;  %v1926_v29 = vpop.permute.xlu1 %1925 }
 0x23b   : > { %2031 = vst [vmem:[%s14526_s30 + $0xd0] sm:$0xff] %v1998_v36  ;;  %v1968_v30 = vmul.f32 %v1926_v29, %v1793_v31 }
 0x23c   : > { %2036 = vst [vmem:[%s14526_s30 + $0xf8] sm:$0xff] %v2003_v24 }
 0x23d   : > { %v2000_v17 = vadd.f32 %v1968_v30, %v1566_v61  ;;  %168 = sbr.rel (!%p166_p10) target bundleno = 183 (0xb7), region = 192 }
 0x23e   : > { %v1934_v58 = vpop.permute.xlu1 %1933 }
 0x23f   : > { %2033 = vst [vmem:[%s14526_s30 + $0xe0] sm:$0xff] %v2000_v17  ;;  %v1970_v45 = vmul.f32 %v1934_v58, %v1803_v5 }
 0x241   : > { %v2002_v46 = vadd.f32 %v1970_v45, %v1568_v50 }
 0x243   : > { %2035 = vst [vmem:[%s14526_s30 + $0xf0] sm:$0xff] %v2002_v46 }
 0x244 LB: > { %16523 = vst [vmem:[#allocation49_spill] sm:$0xff] %v13526_v7  ;;  %16524 = vst [vmem:[#allocation50_spill] sm:$0xff] %v13530_v56  ;;  %v2181_v52 = vld [vmem:[#allocation14 + $0x100] sm:$0xff]  ;;  %v2182_v54 = vld [vmem:[#allocation14 + $0x108] sm:$0xff]  ;;  %s14686_s16 = sshll.u32 %s13534_s3, 8  ;;  %s2042_s3 = sadd.s32 1, %s13534_s3   ;;  %s13534_s3 = sphi %s14669_s3, %s2042_s3   ;;  %v13530_v56 = vphi %v14667_v56, %v16562_v56   ;;  %v13526_v7 = vphi %v14665_v7, %v16561_v7  }
 0x245   : > { %v3183_v51 = vld [vmem:[#allocation14 + $0x200] sm:$0xff]  ;;  %v11994_v60 = vpack.c.bf16 %v2182_v54, %v2181_v52  ;;  %v3184_v21 = vld [vmem:[#allocation14 + $0x208] sm:$0xff]  ;;  %v2183_v9 = vld [vmem:[#allocation14 + $0x110] sm:$0xff]  ;;  %s14697_s12 = scalar_lea.vmem [#allocation2], %s14686_s16  ;;  %s15235_s13 = scalar_lea.vmem [#allocation11], %s14686_s16 }
 0x246   : > { %v2184_v28 = vld [vmem:[#allocation14 + $0x118] sm:$0xff]  ;;  %v14680_v33 = vpack.c.bf16 %v3184_v21, %v3183_v51  ;;  %v3185_v19 = vld [vmem:[#allocation14 + $0x210] sm:$0xff]  ;;  %v2185_v26 = vld [vmem:[#allocation14 + $0x120] sm:$0xff]  ;;  %s15240_s15 = scalar_lea.vmem [#allocation4], %s14686_s16  ;;  %p2039_p11 = scmp.ge.s32.totalorder %s2042_s3, 3  }
 0x247   : > { %v11998_v3 = vpack.c.bf16 %v2184_v28, %v2183_v9  ;;  %v3186_v59 = vld [vmem:[#allocation14 + $0x218] sm:$0xff]  ;;  %11995 = vmatprep.subr.bf16.mxu1 %v11994_v60  ;;  %v2186_v35 = vld [vmem:[#allocation14 + $0x128] sm:$0xff]  ;;  %v3187_v48 = vld [vmem:[#allocation14 + $0x220] sm:$0xff]  ;;  %s15330_s7 = smov (%p2039_p11), 0  }
 0x248   : > { %v14682_v55 = vpack.c.bf16 %v3186_v59, %v3185_v19  ;;  %v3188_v6 = vld [vmem:[#allocation14 + $0x228] sm:$0xff]  ;;  %12123 = vmatprep.subr.bf16.mxu0 %v14680_v33  ;;  %11997 = vmatpush3.bf16.msra.mxu1 %v11994_v60  ;;  %v12002_v53 = vpack.c.bf16 %v2186_v35, %v2185_v26  ;;  %v2187_v31 = vld [vmem:[#allocation14 + $0x130] sm:$0xff]  ;;  %v2188_v61 = vld [vmem:[#allocation14 + $0x138] sm:$0xff] }
 0x249   : > { %12125 = vmatpush3.bf16.msra.mxu0 %v14680_v33  ;;  %11999 = vmatprep.subr.bf16.mxu1 %v11998_v3  ;;  %v14690_v49 = vpack.c.bf16 %v3188_v6, %v3187_v48  ;;  %v3189_v25 = vld [vmem:[#allocation14 + $0x230] sm:$0xff]  ;;  %v3190_v63 = vld [vmem:[#allocation14 + $0x238] sm:$0xff]  ;;  %v12006_v40 = vpack.c.bf16 %v2188_v61, %v2187_v31  ;;  %v2189_v34 = vld [vmem:[#allocation14 + $0x140] sm:$0xff] }
 0x24a   : > { %16525 = vst [vmem:[#allocation51_spill] sm:$0xff] %v14682_v55  ;;  %12127 = vmatprep.subr.bf16.mxu0 %v14682_v55  ;;  %v14694_v44 = vpack.c.bf16 %v3190_v63, %v3189_v25  ;;  %v2190_v0 = vld [vmem:[#allocation14 + $0x148] sm:$0xff]  ;;  %v3191_v32 = vld [vmem:[#allocation14 + $0x240] sm:$0xff]  ;;  %v8552_v37 = vld [vmem:[%s14697_s12 + $0x13] sm:$0xff] }
 0x24b   : > { %16526 = vst [vmem:[#allocation52_spill] sm:$0xff] %v14690_v49  ;;  %v8486_v43 = vld [vmem:[%s14697_s12 + $0x2] sm:$0xff]  ;;  %10778 = vmatprep.mubr.f32.mxu0 %v8552_v37  ;;  %v12010_v11 = vpack.c.bf16 %v2190_v0, %v2189_v34  ;;  %v2191_v15 = vld [vmem:[#allocation14 + $0x150] sm:$0xff]  ;;  %v2192_v42 = vld [vmem:[#allocation14 + $0x158] sm:$0xff] }
 0x24c   : > { %12001 = vmatpush3.bf16.msra.mxu1 %v11998_v3  ;;  %16527 = vst [vmem:[#allocation53_spill] sm:$0xff] %v14694_v44  ;;  %v3192_v38 = vld [vmem:[#allocation14 + $0x248] sm:$0xff]  ;;  %10458 = vmatprep.mubr.f32.mxu1 %v8486_v43  ;;  %v3193_v5 = vld [vmem:[#allocation14 + $0x250] sm:$0xff]  ;;  %v3194_v27 = vld [vmem:[#allocation14 + $0x258] sm:$0xff]  ;;  %v12014_v50 = vpack.c.bf16 %v2192_v42, %v2191_v15 }
 0x24d   : > { %12129 = vmatpush3.bf16.msra.mxu0 %v14682_v55  ;;  %12003 = vmatprep.subr.bf16.mxu1 %v12002_v53  ;;  %v14703_v14 = vpack.c.bf16 %v3192_v38, %v3191_v32  ;;  %v14707_v13 = vpack.c.bf16 %v3194_v27, %v3193_v5  ;;  %v2193_v10 = vld [vmem:[#allocation14 + $0x160] sm:$0xff]  ;;  %v2194_v41 = vld [vmem:[#allocation14 + $0x168] sm:$0xff]  ;;  %v2195_v62 = vld [vmem:[#allocation14 + $0x170] sm:$0xff] }
 0x24e   : > { %12131 = vmatprep.subr.bf16.mxu0 %v14690_v49  ;;  %v3195_v16 = vld [vmem:[#allocation14 + $0x260] sm:$0xff]  ;;  %v3196_v12 = vld [vmem:[#allocation14 + $0x268] sm:$0xff]  ;;  %v12018_v39 = vpack.c.bf16 %v2194_v41, %v2193_v10  ;;  %v2196_v23 = vld [vmem:[#allocation14 + $0x178] sm:$0xff] }
 0x24f   : > { %16528 = vst [vmem:[#allocation54_spill] sm:$0xff] %v14703_v14  ;;  %16529 = vst [vmem:[#allocation55_spill] sm:$0xff] %v14707_v13  ;;  %v14711_v1 = vpack.c.bf16 %v3196_v12, %v3195_v16  ;;  %v3197_v4 = vld [vmem:[#allocation14 + $0x270] sm:$0xff]  ;;  %v3198_v18 = vld [vmem:[#allocation14 + $0x278] sm:$0xff]  ;;  %v12022_v22 = vpack.c.bf16 %v2196_v23, %v2195_v62 }
 0x250   : > { %12005 = vmatpush3.bf16.msra.mxu1 %v12002_v53  ;;  %v14715_v20 = vpack.c.bf16 %v3198_v18, %v3197_v4  ;;  %v2079_v2 = vld [vmem:[#allocation14] sm:$0xff]  ;;  %v2080_v47 = vld [vmem:[#allocation14 + $0x8] sm:$0xff]  ;;  %v3493_v29 = vld [vmem:[#allocation14 + $0x290] sm:$0xff] }
 0x251   : > { %12133 = vmatpush3.bf16.msra.mxu0 %v14690_v49  ;;  %12007 = vmatprep.subr.bf16.mxu1 %v12006_v40  ;;  %16530 = vst [vmem:[#allocation56_spill] sm:$0xff] %v14711_v1  ;;  %v3491_v57 = vld [vmem:[#allocation14 + $0x280] sm:$0xff]  ;;  %v3492_v8 = vld [vmem:[#allocation14 + $0x288] sm:$0xff]  ;;  %v12026_v36 = vpack.c.bf16 %v2080_v47, %v2079_v2  ;;  %v3494_v30 = vld [vmem:[#allocation14 + $0x298] sm:$0xff] }
 0x252   : > { %12135 = vmatprep.subr.bf16.mxu0 %v14694_v44  ;;  %16531 = vst [vmem:[#allocation57_spill] sm:$0xff] %v14715_v20  ;;  %v12154_v24 = vpack.c.bf16 %v3492_v8, %v3491_v57  ;;  %v8487_v17 = vld [vmem:[%s14697_s12 + $0xa] sm:$0xff]  ;;  %v2082_v45 = vld [vmem:[#allocation14 + $0x18] sm:$0xff]  ;;  %v12158_v54 = vpack.c.bf16 %v3494_v30, %v3493_v29  ;;  %v3495_v21 = vld [vmem:[#allocation14 + $0x2a0] sm:$0xff] }
 0x253   : > { %v2081_v58 = vld [vmem:[#allocation14 + $0x10] sm:$0xff]  ;;  %v8553_v46 = vld [vmem:[%s14697_s12 + $0x1b] sm:$0xff]  ;;  %v8554_v51 = vld [vmem:[%s14697_s12 + $0x23] sm:$0xff] }
 0x254   : > { %12009 = vmatpush3.bf16.msra.mxu1 %v12006_v40  ;;  %v14723_v52 = vld [vmem:[%s14697_s12 + $0x12] sm:$0xff]  ;;  %v12030_v60 = vpack.c.bf16 %v2082_v45, %v2081_v58  ;;  %v3496_v9 = vld [vmem:[#allocation14 + $0x2a8] sm:$0xff]  ;;  %v14727_v28 = vld [vmem:[%s14697_s12 + $0x1a] sm:$0xff] }
 0x255   : > { %12137 = vmatpush3.bf16.msra.mxu0 %v14694_v44  ;;  %12011 = vmatprep.subr.bf16.mxu1 %v12010_v11  ;;  %v2083_v3 = vld [vmem:[#allocation14 + $0x20] sm:$0xff]  ;;  %v2084_v19 = vld [vmem:[#allocation14 + $0x28] sm:$0xff]  ;;  %v8556_v35 = vld [vmem:[%s14697_s12 + $0x33] sm:$0xff]  ;;  %v12162_v48 = vpack.c.bf16 %v3496_v9, %v3495_v21 }
 0x256   : > { %12139 = vmatprep.subr.bf16.mxu0 %v14703_v14  ;;  %v8555_v59 = vld [vmem:[%s14697_s12 + $0x2b] sm:$0xff]  ;;  %v14732_v26 = vld [vmem:[%s14697_s12 + $0x22] sm:$0xff]  ;;  %v3498_v53 = vld [vmem:[#allocation14 + $0x2b8] sm:$0xff]  ;;  %v12034_v31 = vpack.c.bf16 %v2084_v19, %v2083_v3 }
 0x257   : > { %v3497_v6 = vld [vmem:[#allocation14 + $0x2b0] sm:$0xff]  ;;  %v2086_v63 = vld [vmem:[#allocation14 + $0x38] sm:$0xff]  ;;  %v8558_v0 = vld [vmem:[%s14697_s12 + $0x43] sm:$0xff] }
 0x258   : > { %12013 = vmatpush3.bf16.msra.mxu1 %v12010_v11  ;;  %v14738_v61 = vld [vmem:[%s14697_s12 + $0x2a] sm:$0xff]  ;;  %v8557_v40 = vld [vmem:[%s14697_s12 + $0x3b] sm:$0xff]  ;;  %v14742_v34 = vld [vmem:[%s14697_s12 + $0x32] sm:$0xff]  ;;  %v12166_v43 = vpack.c.bf16 %v3498_v53, %v3497_v6 }
 0x259   : > { %12141 = vmatpush3.bf16.msra.mxu0 %v14703_v14  ;;  %12015 = vmatprep.subr.bf16.mxu1 %v12014_v50  ;;  %v2085_v25 = vld [vmem:[#allocation14 + $0x30] sm:$0xff]  ;;  %v3499_v32 = vld [vmem:[#allocation14 + $0x2c0] sm:$0xff]  ;;  %v3500_v38 = vld [vmem:[#allocation14 + $0x2c8] sm:$0xff] }
 0x25a   : > { %12143 = vmatprep.subr.bf16.mxu0 %v14707_v13  ;;  %v12038_v37 = vpack.c.bf16 %v2086_v63, %v2085_v25  ;;  %v14748_v11 = vld [vmem:[%s14697_s12 + $0x3a] sm:$0xff]  ;;  %v2088_v42 = vld [vmem:[#allocation14 + $0x48] sm:$0xff]  ;;  %v12170_v10 = vpack.c.bf16 %v3500_v38, %v3499_v32  ;;  %v3501_v41 = vld [vmem:[#allocation14 + $0x2d0] sm:$0xff] }
 0x25b   : > { %v2087_v15 = vld [vmem:[#allocation14 + $0x40] sm:$0xff]  ;;  %v8559_v5 = vld [vmem:[%s14697_s12 + $0x4b] sm:$0xff]  ;;  %v3502_v16 = vld [vmem:[#allocation14 + $0x2d8] sm:$0xff] }
 0x25c   : > { %12017 = vmatpush3.bf16.msra.mxu1 %v12014_v50  ;;  %v14752_v27 = vld [vmem:[%s14697_s12 + $0x42] sm:$0xff]  ;;  %v8560_v50 = vld [vmem:[%s14697_s12 + $0x53] sm:$0xff]  ;;  %v12042_v12 = vpack.c.bf16 %v2088_v42, %v2087_v15  ;;  %v12174_v2 = vpack.c.bf16 %v3502_v16, %v3501_v41  ;;  %v8563_v30 = vld [vmem:[%s14697_s12 + $0x6b] sm:$0xff] }
 0x25d   : > { %12145 = vmatpush3.bf16.msra.mxu0 %v14707_v13  ;;  %12019 = vmatprep.subr.bf16.mxu1 %v12018_v39  ;;  %v2089_v62 = vld [vmem:[#allocation14 + $0x50] sm:$0xff]  ;;  %v2090_v23 = vld [vmem:[#allocation14 + $0x58] sm:$0xff]  ;;  %v3503_v47 = vld [vmem:[#allocation14 + $0x2e0] sm:$0xff] }
 0x25e   : > { %12147 = vmatprep.subr.bf16.mxu0 %v14711_v1  ;;  %v8561_v4 = vld [vmem:[%s14697_s12 + $0x5b] sm:$0xff]  ;;  %v14762_v18 = vld [vmem:[%s14697_s12 + $0x52] sm:$0xff]  ;;  %v3504_v57 = vld [vmem:[#allocation14 + $0x2e8] sm:$0xff]  ;;  %v12046_v8 = vpack.c.bf16 %v2090_v23, %v2089_v62 }
 0x25f   : > { %v2092_v29 = vld [vmem:[#allocation14 + $0x68] sm:$0xff]  ;;  %v8564_v58 = vld [vmem:[%s14697_s12 + $0x73] sm:$0xff]  ;;  %v12178_v45 = vpack.c.bf16 %v3504_v57, %v3503_v47  ;;  %v8565_v3 = vld [vmem:[%s14697_s12 + $0x7b] sm:$0xff] }
 0x260   : > { %12021 = vmatpush3.bf16.msra.mxu1 %v12018_v39  ;;  %v14758_v39 = vld [vmem:[%s14697_s12 + $0x4a] sm:$0xff]  ;;  %v2094_v9 = vld [vmem:[#allocation14 + $0x78] sm:$0xff]  ;;  %v2682_v25 = vld [vmem:[#allocation14 + $0x180] sm:$0xff] }
 0x261   : > { %12149 = vmatpush3.bf16.msra.mxu0 %v14711_v1  ;;  %12023 = vmatprep.subr.bf16.mxu1 %v12022_v22  ;;  %v2093_v21 = vld [vmem:[#allocation14 + $0x70] sm:$0xff]  ;;  %v3800_v6 = vld [vmem:[#allocation14 + $0x308] sm:$0xff]  ;;  %v3803_v16 = vld [vmem:[#allocation14 + $0x320] sm:$0xff] }
 0x262   : > { %12151 = vmatprep.subr.bf16.mxu0 %v14715_v20  ;;  %v14782_v19 = vld [vmem:[%s14697_s12 + $0x72] sm:$0xff]  ;;  %v12054_v53 = vpack.c.bf16 %v2094_v9, %v2093_v21  ;;  %v2683_v63 = vld [vmem:[#allocation14 + $0x188] sm:$0xff]  ;;  %v14813_v62 = vld [vmem:[%s14697_s12 + $0x9a] sm:$0xff] }
 0x263   : > { %v3801_v38 = vld [vmem:[#allocation14 + $0x310] sm:$0xff]  ;;  %v14796_v15 = vpack.c.bf16 %v2683_v63, %v2682_v25  ;;  %v3806_v57 = vld [vmem:[#allocation14 + $0x338] sm:$0xff]  ;;  %v14852_v21 = vld [vmem:[%s14697_s12 + $0xc2] sm:$0xff] }
 0x264   : > { %12025 = vmatpush3.bf16.msra.mxu1 %v12022_v22  ;;  %v8562_v22 = vld [vmem:[%s14697_s12 + $0x63] sm:$0xff]  ;;  %v14817_v23 = vld [vmem:[%s14697_s12 + $0x2c] sm:$0xff]  ;;  %16534 = vst [vmem:[#allocation60_spill] sm:$0xff] %v14852_v21  ;;  %v14855_v9 = vld [vmem:[%s14697_s12 + $0x54] sm:$0xff] }
 0x265   : > { %12153 = vmatpush3.bf16.msra.mxu0 %v14715_v20  ;;  %12027 = vmatprep.subr.bf16.mxu1 %v12026_v36  ;;  %v14800_v42 = vld [vmem:[%s14697_s12 + $0x8a] sm:$0xff]  ;;  %v14926_v56 = vld [vmem:[%s14697_s12 + $0x9c] sm:$0xff] }
 0x266   : > { %12155 = vmatprep.subr.bf16.mxu0 %v12154_v24  ;;  %v3805_v47 = vld [vmem:[#allocation14 + $0x330] sm:$0xff]  ;;  %v14871_v25 = vld [vmem:[%s14697_s12 + $0x64] sm:$0xff]  ;;  %v2689_v14 = vld [vmem:[#allocation14 + $0x1b8] sm:$0xff] }
 0x267   : > { %10459 = vmatmul.mubr.f32.vlgmr.msra.gmra.mrb[0].mxu1 %v8487_v17  ;;  %v14772_v17 = vld [vmem:[%s14697_s12 + $0x62] sm:$0xff]  ;;  %v2688_v13 = vld [vmem:[#allocation14 + $0x1b0] sm:$0xff] }
 0x268   : > { %10779 = vmatmul.mubr.f32.vlgmr.msra.gmra.mrb[0].mxu0 %v8553_v46  ;;  %12029 = vmatpush3.bf16.msra.mxu1 %v12026_v36  ;;  %v14768_v36 = vld [vmem:[%s14697_s12 + $0x5a] sm:$0xff]  ;;  %v3505_v46 = vld [vmem:[#allocation14 + $0x2f0] sm:$0xff]  ;;  %v2048_v7 = vld [vmem:[%s14697_s12 + $0x8] sm:$0xff] }
 0x269   : > { %12157 = vmatpush3.bf16.msra.mxu0 %v12154_v24  ;;  %10461 = vmatprep.mubr.f32.mxu1 %v14723_v52  ;;  %v2091_v24 = vld [vmem:[#allocation14 + $0x60] sm:$0xff]  ;;  %v2687_v1 = vld [vmem:[#allocation14 + $0x1a8] sm:$0xff]  ;;  %v2053_v44 = vld [vmem:[%s14697_s12 + $0x30] sm:$0xff] }
 0x26a   : > { %10781 = vmatprep.mubr.f32.mxu0 %v8554_v51  ;;  %12159 = vmatprep.subr.bf16.mxu0 %v12158_v54  ;;  %v12050_v51 = vpack.c.bf16 %v2092_v29, %v2091_v24  ;;  %v14833_v24 = vld [vmem:[%s14697_s12 + $0x3c] sm:$0xff]  ;;  %v14836_v29 = vld [vmem:[%s14697_s12 + $0xb2] sm:$0xff]  ;;  %v14952_v49 = vld [vmem:[%s14697_s12 + $0xc4] sm:$0xff] }
 0x26b   : > { %10462 = vmatmul.mubr.f32.gmra.mrb[2].mxu1 %v14727_v28  ;;  %12031 = vmatprep.subr.bf16.mxu1 %v12030_v60  ;;  %16532 = vst [vmem:[#allocation58_spill] sm:$0xff] %v14836_v29  ;;  %v2686_v20 = vld [vmem:[#allocation14 + $0x1a0] sm:$0xff]  ;;  %v14958_v55 = vld [vmem:[%s14697_s12 + $0xcc] sm:$0xff] }
 0x26c   : > { %10782 = vmatmul.mubr.f32.gmra.mrb[2].mxu0 %v8555_v59  ;;  %10464 = vmatprep.mubr.f32.mxu1 %v14732_v26  ;;  %v8566_v59 = vld [vmem:[%s14697_s12 + $0x83] sm:$0xff] }
 0x26d   : > { %12161 = vmatpush3.bf16.msra.mxu0 %v12158_v54  ;;  %10784 = vmatprep.mubr.f32.mxu0 %v8556_v35  ;;  %v3506_v54 = vld [vmem:[#allocation14 + $0x2f8] sm:$0xff] }
 0x26e   : > { %12163 = vmatprep.subr.bf16.mxu0 %v12162_v48  ;;  %12033 = vmatpush3.bf16.msra.mxu1 %v12030_v60  ;;  %v14778_v60 = vld [vmem:[%s14697_s12 + $0x6a] sm:$0xff]  ;;  %v12182_v35 = vpack.c.bf16 %v3506_v54, %v3505_v46  ;;  %v14845_v54 = vld [vmem:[%s14697_s12 + $0xba] sm:$0xff] }
 0x26f   : > { %10465 = vmatmul.mubr.f32.gmra.mrb[4].mxu1 %v14738_v61  ;;  %12035 = vmatprep.subr.bf16.mxu1 %v12034_v31  ;;  %v3808_v46 = vld [vmem:[#allocation14 + $0x348] sm:$0xff]  ;;  %16533 = vst [vmem:[#allocation59_spill] sm:$0xff] %v14845_v54 }
 0x270   : > { %10785 = vmatmul.mubr.f32.gmra.mrb[4].mxu0 %v8557_v40  ;;  %10467 = vmatprep.mubr.f32.mxu1 %v14742_v34  ;;  %v8567_v40 = vld [vmem:[%s14697_s12 + $0x8b] sm:$0xff] }
 0x271   : > { %12165 = vmatpush3.bf16.msra.mxu0 %v12162_v48  ;;  %10787 = vmatprep.mubr.f32.mxu0 %v8558_v0  ;;  %v3799_v48 = vld [vmem:[#allocation14 + $0x300] sm:$0xff] }
 0x272   : > { %12167 = vmatprep.subr.bf16.mxu0 %v12166_v43  ;;  %12037 = vmatpush3.bf16.msra.mxu1 %v12034_v31  ;;  %v14788_v31 = vld [vmem:[%s14697_s12 + $0x7a] sm:$0xff]  ;;  %v14792_v0 = vld [vmem:[%s14697_s12 + $0x82] sm:$0xff]  ;;  %v12186_v32 = vpack.c.bf16 %v3800_v6, %v3799_v48  ;;  %v14861_v48 = vld [vmem:[%s14697_s12 + $0xca] sm:$0xff] }
 0x273   : > { %10468 = vmatmul.mubr.f32.gmra.mrb[6].mxu1 %v14748_v11  ;;  %12039 = vmatprep.subr.bf16.mxu1 %v12038_v37  ;;  %16535 = vst [vmem:[#allocation61_spill] sm:$0xff] %v14861_v48  ;;  %v14865_v6 = vld [vmem:[%s14697_s12 + $0x5c] sm:$0xff] }
 0x274   : > { %10788 = vmatmul.mubr.f32.gmra.mrb[6].mxu0 %v8559_v5  ;;  %10470 = vmatprep.mubr.f32.mxu1 %v14752_v27  ;;  %v8586_v5 = vld [vmem:[%s14697_s12 + $0x1c] sm:$0xff] }
 0x275   : > { %12169 = vmatpush3.bf16.msra.mxu0 %v12166_v43  ;;  %10790 = vmatprep.mubr.f32.mxu0 %v8560_v50  ;;  %v8585_v43 = vld [vmem:[%s14697_s12 + $0x14] sm:$0xff] }
 0x276   : > { %12171 = vmatprep.subr.bf16.mxu0 %v12170_v10  ;;  %12041 = vmatpush3.bf16.msra.mxu1 %v12038_v37  ;;  %v3802_v37 = vld [vmem:[#allocation14 + $0x318] sm:$0xff] }
 0x277   : > { %10471 = vmatmul.mubr.f32.gmra.mrb[8].mxu1 %v14758_v39  ;;  %12043 = vmatprep.subr.bf16.mxu1 %v12042_v12  ;;  %v14804_v50 = vld [vmem:[%s14697_s12 + $0x92] sm:$0xff]  ;;  %v12190_v41 = vpack.c.bf16 %v3802_v37, %v3801_v38  ;;  %v14884_v37 = vld [vmem:[%s14697_s12 + $0xe2] sm:$0xff] }
 0x278   : > { %10791 = vmatmul.mubr.f32.gmra.mrb[8].mxu0 %v8561_v4  ;;  %10473 = vmatprep.mubr.f32.mxu1 %v14762_v18  ;;  %v14820_v4 = vld [vmem:[%s14697_s12 + $0xa2] sm:$0xff]  ;;  %v14881_v38 = vld [vmem:[%s14697_s12 + $0x6c] sm:$0xff]  ;;  %16538 = vst [vmem:[#allocation64_spill] sm:$0xff] %v14884_v37 }
 0x279   : > { %12173 = vmatpush3.bf16.msra.mxu0 %v12170_v10  ;;  %10793 = vmatprep.mubr.f32.mxu0 %v8562_v22  ;;  %v14807_v10 = vld [vmem:[%s14697_s12 + $0x24] sm:$0xff]  ;;  %v14823_v22 = vld [vmem:[%s14697_s12 + $0x34] sm:$0xff] }
 0x27a   : > { %12175 = vmatprep.subr.bf16.mxu0 %v12174_v2  ;;  %12045 = vmatpush3.bf16.msra.mxu1 %v12042_v12  ;;  %v3804_v12 = vld [vmem:[#allocation14 + $0x328] sm:$0xff] }
 0x27b   : > { %10474 = vmatmul.mubr.f32.gmra.mrb[10].mxu1 %v14768_v36  ;;  %12047 = vmatprep.subr.bf16.mxu1 %v12046_v8 }
 0x27c   : > { %10794 = vmatmul.mubr.f32.gmra.mrb[10].mxu0 %v8563_v30  ;;  %10476 = vmatprep.mubr.f32.mxu1 %v14772_v17  ;;  %v14839_v30 = vld [vmem:[%s14697_s12 + $0x44] sm:$0xff] }
 0x27d   : > { %12177 = vmatpush3.bf16.msra.mxu0 %v12174_v2  ;;  %10796 = vmatprep.mubr.f32.mxu0 %v8564_v58  ;;  %v12194_v2 = vpack.c.bf16 %v3804_v12, %v3803_v16  ;;  %v12198_v58 = vpack.c.bf16 %v3806_v57, %v3805_v47  ;;  %v3813_v16 = vld [vmem:[#allocation14 + $0x370] sm:$0xff]  ;;  %v3814_v12 = vld [vmem:[#allocation14 + $0x378] sm:$0xff] }
 0x27e   : > { %12179 = vmatprep.subr.bf16.mxu0 %v12178_v45  ;;  %12049 = vmatpush3.bf16.msra.mxu1 %v12046_v8  ;;  %v14829_v8 = vld [vmem:[%s14697_s12 + $0xaa] sm:$0xff]  ;;  %v14897_v47 = vld [vmem:[%s14697_s12 + $0x7c] sm:$0xff]  ;;  %v14900_v57 = vld [vmem:[%s14697_s12 + $0xf2] sm:$0xff] }
 0x27f   : > { %10477 = vmatmul.mubr.f32.gmra.mrb[12].mxu1 %v14778_v60  ;;  %12051 = vmatprep.subr.bf16.mxu1 %v12050_v51  ;;  %16540 = vst [vmem:[#allocation66_spill] sm:$0xff] %v14900_v57 }
 0x280   : > { %10797 = vmatmul.mubr.f32.gmra.mrb[12].mxu0 %v8565_v3  ;;  %10479 = vmatprep.mubr.f32.mxu1 %v14782_v19 }
 0x281   : > { %12181 = vmatpush3.bf16.msra.mxu0 %v12178_v45  ;;  %10799 = vmatprep.mubr.f32.mxu0 %v8566_v59  ;;  %v3807_v45 = vld [vmem:[#allocation14 + $0x340] sm:$0xff]  ;;  %v3809_v59 = vld [vmem:[#allocation14 + $0x350] sm:$0xff] }
 0x282   : > { %12183 = vmatprep.subr.bf16.mxu0 %v12182_v35  ;;  %12053 = vmatpush3.bf16.msra.mxu1 %v12050_v51  ;;  %v14849_v51 = vld [vmem:[%s14697_s12 + $0x4c] sm:$0xff]  ;;  %v12202_v3 = vpack.c.bf16 %v3808_v46, %v3807_v45  ;;  %v12214_v45 = vpack.c.bf16 %v3814_v12, %v3813_v16  ;;  %v4107_v46 = vld [vmem:[#allocation14 + $0x380] sm:$0xff]  ;;  %v2685_v12 = vld [vmem:[#allocation14 + $0x198] sm:$0xff] }
 0x283   : > { %10480 = vmatmul.mubr.f32.gmra.mrb[14].mxu1 %v14788_v31  ;;  %12055 = vmatprep.subr.bf16.mxu1 %v12054_v53  ;;  %v2684_v16 = vld [vmem:[#allocation14 + $0x190] sm:$0xff] }
 0x284   : > { %10800 = vmatmul.mubr.f32.gmra.mrb[14].mxu0 %v8567_v40  ;;  %10482 = vmatprep.mubr.f32.mxu1 %v14792_v0  ;;  %v3811_v40 = vld [vmem:[#allocation14 + $0x360] sm:$0xff] }
 0x285   : > { %12185 = vmatpush3.bf16.msra.mxu0 %v12182_v35  ;;  %10858 = vmatprep.mubr.f32.mxu0 %v8585_v43  ;;  %v3810_v35 = vld [vmem:[#allocation14 + $0x358] sm:$0xff]  ;;  %v3812_v43 = vld [vmem:[#allocation14 + $0x368] sm:$0xff] }
 0x286   : > { %12187 = vmatprep.subr.bf16.mxu0 %v12186_v32  ;;  %12057 = vmatpush3.bf16.msra.mxu1 %v12054_v53  ;;  %v14868_v53 = vld [vmem:[%s14697_s12 + $0xd2] sm:$0xff]  ;;  %v12206_v63 = vpack.c.bf16 %v3810_v35, %v3809_v59  ;;  %v14909_v59 = vld [vmem:[%s14697_s12 + $0xfa] sm:$0xff] }
 0x287   : > { %10483 = vmatmul.mubr.f32.gmra.mrb[16].mxu1 %v14800_v42  ;;  %12059 = vmatprep.subr.bf16.mxu1 %v14796_v15  ;;  %16536 = vst [vmem:[#allocation62_spill] sm:$0xff] %v14868_v53  ;;  %16541 = vst [vmem:[#allocation67_spill] sm:$0xff] %v14909_v59  ;;  %v14913_v35 = vld [vmem:[%s14697_s12 + $0x8c] sm:$0xff] }
 0x288   : > { %10859 = vmatmul.mubr.f32.vlgmr.msra.gmra.mrb[0].mxu0 %v8586_v5  ;;  %10485 = vmatprep.mubr.f32.mxu1 %v14804_v50  ;;  %v14887_v5 = vld [vmem:[%s14697_s12 + $0x74] sm:$0xff] }
 0x289   : > { %12189 = vmatpush3.bf16.msra.mxu0 %v12186_v32  ;;  %10861 = vmatprep.mubr.f32.mxu0 %v14807_v10  ;;  %v14877_v32 = vld [vmem:[%s14697_s12 + $0xda] sm:$0xff] }
 0x28a   : > { %12191 = vmatprep.subr.bf16.mxu0 %v12190_v41  ;;  %16537 = vst [vmem:[#allocation63_spill] sm:$0xff] %v14877_v32 }
 0x28b   : > { %10486 = vmatmul.mubr.f32.gmra.mrb[18].mxu1 %v14813_v62 }
 0x28c   : > { %10862 = vmatmul.mubr.f32.gmra.mrb[2].mxu0 %v14817_v23  ;;  %10488 = vmatprep.mubr.f32.mxu1 %v14820_v4 }
 0x28d   : > { %10864 = vmatprep.mubr.f32.mxu0 %v14823_v22  ;;  %12193 = vmatpush3.bf16.msra.mxu0 %v12190_v41  ;;  %v12210_v41 = vpack.c.bf16 %v3812_v43, %v3811_v40  ;;  %v14917_v40 = vld [vmem:[%s14697_s12 + $0x94] sm:$0xff] }
 0x28e   : > { %12195 = vmatprep.subr.bf16.mxu0 %v12194_v2 }
 0x28f   : > { %10489 = vmatmul.mubr.f32.gmra.mrb[20].mxu1 %v14829_v8 }
 0x290   : > { %10865 = vmatmul.mubr.f32.gmra.mrb[4].mxu0 %v14833_v24  ;;  %10491 = vmatprep.mubr.f32.mxu1 %v14836_v29 }
 0x291   : > { %10867 = vmatprep.mubr.f32.mxu0 %v14839_v30  ;;  %12197 = vmatpush3.bf16.msra.mxu0 %v12194_v2  ;;  %v14893_v2 = vld [vmem:[%s14697_s12 + $0xea] sm:$0xff] }
 0x292   : > { %12199 = vmatprep.subr.bf16.mxu0 %v12198_v58  ;;  %16539 = vst [vmem:[#allocation65_spill] sm:$0xff] %v14893_v2 }
 0x293   : > { %10492 = vmatmul.mubr.f32.gmra.mrb[22].mxu1 %v14845_v54  ;;  %v2063_v54 = vld [vmem:[%s14697_s12 + $0x80] sm:$0xff] }
 0x294   : > { %10868 = vmatmul.mubr.f32.gmra.mrb[6].mxu0 %v14849_v51  ;;  %10494 = vmatprep.mubr.f32.mxu1 %v14852_v21  ;;  %v14998_v21 = vld [vmem:[%s14697_s12 + $0x10c] sm:$0xff] }
 0x295   : > { %10870 = vmatprep.mubr.f32.mxu0 %v14855_v9  ;;  %12201 = vmatpush3.bf16.msra.mxu0 %v12198_v58  ;;  %v14903_v58 = vld [vmem:[%s14697_s12 + $0x84] sm:$0xff] }
 0x296   : > { %12203 = vmatprep.subr.bf16.mxu0 %v12202_v3 }
 0x297   : > { %10495 = vmatmul.mubr.f32.gmra.mrb[24].mxu1 %v14861_v48  ;;  %v2061_v48 = vld [vmem:[%s14697_s12 + $0x70] sm:$0xff] }
 0x298   : > { %10871 = vmatmul.mubr.f32.gmra.mrb[8].mxu0 %v14865_v6  ;;  %10497 = vmatprep.mubr.f32.mxu1 %v14868_v53  ;;  %v14988_v53 = vld [vmem:[%s14697_s12 + $0xfc] sm:$0xff] }
 0x299   : > { %10873 = vmatprep.mubr.f32.mxu0 %v14871_v25  ;;  %12205 = vmatpush3.bf16.msra.mxu0 %v12202_v3  ;;  %v4108_v3 = vld [vmem:[#allocation14 + $0x388] sm:$0xff] }
 0x29a   : > { %12207 = vmatprep.subr.bf16.mxu0 %v12206_v63  ;;  %v14919_v43 = vpack.c.bf16 %v4108_v3, %v4107_v46  ;;  %v14930_v46 = vld [vmem:[%s14697_s12 + $0xa4] sm:$0xff]  ;;  %v12062_v3 = vpack.c.bf16 %v2685_v12, %v2684_v16  ;;  %v14942_v12 = vld [vmem:[%s14697_s12 + $0xb4] sm:$0xff] }
 0x29b   : > { %10498 = vmatmul.mubr.f32.gmra.mrb[26].mxu1 %v14877_v32  ;;  %v2051_v16 = vld [vmem:[%s14697_s12 + $0x20] sm:$0xff]  ;;  %v14982_v32 = vld [vmem:[%s14697_s12 + $0xf4] sm:$0xff] }
 0x29c   : > { %10874 = vmatmul.mubr.f32.gmra.mrb[10].mxu0 %v14881_v38  ;;  %10500 = vmatprep.mubr.f32.mxu1 %v14884_v37  ;;  %v14978_v37 = vld [vmem:[%s14697_s12 + $0xec] sm:$0xff] }
 0x29d   : > { %10876 = vmatprep.mubr.f32.mxu0 %v14887_v5  ;;  %12209 = vmatpush3.bf16.msra.mxu0 %v12206_v63  ;;  %v2047_v63 = vld [vmem:[%s14697_s12] sm:$0xff] }
 0x29e   : > { %12211 = vmatprep.subr.bf16.mxu0 %v12210_v41 }
 0x29f   : > { %10501 = vmatmul.mubr.f32.gmra.mrb[28].mxu1 %v14893_v2  ;;  %v14972_v2 = vld [vmem:[%s14697_s12 + $0xe4] sm:$0xff] }
 0x2a0   : > { %10877 = vmatmul.mubr.f32.gmra.mrb[12].mxu0 %v14897_v47  ;;  %10503 = vmatprep.mubr.f32.mxu1 %v14900_v57  ;;  %v14968_v57 = vld [vmem:[%s14697_s12 + $0xdc] sm:$0xff] }
 0x2a1   : > { %10879 = vmatprep.mubr.f32.mxu0 %v14903_v58  ;;  %12213 = vmatpush3.bf16.msra.mxu0 %v12210_v41  ;;  %v2049_v41 = vld [vmem:[%s14697_s12 + $0x10] sm:$0xff] }
 0x2a2   : > { %12215 = vmatprep.subr.bf16.mxu0 %v12214_v45 }
 0x2a3   : > { %10504 = vmatmul.mubr.f32.gmra.mrb[30].mxu1 %v14909_v59  ;;  %v14962_v59 = vld [vmem:[%s14697_s12 + $0xd4] sm:$0xff] }
 0x2a4   : > { %10880 = vmatmul.mubr.f32.gmra.mrb[14].mxu0 %v14913_v35  ;;  %10538 = vmatprep.mubr.f32.mxu1 %v2047_v63  ;;  %v2050_v63 = vld [vmem:[%s14697_s12 + $0x18] sm:$0xff] }
 0x2a5   : > { %10882 = vmatprep.mubr.f32.mxu0 %v14917_v40  ;;  %12217 = vmatpush3.bf16.msra.mxu0 %v12214_v45  ;;  %v14938_v45 = vld [vmem:[%s14697_s12 + $0xac] sm:$0xff] }
 0x2a6   : > { %12219 = vmatprep.subr.bf16.mxu0 %v14919_v43 }
 0x2a7   : > { %10539 = vmatmul.mubr.f32.vlgmr.msra.gmra.mrb[0].mxu1 %v2048_v7  ;;  %v12066_v7 = vpack.c.bf16 %v2687_v1, %v2686_v20  ;;  %v12070_v1 = vpack.c.bf16 %v2689_v14, %v2688_v13  ;;  %v2690_v20 = vld [vmem:[#allocation14 + $0x1c0] sm:$0xff]  ;;  %v2692_v13 = vld [vmem:[#allocation14 + $0x1d0] sm:$0xff] }
 0x2a8   : > { %10883 = vmatmul.mubr.f32.gmra.mrb[16].mxu0 %v14926_v56  ;;  %12061 = vmatpush3.bf16.msra.mxu1 %v14796_v15  ;;  %v2052_v15 = vld [vmem:[%s14697_s12 + $0x28] sm:$0xff] }
 0x2a9   : > { %10541 = vmatprep.mubr.f32.mxu1 %v2049_v41  ;;  %10885 = vmatprep.mubr.f32.mxu0 %v14930_v46  ;;  %v14948_v41 = vld [vmem:[%s14697_s12 + $0xbc] sm:$0xff] }
 0x2aa   : > { %12063 = vmatprep.subr.bf16.mxu1 %v12062_v3 }
 0x2ab   : > { %10542 = vmatmul.mubr.f32.gmra.mrb[2].mxu1 %v2050_v63  ;;  %v2691_v63 = vld [vmem:[#allocation14 + $0x1c8] sm:$0xff] }
 0x2ac   : > { %10886 = vmatmul.mubr.f32.gmra.mrb[18].mxu0 %v14938_v45  ;;  %10544 = vmatprep.mubr.f32.mxu1 %v2051_v16  ;;  %v2054_v16 = vld [vmem:[%s14697_s12 + $0x38] sm:$0xff]  ;;  %v12074_v14 = vpack.c.bf16 %v2691_v63, %v2690_v20  ;;  %v2694_v63 = vld [vmem:[#allocation14 + $0x1e0] sm:$0xff] }
 0x2ad   : > { %10888 = vmatprep.mubr.f32.mxu0 %v14942_v12  ;;  %12065 = vmatpush3.bf16.msra.mxu1 %v12062_v3  ;;  %v2055_v3 = vld [vmem:[%s14697_s12 + $0x40] sm:$0xff] }
 0x2ae   : > { %12067 = vmatprep.subr.bf16.mxu1 %v12066_v7 }
 0x2af   : > { %10545 = vmatmul.mubr.f32.gmra.mrb[4].mxu1 %v2052_v15  ;;  %v2693_v15 = vld [vmem:[#allocation14 + $0x1d8] sm:$0xff] }
 0x2b0   : > { %10889 = vmatmul.mubr.f32.gmra.mrb[20].mxu0 %v14948_v41  ;;  %10547 = vmatprep.mubr.f32.mxu1 %v2053_v44  ;;  %v2056_v44 = vld [vmem:[%s14697_s12 + $0x48] sm:$0xff]  ;;  %v12078_v20 = vpack.c.bf16 %v2693_v15, %v2692_v13  ;;  %v2696_v15 = vld [vmem:[#allocation14 + $0x1f0] sm:$0xff] }
 0x2b1   : > { %10891 = vmatprep.mubr.f32.mxu0 %v14952_v49  ;;  %12069 = vmatpush3.bf16.msra.mxu1 %v12066_v7  ;;  %v2057_v7 = vld [vmem:[%s14697_s12 + $0x50] sm:$0xff] }
 0x2b2   : > { %12071 = vmatprep.subr.bf16.mxu1 %v12070_v1 }
 0x2b3   : > { %10548 = vmatmul.mubr.f32.gmra.mrb[6].mxu1 %v2054_v16  ;;  %v2695_v16 = vld [vmem:[#allocation14 + $0x1e8] sm:$0xff] }
 0x2b4   : > { %10892 = vmatmul.mubr.f32.gmra.mrb[22].mxu0 %v14958_v55  ;;  %10550 = vmatprep.mubr.f32.mxu1 %v2055_v3  ;;  %v2058_v3 = vld [vmem:[%s14697_s12 + $0x58] sm:$0xff]  ;;  %v12082_v13 = vpack.c.bf16 %v2695_v16, %v2694_v63  ;;  %v2130_v16 = vld [vmem:[#allocation14 + $0x80] sm:$0xff] }
 0x2b5   : > { %10894 = vmatprep.mubr.f32.mxu0 %v14962_v59  ;;  %12073 = vmatpush3.bf16.msra.mxu1 %v12070_v1  ;;  %v2059_v1 = vld [vmem:[%s14697_s12 + $0x60] sm:$0xff] }
 0x2b6   : > { %12075 = vmatprep.subr.bf16.mxu1 %v12074_v14 }
 0x2b7   : > { %10551 = vmatmul.mubr.f32.gmra.mrb[8].mxu1 %v2056_v44  ;;  %v2697_v44 = vld [vmem:[#allocation14 + $0x1f8] sm:$0xff] }
 0x2b8   : > { %10895 = vmatmul.mubr.f32.gmra.mrb[24].mxu0 %v14968_v57  ;;  %10553 = vmatprep.mubr.f32.mxu1 %v2057_v7  ;;  %v2060_v7 = vld [vmem:[%s14697_s12 + $0x68] sm:$0xff]  ;;  %v12086_v63 = vpack.c.bf16 %v2697_v44, %v2696_v15  ;;  %v4109_v15 = vld [vmem:[#allocation14 + $0x390] sm:$0xff]  ;;  %v4110_v44 = vld [vmem:[#allocation14 + $0x398] sm:$0xff] }
 0x2b9   : > { %10897 = vmatprep.mubr.f32.mxu0 %v14972_v2  ;;  %12077 = vmatpush3.bf16.msra.mxu1 %v12074_v14  ;;  %v14992_v14 = vld [vmem:[%s14697_s12 + $0x104] sm:$0xff]  ;;  %v12222_v29 = vpack.c.bf16 %v4110_v44, %v4109_v15 }
 0x2ba   : > { %12079 = vmatprep.subr.bf16.mxu1 %v12078_v20  ;;  %v2068_v15 = vld [vmem:[%s14697_s12 + $0xa8] sm:$0xff] }
 0x2bb   : > { %10554 = vmatmul.mubr.f32.gmra.mrb[10].mxu1 %v2058_v3  ;;  %v2131_v3 = vld [vmem:[#allocation14 + $0x88] sm:$0xff] }
 0x2bc   : > { %10898 = vmatmul.mubr.f32.gmra.mrb[26].mxu0 %v14978_v37  ;;  %10556 = vmatprep.mubr.f32.mxu1 %v2059_v1  ;;  %v2062_v1 = vld [vmem:[%s14697_s12 + $0x78] sm:$0xff]  ;;  %v4116_v44 = vld [vmem:[#allocation14 + $0x3c8] sm:$0xff] }
 0x2bd   : > { %10900 = vmatprep.mubr.f32.mxu0 %v14982_v32  ;;  %12081 = vmatpush3.bf16.msra.mxu1 %v12078_v20  ;;  %v15001_v20 = vpack.c.bf16 %v2131_v3, %v2130_v16  ;;  %v4112_v16 = vld [vmem:[#allocation14 + $0x3a8] sm:$0xff]  ;;  %v2066_v3 = vld [vmem:[%s14697_s12 + $0x98] sm:$0xff] }
 0x2be   : > { %12083 = vmatprep.subr.bf16.mxu1 %v12082_v13 }
 0x2bf   : > { %10557 = vmatmul.mubr.f32.gmra.mrb[12].mxu1 %v2060_v7  ;;  %v2064_v7 = vld [vmem:[%s14697_s12 + $0x88] sm:$0xff] }
 0x2c0   : > { %10901 = vmatmul.mubr.f32.gmra.mrb[28].mxu0 %v14988_v53  ;;  %10559 = vmatprep.mubr.f32.mxu1 %v2061_v48  ;;  %v2065_v48 = vld [vmem:[%s14697_s12 + $0x90] sm:$0xff] }
 0x2c1   : > { %10903 = vmatprep.mubr.f32.mxu0 %v14992_v14  ;;  %12085 = vmatpush3.bf16.msra.mxu1 %v12082_v13  ;;  %v4111_v13 = vld [vmem:[#allocation14 + $0x3a0] sm:$0xff] }
 0x2c2   : > { %12087 = vmatprep.subr.bf16.mxu1 %v12086_v63 }
 0x2c3   : > { %10560 = vmatmul.mubr.f32.gmra.mrb[14].mxu1 %v2062_v1  ;;  %v4114_v1 = vld [vmem:[#allocation14 + $0x3b8] sm:$0xff] }
 0x2c4   : > { %10904 = vmatmul.mubr.f32.gmra.mrb[30].mxu0 %v14998_v21  ;;  %10562 = vmatprep.mubr.f32.mxu1 %v2063_v54  ;;  %v2067_v54 = vld [vmem:[%s14697_s12 + $0xa0] sm:$0xff] }
 0x2c5   : > { %10938 = vmatprep.mubr.f32.mxu0 %v14807_v10  ;;  %12089 = vmatpush3.bf16.msra.mxu1 %v12086_v63  ;;  %v12226_v10 = vpack.c.bf16 %v4112_v16, %v4111_v13  ;;  %v4113_v63 = vld [vmem:[#allocation14 + $0x3b0] sm:$0xff]  ;;  %v2072_v13 = vld [vmem:[%s14697_s12 + $0xc8] sm:$0xff] }
 0x2c6   : > { %12091 = vmatprep.subr.bf16.mxu1 %v15001_v20 }
 0x2c7   : > { %10563 = vmatmul.mubr.f32.gmra.mrb[16].mxu1 %v2064_v7  ;;  %v2070_v7 = vld [vmem:[%s14697_s12 + $0xb8] sm:$0xff] }
 0x2c8   : > { %10939 = vmatmul.mubr.f32.vlgmr.msra.gmra.mrb[0].mxu0 %v14817_v23  ;;  %10565 = vmatprep.mubr.f32.mxu1 %v2065_v48  ;;  %v2069_v23 = vld [vmem:[%s14697_s12 + $0xb0] sm:$0xff] }
 0x2c9   : > { %12221 = vmatpush3.bf16.msra.mxu0 %v14919_v43  ;;  %10941 = vmatprep.mubr.f32.mxu0 %v14823_v22  ;;  %v12230_v43 = vpack.c.bf16 %v4114_v1, %v4113_v63  ;;  %v4115_v22 = vld [vmem:[#allocation14 + $0x3c0] sm:$0xff]  ;;  %v4122_v63 = vld [vmem:[#allocation14 + $0x3f8] sm:$0xff]  ;;  %v2076_v1 = vld [vmem:[%s14697_s12 + $0xe8] sm:$0xff] }
 0x2ca   : > { %12223 = vmatprep.subr.bf16.mxu0 %v12222_v29  ;;  %v12234_v48 = vpack.c.bf16 %v4116_v44, %v4115_v22  ;;  %v2132_v22 = vld [vmem:[#allocation14 + $0x90] sm:$0xff] }
 0x2cb   : > { %10566 = vmatmul.mubr.f32.gmra.mrb[18].mxu1 %v2066_v3  ;;  %v4120_v3 = vld [vmem:[#allocation14 + $0x3e8] sm:$0xff] }
 0x2cc   : > { %10942 = vmatmul.mubr.f32.gmra.mrb[2].mxu0 %v14833_v24  ;;  %10568 = vmatprep.mubr.f32.mxu1 %v2067_v54  ;;  %v2071_v24 = vld [vmem:[%s14697_s12 + $0xc0] sm:$0xff]  ;;  %v2074_v54 = vld [vmem:[%s14697_s12 + $0xd8] sm:$0xff] }
 0x2cd   : > { %10944 = vmatprep.mubr.f32.mxu0 %v14839_v30  ;;  %12225 = vmatpush3.bf16.msra.mxu0 %v12222_v29  ;;  %v4117_v29 = vld [vmem:[#allocation14 + $0x3d0] sm:$0xff]  ;;  %v4118_v30 = vld [vmem:[#allocation14 + $0x3d8] sm:$0xff] }
 0x2ce   : > { %12227 = vmatprep.subr.bf16.mxu0 %v12226_v10  ;;  %v12238_v16 = vpack.c.bf16 %v4118_v30, %v4117_v29  ;;  %v8658_v29 = vld [vmem:[%s14697_s12 + $0x5d] sm:$0xff]  ;;  %v8659_v30 = vld [vmem:[%s14697_s12 + $0x65] sm:$0xff] }
 0x2cf   : > { %10569 = vmatmul.mubr.f32.gmra.mrb[20].mxu1 %v2068_v15  ;;  %v2077_v15 = vld [vmem:[%s14697_s12 + $0xf0] sm:$0xff] }
 0x2d0   : > { %10945 = vmatmul.mubr.f32.gmra.mrb[4].mxu0 %v14849_v51  ;;  %10571 = vmatprep.mubr.f32.mxu1 %v2069_v23  ;;  %v2073_v51 = vld [vmem:[%s14697_s12 + $0xd0] sm:$0xff]  ;;  %v4416_v23 = vld [vmem:[#allocation14 + $0x408] sm:$0xff] }
 0x2d1   : > { %10947 = vmatprep.mubr.f32.mxu0 %v14855_v9  ;;  %12229 = vmatpush3.bf16.msra.mxu0 %v12226_v10  ;;  %v4119_v9 = vld [vmem:[#allocation14 + $0x3e0] sm:$0xff] }
 0x2d2   : > { %12231 = vmatprep.subr.bf16.mxu0 %v12230_v43  ;;  %v12242_v10 = vpack.c.bf16 %v4120_v3, %v4119_v9  ;;  %v4426_v9 = vld [vmem:[#allocation14 + $0x458] sm:$0xff] }
 0x2d3   : > { %10572 = vmatmul.mubr.f32.gmra.mrb[22].mxu1 %v2070_v7  ;;  %v16543_v7 = vld [vmem:[#allocation59_spill] sm:$0xff]  ;;  %v16546_v3 = vld [vmem:[#allocation62_spill] sm:$0xff] }
 0x2d4   : > { %10948 = vmatmul.mubr.f32.gmra.mrb[6].mxu0 %v14865_v6  ;;  %10574 = vmatprep.mubr.f32.mxu1 %v2071_v24  ;;  %v2075_v6 = vld [vmem:[%s14697_s12 + $0xe0] sm:$0xff] }
 0x2d5   : > { %10950 = vmatprep.mubr.f32.mxu0 %v14871_v25  ;;  %12233 = vmatpush3.bf16.msra.mxu0 %v12230_v43  ;;  %v4121_v25 = vld [vmem:[#allocation14 + $0x3f0] sm:$0xff]  ;;  %v2078_v43 = vld [vmem:[%s14697_s12 + $0xf8] sm:$0xff]  ;;  %v4423_v24 = vld [vmem:[#allocation14 + $0x440] sm:$0xff] }
 0x2d6   : > { %12235 = vmatprep.subr.bf16.mxu0 %v12234_v48 }
 0x2d7   : > { %10575 = vmatmul.mubr.f32.gmra.mrb[24].mxu1 %v2072_v13 }
 0x2d8   : > { %10951 = vmatmul.mubr.f32.gmra.mrb[8].mxu0 %v14881_v38  ;;  %10577 = vmatprep.mubr.f32.mxu1 %v2073_v51  ;;  %v12246_v38 = vpack.c.bf16 %v4122_v63, %v4121_v25  ;;  %v16545_v51 = vld [vmem:[#allocation61_spill] sm:$0xff]  ;;  %v16547_v25 = vld [vmem:[#allocation63_spill] sm:$0xff] }
 0x2d9   : > { %10953 = vmatprep.mubr.f32.mxu0 %v14887_v5  ;;  %12237 = vmatpush3.bf16.msra.mxu0 %v12234_v48  ;;  %v4415_v5 = vld [vmem:[#allocation14 + $0x400] sm:$0xff]  ;;  %v4424_v48 = vld [vmem:[#allocation14 + $0x448] sm:$0xff] }
 0x2da   : > { %12239 = vmatprep.subr.bf16.mxu0 %v12238_v16  ;;  %v12266_v13 = vpack.c.bf16 %v4424_v48, %v4423_v24  ;;  %v4427_v63 = vld [vmem:[#allocation14 + $0x460] sm:$0xff]  ;;  %v8467_v24 = vld [vmem:[%s14697_s12 + $0x71] sm:$0xff] }
 0x2db   : > { %10578 = vmatmul.mubr.f32.gmra.mrb[26].mxu1 %v2074_v54  ;;  %v8660_v54 = vld [vmem:[%s14697_s12 + $0x6d] sm:$0xff]  ;;  %v8681_v48 = vld [vmem:[%s14697_s12 + $0x115] sm:$0xff] }
 0x2dc   : > { %10954 = vmatmul.mubr.f32.gmra.mrb[10].mxu0 %v14897_v47  ;;  %10580 = vmatprep.mubr.f32.mxu1 %v2075_v6  ;;  %v15036_v47 = vpack.c.bf16 %v4416_v23, %v4415_v5  ;;  %v8661_v6 = vld [vmem:[%s14697_s12 + $0x75] sm:$0xff]  ;;  %v8663_v5 = vld [vmem:[%s14697_s12 + $0x85] sm:$0xff] }
 0x2dd   : > { %10956 = vmatprep.mubr.f32.mxu0 %v14903_v58  ;;  %12241 = vmatpush3.bf16.msra.mxu0 %v12238_v16  ;;  %v2133_v58 = vld [vmem:[#allocation14 + $0x98] sm:$0xff]  ;;  %v4425_v16 = vld [vmem:[#allocation14 + $0x450] sm:$0xff] }
 0x2de   : > { %12243 = vmatprep.subr.bf16.mxu0 %v12242_v10  ;;  %v12094_v44 = vpack.c.bf16 %v2133_v58, %v2132_v22  ;;  %v4430_v22 = vld [vmem:[#allocation14 + $0x478] sm:$0xff] }
 0x2df   : > { %10581 = vmatmul.mubr.f32.gmra.mrb[28].mxu1 %v2076_v1  ;;  %v4428_v1 = vld [vmem:[#allocation14 + $0x468] sm:$0xff]  ;;  %v16550_v58 = vld [vmem:[#allocation66_spill] sm:$0xff] }
 0x2e0   : > { %10957 = vmatmul.mubr.f32.gmra.mrb[12].mxu0 %v14913_v35  ;;  %10583 = vmatprep.mubr.f32.mxu1 %v2077_v15  ;;  %v2134_v35 = vld [vmem:[#allocation14 + $0xa0] sm:$0xff]  ;;  %v16548_v15 = vld [vmem:[#allocation64_spill] sm:$0xff]  ;;  %v12274_v23 = vpack.c.bf16 %v4428_v1, %v4427_v63 }
 0x2e1   : > { %10959 = vmatprep.mubr.f32.mxu0 %v14917_v40  ;;  %12245 = vmatpush3.bf16.msra.mxu0 %v12242_v10  ;;  %v2135_v40 = vld [vmem:[#allocation14 + $0xa8] sm:$0xff]  ;;  %v12270_v10 = vpack.c.bf16 %v4426_v9, %v4425_v16  ;;  %v16558_v16 = vld [vmem:[#allocation57_spill] sm:$0xff] }
 0x2e2   : > { %12247 = vmatprep.subr.bf16.mxu0 %v12246_v38  ;;  %v8470_v9 = vld [vmem:[%s14697_s12 + $0x89] sm:$0xff]  ;;  %v8473_v63 = vld [vmem:[%s14697_s12 + $0xa1] sm:$0xff] }
 0x2e3   : > { %10584 = vmatmul.mubr.f32.gmra.mrb[30].mxu1 %v2078_v43  ;;  %v16549_v43 = vld [vmem:[#allocation65_spill] sm:$0xff]  ;;  %v8688_v1 = vld [vmem:[%s14697_s12 + $0x46] sm:$0xff] }
 0x2e4   : > { %10960 = vmatmul.mubr.f32.gmra.mrb[14].mxu0 %v14926_v56  ;;  %10618 = vmatprep.mubr.f32.mxu1 %v14723_v52  ;;  %v12098_v56 = vpack.c.bf16 %v2135_v40, %v2134_v35  ;;  %v2136_v52 = vld [vmem:[#allocation14 + $0xb0] sm:$0xff]  ;;  %v8549_v35 = vld [vmem:[%s14697_s12 + $0x102] sm:$0xff] }
 0x2e5   : > { %10962 = vmatprep.mubr.f32.mxu0 %v14930_v46  ;;  %12249 = vmatpush3.bf16.msra.mxu0 %v12246_v38  ;;  %v2137_v46 = vld [vmem:[#allocation14 + $0xb8] sm:$0xff] }
 0x2e6   : > { %12251 = vmatprep.subr.bf16.mxu0 %v15036_v47  ;;  %v8662_v38 = vld [vmem:[%s14697_s12 + $0x7d] sm:$0xff]  ;;  %v8665_v40 = vld [vmem:[%s14697_s12 + $0x95] sm:$0xff] }
 0x2e7   : > { %10619 = vmatmul.mubr.f32.vlgmr.msra.gmra.mrb[0].mxu1 %v14727_v28  ;;  %v12102_v28 = vpack.c.bf16 %v2137_v46, %v2136_v52  ;;  %v16551_v52 = vld [vmem:[#allocation67_spill] sm:$0xff]  ;;  %v8550_v46 = vld [vmem:[%s14697_s12 + $0x10a] sm:$0xff] }
 0x2e8   : > { %10963 = vmatmul.mubr.f32.gmra.mrb[16].mxu0 %v14938_v45  ;;  %12093 = vmatpush3.bf16.msra.mxu1 %v15001_v20  ;;  %v2139_v45 = vld [vmem:[#allocation14 + $0xc8] sm:$0xff] }
 0x2e9   : > { %10621 = vmatprep.mubr.f32.mxu1 %v14732_v26  ;;  %10965 = vmatprep.mubr.f32.mxu0 %v14942_v12  ;;  %v2138_v26 = vld [vmem:[#allocation14 + $0xc0] sm:$0xff]  ;;  %v4421_v12 = vld [vmem:[#allocation14 + $0x430] sm:$0xff] }
 0x2ea   : > { %12095 = vmatprep.subr.bf16.mxu1 %v12094_v44 }
 0x2eb   : > { %10622 = vmatmul.mubr.f32.gmra.mrb[2].mxu1 %v14738_v61  ;;  %v12106_v61 = vpack.c.bf16 %v2139_v45, %v2138_v26  ;;  %v8453_v26 = vld [vmem:[%s14697_s12 + $0x1] sm:$0xff] }
 0x2ec   : > { %10966 = vmatmul.mubr.f32.gmra.mrb[18].mxu0 %v14948_v41  ;;  %10624 = vmatprep.mubr.f32.mxu1 %v14742_v34  ;;  %v2140_v34 = vld [vmem:[#allocation14 + $0xd0] sm:$0xff]  ;;  %v4422_v41 = vld [vmem:[#allocation14 + $0x438] sm:$0xff]  ;;  %v8667_v45 = vld [vmem:[%s14697_s12 + $0xa5] sm:$0xff] }
 0x2ed   : > { %10968 = vmatprep.mubr.f32.mxu0 %v14952_v49  ;;  %12097 = vmatpush3.bf16.msra.mxu1 %v12094_v44  ;;  %v2141_v49 = vld [vmem:[#allocation14 + $0xd8] sm:$0xff]  ;;  %v12262_v20 = vpack.c.bf16 %v4422_v41, %v4421_v12  ;;  %v8664_v44 = vld [vmem:[%s14697_s12 + $0x8d] sm:$0xff] }
 0x2ee   : > { %12099 = vmatprep.subr.bf16.mxu1 %v12098_v56  ;;  %v8464_v12 = vld [vmem:[%s14697_s12 + $0x59] sm:$0xff] }
 0x2ef   : > { %10625 = vmatmul.mubr.f32.gmra.mrb[4].mxu1 %v14748_v11  ;;  %v2142_v11 = vld [vmem:[#allocation14 + $0xe0] sm:$0xff] }
 0x2f0   : > { %10969 = vmatmul.mubr.f32.gmra.mrb[20].mxu0 %v14958_v55  ;;  %10627 = vmatprep.mubr.f32.mxu1 %v14752_v27  ;;  %v12110_v55 = vpack.c.bf16 %v2141_v49, %v2140_v34  ;;  %v2143_v27 = vld [vmem:[#allocation14 + $0xe8] sm:$0xff]  ;;  %v8455_v49 = vld [vmem:[%s14697_s12 + $0x11] sm:$0xff]  ;;  %v8678_v41 = vld [vmem:[%s14697_s12 + $0xfd] sm:$0xff] }
 0x2f1   : > { %10971 = vmatprep.mubr.f32.mxu0 %v14962_v59  ;;  %12101 = vmatpush3.bf16.msra.mxu1 %v12098_v56  ;;  %v8668_v34 = vld [vmem:[%s14697_s12 + $0xad] sm:$0xff] }
 0x2f2   : > { %12103 = vmatprep.subr.bf16.mxu1 %v12102_v28 }
 0x2f3   : > { %10628 = vmatmul.mubr.f32.gmra.mrb[6].mxu1 %v14758_v39  ;;  %v12114_v39 = vpack.c.bf16 %v2143_v27, %v2142_v11  ;;  %v8456_v11 = vld [vmem:[%s14697_s12 + $0x19] sm:$0xff] }
 0x2f4   : > { %10972 = vmatmul.mubr.f32.gmra.mrb[22].mxu0 %v14968_v57  ;;  %10630 = vmatprep.mubr.f32.mxu1 %v14762_v18  ;;  %v2144_v18 = vld [vmem:[#allocation14 + $0xf0] sm:$0xff]  ;;  %v4420_v57 = vld [vmem:[#allocation14 + $0x428] sm:$0xff]  ;;  %v8670_v27 = vld [vmem:[%s14697_s12 + $0xbd] sm:$0xff] }
 0x2f5   : > { %10974 = vmatprep.mubr.f32.mxu0 %v14972_v2  ;;  %12105 = vmatpush3.bf16.msra.mxu1 %v12102_v28  ;;  %v2145_v2 = vld [vmem:[#allocation14 + $0xf8] sm:$0xff] }
 0x2f6   : > { %12107 = vmatprep.subr.bf16.mxu1 %v12106_v61  ;;  %v8666_v28 = vld [vmem:[%s14697_s12 + $0x9d] sm:$0xff] }
 0x2f7   : > { %10631 = vmatmul.mubr.f32.gmra.mrb[8].mxu1 %v14768_v36  ;;  %v8648_v36 = vld [vmem:[%s14697_s12 + $0x114] sm:$0xff] }
 0x2f8   : > { %10975 = vmatmul.mubr.f32.gmra.mrb[24].mxu0 %v14978_v37  ;;  %10633 = vmatprep.mubr.f32.mxu1 %v14772_v17  ;;  %v12118_v17 = vpack.c.bf16 %v2145_v2, %v2144_v18  ;;  %v8671_v18 = vld [vmem:[%s14697_s12 + $0xc5] sm:$0xff] }
 0x2f9   : > { %10977 = vmatprep.mubr.f32.mxu0 %v14982_v32  ;;  %12109 = vmatpush3.bf16.msra.mxu1 %v12106_v61  ;;  %v4418_v32 = vld [vmem:[#allocation14 + $0x418] sm:$0xff]  ;;  %v8454_v61 = vld [vmem:[%s14697_s12 + $0x9] sm:$0xff]  ;;  %v16552_v2 = vld [vmem:[#allocation51_spill] sm:$0xff] }
 0x2fa   : > { %12111 = vmatprep.subr.bf16.mxu1 %v12110_v55 }
 0x2fb   : > { %10634 = vmatmul.mubr.f32.gmra.mrb[10].mxu1 %v14778_v60  ;;  %v8649_v60 = vld [vmem:[%s14697_s12 + $0x11c] sm:$0xff] }
 0x2fc   : > { %10978 = vmatmul.mubr.f32.gmra.mrb[26].mxu0 %v14988_v53  ;;  %10636 = vmatprep.mubr.f32.mxu1 %v14782_v19  ;;  %v8651_v53 = vld [vmem:[%s14697_s12 + $0x25] sm:$0xff]  ;;  %v4417_v19 = vld [vmem:[#allocation14 + $0x410] sm:$0xff] }
 0x2fd   : > { %10980 = vmatprep.mubr.f32.mxu0 %v14992_v14  ;;  %12113 = vmatpush3.bf16.msra.mxu1 %v12110_v55  ;;  %v12254_v37 = vpack.c.bf16 %v4418_v32, %v4417_v19  ;;  %v8656_v14 = vld [vmem:[%s14697_s12 + $0x4d] sm:$0xff]  ;;  %v8669_v55 = vld [vmem:[%s14697_s12 + $0xb5] sm:$0xff]  ;;  %v8674_v32 = vld [vmem:[%s14697_s12 + $0xdd] sm:$0xff] }
 0x2fe   : > { %12115 = vmatprep.subr.bf16.mxu1 %v12114_v39  ;;  %v8460_v19 = vld [vmem:[%s14697_s12 + $0x39] sm:$0xff] }
 0x2ff   : > { %10637 = vmatmul.mubr.f32.gmra.mrb[12].mxu1 %v14788_v31  ;;  %v8652_v31 = vld [vmem:[%s14697_s12 + $0x2d] sm:$0xff] }
 0x300   : > { %10981 = vmatmul.mubr.f32.gmra.mrb[28].mxu0 %v14998_v21  ;;  %10639 = vmatprep.mubr.f32.mxu1 %v14792_v0  ;;  %v8653_v21 = vld [vmem:[%s14697_s12 + $0x35] sm:$0xff]  ;;  %v4419_v0 = vld [vmem:[#allocation14 + $0x420] sm:$0xff] }
 0x301   : > { %10983 = vmatprep.mubr.f32.mxu0 %v8648_v36  ;;  %12117 = vmatpush3.bf16.msra.mxu1 %v12114_v39  ;;  %v12258_v59 = vpack.c.bf16 %v4420_v57, %v4419_v0  ;;  %v8457_v39 = vld [vmem:[%s14697_s12 + $0x21] sm:$0xff]  ;;  %v8458_v36 = vld [vmem:[%s14697_s12 + $0x29] sm:$0xff] }
 0x302   : > { %12119 = vmatprep.subr.bf16.mxu1 %v12118_v17  ;;  %v8462_v0 = vld [vmem:[%s14697_s12 + $0x49] sm:$0xff] }
 0x303   : > { %10640 = vmatmul.mubr.f32.gmra.mrb[14].mxu1 %v14800_v42  ;;  %v8654_v42 = vld [vmem:[%s14697_s12 + $0x3d] sm:$0xff]  ;;  %v8676_v57 = vld [vmem:[%s14697_s12 + $0xed] sm:$0xff] }
 0x304   : > { %10984 = vmatmul.mubr.f32.gmra.mrb[30].mxu0 %v8649_v60  ;;  %10642 = vmatprep.mubr.f32.mxu1 %v14804_v50  ;;  %v8655_v50 = vld [vmem:[%s14697_s12 + $0x45] sm:$0xff]  ;;  %v8673_v60 = vld [vmem:[%s14697_s12 + $0xd5] sm:$0xff] }
 0x305   : > { %11018 = vmatprep.mubr.f32.mxu0 %v8651_v53  ;;  %12121 = vmatpush3.bf16.msra.mxu1 %v12118_v17  ;;  %v8672_v17 = vld [vmem:[%s14697_s12 + $0xcd] sm:$0xff] }
 0x306   : > { %12570 = vmatprep.subr.bf16.mxu1 %v14680_v33  ;;  %v16553_v53 = vld [vmem:[#allocation52_spill] sm:$0xff] }
 0x307   : > { %10643 = vmatmul.mubr.f32.gmra.mrb[16].mxu1 %v14813_v62  ;;  %v16542_v62 = vld [vmem:[#allocation58_spill] sm:$0xff] }
 0x308   : > { %11019 = vmatmul.mubr.f32.vlgmr.msra.gmra.mrb[0].mxu0 %v8652_v31  ;;  %10645 = vmatprep.mubr.f32.mxu1 %v14820_v4  ;;  %v8657_v4 = vld [vmem:[%s14697_s12 + $0x55] sm:$0xff]  ;;  %v8461_v31 = vld [vmem:[%s14697_s12 + $0x41] sm:$0xff] }
 0x309   : > { %12253 = vmatpush3.bf16.msra.mxu0 %v15036_v47  ;;  %11021 = vmatprep.mubr.f32.mxu0 %v8653_v21  ;;  %v4429_v47 = vld [vmem:[#allocation14 + $0x470] sm:$0xff]  ;;  %v8675_v21 = vld [vmem:[%s14697_s12 + $0xe5] sm:$0xff] }
 0x30a   : > { %12255 = vmatprep.subr.bf16.mxu0 %v12254_v37  ;;  %v12278_v56 = vpack.c.bf16 %v4430_v22, %v4429_v47  ;;  %v8691_v47 = vld [vmem:[%s14697_s12 + $0x5e] sm:$0xff] }
 0x30b   : > { %10646 = vmatmul.mubr.f32.gmra.mrb[18].mxu1 %v14829_v8  ;;  %v16544_v8 = vld [vmem:[#allocation60_spill] sm:$0xff] }
 0x30c   : > { %11022 = vmatmul.mubr.f32.gmra.mrb[2].mxu0 %v8654_v42  ;;  %10648 = vmatprep.mubr.f32.mxu1 %v16542_v62  ;;  %v8463_v42 = vld [vmem:[%s14697_s12 + $0x51] sm:$0xff]  ;;  %v8465_v62 = vld [vmem:[%s14697_s12 + $0x61] sm:$0xff] }
 0x30d   : > { %11024 = vmatprep.mubr.f32.mxu0 %v8655_v50  ;;  %12257 = vmatpush3.bf16.msra.mxu0 %v12254_v37  ;;  %v16554_v37 = vld [vmem:[#allocation53_spill] sm:$0xff]  ;;  %v8477_v22 = vld [vmem:[%s14697_s12 + $0xc1] sm:$0xff] }
 0x30e   : > { %12259 = vmatprep.subr.bf16.mxu0 %v12258_v59  ;;  %v8677_v50 = vld [vmem:[%s14697_s12 + $0xf5] sm:$0xff] }
 0x30f   : > { %10649 = vmatmul.mubr.f32.gmra.mrb[20].mxu1 %v16543_v7  ;;  %v8680_v7 = vld [vmem:[%s14697_s12 + $0x10d] sm:$0xff] }
 0x310   : > { %11025 = vmatmul.mubr.f32.gmra.mrb[4].mxu0 %v8656_v14  ;;  %10651 = vmatprep.mubr.f32.mxu1 %v16544_v8  ;;  %v8679_v14 = vld [vmem:[%s14697_s12 + $0x105] sm:$0xff] }
 0x311   : > { %11027 = vmatprep.mubr.f32.mxu0 %v8657_v4  ;;  %12261 = vmatpush3.bf16.msra.mxu0 %v12258_v59  ;;  %v16555_v59 = vld [vmem:[#allocation54_spill] sm:$0xff]  ;;  %v16556_v4 = vld [vmem:[#allocation55_spill] sm:$0xff]  ;;  %v16557_v8 = vld [vmem:[#allocation56_spill] sm:$0xff] }
 0x312   : > { %12263 = vmatprep.subr.bf16.mxu0 %v12262_v20 }
 0x313   : > { %10652 = vmatmul.mubr.f32.gmra.mrb[22].mxu1 %v16545_v51  ;;  %v8684_v51 = vld [vmem:[%s14697_s12 + $0x26] sm:$0xff] }
 0x314   : > { %11028 = vmatmul.mubr.f32.gmra.mrb[6].mxu0 %v8658_v29  ;;  %10654 = vmatprep.mubr.f32.mxu1 %v16546_v3  ;;  %v8468_v29 = vld [vmem:[%s14697_s12 + $0x79] sm:$0xff]  ;;  %v8685_v3 = vld [vmem:[%s14697_s12 + $0x2e] sm:$0xff] }
 0x315   : > { %11030 = vmatprep.mubr.f32.mxu0 %v8659_v30  ;;  %12265 = vmatpush3.bf16.msra.mxu0 %v12262_v20  ;;  %v8466_v20 = vld [vmem:[%s14697_s12 + $0x69] sm:$0xff]  ;;  %v8682_v30 = vld [vmem:[%s14697_s12 + $0x11d] sm:$0xff] }
 0x316   : > { %12267 = vmatprep.subr.bf16.mxu0 %v12266_v13 }
 0x317   : > { %10655 = vmatmul.mubr.f32.gmra.mrb[24].mxu1 %v16547_v25  ;;  %v8687_v25 = vld [vmem:[%s14697_s12 + $0x3e] sm:$0xff] }
 0x318   : > { %11031 = vmatmul.mubr.f32.gmra.mrb[8].mxu0 %v8660_v54  ;;  %10657 = vmatprep.mubr.f32.mxu1 %v16548_v15  ;;  %v8471_v54 = vld [vmem:[%s14697_s12 + $0x91] sm:$0xff]  ;;  %v8474_v15 = vld [vmem:[%s14697_s12 + $0xa9] sm:$0xff] }
 0x319   : > { %11033 = vmatprep.mubr.f32.mxu0 %v8661_v6  ;;  %12269 = vmatpush3.bf16.msra.mxu0 %v12266_v13  ;;  %v8469_v13 = vld [vmem:[%s14697_s12 + $0x81] sm:$0xff]  ;;  %v8686_v6 = vld [vmem:[%s14697_s12 + $0x36] sm:$0xff] }
 0x31a   : > { %12271 = vmatprep.subr.bf16.mxu0 %v12270_v10 }
 0x31b   : > { %10658 = vmatmul.mubr.f32.gmra.mrb[26].mxu1 %v16549_v43  ;;  %v8476_v43 = vld [vmem:[%s14697_s12 + $0xb9] sm:$0xff] }
 0x31c   : > { %11034 = vmatmul.mubr.f32.gmra.mrb[10].mxu0 %v8662_v38  ;;  %10660 = vmatprep.mubr.f32.mxu1 %v16550_v58  ;;  %v8689_v38 = vld [vmem:[%s14697_s12 + $0x4e] sm:$0xff]  ;;  %v8692_v58 = vld [vmem:[%s14697_s12 + $0x66] sm:$0xff] }
 0x31d   : > { %11036 = vmatprep.mubr.f32.mxu0 %v8663_v5  ;;  %12273 = vmatpush3.bf16.msra.mxu0 %v12270_v10  ;;  %v8472_v10 = vld [vmem:[%s14697_s12 + $0x99] sm:$0xff]  ;;  %v8475_v5 = vld [vmem:[%s14697_s12 + $0xb1] sm:$0xff] }
 0x31e   : > { %12275 = vmatprep.subr.bf16.mxu0 %v12274_v23 }
 0x31f   : > { %10661 = vmatmul.mubr.f32.gmra.mrb[28].mxu1 %v16551_v52  ;;  %v8480_v52 = vld [vmem:[%s14697_s12 + $0xd9] sm:$0xff] }
 0x320   : > { %11037 = vmatmul.mubr.f32.gmra.mrb[12].mxu0 %v8664_v44  ;;  %10663 = vmatprep.mubr.f32.mxu1 %v8549_v35  ;;  %v8478_v44 = vld [vmem:[%s14697_s12 + $0xc9] sm:$0xff] }
 0x321   : > { %11039 = vmatprep.mubr.f32.mxu0 %v8665_v40  ;;  %12277 = vmatpush3.bf16.msra.mxu0 %v12274_v23  ;;  %v8690_v23 = vld [vmem:[%s14697_s12 + $0x56] sm:$0xff]  ;;  %v8693_v35 = vld [vmem:[%s14697_s12 + $0x6e] sm:$0xff] }
 0x322   : > { %12279 = vmatprep.subr.bf16.mxu0 %v12278_v56  ;;  %v8479_v40 = vld [vmem:[%s14697_s12 + $0xd1] sm:$0xff] }
 0x323   : > { %10664 = vmatmul.mubr.f32.gmra.mrb[30].mxu1 %v8550_v46  ;;  %v8695_v46 = vld [vmem:[%s14697_s12 + $0x7e] sm:$0xff] }
 0x324   : > { %11040 = vmatmul.mubr.f32.gmra.mrb[14].mxu0 %v8666_v28  ;;  %10698 = vmatprep.mubr.f32.mxu1 %v8453_v26  ;;  %v8481_v28 = vld [vmem:[%s14697_s12 + $0xe1] sm:$0xff] }
 0x325   : > { %11042 = vmatprep.mubr.f32.mxu0 %v8667_v45  ;;  %12281 = vmatpush3.bf16.msra.mxu0 %v12278_v56  ;;  %v8694_v56 = vld [vmem:[%s14697_s12 + $0x76] sm:$0xff]  ;;  %v8696_v26 = vld [vmem:[%s14697_s12 + $0x86] sm:$0xff] }
 0x326   : > { %v8482_v45 = vld [vmem:[%s14697_s12 + $0xe9] sm:$0xff] }
 0x327   : > { %10699 = vmatmul.mubr.f32.vlgmr.msra.gmra.mrb[0].mxu1 %v8454_v61  ;;  %v8697_v61 = vld [vmem:[%s14697_s12 + $0x8e] sm:$0xff] }
 0x328   : > { %11043 = vmatmul.mubr.f32.gmra.mrb[16].mxu0 %v8668_v34  ;;  %12578 = vmatpush3.bf16.msra.mxu1 %v14680_v33  ;;  %v8459_v33 = vld [vmem:[%s14697_s12 + $0x31] sm:$0xff] }
 0x329   : > { %10701 = vmatprep.mubr.f32.mxu1 %v8455_v49  ;;  %11045 = vmatprep.mubr.f32.mxu0 %v8669_v55  ;;  %v8483_v34 = vld [vmem:[%s14697_s12 + $0xf1] sm:$0xff]  ;;  %v8484_v55 = vld [vmem:[%s14697_s12 + $0xf9] sm:$0xff] }
 0x32a   : > { %12571 = vmatprep.subr.bf16.mxu1 %v16552_v2  ;;  %v8698_v49 = vld [vmem:[%s14697_s12 + $0x96] sm:$0xff] }
 0x32b   : > { %10702 = vmatmul.mubr.f32.gmra.mrb[2].mxu1 %v8456_v11  ;;  %v8699_v11 = vld [vmem:[%s14697_s12 + $0x9e] sm:$0xff] }
 0x32c   : > { %11046 = vmatmul.mubr.f32.gmra.mrb[18].mxu0 %v8670_v27  ;;  %10704 = vmatprep.mubr.f32.mxu1 %v8457_v39  ;;  %v8568_v27 = vld [vmem:[%s14697_s12 + $0x93] sm:$0xff]  ;;  %v8700_v39 = vld [vmem:[%s14697_s12 + $0xa6] sm:$0xff] }
 0x32d   : > { %11048 = vmatprep.mubr.f32.mxu0 %v8671_v18  ;;  %12579 = vmatpush3.bf16.msra.mxu1 %v16552_v2  ;;  %v8569_v18 = vld [vmem:[%s14697_s12 + $0x9b] sm:$0xff]  ;;  %v8701_v2 = vld [vmem:[%s14697_s12 + $0xae] sm:$0xff] }
 0x32e   : > { %12572 = vmatprep.subr.bf16.mxu1 %v16553_v53 }
 0x32f   : > { %10705 = vmatmul.mubr.f32.gmra.mrb[4].mxu1 %v8458_v36  ;;  %v8570_v36 = vld [vmem:[%s14697_s12 + $0xa3] sm:$0xff] }
 0x330   : > { %11049 = vmatmul.mubr.f32.gmra.mrb[20].mxu0 %v8672_v17  ;;  %10707 = vmatprep.mubr.f32.mxu1 %v8459_v33  ;;  %v8702_v17 = vld [vmem:[%s14697_s12 + $0xb6] sm:$0xff]  ;;  %v8571_v33 = vld [vmem:[%s14697_s12 + $0xab] sm:$0xff] }
 0x331   : > { %11051 = vmatprep.mubr.f32.mxu0 %v8673_v60  ;;  %12580 = vmatpush3.bf16.msra.mxu1 %v16553_v53  ;;  %v8703_v60 = vld [vmem:[%s14697_s12 + $0xbe] sm:$0xff]  ;;  %v8572_v53 = vld [vmem:[%s14697_s12 + $0xb3] sm:$0xff] }
 0x332   : > { %12573 = vmatprep.subr.bf16.mxu1 %v16554_v37 }
 0x333   : > { %10708 = vmatmul.mubr.f32.gmra.mrb[6].mxu1 %v8460_v19  ;;  %v8704_v19 = vld [vmem:[%s14697_s12 + $0xc6] sm:$0xff] }
 0x334   : > { %11052 = vmatmul.mubr.f32.gmra.mrb[22].mxu0 %v8674_v32  ;;  %10710 = vmatprep.mubr.f32.mxu1 %v8461_v31  ;;  %v8573_v32 = vld [vmem:[%s14697_s12 + $0xbb] sm:$0xff]  ;;  %v8705_v31 = vld [vmem:[%s14697_s12 + $0xce] sm:$0xff] }
 0x335   : > { %11054 = vmatprep.mubr.f32.mxu0 %v8675_v21  ;;  %12581 = vmatpush3.bf16.msra.mxu1 %v16554_v37  ;;  %v8574_v21 = vld [vmem:[%s14697_s12 + $0xc3] sm:$0xff]  ;;  %v8706_v37 = vld [vmem:[%s14697_s12 + $0xd6] sm:$0xff] }
 0x336   : > { %12574 = vmatprep.subr.bf16.mxu1 %v16555_v59 }
 0x337   : > { %10711 = vmatmul.mubr.f32.gmra.mrb[8].mxu1 %v8462_v0  ;;  %v8575_v0 = vld [vmem:[%s14697_s12 + $0xcb] sm:$0xff] }
 0x338   : > { %11055 = vmatmul.mubr.f32.gmra.mrb[24].mxu0 %v8676_v57  ;;  %10713 = vmatprep.mubr.f32.mxu1 %v8463_v42  ;;  %v8707_v57 = vld [vmem:[%s14697_s12 + $0xde] sm:$0xff]  ;;  %v8576_v42 = vld [vmem:[%s14697_s12 + $0xd3] sm:$0xff] }
 0x339   : > { %11057 = vmatprep.mubr.f32.mxu0 %v8677_v50  ;;  %12582 = vmatpush3.bf16.msra.mxu1 %v16555_v59  ;;  %v8708_v50 = vld [vmem:[%s14697_s12 + $0xe6] sm:$0xff]  ;;  %v8577_v59 = vld [vmem:[%s14697_s12 + $0xdb] sm:$0xff] }
 0x33a   : > { %12575 = vmatprep.subr.bf16.mxu1 %v16556_v4 }
 0x33b   : > { %10714 = vmatmul.mubr.f32.gmra.mrb[10].mxu1 %v8464_v12  ;;  %v8709_v12 = vld [vmem:[%s14697_s12 + $0xee] sm:$0xff] }
 0x33c   : > { %11058 = vmatmul.mubr.f32.gmra.mrb[26].mxu0 %v8678_v41  ;;  %10716 = vmatprep.mubr.f32.mxu1 %v8465_v62  ;;  %v8578_v41 = vld [vmem:[%s14697_s12 + $0xe3] sm:$0xff]  ;;  %v8710_v62 = vld [vmem:[%s14697_s12 + $0xf6] sm:$0xff] }
 0x33d   : > { %11060 = vmatprep.mubr.f32.mxu0 %v8679_v14  ;;  %12583 = vmatpush3.bf16.msra.mxu1 %v16556_v4  ;;  %v8579_v14 = vld [vmem:[%s14697_s12 + $0xeb] sm:$0xff]  ;;  %v8711_v4 = vld [vmem:[%s14697_s12 + $0xfe] sm:$0xff] }
 0x33e   : > { %12576 = vmatprep.subr.bf16.mxu1 %v16557_v8 }
 0x33f   : > { %10717 = vmatmul.mubr.f32.gmra.mrb[12].mxu1 %v8466_v20  ;;  %v8580_v20 = vld [vmem:[%s14697_s12 + $0xf3] sm:$0xff] }
 0x340   : > { %11061 = vmatmul.mubr.f32.gmra.mrb[28].mxu0 %v8680_v7  ;;  %10719 = vmatprep.mubr.f32.mxu1 %v8467_v24  ;;  %v8712_v7 = vld [vmem:[%s14697_s12 + $0x106] sm:$0xff]  ;;  %v8581_v24 = vld [vmem:[%s14697_s12 + $0xfb] sm:$0xff] }
 0x341   : > { %11063 = vmatprep.mubr.f32.mxu0 %v8681_v48  ;;  %12584 = vmatpush3.bf16.msra.mxu1 %v16557_v8  ;;  %v8713_v48 = vld [vmem:[%s14697_s12 + $0x10e] sm:$0xff]  ;;  %v8582_v8 = vld [vmem:[%s14697_s12 + $0x103] sm:$0xff] }
 0x342   : > { %12577 = vmatprep.subr.bf16.mxu1 %v16558_v16 }
 0x343   : > { %10720 = vmatmul.mubr.f32.gmra.mrb[14].mxu1 %v8468_v29  ;;  %v8714_v29 = vld [vmem:[%s14697_s12 + $0x116] sm:$0xff] }
 0x344   : > { %11064 = vmatmul.mubr.f32.gmra.mrb[30].mxu0 %v8682_v30  ;;  %10722 = vmatprep.mubr.f32.mxu1 %v8469_v13  ;;  %v8583_v30 = vld [vmem:[%s14697_s12 + $0x10b] sm:$0xff]  ;;  %v8715_v13 = vld [vmem:[%s14697_s12 + $0x11e] sm:$0xff] }
 0x345   : > { %11098 = vmatprep.mubr.f32.mxu0 %v8684_v51  ;;  %12585 = vmatpush3.bf16.msra.mxu1 %v16558_v16 }
 0x347   : > { %10723 = vmatmul.mubr.f32.gmra.mrb[16].mxu1 %v8470_v9 }
 0x348   : > { %11099 = vmatmul.mubr.f32.vlgmr.msra.gmra.mrb[0].mxu0 %v8685_v3  ;;  %10725 = vmatprep.mubr.f32.mxu1 %v8471_v54 }
 0x349   : > { %11101 = vmatprep.mubr.f32.mxu0 %v8686_v6 }
 0x34b   : > { %10726 = vmatmul.mubr.f32.gmra.mrb[18].mxu1 %v8472_v10 }
 0x34c   : > { %11102 = vmatmul.mubr.f32.gmra.mrb[2].mxu0 %v8687_v25  ;;  %10728 = vmatprep.mubr.f32.mxu1 %v8473_v63 }
 0x34d   : > { %11104 = vmatprep.mubr.f32.mxu0 %v8688_v1 }
 0x34f   : > { %10729 = vmatmul.mubr.f32.gmra.mrb[20].mxu1 %v8474_v15 }
 0x350   : > { %11105 = vmatmul.mubr.f32.gmra.mrb[4].mxu0 %v8689_v38  ;;  %10731 = vmatprep.mubr.f32.mxu1 %v8475_v5 }
 0x351   : > { %11107 = vmatprep.mubr.f32.mxu0 %v8690_v23 }
 0x353   : > { %10732 = vmatmul.mubr.f32.gmra.mrb[22].mxu1 %v8476_v43 }
 0x354   : > { %11108 = vmatmul.mubr.f32.gmra.mrb[6].mxu0 %v8691_v47  ;;  %10734 = vmatprep.mubr.f32.mxu1 %v8477_v22 }
 0x355   : > { %11110 = vmatprep.mubr.f32.mxu0 %v8692_v58  ;;  %v4755_v58 = vld [vmem:[%s15235_s13 + $0x8] sm:$0xff] }
 0x357   : > { %10735 = vmatmul.mubr.f32.gmra.mrb[24].mxu1 %v8478_v44 }
 0x358   : > { %11111 = vmatmul.mubr.f32.gmra.mrb[8].mxu0 %v8693_v35  ;;  %10737 = vmatprep.mubr.f32.mxu1 %v8479_v40  ;;  %v4754_v40 = vld [vmem:[%s15235_s13] sm:$0xff] }
 0x359   : > { %11113 = vmatprep.mubr.f32.mxu0 %v8694_v56 }
 0x35b   : > { %10738 = vmatmul.mubr.f32.gmra.mrb[26].mxu1 %v8480_v52 }
 0x35c   : > { %11114 = vmatmul.mubr.f32.gmra.mrb[10].mxu0 %v8695_v46  ;;  %10740 = vmatprep.mubr.f32.mxu1 %v8481_v28 }
 0x35d   : > { %11116 = vmatprep.mubr.f32.mxu0 %v8696_v26 }
 0x35f   : > { %10741 = vmatmul.mubr.f32.gmra.mrb[28].mxu1 %v8482_v45 }
 0x360   : > { %11117 = vmatmul.mubr.f32.gmra.mrb[12].mxu0 %v8697_v61  ;;  %10743 = vmatprep.mubr.f32.mxu1 %v8483_v34  ;;  %v4757_v61 = vld [vmem:[%s15235_s13 + $0x18] sm:$0xff] }
 0x361   : > { %11119 = vmatprep.mubr.f32.mxu0 %v8698_v49  ;;  %v4756_v49 = vld [vmem:[%s15235_s13 + $0x10] sm:$0xff] }
 0x363   : > { %10744 = vmatmul.mubr.f32.gmra.mrb[30].mxu1 %v8484_v55 }
 0x364   : > { %11120 = vmatmul.mubr.f32.gmra.mrb[14].mxu0 %v8699_v11  ;;  %10802 = vmatprep.mubr.f32.mxu1 %v8568_v27 }
 0x365   : > { %11122 = vmatprep.mubr.f32.mxu0 %v8700_v39 }
 0x367   : > { %10803 = vmatmul.mubr.f32.vlgmr.msra.gmra.mrb[16].mxu1 %v8569_v18 }
 0x368   : > { %11123 = vmatmul.mubr.f32.gmra.mrb[16].mxu0 %v8701_v2  ;;  %10805 = vmatprep.mubr.f32.mxu1 %v8570_v36 }
 0x369   : > { %11125 = vmatprep.mubr.f32.mxu0 %v8702_v17  ;;  %v4759_v17 = vld [vmem:[%s15235_s13 + $0x28] sm:$0xff] }
 0x36b   : > { %10806 = vmatmul.mubr.f32.gmra.mrb[18].mxu1 %v8571_v33 }
 0x36c   : > { %11126 = vmatmul.mubr.f32.gmra.mrb[18].mxu0 %v8703_v60  ;;  %10808 = vmatprep.mubr.f32.mxu1 %v8572_v53  ;;  %v4758_v53 = vld [vmem:[%s15235_s13 + $0x20] sm:$0xff] }
 0x36d   : > { %11128 = vmatprep.mubr.f32.mxu0 %v8704_v19 }
 0x36f   : > { %10809 = vmatmul.mubr.f32.gmra.mrb[20].mxu1 %v8573_v32 }
 0x370   : > { %11129 = vmatmul.mubr.f32.gmra.mrb[20].mxu0 %v8705_v31  ;;  %10811 = vmatprep.mubr.f32.mxu1 %v8574_v21 }
 0x371   : > { %11131 = vmatprep.mubr.f32.mxu0 %v8706_v37 }
 0x373   : > { %10812 = vmatmul.mubr.f32.gmra.mrb[22].mxu1 %v8575_v0 }
 0x374   : > { %11132 = vmatmul.mubr.f32.gmra.mrb[22].mxu0 %v8707_v57  ;;  %10814 = vmatprep.mubr.f32.mxu1 %v8576_v42 }
 0x375   : > { %11134 = vmatprep.mubr.f32.mxu0 %v8708_v50 }
 0x377   : > { %10815 = vmatmul.mubr.f32.gmra.mrb[24].mxu1 %v8577_v59 }
 0x378   : > { %11135 = vmatmul.mubr.f32.gmra.mrb[24].mxu0 %v8709_v12  ;;  %10817 = vmatprep.mubr.f32.mxu1 %v8578_v41  ;;  %v4761_v12 = vld [vmem:[%s15235_s13 + $0x38] sm:$0xff] }
 0x379   : > { %11137 = vmatprep.mubr.f32.mxu0 %v8710_v62  ;;  %v4760_v62 = vld [vmem:[%s15235_s13 + $0x30] sm:$0xff] }
 0x37b   : > { %10818 = vmatmul.mubr.f32.gmra.mrb[26].mxu1 %v8579_v14 }
 0x37c   : > { %11138 = vmatmul.mubr.f32.gmra.mrb[26].mxu0 %v8711_v4  ;;  %10820 = vmatprep.mubr.f32.mxu1 %v8580_v20 }
 0x37d   : > { %11140 = vmatprep.mubr.f32.mxu0 %v8712_v7 }
 0x37f   : > { %10821 = vmatmul.mubr.f32.gmra.mrb[28].mxu1 %v8581_v24 }
 0x380   : > { %11141 = vmatmul.mubr.f32.gmra.mrb[28].mxu0 %v8713_v48  ;;  %10823 = vmatprep.mubr.f32.mxu1 %v8582_v8 }
 0x381   : > { %11143 = vmatprep.mubr.f32.mxu0 %v8714_v29 }
 0x383   : > { %10824 = vmatmul.mubr.f32.gmra.mrb[30].mxu1 %v8583_v30 }
 0x384   : > { %11144 = vmatmul.mubr.f32.gmra.mrb[30].mxu0 %v8715_v13 }
 0x3fa   : > { %v10700_v51 = vpop.f32.mrb[0].mxu1 }
 0x3fb   : > { %v2989_v16 = vpop.f32.mrb[1].mxu1 }
 0x3fe   : > { %v10703_v9 = vpop.f32.mrb[2].mxu1 }
 0x3ff   : > { %v2999_v3 = vpop.f32.mrb[3].mxu1 }
 0x402   : > { %v10706_v54 = vpop.f32.mrb[4].mxu1 }
 0x403   : > { %v3009_v6 = vpop.f32.mrb[5].mxu1 }
 0x406   : > { %v10709_v10 = vpop.f32.mrb[6].mxu1 }
 0x407   : > { %v3019_v25 = vpop.f32.mrb[7].mxu1 }
 0x40a   : > { %v15218_v63 = vpop.f32.mrb[8].mxu1 }
 0x40b   : > { %v15220_v1 = vpop.f32.mrb[9].mxu1 }
 0x40e   : > { %v15222_v15 = vpop.f32.mrb[10].mxu1 }
 0x40f   : > { %v15224_v38 = vpop.f32.mrb[11].mxu1 }
 0x412   : > { %v15226_v5 = vpop.f32.mrb[12].mxu1 }
 0x413   : > { %v15228_v23 = vpop.f32.mrb[13].mxu1 }
 0x416   : > { %v15230_v43 = vpop.f32.mrb[14].mxu1 }
 0x417   : > { %v15232_v47 = vpop.f32.mrb[15].mxu1 }
 0x41b   : > { %v11100_v22 = vpop.f32.mrb[0].mxu0 }
 0x41c   : > { %v12586_v44 = vadd.f32 %v11100_v22, %v10700_v51  ;;  %v4497_v35 = vpop.f32.mrb[1].mxu0  ;;  %v4763_v51 = vld [vmem:[%s15235_s13 + $0x48] sm:$0xff] }
 0x41d   : > { %v12587_v56 = vadd.f32 %v4497_v35, %v2989_v16 }
 0x41e   : > { %4722 = vst [vmem:[%s15240_s15 + $0x8] sm:$0xff] %v12586_v44  ;;  %v4787_v52 = vmul.f32 %v12586_v44, %v4755_v58 }
 0x41f   : > { %4721 = vst [vmem:[%s15240_s15] sm:$0xff] %v12587_v56  ;;  %v4786_v46 = vmul.f32 %v12587_v56, %v4754_v40  ;;  %v11103_v28 = vpop.f32.mrb[2].mxu0 }
 0x420   : > { %v4857_v26 = vmul.f32 %v4787_v52, %v4787_v52  ;;  %v12588_v45 = vadd.f32 %v11103_v28, %v10703_v9  ;;  %v4507_v34 = vpop.f32.mrb[3].mxu0  ;;  %v4764_v28 = vld [vmem:[%s15235_s13 + $0x50] sm:$0xff] }
 0x421   : > { %v4818_v55 = vadd.f32 %v4787_v52, %v4786_v46  ;;  %v4856_v11 = vmul.f32 %v4786_v46, %v4786_v46  ;;  %v12589_v27 = vadd.f32 %v4507_v34, %v2999_v3  ;;  %v4762_v3 = vld [vmem:[%s15235_s13 + $0x40] sm:$0xff]  ;;  %v4765_v52 = vld [vmem:[%s15235_s13 + $0x58] sm:$0xff] }
 0x422   : > { %4724 = vst [vmem:[%s15240_s15 + $0x18] sm:$0xff] %v12588_v45  ;;  %v4789_v18 = vmul.f32 %v12588_v45, %v4757_v61 }
 0x423   : > { %v4888_v39 = vadd.f32 %v4857_v26, %v4856_v11  ;;  %4723 = vst [vmem:[%s15240_s15 + $0x10] sm:$0xff] %v12589_v27  ;;  %v4788_v2 = vmul.f32 %v12589_v27, %v4756_v49  ;;  %v11106_v36 = vpop.f32.mrb[4].mxu0 }
 0x424   : > { %v12590_v33 = vadd.f32 %v11106_v36, %v10706_v54  ;;  %v4517_v60 = vpop.f32.mrb[5].mxu0  ;;  %v4859_v37 = vmul.f32 %v4789_v18, %v4789_v18  ;;  %v4766_v36 = vld [vmem:[%s15235_s13 + $0x60] sm:$0xff] }
 0x425   : > { %v4819_v19 = vadd.f32 %v4818_v55, %v4788_v2  ;;  %v4858_v32 = vmul.f32 %v4788_v2, %v4788_v2  ;;  %v12591_v31 = vadd.f32 %v4517_v60, %v3009_v6 }
 0x426   : > { %4726 = vst [vmem:[%s15240_s15 + $0x28] sm:$0xff] %v12590_v33  ;;  %v4791_v21 = vmul.f32 %v12590_v33, %v4759_v17 }
 0x427   : > { %v4889_v0 = vadd.f32 %v4888_v39, %v4858_v32  ;;  %4725 = vst [vmem:[%s15240_s15 + $0x20] sm:$0xff] %v12591_v31  ;;  %v4790_v57 = vmul.f32 %v12591_v31, %v4758_v53  ;;  %v4820_v42 = vadd.f32 %v4819_v19, %v4789_v18  ;;  %v11109_v50 = vpop.f32.mrb[6].mxu0  ;;  %v4767_v39 = vld [vmem:[%s15235_s13 + $0x68] sm:$0xff] }
 0x428   : > { %v12592_v59 = vadd.f32 %v11109_v50, %v10709_v10  ;;  %v4527_v41 = vpop.f32.mrb[7].mxu0  ;;  %v4861_v24 = vmul.f32 %v4791_v21, %v4791_v21 }
 0x429   : > { %v4821_v14 = vadd.f32 %v4820_v42, %v4790_v57  ;;  %v4860_v4 = vmul.f32 %v4790_v57, %v4790_v57  ;;  %v4890_v20 = vadd.f32 %v4889_v0, %v4859_v37  ;;  %v12593_v7 = vadd.f32 %v4527_v41, %v3019_v25  ;;  %v4769_v0 = vld [vmem:[%s15235_s13 + $0x78] sm:$0xff]  ;;  %v4768_v42 = vld [vmem:[%s15235_s13 + $0x70] sm:$0xff] }
 0x42a   : > { %4728 = vst [vmem:[%s15240_s15 + $0x38] sm:$0xff] %v12592_v59  ;;  %v4793_v8 = vmul.f32 %v12592_v59, %v4761_v12 }
 0x42b   : > { %v4891_v48 = vadd.f32 %v4890_v20, %v4860_v4  ;;  %4727 = vst [vmem:[%s15240_s15 + $0x30] sm:$0xff] %v12593_v7  ;;  %v4792_v29 = vmul.f32 %v12593_v7, %v4760_v62  ;;  %v4822_v30 = vadd.f32 %v4821_v14, %v4791_v21  ;;  %v11112_v13 = vpop.f32.mrb[8].mxu0 }
 0x42c   : > { %v12594_v16 = vadd.f32 %v11112_v13, %v15218_v63  ;;  %v4537_v9 = vpop.f32.mrb[9].mxu0  ;;  %v4863_v58 = vmul.f32 %v4793_v8, %v4793_v8 }
 0x42d   : > { %v4823_v54 = vadd.f32 %v4822_v30, %v4792_v29  ;;  %v4862_v6 = vmul.f32 %v4792_v29, %v4792_v29  ;;  %v4892_v10 = vadd.f32 %v4891_v48, %v4861_v24  ;;  %v12595_v25 = vadd.f32 %v4537_v9, %v15220_v1  ;;  %v4771_v24 = vld [vmem:[%s15235_s13 + $0x88] sm:$0xff]  ;;  %v4770_v30 = vld [vmem:[%s15235_s13 + $0x80] sm:$0xff] }
 0x42e   : > { %4730 = vst [vmem:[%s15240_s15 + $0x48] sm:$0xff] %v12594_v16  ;;  %v4795_v22 = vmul.f32 %v12594_v16, %v4763_v51 }
 0x42f   : > { %v4893_v44 = vadd.f32 %v4892_v10, %v4862_v6  ;;  %4729 = vst [vmem:[%s15240_s15 + $0x40] sm:$0xff] %v12595_v25  ;;  %v4794_v35 = vmul.f32 %v12595_v25, %v4762_v3  ;;  %v4824_v40 = vadd.f32 %v4823_v54, %v4793_v8  ;;  %v11115_v56 = vpop.f32.mrb[10].mxu0 }
 0x430   : > { %v12596_v63 = vadd.f32 %v11115_v56, %v15222_v15  ;;  %v4547_v46 = vpop.f32.mrb[11].mxu0  ;;  %v4865_v34 = vmul.f32 %v4795_v22, %v4795_v22  ;;  %v4772_v56 = vld [vmem:[%s15235_s13 + $0x90] sm:$0xff] }
 0x431   : > { %v4825_v26 = vadd.f32 %v4824_v40, %v4794_v35  ;;  %v4864_v45 = vmul.f32 %v4794_v35, %v4794_v35  ;;  %v4894_v1 = vadd.f32 %v4893_v44, %v4863_v58  ;;  %v12597_v61 = vadd.f32 %v4547_v46, %v15224_v38  ;;  %v4773_v35 = vld [vmem:[%s15235_s13 + $0x98] sm:$0xff] }
 0x432   : > { %4732 = vst [vmem:[%s15240_s15 + $0x58] sm:$0xff] %v12596_v63  ;;  %v4797_v55 = vmul.f32 %v12596_v63, %v4765_v52 }
 0x433   : > { %v4895_v49 = vadd.f32 %v4894_v1, %v4864_v45  ;;  %4731 = vst [vmem:[%s15240_s15 + $0x50] sm:$0xff] %v12597_v61  ;;  %v4796_v11 = vmul.f32 %v12597_v61, %v4764_v28  ;;  %v4826_v27 = vadd.f32 %v4825_v26, %v4795_v22  ;;  %v11118_v15 = vpop.f32.mrb[12].mxu0 }
 0x434   : > { %v12598_v18 = vadd.f32 %v11118_v15, %v15226_v5  ;;  %v4557_v2 = vpop.f32.mrb[13].mxu0  ;;  %v4867_v19 = vmul.f32 %v4797_v55, %v4797_v55 }
 0x435   : > { %v4827_v17 = vadd.f32 %v4826_v27, %v4796_v11  ;;  %v4866_v33 = vmul.f32 %v4796_v11, %v4796_v11  ;;  %v4896_v38 = vadd.f32 %v4895_v49, %v4865_v34  ;;  %v12599_v60 = vadd.f32 %v4557_v2, %v15228_v23  ;;  %v4775_v11 = vld [vmem:[%s15235_s13 + $0xa8] sm:$0xff] }
 0x436   : > { %4734 = vst [vmem:[%s15240_s15 + $0x68] sm:$0xff] %v12598_v18  ;;  %v4799_v53 = vmul.f32 %v12598_v18, %v4767_v39  ;;  %v4774_v18 = vld [vmem:[%s15235_s13 + $0xa0] sm:$0xff] }
 0x437   : > { %v4897_v32 = vadd.f32 %v4896_v38, %v4866_v33  ;;  %4733 = vst [vmem:[%s15240_s15 + $0x60] sm:$0xff] %v12599_v60  ;;  %v4798_v31 = vmul.f32 %v12599_v60, %v4766_v36  ;;  %v4828_v21 = vadd.f32 %v4827_v17, %v4797_v55  ;;  %v11121_v37 = vpop.f32.mrb[14].mxu0 }
 0x438   : > { %v12600_v5 = vadd.f32 %v11121_v37, %v15230_v43  ;;  %v4567_v57 = vpop.f32.mrb[15].mxu0  ;;  %v4869_v41 = vmul.f32 %v4799_v53, %v4799_v53 }
 0x439   : > { %v4829_v50 = vadd.f32 %v4828_v21, %v4798_v31  ;;  %v4868_v59 = vmul.f32 %v4798_v31, %v4798_v31  ;;  %v4898_v23 = vadd.f32 %v4897_v32, %v4867_v19  ;;  %v12601_v12 = vadd.f32 %v4567_v57, %v15232_v47 }
 0x43a   : > { %4736 = vst [vmem:[%s15240_s15 + $0x78] sm:$0xff] %v12600_v5  ;;  %v10804_v62 = vpop.f32.mrb[16].mxu1  ;;  %v4801_v4 = vmul.f32 %v12600_v5, %v4769_v0  ;;  %v4777_v0 = vld [vmem:[%s15235_s13 + $0xb8] sm:$0xff] }
 0x43b   : > { %v4899_v14 = vadd.f32 %v4898_v23, %v4868_v59  ;;  %4735 = vst [vmem:[%s15240_s15 + $0x70] sm:$0xff] %v12601_v12  ;;  %v4800_v20 = vmul.f32 %v12601_v12, %v4768_v42  ;;  %v4830_v7 = vadd.f32 %v4829_v50, %v4799_v53  ;;  %v11124_v43 = vpop.f32.mrb[16].mxu0  ;;  %v3345_v48 = vpop.f32.mrb[17].mxu1  ;;  %v4776_v42 = vld [vmem:[%s15235_s13 + $0xb0] sm:$0xff] }
 0x43c   : > { %v12602_v8 = vadd.f32 %v11124_v43, %v10804_v62  ;;  %v4577_v29 = vpop.f32.mrb[17].mxu0  ;;  %v4871_v54 = vmul.f32 %v4801_v4, %v4801_v4 }
 0x43d   : > { %v4831_v13 = vadd.f32 %v4830_v7, %v4800_v20  ;;  %v4870_v51 = vmul.f32 %v4800_v20, %v4800_v20  ;;  %v4900_v47 = vadd.f32 %v4899_v14, %v4869_v41  ;;  %v12603_v16 = vadd.f32 %v4577_v29, %v3345_v48 }
 0x43e   : > { %4738 = vst [vmem:[%s15240_s15 + $0x88] sm:$0xff] %v12602_v8  ;;  %v4803_v9 = vmul.f32 %v12602_v8, %v4771_v24  ;;  %v10807_v3 = vpop.f32.mrb[18].mxu1  ;;  %v4779_v24 = vld [vmem:[%s15235_s13 + $0xc8] sm:$0xff] }
 0x43f   : > { %v4901_v6 = vadd.f32 %v4900_v47, %v4870_v51  ;;  %4737 = vst [vmem:[%s15240_s15 + $0x80] sm:$0xff] %v12603_v16  ;;  %v4802_v10 = vmul.f32 %v12603_v16, %v4770_v30  ;;  %v4832_v25 = vadd.f32 %v4831_v13, %v4801_v4  ;;  %v11127_v22 = vpop.f32.mrb[18].mxu0  ;;  %v3355_v58 = vpop.f32.mrb[19].mxu1  ;;  %v4778_v30 = vld [vmem:[%s15235_s13 + $0xc0] sm:$0xff] }
 0x440   : > { %v12604_v44 = vadd.f32 %v11127_v22, %v10807_v3  ;;  %v4587_v40 = vpop.f32.mrb[19].mxu0  ;;  %v4873_v26 = vmul.f32 %v4803_v9, %v4803_v9 }
 0x441   : > { %v4833_v63 = vadd.f32 %v4832_v25, %v4802_v10  ;;  %v4872_v52 = vmul.f32 %v4802_v10, %v4802_v10  ;;  %v4902_v46 = vadd.f32 %v4901_v6, %v4871_v54  ;;  %v12605_v28 = vadd.f32 %v4587_v40, %v3355_v58 }
 0x442   : > { %4740 = vst [vmem:[%s15240_s15 + $0x98] sm:$0xff] %v12604_v44  ;;  %v10810_v45 = vpop.f32.mrb[20].mxu1  ;;  %v4805_v61 = vmul.f32 %v12604_v44, %v4773_v35  ;;  %v4781_v35 = vld [vmem:[%s15235_s13 + $0xd8] sm:$0xff] }
 0x443   : > { %v4903_v1 = vadd.f32 %v4902_v46, %v4872_v52  ;;  %4739 = vst [vmem:[%s15240_s15 + $0x90] sm:$0xff] %v12605_v28  ;;  %v4804_v34 = vmul.f32 %v12605_v28, %v4772_v56  ;;  %v4834_v49 = vadd.f32 %v4833_v63, %v4803_v9  ;;  %v11130_v55 = vpop.f32.mrb[20].mxu0  ;;  %v3365_v27 = vpop.f32.mrb[21].mxu1  ;;  %v4780_v56 = vld [vmem:[%s15235_s13 + $0xd0] sm:$0xff] }
 0x444   : > { %v12606_v15 = vadd.f32 %v11130_v55, %v10810_v45  ;;  %v4597_v39 = vpop.f32.mrb[21].mxu0  ;;  %v4875_v53 = vmul.f32 %v4805_v61, %v4805_v61 }
 0x445   : > { %v4835_v2 = vadd.f32 %v4834_v49, %v4804_v34  ;;  %v4874_v36 = vmul.f32 %v4804_v34, %v4804_v34  ;;  %v4904_v17 = vadd.f32 %v4903_v1, %v4873_v26  ;;  %v12607_v33 = vadd.f32 %v4597_v39, %v3365_v27 }
 0x446   : > { %4742 = vst [vmem:[%s15240_s15 + $0xa8] sm:$0xff] %v12606_v15  ;;  %v4807_v38 = vmul.f32 %v12606_v15, %v4775_v11  ;;  %v10813_v60 = vpop.f32.mrb[22].mxu1  ;;  %v4783_v11 = vld [vmem:[%s15235_s13 + $0xe8] sm:$0xff] }
 0x447   : > { %v4905_v19 = vadd.f32 %v4904_v17, %v4874_v36  ;;  %4741 = vst [vmem:[%s15240_s15 + $0xa0] sm:$0xff] %v12607_v33  ;;  %v4806_v32 = vmul.f32 %v12607_v33, %v4774_v18  ;;  %v4836_v31 = vadd.f32 %v4835_v2, %v4805_v61  ;;  %v11133_v21 = vpop.f32.mrb[22].mxu0  ;;  %v3375_v37 = vpop.f32.mrb[23].mxu1  ;;  %v4782_v18 = vld [vmem:[%s15235_s13 + $0xe0] sm:$0xff] }
 0x448   : > { %v12608_v5 = vadd.f32 %v11133_v21, %v10813_v60  ;;  %v4607_v57 = vpop.f32.mrb[23].mxu0  ;;  %v4877_v41 = vmul.f32 %v4807_v38, %v4807_v38 }
 0x449   : > { %v4837_v50 = vadd.f32 %v4836_v31, %v4806_v32  ;;  %v4876_v59 = vmul.f32 %v4806_v32, %v4806_v32  ;;  %v4906_v23 = vadd.f32 %v4905_v19, %v4875_v53  ;;  %v12609_v12 = vadd.f32 %v4607_v57, %v3375_v37 }
 0x44a   : > { %4744 = vst [vmem:[%s15240_s15 + $0xb8] sm:$0xff] %v12608_v5  ;;  %v10816_v62 = vpop.f32.mrb[24].mxu1  ;;  %v4809_v4 = vmul.f32 %v12608_v5, %v4777_v0  ;;  %v4785_v0 = vld [vmem:[%s15235_s13 + $0xf8] sm:$0xff] }
 0x44b   : > { %v4907_v14 = vadd.f32 %v4906_v23, %v4876_v59  ;;  %4743 = vst [vmem:[%s15240_s15 + $0xb0] sm:$0xff] %v12609_v12  ;;  %v4808_v20 = vmul.f32 %v12609_v12, %v4776_v42  ;;  %v4838_v7 = vadd.f32 %v4837_v50, %v4807_v38  ;;  %v11136_v43 = vpop.f32.mrb[24].mxu0  ;;  %v3385_v48 = vpop.f32.mrb[25].mxu1  ;;  %v4784_v42 = vld [vmem:[%s15235_s13 + $0xf0] sm:$0xff] }
 0x44c   : > { %v12610_v8 = vadd.f32 %v11136_v43, %v10816_v62  ;;  %v4617_v29 = vpop.f32.mrb[25].mxu0  ;;  %v4879_v54 = vmul.f32 %v4809_v4, %v4809_v4 }
 0x44d   : > { %v4839_v13 = vadd.f32 %v4838_v7, %v4808_v20  ;;  %v4878_v51 = vmul.f32 %v4808_v20, %v4808_v20  ;;  %v4908_v47 = vadd.f32 %v4907_v14, %v4877_v41  ;;  %v12611_v16 = vadd.f32 %v4617_v29, %v3385_v48 }
 0x44e   : > { %4746 = vst [vmem:[%s15240_s15 + $0xc8] sm:$0xff] %v12610_v8  ;;  %v4811_v9 = vmul.f32 %v12610_v8, %v4779_v24  ;;  %v10819_v3 = vpop.f32.mrb[26].mxu1 }
 0x44f   : > { %v4909_v6 = vadd.f32 %v4908_v47, %v4878_v51  ;;  %4745 = vst [vmem:[%s15240_s15 + $0xc0] sm:$0xff] %v12611_v16  ;;  %v4810_v10 = vmul.f32 %v12611_v16, %v4778_v30  ;;  %v4840_v25 = vadd.f32 %v4839_v13, %v4809_v4  ;;  %v11139_v22 = vpop.f32.mrb[26].mxu0  ;;  %v3395_v58 = vpop.f32.mrb[27].mxu1 }
 0x450   : > { %v12612_v44 = vadd.f32 %v11139_v22, %v10819_v3  ;;  %v4627_v40 = vpop.f32.mrb[27].mxu0  ;;  %v4881_v26 = vmul.f32 %v4811_v9, %v4811_v9 }
 0x451   : > { %v4841_v63 = vadd.f32 %v4840_v25, %v4810_v10  ;;  %v4880_v52 = vmul.f32 %v4810_v10, %v4810_v10  ;;  %v4910_v46 = vadd.f32 %v4909_v6, %v4879_v54  ;;  %v12613_v28 = vadd.f32 %v4627_v40, %v3395_v58  ;;  %v16559_v58 = vld [vmem:[#allocation50_spill] sm:$0xff]  ;;  %v16560_v40 = vld [vmem:[#allocation49_spill] sm:$0xff] }
 0x452   : > { %4748 = vst [vmem:[%s15240_s15 + $0xd8] sm:$0xff] %v12612_v44  ;;  %v10822_v45 = vpop.f32.mrb[28].mxu1  ;;  %v4813_v61 = vmul.f32 %v12612_v44, %v4781_v35 }
 0x453   : > { %v4911_v1 = vadd.f32 %v4910_v46, %v4880_v52  ;;  %4747 = vst [vmem:[%s15240_s15 + $0xd0] sm:$0xff] %v12613_v28  ;;  %v4812_v34 = vmul.f32 %v12613_v28, %v4780_v56  ;;  %v4842_v49 = vadd.f32 %v4841_v63, %v4811_v9  ;;  %v11142_v55 = vpop.f32.mrb[28].mxu0  ;;  %v3405_v27 = vpop.f32.mrb[29].mxu1 }
 0x454   : > { %v12614_v15 = vadd.f32 %v11142_v55, %v10822_v45  ;;  %v4637_v39 = vpop.f32.mrb[29].mxu0  ;;  %v4883_v53 = vmul.f32 %v4813_v61, %v4813_v61  ;;  %v4927_v45 = vld [vmem:[#allocation17] sm:$0x1] (%p2039_p11) }
 0x455   : > { %v4843_v2 = vadd.f32 %v4842_v49, %v4812_v34  ;;  %v4882_v36 = vmul.f32 %v4812_v34, %v4812_v34  ;;  %v4912_v17 = vadd.f32 %v4911_v1, %v4881_v26  ;;  %v12615_v33 = vadd.f32 %v4637_v39, %v3405_v27  ;;  %v15323_v34 = vld [vmem:[#allocation18] sm:$0x1] (%p2039_p11) }
 0x456   : > { %4750 = vst [vmem:[%s15240_s15 + $0xe8] sm:$0xff] %v12614_v15  ;;  %v4815_v38 = vmul.f32 %v12614_v15, %v4783_v11  ;;  %v10825_v60 = vpop.f32.mrb[30].mxu1 }
 0x457   : > { %v4913_v19 = vadd.f32 %v4912_v17, %v4882_v36  ;;  %4749 = vst [vmem:[%s15240_s15 + $0xe0] sm:$0xff] %v12615_v33  ;;  %v4814_v32 = vmul.f32 %v12615_v33, %v4782_v18  ;;  %v4844_v31 = vadd.f32 %v4843_v2, %v4813_v61  ;;  %v11145_v21 = vpop.f32.mrb[30].mxu0  ;;  %v3415_v37 = vpop.f32.mrb[31].mxu1 }
 0x458   : > { %v12616_v5 = vadd.f32 %v11145_v21, %v10825_v60  ;;  %v4647_v57 = vpop.f32.mrb[31].mxu0  ;;  %v4885_v41 = vmul.f32 %v4815_v38, %v4815_v38 }
 0x459   : > { %v4845_v50 = vadd.f32 %v4844_v31, %v4814_v32  ;;  %v4884_v59 = vmul.f32 %v4814_v32, %v4814_v32  ;;  %v4914_v23 = vadd.f32 %v4913_v19, %v4883_v53  ;;  %v12617_v12 = vadd.f32 %v4647_v57, %v3415_v37 }
 0x45a   : > { %4752 = vst [vmem:[%s15240_s15 + $0xf8] sm:$0xff] %v12616_v5  ;;  %v4817_v14 = vmul.f32 %v12616_v5, %v4785_v0 }
 0x45b   : > { %v4915_v62 = vadd.f32 %v4914_v23, %v4884_v59  ;;  %4751 = vst [vmem:[%s15240_s15 + $0xf0] sm:$0xff] %v12617_v12  ;;  %v4816_v4 = vmul.f32 %v12617_v12, %v4784_v42  ;;  %v4846_v20 = vadd.f32 %v4845_v50, %v4815_v38 }
 0x45c   : > { %v4887_v48 = vmul.f32 %v4817_v14, %v4817_v14 }
 0x45d   : > { %v4847_v7 = vadd.f32 %v4846_v20, %v4816_v4  ;;  %v4886_v43 = vmul.f32 %v4816_v4, %v4816_v4  ;;  %v4916_v24 = vadd.f32 %v4915_v62, %v4885_v41 }
 0x45f   : > { %v4848_v8 = vadd.f32 %v4847_v7, %v4817_v14  ;;  %v4917_v29 = vadd.f32 %v4916_v24, %v4886_v43 }
 0x461   : > { %v4849_v30 = vrot.slane %v4848_v8, 4  ;;  %v4918_v13 = vadd.f32 %v4917_v29, %v4887_v48 }
 0x463   : > { %v4850_v51 = vadd.f32 %v4849_v30, %v4848_v8  ;;  %v4919_v47 = vrot.slane %v4918_v13, 4 }
 0x465   : > { %v4851_v16 = vrot.slane %v4850_v51, 2  ;;  %v4920_v9 = vadd.f32 %v4919_v47, %v4918_v13 }
 0x467   : > { %v4852_v3 = vadd.f32 %v4851_v16, %v4850_v51  ;;  %v4921_v54 = vrot.slane %v4920_v9, 2 }
 0x469   : > { %v4853_v6 = vrot.slane %v4852_v3, 1  ;;  %v4922_v10 = vadd.f32 %v4921_v54, %v4920_v9 }
 0x46b   : > { %v4854_v25 = vadd.f32 %v4853_v6, %v4852_v3  ;;  %v4923_v22 = vrot.slane %v4922_v10, 1  ;;  %2041 = sbr.rel (!%p2039_p11) target bundleno = 580 (0x244), region = 203 }
 0x46d   : > { %v4855_v44 = vadd.f32 %v16559_v58, %v4854_v25   ;;  %v4924_v35 = vadd.f32 %v4923_v22, %v4922_v10 }
 0x46f   : > { %v4925_v63 = vadd.f32 %v16560_v40, %v4924_v35   ;;  %v16562_v56 = vmov %v4855_v44 }
 0x470   :  { %v4926_v56 = vmul.f32 (%p2039_p11), 0.001953125, %v4855_v44 }
 0x471   : > { %v16561_v7 = vmov %v4925_v63  ;;  %v4928_v52 = vmul.f32 (%p2039_p11), 0.001953125, %v4925_v63 }
 0x472   :  { %v4929_v46 = vmul.f32 %v4926_v56, %v4926_v56 }
 0x474   :  { %v4930_v28 = vsub.f32 %v4928_v52, %v4929_v46 }
 0x476   :  { %v4931_v26 = vadd.f32 1e-05, %v4930_v28 }
 0x478   :  { %13220 = vrsqrt.f32 %v4931_v26 }
 0x482   :  { %v13221_v1 = vpop.eup %13220 }
 0x483   :  { %v15321_v61 = vmul.f32 %v13221_v1, %v4927_v45 }
 0x485   :  { %v15326_v49 = vmul.f32 %v15321_v61, %v4926_v56 }
 0x487   :  { %v4936_v55 = vsub.f32 %v15323_v34, %v15326_v49 }
 0x488 LB: > { %s8716_s22 = sshll.u32 %s13538_s7, 8  ;;  %v13576_v11 = vmov 0.0   ;;  %s4942_s7 = sadd.s32 1, %s13538_s7   ;;  %s13538_s7 = sphi %s15330_s7, %s4942_s7  }
 0x489   : > { %s15336_s2 = scalar_lea.vmem [#allocation3], %s8716_s22  ;;  %p4939_p12 = scmp.ge.s32.totalorder %s4942_s7, 5  }
 0x48a   : > { %4945 = vst [vmem:[%s15336_s2] sm:$0xff] %v13576_v11  ;;  %4946 = vst [vmem:[%s15336_s2 + $0x8] sm:$0xff] %v13576_v11  ;;  %s15373_s6 = smov (%p4939_p12), 0  }
 0x48b   : > { %4947 = vst [vmem:[%s15336_s2 + $0x10] sm:$0xff] %v13576_v11  ;;  %4948 = vst [vmem:[%s15336_s2 + $0x18] sm:$0xff] %v13576_v11 }
 0x48c   : > { %4949 = vst [vmem:[%s15336_s2 + $0x20] sm:$0xff] %v13576_v11  ;;  %4950 = vst [vmem:[%s15336_s2 + $0x28] sm:$0xff] %v13576_v11 }
 0x48d   : > { %4951 = vst [vmem:[%s15336_s2 + $0x30] sm:$0xff] %v13576_v11  ;;  %4952 = vst [vmem:[%s15336_s2 + $0x38] sm:$0xff] %v13576_v11 }
 0x48e   : > { %4953 = vst [vmem:[%s15336_s2 + $0x40] sm:$0xff] %v13576_v11  ;;  %4954 = vst [vmem:[%s15336_s2 + $0x48] sm:$0xff] %v13576_v11 }
 0x48f   : > { %4955 = vst [vmem:[%s15336_s2 + $0x50] sm:$0xff] %v13576_v11  ;;  %4956 = vst [vmem:[%s15336_s2 + $0x58] sm:$0xff] %v13576_v11 }
 0x490   : > { %4957 = vst [vmem:[%s15336_s2 + $0x60] sm:$0xff] %v13576_v11  ;;  %4958 = vst [vmem:[%s15336_s2 + $0x68] sm:$0xff] %v13576_v11 }
 0x491   : > { %4959 = vst [vmem:[%s15336_s2 + $0x70] sm:$0xff] %v13576_v11  ;;  %4960 = vst [vmem:[%s15336_s2 + $0x78] sm:$0xff] %v13576_v11 }
 0x492   : > { %4961 = vst [vmem:[%s15336_s2 + $0x80] sm:$0xff] %v13576_v11  ;;  %4962 = vst [vmem:[%s15336_s2 + $0x88] sm:$0xff] %v13576_v11 }
 0x493   : > { %4963 = vst [vmem:[%s15336_s2 + $0x90] sm:$0xff] %v13576_v11  ;;  %4964 = vst [vmem:[%s15336_s2 + $0x98] sm:$0xff] %v13576_v11  ;;  %4941 = sbr.rel (!%p4939_p12) target bundleno = 1160 (0x488), region = 214 }
 0x494   : > { %4965 = vst [vmem:[%s15336_s2 + $0xa0] sm:$0xff] %v13576_v11  ;;  %4966 = vst [vmem:[%s15336_s2 + $0xa8] sm:$0xff] %v13576_v11 }
 0x495   : > { %4967 = vst [vmem:[%s15336_s2 + $0xb0] sm:$0xff] %v13576_v11  ;;  %4968 = vst [vmem:[%s15336_s2 + $0xb8] sm:$0xff] %v13576_v11 }
 0x496   : > { %4969 = vst [vmem:[%s15336_s2 + $0xc0] sm:$0xff] %v13576_v11  ;;  %4970 = vst [vmem:[%s15336_s2 + $0xc8] sm:$0xff] %v13576_v11 }
 0x497   : > { %4971 = vst [vmem:[%s15336_s2 + $0xd0] sm:$0xff] %v13576_v11  ;;  %4972 = vst [vmem:[%s15336_s2 + $0xd8] sm:$0xff] %v13576_v11 }
 0x498   : > { %4973 = vst [vmem:[%s15336_s2 + $0xe0] sm:$0xff] %v13576_v11  ;;  %4974 = vst [vmem:[%s15336_s2 + $0xe8] sm:$0xff] %v13576_v11 }
 0x499   : > { %4975 = vst [vmem:[%s15336_s2 + $0xf0] sm:$0xff] %v13576_v11  ;;  %4976 = vst [vmem:[%s15336_s2 + $0xf8] sm:$0xff] %v13576_v11 }
 0x49a LB: > { %v5018_v27 = vlaneseq  ;;  %s15379_s11 = sshll.u32 %s13542_s6, 8  ;;  %s4982_s6 = sadd.s32 1, %s13542_s6   ;;  %s13542_s6 = sphi %s15373_s6, %s4982_s6  }
 0x49b   : > { %s15384_s29 = scalar_lea.vmem [#allocation4], %s15379_s11  ;;  %s15409_s17 = scalar_lea.vmem [#allocation11], %s15379_s11 }
 0x49c   : > { %v5019_v15 = vshrl.u32 %v5018_v27, 7  ;;  %v4985_v18 = vld [vmem:[%s15384_s29] sm:$0xff]  ;;  %v4986_v2 = vld [vmem:[%s15384_s29 + $0x8] sm:$0xff]  ;;  %v4987_v36 = vld [vmem:[%s15384_s29 + $0x10] sm:$0xff]  ;;  %s15440_s18 = scalar_lea.vmem [#allocation3], %s15379_s11  ;;  %p4979_p13 = scmp.ge.s32.totalorder %s4982_s6, 3  }
 0x49d   : > { %v4988_v38 = vld [vmem:[%s15384_s29 + $0x18] sm:$0xff]  ;;  %v4989_v60 = vld [vmem:[%s15384_s29 + $0x20] sm:$0xff]  ;;  %v4990_v53 = vld [vmem:[%s15384_s29 + $0x28] sm:$0xff]  ;;  %s15569_s1 = smov (%p4979_p13), 0  }
 0x49e   : > { %v15381_v39 = vsub.s32 0, %v5019_v15  ;;  %v4991_v37 = vld [vmem:[%s15384_s29 + $0x30] sm:$0xff]  ;;  %v4992_v5 = vld [vmem:[%s15384_s29 + $0x38] sm:$0xff]  ;;  %v5126_v0 = vld [vmem:[%s15409_s17] sm:$0xff] }
 0x49f   : > { %v5127_v57 = vld [vmem:[%s15409_s17 + $0x8] sm:$0xff]  ;;  %v5128_v42 = vld [vmem:[%s15409_s17 + $0x10] sm:$0xff]  ;;  %v5129_v20 = vld [vmem:[%s15409_s17 + $0x18] sm:$0xff] }
 0x4a0   : > { %16563 = vst [vmem:[#allocation68_spill] sm:$0xff] %v15381_v39  ;;  %v15391_v17 = vrot.slane %v15321_v61, %v15381_v39  ;;  %v15397_v33 = vrot.slane %v4936_v55, %v15381_v39  ;;  %v5130_v7 = vld [vmem:[%s15409_s17 + $0x20] sm:$0xff]  ;;  %v5131_v43 = vld [vmem:[%s15409_s17 + $0x28] sm:$0xff]  ;;  %v5132_v29 = vld [vmem:[%s15409_s17 + $0x30] sm:$0xff] }
 0x4a1   : > { %v5133_v13 = vld [vmem:[%s15409_s17 + $0x38] sm:$0xff]  ;;  %v4993_v51 = vld [vmem:[%s15384_s29 + $0x40] sm:$0xff]  ;;  %v4994_v54 = vld [vmem:[%s15384_s29 + $0x48] sm:$0xff] }
 0x4a2   : > { %v5023_v19 = vmul.f32 %v15391_v17, %v4985_v18  ;;  %v5024_v32 = vmul.f32 %v15391_v17, %v4986_v2  ;;  %v5025_v31 = vmul.f32 %v15391_v17, %v4987_v36  ;;  %v5026_v21 = vmul.f32 %v15391_v17, %v4988_v38  ;;  %v4995_v6 = vld [vmem:[%s15384_s29 + $0x50] sm:$0xff]  ;;  %v4996_v44 = vld [vmem:[%s15384_s29 + $0x58] sm:$0xff]  ;;  %v4997_v35 = vld [vmem:[%s15384_s29 + $0x60] sm:$0xff] }
 0x4a3   : > { %v5027_v50 = vmul.f32 %v15391_v17, %v4989_v60  ;;  %v5028_v59 = vmul.f32 %v15391_v17, %v4990_v53  ;;  %v5029_v23 = vmul.f32 %v15391_v17, %v4991_v37  ;;  %v5030_v12 = vmul.f32 %v15391_v17, %v4992_v5  ;;  %v4998_v46 = vld [vmem:[%s15384_s29 + $0x68] sm:$0xff]  ;;  %v4999_v28 = vld [vmem:[%s15384_s29 + $0x70] sm:$0xff]  ;;  %v5000_v26 = vld [vmem:[%s15384_s29 + $0x78] sm:$0xff] }
 0x4a4   : > { %v5061_v41 = vadd.f32 %v15397_v33, %v5023_v19  ;;  %v5062_v62 = vadd.f32 %v15397_v33, %v5024_v32  ;;  %v5063_v14 = vadd.f32 %v15397_v33, %v5025_v31  ;;  %v5064_v4 = vadd.f32 %v15397_v33, %v5026_v21  ;;  %v5134_v38 = vld [vmem:[%s15409_s17 + $0x40] sm:$0xff]  ;;  %v5135_v60 = vld [vmem:[%s15409_s17 + $0x48] sm:$0xff]  ;;  %v5136_v53 = vld [vmem:[%s15409_s17 + $0x50] sm:$0xff] }
 0x4a5   : > { %v5065_v24 = vadd.f32 %v15397_v33, %v5027_v50  ;;  %v5066_v48 = vadd.f32 %v15397_v33, %v5028_v59  ;;  %v5067_v8 = vadd.f32 %v15397_v33, %v5029_v23  ;;  %v5068_v30 = vadd.f32 %v15397_v33, %v5030_v12  ;;  %v5138_v50 = vld [vmem:[%s15409_s17 + $0x60] sm:$0xff]  ;;  %v5139_v59 = vld [vmem:[%s15409_s17 + $0x68] sm:$0xff] }
 0x4a6   : > { %v5093_v47 = vmax.f32 %v5061_v41, 0.0  ;;  %v5094_v16 = vmax.f32 %v5062_v62, 0.0  ;;  %v5095_v9 = vmax.f32 %v5063_v14, 0.0  ;;  %v5096_v3 = vmax.f32 %v5064_v4, 0.0  ;;  %v5140_v62 = vld [vmem:[%s15409_s17 + $0x70] sm:$0xff]  ;;  %v5141_v4 = vld [vmem:[%s15409_s17 + $0x78] sm:$0xff] }
 0x4a7   : > { %v5097_v10 = vmax.f32 %v5065_v24, 0.0  ;;  %v5098_v25 = vmax.f32 %v5066_v48, 0.0  ;;  %v5099_v22 = vmax.f32 %v5067_v8, 0.0  ;;  %v5100_v58 = vmax.f32 %v5068_v30, 0.0  ;;  %v5002_v8 = vld [vmem:[%s15384_s29 + $0x88] sm:$0xff] }
 0x4a8   : > { %v5158_v40 = vmul.f32 %v5126_v0, %v5093_v47  ;;  %v5159_v63 = vmul.f32 %v5127_v57, %v5094_v16  ;;  %v5160_v56 = vmul.f32 %v5128_v42, %v5095_v9  ;;  %v5161_v52 = vmul.f32 %v5129_v20, %v5096_v3  ;;  %v5137_v42 = vld [vmem:[%s15409_s17 + $0x58] sm:$0xff]  ;;  %v5001_v20 = vld [vmem:[%s15384_s29 + $0x80] sm:$0xff] }
 0x4a9   : > { %v5162_v45 = vmul.f32 %v5130_v7, %v5097_v10  ;;  %v5163_v1 = vmul.f32 %v5131_v43, %v5098_v25  ;;  %v5164_v11 = vmul.f32 %v5132_v29, %v5099_v22  ;;  %v5165_v27 = vmul.f32 %v5133_v13, %v5100_v58  ;;  %v5003_v29 = vld [vmem:[%s15384_s29 + $0x90] sm:$0xff]  ;;  %v5004_v16 = vld [vmem:[%s15384_s29 + $0x98] sm:$0xff]  ;;  %v5005_v9 = vld [vmem:[%s15384_s29 + $0xa0] sm:$0xff] }
 0x4aa   : > { %8719 = vst [vmem:[%s15440_s18 + $0x100] sm:$0xff] %v5158_v40  ;;  %8720 = vst [vmem:[%s15440_s18 + $0x108] sm:$0xff] %v5159_v63  ;;  %v5031_v15 = vmul.f32 %v15391_v17, %v4993_v51  ;;  %v5032_v18 = vmul.f32 %v15391_v17, %v4994_v54  ;;  %v5033_v2 = vmul.f32 %v15391_v17, %v4995_v6  ;;  %v5006_v25 = vld [vmem:[%s15384_s29 + $0xa8] sm:$0xff]  ;;  %v5007_v22 = vld [vmem:[%s15384_s29 + $0xb0] sm:$0xff] }
 0x4ab   : > { %8721 = vst [vmem:[%s15440_s18 + $0x110] sm:$0xff] %v5160_v56  ;;  %8722 = vst [vmem:[%s15440_s18 + $0x118] sm:$0xff] %v5161_v52  ;;  %v5034_v36 = vmul.f32 %v15391_v17, %v4996_v44  ;;  %v5035_v19 = vmul.f32 %v15391_v17, %v4997_v35  ;;  %v5036_v32 = vmul.f32 %v15391_v17, %v4998_v46  ;;  %v5008_v58 = vld [vmem:[%s15384_s29 + $0xb8] sm:$0xff] }
 0x4ac   : > { %8723 = vst [vmem:[%s15440_s18 + $0x120] sm:$0xff] %v5162_v45  ;;  %8724 = vst [vmem:[%s15440_s18 + $0x128] sm:$0xff] %v5163_v1  ;;  %v5037_v31 = vmul.f32 %v15391_v17, %v4999_v28  ;;  %v5038_v21 = vmul.f32 %v15391_v17, %v5000_v26  ;;  %v5069_v37 = vadd.f32 %v15397_v33, %v5031_v15  ;;  %v5142_v26 = vld [vmem:[%s15409_s17 + $0x80] sm:$0xff]  ;;  %v5143_v45 = vld [vmem:[%s15409_s17 + $0x88] sm:$0xff] }
 0x4ad   : > { %8725 = vst [vmem:[%s15440_s18 + $0x130] sm:$0xff] %v5164_v11  ;;  %8726 = vst [vmem:[%s15440_s18 + $0x138] sm:$0xff] %v5165_v27  ;;  %v5070_v5 = vadd.f32 %v15397_v33, %v5032_v18  ;;  %v5071_v0 = vadd.f32 %v15397_v33, %v5033_v2  ;;  %v5072_v57 = vadd.f32 %v15397_v33, %v5034_v36  ;;  %v5144_v1 = vld [vmem:[%s15409_s17 + $0x90] sm:$0xff] }
 0x4ae   : > { %v5073_v23 = vadd.f32 %v15397_v33, %v5035_v19  ;;  %v5074_v12 = vadd.f32 %v15397_v33, %v5036_v32  ;;  %v5075_v41 = vadd.f32 %v15397_v33, %v5037_v31  ;;  %v5076_v14 = vadd.f32 %v15397_v33, %v5038_v21  ;;  %v5146_v19 = vld [vmem:[%s15409_s17 + $0xa0] sm:$0xff]  ;;  %v5147_v32 = vld [vmem:[%s15409_s17 + $0xa8] sm:$0xff] }
 0x4af   : > { %v5101_v7 = vmax.f32 %v5069_v37, 0.0  ;;  %v5102_v43 = vmax.f32 %v5070_v5, 0.0  ;;  %v5103_v24 = vmax.f32 %v5071_v0, 0.0  ;;  %v5104_v48 = vmax.f32 %v5072_v57, 0.0  ;;  %v5148_v5 = vld [vmem:[%s15409_s17 + $0xb0] sm:$0xff]  ;;  %v5149_v57 = vld [vmem:[%s15409_s17 + $0xb8] sm:$0xff] }
 0x4b0   : > { %v5105_v30 = vmax.f32 %v5073_v23, 0.0  ;;  %v5106_v13 = vmax.f32 %v5074_v12, 0.0  ;;  %v5107_v51 = vmax.f32 %v5075_v41, 0.0  ;;  %v5108_v47 = vmax.f32 %v5076_v14, 0.0  ;;  %v5010_v41 = vld [vmem:[%s15384_s29 + $0xc8] sm:$0xff] }
 0x4b1   : > { %v5166_v3 = vmul.f32 %v5134_v38, %v5101_v7  ;;  %v5167_v54 = vmul.f32 %v5135_v60, %v5102_v43  ;;  %v5168_v6 = vmul.f32 %v5136_v53, %v5103_v24  ;;  %v5169_v10 = vmul.f32 %v5137_v42, %v5104_v48  ;;  %v5145_v53 = vld [vmem:[%s15409_s17 + $0x98] sm:$0xff]  ;;  %v5009_v42 = vld [vmem:[%s15384_s29 + $0xc0] sm:$0xff] }
 0x4b2   : > { %v5170_v44 = vmul.f32 %v5138_v50, %v5105_v30  ;;  %v5171_v35 = vmul.f32 %v5139_v59, %v5106_v13  ;;  %v5172_v40 = vmul.f32 %v5140_v62, %v5107_v51  ;;  %v5173_v63 = vmul.f32 %v5141_v4, %v5108_v47  ;;  %v5011_v62 = vld [vmem:[%s15384_s29 + $0xd0] sm:$0xff]  ;;  %v5012_v43 = vld [vmem:[%s15384_s29 + $0xd8] sm:$0xff]  ;;  %v5013_v24 = vld [vmem:[%s15384_s29 + $0xe0] sm:$0xff] }
 0x4b3   : > { %8727 = vst [vmem:[%s15440_s18 + $0x140] sm:$0xff] %v5166_v3  ;;  %8728 = vst [vmem:[%s15440_s18 + $0x148] sm:$0xff] %v5167_v54  ;;  %v5039_v56 = vmul.f32 %v15391_v17, %v5001_v20  ;;  %v5040_v52 = vmul.f32 %v15391_v17, %v5002_v8  ;;  %v5041_v46 = vmul.f32 %v15391_v17, %v5003_v29  ;;  %v5014_v13 = vld [vmem:[%s15384_s29 + $0xe8] sm:$0xff]  ;;  %v5015_v51 = vld [vmem:[%s15384_s29 + $0xf0] sm:$0xff] }
 0x4b4   : > { %8729 = vst [vmem:[%s15440_s18 + $0x150] sm:$0xff] %v5168_v6  ;;  %8730 = vst [vmem:[%s15440_s18 + $0x158] sm:$0xff] %v5169_v10  ;;  %v5042_v28 = vmul.f32 %v15391_v17, %v5004_v16  ;;  %v5043_v11 = vmul.f32 %v15391_v17, %v5005_v9  ;;  %v5044_v27 = vmul.f32 %v15391_v17, %v5006_v25  ;;  %v5016_v47 = vld [vmem:[%s15384_s29 + $0xf8] sm:$0xff] }
 0x4b5   : > { %8731 = vst [vmem:[%s15440_s18 + $0x160] sm:$0xff] %v5170_v44  ;;  %8732 = vst [vmem:[%s15440_s18 + $0x168] sm:$0xff] %v5171_v35  ;;  %v5045_v15 = vmul.f32 %v15391_v17, %v5007_v22  ;;  %v5046_v18 = vmul.f32 %v15391_v17, %v5008_v58  ;;  %v5077_v2 = vadd.f32 %v15397_v33, %v5039_v56  ;;  %v5150_v56 = vld [vmem:[%s15409_s17 + $0xc0] sm:$0xff] }
 0x4b6   : > { %8733 = vst [vmem:[%s15440_s18 + $0x170] sm:$0xff] %v5172_v40  ;;  %8734 = vst [vmem:[%s15440_s18 + $0x178] sm:$0xff] %v5173_v63  ;;  %v5078_v36 = vadd.f32 %v15397_v33, %v5040_v52  ;;  %v5079_v38 = vadd.f32 %v15397_v33, %v5041_v46  ;;  %v5080_v60 = vadd.f32 %v15397_v33, %v5042_v28  ;;  %v5151_v46 = vld [vmem:[%s15409_s17 + $0xc8] sm:$0xff] }
 0x4b7   : > { %v5081_v31 = vadd.f32 %v15397_v33, %v5043_v11  ;;  %v5082_v21 = vadd.f32 %v15397_v33, %v5044_v27  ;;  %v5083_v37 = vadd.f32 %v15397_v33, %v5045_v15  ;;  %v5084_v0 = vadd.f32 %v15397_v33, %v5046_v18  ;;  %v5154_v27 = vld [vmem:[%s15409_s17 + $0xe0] sm:$0xff] }
 0x4b8   : > { %v5109_v50 = vmax.f32 %v5077_v2, 0.0  ;;  %v5110_v59 = vmax.f32 %v5078_v36, 0.0  ;;  %v5111_v23 = vmax.f32 %v5079_v38, 0.0  ;;  %v5112_v12 = vmax.f32 %v5080_v60, 0.0 }
 0x4b9   : > { %v5113_v14 = vmax.f32 %v5081_v31, 0.0  ;;  %v5114_v4 = vmax.f32 %v5082_v21, 0.0  ;;  %v5115_v20 = vmax.f32 %v5083_v37, 0.0  ;;  %v5116_v7 = vmax.f32 %v5084_v0, 0.0 }
 0x4ba   : > { %v5174_v48 = vmul.f32 %v5142_v26, %v5109_v50  ;;  %v5175_v8 = vmul.f32 %v5143_v45, %v5110_v59  ;;  %v5176_v29 = vmul.f32 %v5144_v1, %v5111_v23  ;;  %v5177_v30 = vmul.f32 %v5145_v53, %v5112_v12  ;;  %v5152_v26 = vld [vmem:[%s15409_s17 + $0xd0] sm:$0xff]  ;;  %v5153_v1 = vld [vmem:[%s15409_s17 + $0xd8] sm:$0xff] }
 0x4bb   : > { %v5178_v16 = vmul.f32 %v5146_v19, %v5113_v14  ;;  %v5179_v9 = vmul.f32 %v5147_v32, %v5114_v4  ;;  %v5180_v3 = vmul.f32 %v5148_v5, %v5115_v20  ;;  %v5181_v54 = vmul.f32 %v5149_v57, %v5116_v7  ;;  %v5156_v19 = vld [vmem:[%s15409_s17 + $0xf0] sm:$0xff]  ;;  %v5157_v32 = vld [vmem:[%s15409_s17 + $0xf8] sm:$0xff] }
 0x4bc   : > { %8735 = vst [vmem:[%s15440_s18 + $0x180] sm:$0xff] %v5174_v48  ;;  %8736 = vst [vmem:[%s15440_s18 + $0x188] sm:$0xff] %v5175_v8  ;;  %v5047_v6 = vmul.f32 %v15391_v17, %v5009_v42  ;;  %v5048_v10 = vmul.f32 %v15391_v17, %v5010_v41  ;;  %v5049_v25 = vmul.f32 %v15391_v17, %v5011_v62  ;;  %v15565_v41 = vmov (%p4979_p13), 0.0  }
 0x4bd   : > { %8737 = vst [vmem:[%s15440_s18 + $0x190] sm:$0xff] %v5176_v29  ;;  %8738 = vst [vmem:[%s15440_s18 + $0x198] sm:$0xff] %v5177_v30  ;;  %v5050_v22 = vmul.f32 %v15391_v17, %v5012_v43  ;;  %v5051_v58 = vmul.f32 %v15391_v17, %v5013_v24  ;;  %v5052_v44 = vmul.f32 %v15391_v17, %v5014_v13  ;;  %v15567_v62 = vmov (%p4979_p13), 0.0  }
 0x4be   : > { %8739 = vst [vmem:[%s15440_s18 + $0x1a0] sm:$0xff] %v5178_v16  ;;  %8740 = vst [vmem:[%s15440_s18 + $0x1a8] sm:$0xff] %v5179_v9  ;;  %v5053_v35 = vmul.f32 %v15391_v17, %v5015_v51  ;;  %v5054_v40 = vmul.f32 %v15391_v17, %v5016_v47  ;;  %v5085_v63 = vadd.f32 %v15397_v33, %v5047_v6  ;;  %v5155_v17 = vld [vmem:[%s15409_s17 + $0xe8] sm:$0xff] }
 0x4bf   : > { %8741 = vst [vmem:[%s15440_s18 + $0x1b0] sm:$0xff] %v5180_v3  ;;  %8742 = vst [vmem:[%s15440_s18 + $0x1b8] sm:$0xff] %v5181_v54  ;;  %v5086_v52 = vadd.f32 %v15397_v33, %v5048_v10  ;;  %v5087_v28 = vadd.f32 %v15397_v33, %v5049_v25  ;;  %v5088_v45 = vadd.f32 %v15397_v33, %v5050_v22 }
 0x4c0   : > { %v5089_v11 = vadd.f32 %v15397_v33, %v5051_v58  ;;  %v5090_v15 = vadd.f32 %v15397_v33, %v5052_v44  ;;  %v5091_v18 = vadd.f32 %v15397_v33, %v5053_v35  ;;  %v5092_v2 = vadd.f32 %v15397_v33, %v5054_v40 }
 0x4c1   : > { %v5117_v36 = vmax.f32 %v5085_v63, 0.0  ;;  %v5118_v38 = vmax.f32 %v5086_v52, 0.0  ;;  %v5119_v60 = vmax.f32 %v5087_v28, 0.0  ;;  %v5120_v53 = vmax.f32 %v5088_v45, 0.0 }
 0x4c2   : > { %v5121_v31 = vmax.f32 %v5089_v11, 0.0  ;;  %v5122_v21 = vmax.f32 %v5090_v15, 0.0  ;;  %v5123_v37 = vmax.f32 %v5091_v18, 0.0  ;;  %v5124_v5 = vmax.f32 %v5092_v2, 0.0  ;;  %4981 = sbr.rel (!%p4979_p13) target bundleno = 1178 (0x49a), region = 225 }
 0x4c3   : > { %v5182_v0 = vmul.f32 %v5150_v56, %v5117_v36  ;;  %v5183_v33 = vmul.f32 %v5151_v46, %v5118_v38  ;;  %v5184_v57 = vmul.f32 %v5152_v26, %v5119_v60  ;;  %v5185_v42 = vmul.f32 %v5153_v1, %v5120_v53 }
 0x4c4   : > { %v5186_v50 = vmul.f32 %v5154_v27, %v5121_v31  ;;  %v5187_v59 = vmul.f32 %v5155_v17, %v5122_v21  ;;  %v5188_v23 = vmul.f32 %v5156_v19, %v5123_v37  ;;  %v5189_v12 = vmul.f32 %v5157_v32, %v5124_v5 }
 0x4c5   : > { %8743 = vst [vmem:[%s15440_s18 + $0x1c0] sm:$0xff] %v5182_v0  ;;  %8744 = vst [vmem:[%s15440_s18 + $0x1c8] sm:$0xff] %v5183_v33 }
 0x4c6   : > { %8745 = vst [vmem:[%s15440_s18 + $0x1d0] sm:$0xff] %v5184_v57  ;;  %8746 = vst [vmem:[%s15440_s18 + $0x1d8] sm:$0xff] %v5185_v42 }
 0x4c7   : > { %8747 = vst [vmem:[%s15440_s18 + $0x1e0] sm:$0xff] %v5186_v50  ;;  %8748 = vst [vmem:[%s15440_s18 + $0x1e8] sm:$0xff] %v5187_v59 }
 0x4c8   : > { %8749 = vst [vmem:[%s15440_s18 + $0x1f0] sm:$0xff] %v5188_v23  ;;  %8750 = vst [vmem:[%s15440_s18 + $0x1f8] sm:$0xff] %v5189_v12 }
 0x4c9 LB: > { %16564 = vst [vmem:[#allocation69_spill] sm:$0xff] %v13546_v41  ;;  %16565 = vst [vmem:[#allocation70_spill] sm:$0xff] %v13550_v62  ;;  %v5369_v14 = vld [vmem:[#allocation15 + $0x100] sm:$0xff]  ;;  %v5370_v4 = vld [vmem:[#allocation15 + $0x108] sm:$0xff]  ;;  %s15586_s14 = sshll.u32 %s13554_s1, 8  ;;  %s5229_s1 = sadd.s32 1, %s13554_s1   ;;  %s13554_s1 = sphi %s15569_s1, %s5229_s1   ;;  %v13550_v62 = vphi %v15567_v62, %v16603_v62   ;;  %v13546_v41 = vphi %v15565_v41, %v16602_v41  }
 0x4ca   : > { %v6371_v20 = vld [vmem:[#allocation15 + $0x200] sm:$0xff]  ;;  %v12282_v61 = vpack.c.bf16 %v5370_v4, %v5369_v14  ;;  %v6372_v34 = vld [vmem:[#allocation15 + $0x208] sm:$0xff]  ;;  %v5371_v49 = vld [vmem:[#allocation15 + $0x110] sm:$0xff]  ;;  %s15597_s19 = scalar_lea.vmem [#allocation3], %s15586_s14  ;;  %s16135_s21 = scalar_lea.vmem [#allocation11], %s15586_s14 }
 0x4cb   : > { %v5372_v55 = vld [vmem:[#allocation15 + $0x118] sm:$0xff]  ;;  %v15580_v7 = vpack.c.bf16 %v6372_v34, %v6371_v20  ;;  %v6373_v24 = vld [vmem:[#allocation15 + $0x210] sm:$0xff]  ;;  %v5373_v8 = vld [vmem:[#allocation15 + $0x120] sm:$0xff]  ;;  %s16140_s23 = scalar_lea.vmem [#allocation5], %s15586_s14  ;;  %p5226_p0 = scmp.ge.s32.totalorder %s5229_s1, 3  }
 0x4cc   : > { %v12286_v43 = vpack.c.bf16 %v5372_v55, %v5371_v49  ;;  %v6374_v48 = vld [vmem:[#allocation15 + $0x218] sm:$0xff]  ;;  %12283 = vmatprep.subr.bf16.mxu1 %v12282_v61  ;;  %v5374_v30 = vld [vmem:[#allocation15 + $0x128] sm:$0xff]  ;;  %v6375_v13 = vld [vmem:[#allocation15 + $0x220] sm:$0xff]  ;;  %s16230_s5 = smov (%p5226_p0), 0  }
 0x4cd   : > { %v15582_v29 = vpack.c.bf16 %v6374_v48, %v6373_v24  ;;  %v6376_v51 = vld [vmem:[#allocation15 + $0x228] sm:$0xff]  ;;  %12411 = vmatprep.subr.bf16.mxu0 %v15580_v7  ;;  %12285 = vmatpush3.bf16.msra.mxu1 %v12282_v61  ;;  %v12290_v47 = vpack.c.bf16 %v5374_v30, %v5373_v8  ;;  %v5375_v9 = vld [vmem:[#allocation15 + $0x130] sm:$0xff]  ;;  %v5376_v3 = vld [vmem:[#allocation15 + $0x138] sm:$0xff] }
 0x4ce   : > { %12413 = vmatpush3.bf16.msra.mxu0 %v15580_v7  ;;  %12287 = vmatprep.subr.bf16.mxu1 %v12286_v43  ;;  %v15590_v16 = vpack.c.bf16 %v6376_v51, %v6375_v13  ;;  %v6377_v54 = vld [vmem:[#allocation15 + $0x230] sm:$0xff]  ;;  %v6378_v6 = vld [vmem:[#allocation15 + $0x238] sm:$0xff]  ;;  %v12294_v10 = vpack.c.bf16 %v5376_v3, %v5375_v9  ;;  %v5377_v22 = vld [vmem:[#allocation15 + $0x140] sm:$0xff] }
 0x4cf   : > { %16566 = vst [vmem:[#allocation71_spill] sm:$0xff] %v15582_v29  ;;  %12415 = vmatprep.subr.bf16.mxu0 %v15582_v29  ;;  %v15594_v25 = vpack.c.bf16 %v6378_v6, %v6377_v54  ;;  %v5378_v58 = vld [vmem:[#allocation15 + $0x148] sm:$0xff]  ;;  %v6379_v35 = vld [vmem:[#allocation15 + $0x240] sm:$0xff]  ;;  %v5379_v46 = vld [vmem:[#allocation15 + $0x150] sm:$0xff] }
 0x4d0   : > { %16567 = vst [vmem:[#allocation72_spill] sm:$0xff] %v15590_v16  ;;  %v8819_v44 = vld [vmem:[%s15597_s19 + $0xef] sm:$0xff]  ;;  %v8885_v63 = vld [vmem:[%s15597_s19 + $0x100] sm:$0xff]  ;;  %v12298_v56 = vpack.c.bf16 %v5378_v58, %v5377_v22  ;;  %v5380_v28 = vld [vmem:[#allocation15 + $0x158] sm:$0xff] }
 0x4d1   : > { %12289 = vmatpush3.bf16.msra.mxu1 %v12286_v43  ;;  %16568 = vst [vmem:[#allocation73_spill] sm:$0xff] %v15594_v25  ;;  %v6380_v40 = vld [vmem:[#allocation15 + $0x248] sm:$0xff]  ;;  %11178 = vmatprep.mubr.f32.mxu1 %v8819_v44  ;;  %v6381_v26 = vld [vmem:[#allocation15 + $0x250] sm:$0xff]  ;;  %v6382_v45 = vld [vmem:[#allocation15 + $0x258] sm:$0xff]  ;;  %v12302_v1 = vpack.c.bf16 %v5380_v28, %v5379_v46 }
 0x4d2   : > { %12417 = vmatpush3.bf16.msra.mxu0 %v15582_v29  ;;  %12291 = vmatprep.subr.bf16.mxu1 %v12290_v47  ;;  %v15603_v52 = vpack.c.bf16 %v6380_v40, %v6379_v35  ;;  %v15607_v11 = vpack.c.bf16 %v6382_v45, %v6381_v26  ;;  %v5381_v27 = vld [vmem:[#allocation15 + $0x160] sm:$0xff]  ;;  %v5382_v15 = vld [vmem:[#allocation15 + $0x168] sm:$0xff]  ;;  %v5383_v38 = vld [vmem:[#allocation15 + $0x170] sm:$0xff] }
 0x4d3   : > { %12419 = vmatprep.subr.bf16.mxu0 %v15590_v16  ;;  %11498 = vmatprep.mubr.f32.mxu0 %v8885_v63  ;;  %v6383_v17 = vld [vmem:[#allocation15 + $0x260] sm:$0xff]  ;;  %v6384_v18 = vld [vmem:[#allocation15 + $0x268] sm:$0xff]  ;;  %v12306_v2 = vpack.c.bf16 %v5382_v15, %v5381_v27  ;;  %v5384_v60 = vld [vmem:[#allocation15 + $0x178] sm:$0xff] }
 0x4d4   : > { %16569 = vst [vmem:[#allocation74_spill] sm:$0xff] %v15603_v52  ;;  %16570 = vst [vmem:[#allocation75_spill] sm:$0xff] %v15607_v11  ;;  %v15611_v36 = vpack.c.bf16 %v6384_v18, %v6383_v17  ;;  %v6385_v53 = vld [vmem:[#allocation15 + $0x270] sm:$0xff]  ;;  %v6386_v19 = vld [vmem:[#allocation15 + $0x278] sm:$0xff]  ;;  %v12310_v32 = vpack.c.bf16 %v5384_v60, %v5383_v38 }
 0x4d5   : > { %12293 = vmatpush3.bf16.msra.mxu1 %v12290_v47  ;;  %v15615_v31 = vpack.c.bf16 %v6386_v19, %v6385_v53  ;;  %v5267_v21 = vld [vmem:[#allocation15] sm:$0xff]  ;;  %v5268_v37 = vld [vmem:[#allocation15 + $0x8] sm:$0xff]  ;;  %v6681_v42 = vld [vmem:[#allocation15 + $0x290] sm:$0xff] }
 0x4d6   : > { %12421 = vmatpush3.bf16.msra.mxu0 %v15590_v16  ;;  %12295 = vmatprep.subr.bf16.mxu1 %v12294_v10  ;;  %16571 = vst [vmem:[#allocation76_spill] sm:$0xff] %v15611_v36  ;;  %v6679_v5 = vld [vmem:[#allocation15 + $0x280] sm:$0xff]  ;;  %v6680_v0 = vld [vmem:[#allocation15 + $0x288] sm:$0xff]  ;;  %v12314_v33 = vpack.c.bf16 %v5268_v37, %v5267_v21  ;;  %v6682_v50 = vld [vmem:[#allocation15 + $0x298] sm:$0xff] }
 0x4d7   : > { %12423 = vmatprep.subr.bf16.mxu0 %v15594_v25  ;;  %16572 = vst [vmem:[#allocation77_spill] sm:$0xff] %v15615_v31  ;;  %v12442_v57 = vpack.c.bf16 %v6680_v0, %v6679_v5  ;;  %v8820_v59 = vld [vmem:[%s15597_s19 + $0xf7] sm:$0xff]  ;;  %v8886_v14 = vld [vmem:[%s15597_s19 + $0x108] sm:$0xff]  ;;  %v15623_v4 = vld [vmem:[%s15597_s19 + $0xff] sm:$0xff]  ;;  %v12446_v20 = vpack.c.bf16 %v6682_v50, %v6681_v42 }
 0x4d8   : > { %v5269_v23 = vld [vmem:[#allocation15 + $0x10] sm:$0xff]  ;;  %v5270_v12 = vld [vmem:[#allocation15 + $0x18] sm:$0xff]  ;;  %v6683_v49 = vld [vmem:[#allocation15 + $0x2a0] sm:$0xff] }
 0x4d9   : > { %12297 = vmatpush3.bf16.msra.mxu1 %v12294_v10  ;;  %v8887_v61 = vld [vmem:[%s15597_s19 + $0x110] sm:$0xff]  ;;  %v12318_v34 = vpack.c.bf16 %v5270_v12, %v5269_v23  ;;  %v6684_v55 = vld [vmem:[#allocation15 + $0x2a8] sm:$0xff]  ;;  %v5271_v24 = vld [vmem:[#allocation15 + $0x20] sm:$0xff] }
 0x4da   : > { %12425 = vmatpush3.bf16.msra.mxu0 %v15594_v25  ;;  %12299 = vmatprep.subr.bf16.mxu1 %v12298_v56  ;;  %v15627_v43 = vld [vmem:[%s15597_s19 + $0x107] sm:$0xff]  ;;  %v8888_v8 = vld [vmem:[%s15597_s19 + $0x118] sm:$0xff]  ;;  %v15632_v30 = vld [vmem:[%s15597_s19 + $0x10f] sm:$0xff]  ;;  %v12450_v51 = vpack.c.bf16 %v6684_v55, %v6683_v49 }
 0x4db   : > { %12427 = vmatprep.subr.bf16.mxu0 %v15603_v52  ;;  %v5272_v48 = vld [vmem:[#allocation15 + $0x28] sm:$0xff]  ;;  %v8889_v13 = vld [vmem:[%s15597_s19 + $0x120] sm:$0xff]  ;;  %v6685_v47 = vld [vmem:[#allocation15 + $0x2b0] sm:$0xff] }
 0x4dc   : > { %v6686_v9 = vld [vmem:[#allocation15 + $0x2b8] sm:$0xff]  ;;  %v12322_v3 = vpack.c.bf16 %v5272_v48, %v5271_v24  ;;  %v5273_v6 = vld [vmem:[#allocation15 + $0x30] sm:$0xff]  ;;  %v8890_v22 = vld [vmem:[%s15597_s19 + $0x128] sm:$0xff] }
 0x4dd   : > { %12301 = vmatpush3.bf16.msra.mxu1 %v12298_v56  ;;  %v15638_v54 = vld [vmem:[%s15597_s19 + $0x117] sm:$0xff]  ;;  %v15642_v58 = vld [vmem:[%s15597_s19 + $0x11f] sm:$0xff]  ;;  %v12454_v35 = vpack.c.bf16 %v6686_v9, %v6685_v47  ;;  %v6688_v63 = vld [vmem:[#allocation15 + $0x2c8] sm:$0xff] }
 0x4de   : > { %12429 = vmatpush3.bf16.msra.mxu0 %v15603_v52  ;;  %12303 = vmatprep.subr.bf16.mxu1 %v12302_v1  ;;  %v5274_v10 = vld [vmem:[#allocation15 + $0x38] sm:$0xff]  ;;  %v8891_v44 = vld [vmem:[%s15597_s19 + $0x130] sm:$0xff]  ;;  %v6687_v40 = vld [vmem:[#allocation15 + $0x2c0] sm:$0xff] }
 0x4df   : > { %12431 = vmatprep.subr.bf16.mxu0 %v15607_v11  ;;  %v12326_v56 = vpack.c.bf16 %v5274_v10, %v5273_v6  ;;  %v15648_v46 = vld [vmem:[%s15597_s19 + $0x127] sm:$0xff]  ;;  %v8892_v45 = vld [vmem:[%s15597_s19 + $0x138] sm:$0xff]  ;;  %v12458_v15 = vpack.c.bf16 %v6688_v63, %v6687_v40  ;;  %v6689_v17 = vld [vmem:[#allocation15 + $0x2d0] sm:$0xff] }
 0x4e0   : > { %v5275_v28 = vld [vmem:[#allocation15 + $0x40] sm:$0xff]  ;;  %v5276_v26 = vld [vmem:[#allocation15 + $0x48] sm:$0xff]  ;;  %v6690_v18 = vld [vmem:[#allocation15 + $0x2d8] sm:$0xff] }
 0x4e1   : > { %12305 = vmatpush3.bf16.msra.mxu1 %v12302_v1  ;;  %v15652_v1 = vld [vmem:[%s15597_s19 + $0x12f] sm:$0xff]  ;;  %v8893_v27 = vld [vmem:[%s15597_s19 + $0x140] sm:$0xff]  ;;  %v15658_v38 = vld [vmem:[%s15597_s19 + $0x137] sm:$0xff]  ;;  %v12462_v37 = vpack.c.bf16 %v6690_v18, %v6689_v17 }
 0x4e2   : > { %12433 = vmatpush3.bf16.msra.mxu0 %v15607_v11  ;;  %12307 = vmatprep.subr.bf16.mxu1 %v12306_v2  ;;  %v5277_v60 = vld [vmem:[#allocation15 + $0x50] sm:$0xff]  ;;  %v5278_v53 = vld [vmem:[#allocation15 + $0x58] sm:$0xff]  ;;  %v8894_v19 = vld [vmem:[%s15597_s19 + $0x148] sm:$0xff] }
 0x4e3   : > { %12435 = vmatprep.subr.bf16.mxu0 %v15611_v36  ;;  %v8895_v21 = vld [vmem:[%s15597_s19 + $0x150] sm:$0xff]  ;;  %v6691_v5 = vld [vmem:[#allocation15 + $0x2e0] sm:$0xff]  ;;  %v6692_v0 = vld [vmem:[#allocation15 + $0x2e8] sm:$0xff] }
 0x4e4   : > { %v5279_v42 = vld [vmem:[#allocation15 + $0x60] sm:$0xff]  ;;  %v5280_v50 = vld [vmem:[#allocation15 + $0x68] sm:$0xff]  ;;  %v15678_v49 = vld [vmem:[%s15597_s19 + $0x157] sm:$0xff] }
 0x4e5   : > { %12309 = vmatpush3.bf16.msra.mxu1 %v12306_v2  ;;  %v12330_v2 = vpack.c.bf16 %v5276_v26, %v5275_v28  ;;  %v15672_v23 = vld [vmem:[%s15597_s19 + $0x14f] sm:$0xff]  ;;  %v8897_v12 = vld [vmem:[%s15597_s19 + $0x160] sm:$0xff]  ;;  %v5282_v24 = vld [vmem:[#allocation15 + $0x78] sm:$0xff] }
 0x4e6   : > { %12437 = vmatpush3.bf16.msra.mxu0 %v15611_v36  ;;  %12311 = vmatprep.subr.bf16.mxu1 %v12310_v32  ;;  %v5281_v55 = vld [vmem:[#allocation15 + $0x70] sm:$0xff]  ;;  %v8898_v48 = vld [vmem:[%s15597_s19 + $0x168] sm:$0xff]  ;;  %v6987_v47 = vld [vmem:[#allocation15 + $0x300] sm:$0xff] }
 0x4e7   : > { %12439 = vmatprep.subr.bf16.mxu0 %v15615_v31  ;;  %v6988_v9 = vld [vmem:[#allocation15 + $0x308] sm:$0xff]  ;;  %v5870_v10 = vld [vmem:[#allocation15 + $0x180] sm:$0xff]  ;;  %v6990_v28 = vld [vmem:[#allocation15 + $0x318] sm:$0xff] }
 0x4e8   : > { %v15688_v6 = vld [vmem:[%s15597_s19 + $0x167] sm:$0xff]  ;;  %v12474_v63 = vpack.c.bf16 %v6988_v9, %v6987_v47  ;;  %v15707_v17 = vld [vmem:[%s15597_s19 + $0x111] sm:$0xff]  ;;  %v8759_v25 = vld [vmem:[%s15597_s19 + $0x11d] sm:$0xff] }
 0x4e9   : > { %12313 = vmatpush3.bf16.msra.mxu1 %v12310_v32  ;;  %v15662_v32 = vld [vmem:[%s15597_s19 + $0x13f] sm:$0xff]  ;;  %v15761_v9 = vld [vmem:[%s15597_s19 + $0x1b7] sm:$0xff]  ;;  %v15826_v62 = vld [vmem:[%s15597_s19 + $0x189] sm:$0xff] }
 0x4ea   : > { %12441 = vmatpush3.bf16.msra.mxu0 %v15615_v31  ;;  %12315 = vmatprep.subr.bf16.mxu1 %v12314_v33  ;;  %v8918_v40 = vld [vmem:[%s15597_s19 + $0x101] sm:$0xff]  ;;  %v6998_v47 = vld [vmem:[#allocation15 + $0x358] sm:$0xff]  ;;  %16576 = vst [vmem:[#allocation81_spill] sm:$0xff] %v15761_v9  ;;  %v5876_v11 = vld [vmem:[#allocation15 + $0x1b0] sm:$0xff] }
 0x4eb   : > { %12443 = vmatprep.subr.bf16.mxu0 %v12442_v57  ;;  %v5873_v39 = vld [vmem:[#allocation15 + $0x198] sm:$0xff]  ;;  %v5874_v31 = vld [vmem:[#allocation15 + $0x1a0] sm:$0xff]  ;;  %v5875_v36 = vld [vmem:[#allocation15 + $0x1a8] sm:$0xff] }
 0x4ec   : > { %11179 = vmatmul.mubr.f32.vlgmr.msra.gmra.mrb[0].mxu1 %v8820_v59  ;;  %v8896_v59 = vld [vmem:[%s15597_s19 + $0x158] sm:$0xff] }
 0x4ed   : > { %11499 = vmatmul.mubr.f32.vlgmr.msra.gmra.mrb[0].mxu0 %v8886_v14  ;;  %12317 = vmatpush3.bf16.msra.mxu1 %v12314_v33  ;;  %v12334_v33 = vpack.c.bf16 %v5278_v53, %v5277_v60  ;;  %v12466_v14 = vpack.c.bf16 %v6692_v0, %v6691_v5  ;;  %v6992_v60 = vld [vmem:[#allocation15 + $0x328] sm:$0xff]  ;;  %v6993_v0 = vld [vmem:[#allocation15 + $0x330] sm:$0xff]  ;;  %v5877_v52 = vld [vmem:[#allocation15 + $0x1b8] sm:$0xff] }
 0x4ee   : > { %12445 = vmatpush3.bf16.msra.mxu0 %v12442_v57  ;;  %11181 = vmatprep.mubr.f32.mxu1 %v15623_v4  ;;  %v15668_v57 = vld [vmem:[%s15597_s19 + $0x147] sm:$0xff]  ;;  %v8754_v41 = vld [vmem:[%s15597_s19 + $0xf5] sm:$0xff] }
 0x4ef   : > { %11501 = vmatprep.mubr.f32.mxu0 %v8887_v61  ;;  %12447 = vmatprep.subr.bf16.mxu0 %v12446_v20  ;;  %v6694_v61 = vld [vmem:[#allocation15 + $0x2f8] sm:$0xff]  ;;  %v15713_v53 = vld [vmem:[%s15597_s19 + $0x187] sm:$0xff] }
 0x4f0   : > { %11182 = vmatmul.mubr.f32.gmra.mrb[2].mxu1 %v15627_v43  ;;  %12319 = vmatprep.subr.bf16.mxu1 %v12318_v34  ;;  %v15852_v16 = vld [vmem:[%s15597_s19 + $0x1b1] sm:$0xff]  ;;  %v15858_v29 = vld [vmem:[%s15597_s19 + $0x1b9] sm:$0xff] }
 0x4f1   : > { %11502 = vmatmul.mubr.f32.gmra.mrb[2].mxu0 %v8888_v8  ;;  %11184 = vmatprep.mubr.f32.mxu1 %v15632_v30  ;;  %v15682_v8 = vld [vmem:[%s15597_s19 + $0x15f] sm:$0xff] }
 0x4f2   : > { %12449 = vmatpush3.bf16.msra.mxu0 %v12446_v20  ;;  %11504 = vmatprep.mubr.f32.mxu0 %v8889_v13  ;;  %v6693_v20 = vld [vmem:[#allocation15 + $0x2f0] sm:$0xff] }
 0x4f3   : > { %12451 = vmatprep.subr.bf16.mxu0 %v12450_v51  ;;  %12321 = vmatpush3.bf16.msra.mxu1 %v12318_v34  ;;  %v12338_v34 = vpack.c.bf16 %v5280_v50, %v5279_v42  ;;  %v8899_v13 = vld [vmem:[%s15597_s19 + $0x170] sm:$0xff] }
 0x4f4   : > { %11185 = vmatmul.mubr.f32.gmra.mrb[4].mxu1 %v15638_v54  ;;  %12323 = vmatprep.subr.bf16.mxu1 %v12322_v3  ;;  %v15729_v42 = vld [vmem:[%s15597_s19 + $0x197] sm:$0xff]  ;;  %v15733_v50 = vld [vmem:[%s15597_s19 + $0x129] sm:$0xff] }
 0x4f5   : > { %11505 = vmatmul.mubr.f32.gmra.mrb[4].mxu0 %v8890_v22  ;;  %11187 = vmatprep.mubr.f32.mxu1 %v15642_v58  ;;  %v5871_v22 = vld [vmem:[#allocation15 + $0x188] sm:$0xff] }
 0x4f6   : > { %12453 = vmatpush3.bf16.msra.mxu0 %v12450_v51  ;;  %11507 = vmatprep.mubr.f32.mxu0 %v8891_v44  ;;  %v12470_v51 = vpack.c.bf16 %v6694_v61, %v6693_v20  ;;  %v8900_v44 = vld [vmem:[%s15597_s19 + $0x178] sm:$0xff]  ;;  %v15696_v26 = vpack.c.bf16 %v5871_v22, %v5870_v10  ;;  %v6995_v20 = vld [vmem:[#allocation15 + $0x340] sm:$0xff]  ;;  %v6996_v61 = vld [vmem:[#allocation15 + $0x348] sm:$0xff] }
 0x4f7   : > { %12455 = vmatprep.subr.bf16.mxu0 %v12454_v35  ;;  %12325 = vmatpush3.bf16.msra.mxu1 %v12322_v3  ;;  %v12342_v3 = vpack.c.bf16 %v5282_v24, %v5281_v55  ;;  %v15749_v55 = vld [vmem:[%s15597_s19 + $0x139] sm:$0xff]  ;;  %v15752_v24 = vld [vmem:[%s15597_s19 + $0x1af] sm:$0xff] }
 0x4f8   : > { %11188 = vmatmul.mubr.f32.gmra.mrb[6].mxu1 %v15648_v46  ;;  %12327 = vmatprep.subr.bf16.mxu1 %v12326_v56  ;;  %16575 = vst [vmem:[#allocation80_spill] sm:$0xff] %v15752_v24  ;;  %v15768_v10 = vld [vmem:[%s15597_s19 + $0x1bf] sm:$0xff]  ;;  %v15771_v22 = vld [vmem:[%s15597_s19 + $0x151] sm:$0xff] }
 0x4f9   : > { %11508 = vmatmul.mubr.f32.gmra.mrb[6].mxu0 %v8892_v45  ;;  %11190 = vmatprep.mubr.f32.mxu1 %v15652_v1  ;;  %v15700_v45 = vld [vmem:[%s15597_s19 + $0x177] sm:$0xff]  ;;  %16577 = vst [vmem:[#allocation82_spill] sm:$0xff] %v15768_v10 }
 0x4fa   : > { %12457 = vmatpush3.bf16.msra.mxu0 %v12454_v35  ;;  %11510 = vmatprep.mubr.f32.mxu0 %v8893_v27  ;;  %v15692_v35 = vld [vmem:[%s15597_s19 + $0x16f] sm:$0xff] }
 0x4fb   : > { %12459 = vmatprep.subr.bf16.mxu0 %v12458_v15  ;;  %12329 = vmatpush3.bf16.msra.mxu1 %v12326_v56  ;;  %v6989_v56 = vld [vmem:[#allocation15 + $0x310] sm:$0xff] }
 0x4fc   : > { %11191 = vmatmul.mubr.f32.gmra.mrb[8].mxu1 %v15658_v38  ;;  %12331 = vmatprep.subr.bf16.mxu1 %v12330_v2  ;;  %v8919_v27 = vld [vmem:[%s15597_s19 + $0x109] sm:$0xff]  ;;  %v12478_v18 = vpack.c.bf16 %v6990_v28, %v6989_v56  ;;  %v15781_v28 = vld [vmem:[%s15597_s19 + $0x159] sm:$0xff] }
 0x4fd   : > { %11511 = vmatmul.mubr.f32.gmra.mrb[8].mxu0 %v8894_v19  ;;  %11193 = vmatprep.mubr.f32.mxu1 %v15662_v32  ;;  %v15717_v19 = vld [vmem:[%s15597_s19 + $0x119] sm:$0xff]  ;;  %v15777_v56 = vld [vmem:[%s15597_s19 + $0x1c7] sm:$0xff] }
 0x4fe   : > { %12461 = vmatpush3.bf16.msra.mxu0 %v12458_v15  ;;  %11513 = vmatprep.mubr.f32.mxu0 %v8895_v21  ;;  %v15704_v15 = vld [vmem:[%s15597_s19 + $0x17f] sm:$0xff]  ;;  %v15720_v21 = vld [vmem:[%s15597_s19 + $0x18f] sm:$0xff]  ;;  %16578 = vst [vmem:[#allocation83_spill] sm:$0xff] %v15777_v56 }
 0x4ff   : > { %12463 = vmatprep.subr.bf16.mxu0 %v12462_v37  ;;  %12333 = vmatpush3.bf16.msra.mxu1 %v12330_v2  ;;  %v6991_v2 = vld [vmem:[#allocation15 + $0x320] sm:$0xff] }
 0x500   : > { %11194 = vmatmul.mubr.f32.gmra.mrb[10].mxu1 %v15668_v57  ;;  %12335 = vmatprep.subr.bf16.mxu1 %v12334_v33  ;;  %v12482_v5 = vpack.c.bf16 %v6992_v60, %v6991_v2  ;;  %v7001_v60 = vld [vmem:[#allocation15 + $0x370] sm:$0xff] }
 0x501   : > { %11514 = vmatmul.mubr.f32.gmra.mrb[10].mxu0 %v8896_v59  ;;  %11196 = vmatprep.mubr.f32.mxu1 %v15672_v23  ;;  %v15736_v59 = vld [vmem:[%s15597_s19 + $0x19f] sm:$0xff] }
 0x502   : > { %12465 = vmatpush3.bf16.msra.mxu0 %v12462_v37  ;;  %11516 = vmatprep.mubr.f32.mxu0 %v8897_v12  ;;  %v15723_v37 = vld [vmem:[%s15597_s19 + $0x121] sm:$0xff]  ;;  %16573 = vst [vmem:[#allocation78_spill] sm:$0xff] %v15736_v59  ;;  %v15739_v12 = vld [vmem:[%s15597_s19 + $0x131] sm:$0xff] }
 0x503   : > { %12467 = vmatprep.subr.bf16.mxu0 %v12466_v14  ;;  %12337 = vmatpush3.bf16.msra.mxu1 %v12334_v33  ;;  %v6994_v33 = vld [vmem:[#allocation15 + $0x338] sm:$0xff] }
 0x504   : > { %11197 = vmatmul.mubr.f32.gmra.mrb[12].mxu1 %v15678_v49  ;;  %12339 = vmatprep.subr.bf16.mxu1 %v12338_v34 }
 0x505   : > { %11517 = vmatmul.mubr.f32.gmra.mrb[12].mxu0 %v8898_v48  ;;  %11199 = vmatprep.mubr.f32.mxu1 %v15682_v8  ;;  %v15755_v48 = vld [vmem:[%s15597_s19 + $0x141] sm:$0xff] }
 0x506   : > { %12469 = vmatpush3.bf16.msra.mxu0 %v12466_v14  ;;  %11519 = vmatprep.mubr.f32.mxu0 %v8899_v13  ;;  %v12486_v14 = vpack.c.bf16 %v6994_v33, %v6993_v0  ;;  %v12490_v13 = vpack.c.bf16 %v6996_v61, %v6995_v20  ;;  %v15793_v0 = vld [vmem:[%s15597_s19 + $0x1d7] sm:$0xff]  ;;  %v15797_v33 = vld [vmem:[%s15597_s19 + $0x169] sm:$0xff] }
 0x507   : > { %12471 = vmatprep.subr.bf16.mxu0 %v12470_v51  ;;  %12341 = vmatpush3.bf16.msra.mxu1 %v12338_v34  ;;  %v15745_v34 = vld [vmem:[%s15597_s19 + $0x1a7] sm:$0xff]  ;;  %16580 = vst [vmem:[#allocation85_spill] sm:$0xff] %v15793_v0  ;;  %v15803_v20 = vld [vmem:[%s15597_s19 + $0x171] sm:$0xff] }
 0x508   : > { %11200 = vmatmul.mubr.f32.gmra.mrb[14].mxu1 %v15688_v6  ;;  %12343 = vmatprep.subr.bf16.mxu1 %v12342_v3  ;;  %16574 = vst [vmem:[#allocation79_spill] sm:$0xff] %v15745_v34 }
 0x509   : > { %11520 = vmatmul.mubr.f32.gmra.mrb[14].mxu0 %v8900_v44  ;;  %11202 = vmatprep.mubr.f32.mxu1 %v15692_v35 }
 0x50a   : > { %12473 = vmatpush3.bf16.msra.mxu0 %v12470_v51  ;;  %11578 = vmatprep.mubr.f32.mxu0 %v8918_v40  ;;  %v6997_v51 = vld [vmem:[#allocation15 + $0x350] sm:$0xff]  ;;  %v6999_v40 = vld [vmem:[#allocation15 + $0x360] sm:$0xff] }
 0x50b   : > { %12475 = vmatprep.subr.bf16.mxu0 %v12474_v63  ;;  %12345 = vmatpush3.bf16.msra.mxu1 %v12342_v3  ;;  %v15765_v3 = vld [vmem:[%s15597_s19 + $0x149] sm:$0xff]  ;;  %v12494_v44 = vpack.c.bf16 %v6998_v47, %v6997_v51 }
 0x50c   : > { %11203 = vmatmul.mubr.f32.gmra.mrb[16].mxu1 %v15700_v45  ;;  %12347 = vmatprep.subr.bf16.mxu1 %v15696_v26  ;;  %v7296_v51 = vld [vmem:[#allocation15 + $0x388] sm:$0xff] }
 0x50d   : > { %11579 = vmatmul.mubr.f32.vlgmr.msra.gmra.mrb[0].mxu0 %v8919_v27  ;;  %11205 = vmatprep.mubr.f32.mxu1 %v15704_v15  ;;  %v15784_v27 = vld [vmem:[%s15597_s19 + $0x1cf] sm:$0xff]  ;;  %v15809_v47 = vld [vmem:[%s15597_s19 + $0x1e7] sm:$0xff] }
 0x50e   : > { %12477 = vmatpush3.bf16.msra.mxu0 %v12474_v63  ;;  %11581 = vmatprep.mubr.f32.mxu0 %v15707_v17  ;;  %v7000_v63 = vld [vmem:[#allocation15 + $0x368] sm:$0xff]  ;;  %16579 = vst [vmem:[#allocation84_spill] sm:$0xff] %v15784_v27  ;;  %16582 = vst [vmem:[#allocation87_spill] sm:$0xff] %v15809_v47 }
 0x50f   : > { %12479 = vmatprep.subr.bf16.mxu0 %v12478_v18  ;;  %v12498_v2 = vpack.c.bf16 %v7000_v63, %v6999_v40  ;;  %v8753_v40 = vld [vmem:[%s15597_s19 + $0xed] sm:$0xff]  ;;  %v15817_v63 = vld [vmem:[%s15597_s19 + $0x181] sm:$0xff] }
 0x510   : > { %11206 = vmatmul.mubr.f32.gmra.mrb[18].mxu1 %v15713_v53 }
 0x511   : > { %11582 = vmatmul.mubr.f32.gmra.mrb[2].mxu0 %v15717_v19  ;;  %11208 = vmatprep.mubr.f32.mxu1 %v15720_v21 }
 0x512   : > { %11584 = vmatprep.mubr.f32.mxu0 %v15723_v37  ;;  %12481 = vmatpush3.bf16.msra.mxu0 %v12478_v18  ;;  %v15787_v18 = vld [vmem:[%s15597_s19 + $0x161] sm:$0xff] }
 0x513   : > { %12483 = vmatprep.subr.bf16.mxu0 %v12482_v5 }
 0x514   : > { %11209 = vmatmul.mubr.f32.gmra.mrb[20].mxu1 %v15729_v42 }
 0x515   : > { %11585 = vmatmul.mubr.f32.gmra.mrb[4].mxu0 %v15733_v50  ;;  %11211 = vmatprep.mubr.f32.mxu1 %v15736_v59 }
 0x516   : > { %11587 = vmatprep.mubr.f32.mxu0 %v15739_v12  ;;  %12485 = vmatpush3.bf16.msra.mxu0 %v12482_v5  ;;  %v7002_v5 = vld [vmem:[#allocation15 + $0x378] sm:$0xff] }
 0x517   : > { %12487 = vmatprep.subr.bf16.mxu0 %v12486_v14  ;;  %v12502_v61 = vpack.c.bf16 %v7002_v5, %v7001_v60  ;;  %v5872_v5 = vld [vmem:[#allocation15 + $0x190] sm:$0xff] }
 0x518   : > { %11212 = vmatmul.mubr.f32.gmra.mrb[22].mxu1 %v15745_v34  ;;  %v8769_v34 = vld [vmem:[%s15597_s19 + $0x16d] sm:$0xff] }
 0x519   : > { %11588 = vmatmul.mubr.f32.gmra.mrb[6].mxu0 %v15749_v55  ;;  %11214 = vmatprep.mubr.f32.mxu1 %v15752_v24  ;;  %v15898_v24 = vld [vmem:[%s15597_s19 + $0x1f9] sm:$0xff] }
 0x51a   : > { %11590 = vmatprep.mubr.f32.mxu0 %v15755_v48  ;;  %12489 = vmatpush3.bf16.msra.mxu0 %v12486_v14  ;;  %v15800_v14 = vld [vmem:[%s15597_s19 + $0x1df] sm:$0xff] }
 0x51b   : > { %12491 = vmatprep.subr.bf16.mxu0 %v12490_v13  ;;  %16581 = vst [vmem:[#allocation86_spill] sm:$0xff] %v15800_v14 }
 0x51c   : > { %11215 = vmatmul.mubr.f32.gmra.mrb[24].mxu1 %v15761_v9  ;;  %v8767_v9 = vld [vmem:[%s15597_s19 + $0x15d] sm:$0xff] }
 0x51d   : > { %11591 = vmatmul.mubr.f32.gmra.mrb[8].mxu0 %v15765_v3  ;;  %11217 = vmatprep.mubr.f32.mxu1 %v15768_v10  ;;  %v15888_v10 = vld [vmem:[%s15597_s19 + $0x1e9] sm:$0xff] }
 0x51e   : > { %11593 = vmatprep.mubr.f32.mxu0 %v15771_v22  ;;  %12493 = vmatpush3.bf16.msra.mxu0 %v12490_v13  ;;  %v7295_v13 = vld [vmem:[#allocation15 + $0x380] sm:$0xff] }
 0x51f   : > { %12495 = vmatprep.subr.bf16.mxu0 %v12494_v44  ;;  %v15819_v60 = vpack.c.bf16 %v7296_v51, %v7295_v13  ;;  %v15830_v13 = vld [vmem:[%s15597_s19 + $0x191] sm:$0xff]  ;;  %v12350_v51 = vpack.c.bf16 %v5873_v39, %v5872_v5  ;;  %v15842_v5 = vld [vmem:[%s15597_s19 + $0x1a1] sm:$0xff] }
 0x520   : > { %11218 = vmatmul.mubr.f32.gmra.mrb[26].mxu1 %v15777_v56  ;;  %v8757_v39 = vld [vmem:[%s15597_s19 + $0x10d] sm:$0xff]  ;;  %v15882_v56 = vld [vmem:[%s15597_s19 + $0x1e1] sm:$0xff] }
 0x521   : > { %11594 = vmatmul.mubr.f32.gmra.mrb[10].mxu0 %v15781_v28  ;;  %11220 = vmatprep.mubr.f32.mxu1 %v15784_v27  ;;  %v15878_v27 = vld [vmem:[%s15597_s19 + $0x1d9] sm:$0xff] }
 0x522   : > { %11596 = vmatprep.mubr.f32.mxu0 %v15787_v18  ;;  %12497 = vmatpush3.bf16.msra.mxu0 %v12494_v44  ;;  %v15813_v44 = vld [vmem:[%s15597_s19 + $0x179] sm:$0xff] }
 0x523   : > { %12499 = vmatprep.subr.bf16.mxu0 %v12498_v2 }
 0x524   : > { %11221 = vmatmul.mubr.f32.gmra.mrb[28].mxu1 %v15793_v0  ;;  %v15872_v0 = vld [vmem:[%s15597_s19 + $0x1d1] sm:$0xff] }
 0x525   : > { %11597 = vmatmul.mubr.f32.gmra.mrb[12].mxu0 %v15797_v33  ;;  %11223 = vmatprep.mubr.f32.mxu1 %v15800_v14  ;;  %v15868_v14 = vld [vmem:[%s15597_s19 + $0x1c9] sm:$0xff] }
 0x526   : > { %11599 = vmatprep.mubr.f32.mxu0 %v15803_v20  ;;  %12501 = vmatpush3.bf16.msra.mxu0 %v12498_v2  ;;  %v8755_v2 = vld [vmem:[%s15597_s19 + $0xfd] sm:$0xff] }
 0x527   : > { %12503 = vmatprep.subr.bf16.mxu0 %v12502_v61 }
 0x528   : > { %11224 = vmatmul.mubr.f32.gmra.mrb[30].mxu1 %v15809_v47  ;;  %v15862_v47 = vld [vmem:[%s15597_s19 + $0x1c1] sm:$0xff] }
 0x529   : > { %11600 = vmatmul.mubr.f32.gmra.mrb[14].mxu0 %v15813_v44  ;;  %11258 = vmatprep.mubr.f32.mxu1 %v8753_v40  ;;  %v8756_v40 = vld [vmem:[%s15597_s19 + $0x105] sm:$0xff] }
 0x52a   : > { %11602 = vmatprep.mubr.f32.mxu0 %v15817_v63  ;;  %12505 = vmatpush3.bf16.msra.mxu0 %v12502_v61  ;;  %v15838_v61 = vld [vmem:[%s15597_s19 + $0x199] sm:$0xff] }
 0x52b   : > { %12507 = vmatprep.subr.bf16.mxu0 %v15819_v60 }
 0x52c   : > { %11259 = vmatmul.mubr.f32.vlgmr.msra.gmra.mrb[0].mxu1 %v8754_v41  ;;  %v12354_v41 = vpack.c.bf16 %v5875_v36, %v5874_v31  ;;  %v12358_v36 = vpack.c.bf16 %v5877_v52, %v5876_v11  ;;  %v5878_v31 = vld [vmem:[#allocation15 + $0x1c0] sm:$0xff]  ;;  %v5880_v11 = vld [vmem:[#allocation15 + $0x1d0] sm:$0xff] }
 0x52d   : > { %11603 = vmatmul.mubr.f32.gmra.mrb[16].mxu0 %v15826_v62  ;;  %12349 = vmatpush3.bf16.msra.mxu1 %v15696_v26  ;;  %v8758_v26 = vld [vmem:[%s15597_s19 + $0x115] sm:$0xff] }
 0x52e   : > { %11261 = vmatprep.mubr.f32.mxu1 %v8755_v2  ;;  %11605 = vmatprep.mubr.f32.mxu0 %v15830_v13  ;;  %v15848_v2 = vld [vmem:[%s15597_s19 + $0x1a9] sm:$0xff] }
 0x52f   : > { %12351 = vmatprep.subr.bf16.mxu1 %v12350_v51 }
 0x530   : > { %11262 = vmatmul.mubr.f32.gmra.mrb[2].mxu1 %v8756_v40  ;;  %v5879_v40 = vld [vmem:[#allocation15 + $0x1c8] sm:$0xff] }
 0x531   : > { %11606 = vmatmul.mubr.f32.gmra.mrb[18].mxu0 %v15838_v61  ;;  %11264 = vmatprep.mubr.f32.mxu1 %v8757_v39  ;;  %v8760_v39 = vld [vmem:[%s15597_s19 + $0x125] sm:$0xff]  ;;  %v12362_v52 = vpack.c.bf16 %v5879_v40, %v5878_v31 }
 0x532   : > { %11608 = vmatprep.mubr.f32.mxu0 %v15842_v5  ;;  %12353 = vmatpush3.bf16.msra.mxu1 %v12350_v51  ;;  %v8761_v51 = vld [vmem:[%s15597_s19 + $0x12d] sm:$0xff]  ;;  %v5882_v40 = vld [vmem:[#allocation15 + $0x1e0] sm:$0xff] }
 0x533   : > { %12355 = vmatprep.subr.bf16.mxu1 %v12354_v41 }
 0x534   : > { %11265 = vmatmul.mubr.f32.gmra.mrb[4].mxu1 %v8758_v26  ;;  %v5881_v26 = vld [vmem:[#allocation15 + $0x1d8] sm:$0xff] }
 0x535   : > { %11609 = vmatmul.mubr.f32.gmra.mrb[20].mxu0 %v15848_v2  ;;  %11267 = vmatprep.mubr.f32.mxu1 %v8759_v25  ;;  %v8762_v25 = vld [vmem:[%s15597_s19 + $0x135] sm:$0xff]  ;;  %v12366_v31 = vpack.c.bf16 %v5881_v26, %v5880_v11 }
 0x536   : > { %11611 = vmatprep.mubr.f32.mxu0 %v15852_v16  ;;  %12357 = vmatpush3.bf16.msra.mxu1 %v12354_v41  ;;  %v8763_v41 = vld [vmem:[%s15597_s19 + $0x13d] sm:$0xff]  ;;  %v5884_v26 = vld [vmem:[#allocation15 + $0x1f0] sm:$0xff] }
 0x537   : > { %12359 = vmatprep.subr.bf16.mxu1 %v12358_v36 }
 0x538   : > { %11268 = vmatmul.mubr.f32.gmra.mrb[6].mxu1 %v8760_v39  ;;  %v5883_v39 = vld [vmem:[#allocation15 + $0x1e8] sm:$0xff] }
 0x539   : > { %11612 = vmatmul.mubr.f32.gmra.mrb[22].mxu0 %v15858_v29  ;;  %11270 = vmatprep.mubr.f32.mxu1 %v8761_v51  ;;  %v8764_v51 = vld [vmem:[%s15597_s19 + $0x145] sm:$0xff]  ;;  %v12370_v11 = vpack.c.bf16 %v5883_v39, %v5882_v40 }
 0x53a   : > { %11614 = vmatprep.mubr.f32.mxu0 %v15862_v47  ;;  %12361 = vmatpush3.bf16.msra.mxu1 %v12358_v36  ;;  %v8765_v36 = vld [vmem:[%s15597_s19 + $0x14d] sm:$0xff]  ;;  %v5318_v39 = vld [vmem:[#allocation15 + $0x80] sm:$0xff] }
 0x53b   : > { %12363 = vmatprep.subr.bf16.mxu1 %v12362_v52 }
 0x53c   : > { %11271 = vmatmul.mubr.f32.gmra.mrb[8].mxu1 %v8762_v25  ;;  %v5885_v25 = vld [vmem:[#allocation15 + $0x1f8] sm:$0xff] }
 0x53d   : > { %11615 = vmatmul.mubr.f32.gmra.mrb[24].mxu0 %v15868_v14  ;;  %11273 = vmatprep.mubr.f32.mxu1 %v8763_v41  ;;  %v8766_v41 = vld [vmem:[%s15597_s19 + $0x155] sm:$0xff]  ;;  %v12374_v40 = vpack.c.bf16 %v5885_v25, %v5884_v26 }
 0x53e   : > { %11617 = vmatprep.mubr.f32.mxu0 %v15872_v0  ;;  %12365 = vmatpush3.bf16.msra.mxu1 %v12362_v52  ;;  %v15892_v52 = vld [vmem:[%s15597_s19 + $0x1f1] sm:$0xff] }
 0x53f   : > { %12367 = vmatprep.subr.bf16.mxu1 %v12366_v31  ;;  %v7297_v26 = vld [vmem:[#allocation15 + $0x390] sm:$0xff]  ;;  %v7298_v25 = vld [vmem:[#allocation15 + $0x398] sm:$0xff] }
 0x540   : > { %11274 = vmatmul.mubr.f32.gmra.mrb[10].mxu1 %v8764_v51  ;;  %v5319_v51 = vld [vmem:[#allocation15 + $0x88] sm:$0xff]  ;;  %v12510_v59 = vpack.c.bf16 %v7298_v25, %v7297_v26  ;;  %v8774_v26 = vld [vmem:[%s15597_s19 + $0x195] sm:$0xff] }
 0x541   : > { %11618 = vmatmul.mubr.f32.gmra.mrb[26].mxu0 %v15878_v27  ;;  %11276 = vmatprep.mubr.f32.mxu1 %v8765_v36  ;;  %v8768_v36 = vld [vmem:[%s15597_s19 + $0x165] sm:$0xff] }
 0x542   : > { %11620 = vmatprep.mubr.f32.mxu0 %v15882_v56  ;;  %12369 = vmatpush3.bf16.msra.mxu1 %v12366_v31  ;;  %v15901_v31 = vpack.c.bf16 %v5319_v51, %v5318_v39  ;;  %v7300_v39 = vld [vmem:[#allocation15 + $0x3a8] sm:$0xff] }
 0x543   : > { %12371 = vmatprep.subr.bf16.mxu1 %v12370_v11  ;;  %v8772_v51 = vld [vmem:[%s15597_s19 + $0x185] sm:$0xff] }
 0x544   : > { %11277 = vmatmul.mubr.f32.gmra.mrb[12].mxu1 %v8766_v41  ;;  %v8770_v41 = vld [vmem:[%s15597_s19 + $0x175] sm:$0xff]  ;;  %v7304_v25 = vld [vmem:[#allocation15 + $0x3c8] sm:$0xff] }
 0x545   : > { %11621 = vmatmul.mubr.f32.gmra.mrb[28].mxu0 %v15888_v10  ;;  %11279 = vmatprep.mubr.f32.mxu1 %v8767_v9  ;;  %v8771_v9 = vld [vmem:[%s15597_s19 + $0x17d] sm:$0xff] }
 0x546   : > { %11623 = vmatprep.mubr.f32.mxu0 %v15892_v52  ;;  %12373 = vmatpush3.bf16.msra.mxu1 %v12370_v11  ;;  %v7299_v11 = vld [vmem:[#allocation15 + $0x3a0] sm:$0xff] }
 0x547   : > { %12375 = vmatprep.subr.bf16.mxu1 %v12374_v40 }
 0x548   : > { %11280 = vmatmul.mubr.f32.gmra.mrb[14].mxu1 %v8768_v36  ;;  %v7302_v36 = vld [vmem:[#allocation15 + $0x3b8] sm:$0xff] }
 0x549   : > { %11624 = vmatmul.mubr.f32.gmra.mrb[30].mxu0 %v15898_v24  ;;  %11282 = vmatprep.mubr.f32.mxu1 %v8769_v34  ;;  %v8773_v34 = vld [vmem:[%s15597_s19 + $0x18d] sm:$0xff] }
 0x54a   : > { %11658 = vmatprep.mubr.f32.mxu0 %v15707_v17  ;;  %12377 = vmatpush3.bf16.msra.mxu1 %v12374_v40  ;;  %v12514_v17 = vpack.c.bf16 %v7300_v39, %v7299_v11  ;;  %v7301_v40 = vld [vmem:[#allocation15 + $0x3b0] sm:$0xff] }
 0x54b   : > { %12379 = vmatprep.subr.bf16.mxu1 %v15901_v31  ;;  %v8778_v11 = vld [vmem:[%s15597_s19 + $0x1b5] sm:$0xff] }
 0x54c   : > { %11283 = vmatmul.mubr.f32.gmra.mrb[16].mxu1 %v8770_v41  ;;  %v8776_v41 = vld [vmem:[%s15597_s19 + $0x1a5] sm:$0xff] }
 0x54d   : > { %11659 = vmatmul.mubr.f32.vlgmr.msra.gmra.mrb[0].mxu0 %v15717_v19  ;;  %11285 = vmatprep.mubr.f32.mxu1 %v8771_v9  ;;  %v8775_v19 = vld [vmem:[%s15597_s19 + $0x19d] sm:$0xff] }
 0x54e   : > { %12509 = vmatpush3.bf16.msra.mxu0 %v15819_v60  ;;  %11661 = vmatprep.mubr.f32.mxu0 %v15723_v37  ;;  %v12518_v60 = vpack.c.bf16 %v7302_v36, %v7301_v40  ;;  %v7303_v37 = vld [vmem:[#allocation15 + $0x3c0] sm:$0xff]  ;;  %v7310_v40 = vld [vmem:[#allocation15 + $0x3f8] sm:$0xff] }
 0x54f   : > { %12511 = vmatprep.subr.bf16.mxu0 %v12510_v59  ;;  %v12522_v9 = vpack.c.bf16 %v7304_v25, %v7303_v37  ;;  %v8782_v36 = vld [vmem:[%s15597_s19 + $0x1d5] sm:$0xff] }
 0x550   : > { %11286 = vmatmul.mubr.f32.gmra.mrb[18].mxu1 %v8772_v51  ;;  %v7308_v51 = vld [vmem:[#allocation15 + $0x3e8] sm:$0xff]  ;;  %v5320_v37 = vld [vmem:[#allocation15 + $0x90] sm:$0xff] }
 0x551   : > { %11662 = vmatmul.mubr.f32.gmra.mrb[2].mxu0 %v15733_v50  ;;  %11288 = vmatprep.mubr.f32.mxu1 %v8773_v34  ;;  %v8777_v50 = vld [vmem:[%s15597_s19 + $0x1ad] sm:$0xff]  ;;  %v8780_v34 = vld [vmem:[%s15597_s19 + $0x1c5] sm:$0xff] }
 0x552   : > { %11664 = vmatprep.mubr.f32.mxu0 %v15739_v12  ;;  %12513 = vmatpush3.bf16.msra.mxu0 %v12510_v59  ;;  %v7305_v59 = vld [vmem:[#allocation15 + $0x3d0] sm:$0xff]  ;;  %v7306_v12 = vld [vmem:[#allocation15 + $0x3d8] sm:$0xff] }
 0x553   : > { %12515 = vmatprep.subr.bf16.mxu0 %v12514_v17  ;;  %v12526_v39 = vpack.c.bf16 %v7306_v12, %v7305_v59  ;;  %v8991_v59 = vld [vmem:[%s15597_s19 + $0x14a] sm:$0xff]  ;;  %v8992_v12 = vld [vmem:[%s15597_s19 + $0x152] sm:$0xff] }
 0x554   : > { %11289 = vmatmul.mubr.f32.gmra.mrb[20].mxu1 %v8774_v26  ;;  %v8783_v26 = vld [vmem:[%s15597_s19 + $0x1dd] sm:$0xff] }
 0x555   : > { %11665 = vmatmul.mubr.f32.gmra.mrb[4].mxu0 %v15749_v55  ;;  %11291 = vmatprep.mubr.f32.mxu1 %v8775_v19  ;;  %v8779_v55 = vld [vmem:[%s15597_s19 + $0x1bd] sm:$0xff]  ;;  %v7604_v19 = vld [vmem:[#allocation15 + $0x408] sm:$0xff] }
 0x556   : > { %11667 = vmatprep.mubr.f32.mxu0 %v15755_v48  ;;  %12517 = vmatpush3.bf16.msra.mxu0 %v12514_v17  ;;  %v7307_v48 = vld [vmem:[#allocation15 + $0x3e0] sm:$0xff] }
 0x557   : > { %12519 = vmatprep.subr.bf16.mxu0 %v12518_v60  ;;  %v12530_v17 = vpack.c.bf16 %v7308_v51, %v7307_v48  ;;  %v7614_v48 = vld [vmem:[#allocation15 + $0x458] sm:$0xff] }
 0x558   : > { %11292 = vmatmul.mubr.f32.gmra.mrb[22].mxu1 %v8776_v41  ;;  %v16584_v41 = vld [vmem:[#allocation79_spill] sm:$0xff]  ;;  %v16587_v51 = vld [vmem:[#allocation82_spill] sm:$0xff] }
 0x559   : > { %11668 = vmatmul.mubr.f32.gmra.mrb[6].mxu0 %v15765_v3  ;;  %11294 = vmatprep.mubr.f32.mxu1 %v8777_v50  ;;  %v8781_v3 = vld [vmem:[%s15597_s19 + $0x1cd] sm:$0xff]  ;;  %v7611_v50 = vld [vmem:[#allocation15 + $0x440] sm:$0xff] }
 0x55a   : > { %11670 = vmatprep.mubr.f32.mxu0 %v15771_v22  ;;  %12521 = vmatpush3.bf16.msra.mxu0 %v12518_v60  ;;  %v7309_v22 = vld [vmem:[#allocation15 + $0x3f0] sm:$0xff]  ;;  %v8784_v60 = vld [vmem:[%s15597_s19 + $0x1e5] sm:$0xff] }
 0x55b   : > { %12523 = vmatprep.subr.bf16.mxu0 %v12522_v9 }
 0x55c   : > { %11295 = vmatmul.mubr.f32.gmra.mrb[24].mxu1 %v8778_v11 }
 0x55d   : > { %11671 = vmatmul.mubr.f32.gmra.mrb[8].mxu0 %v15781_v28  ;;  %11297 = vmatprep.mubr.f32.mxu1 %v8779_v55  ;;  %v12534_v28 = vpack.c.bf16 %v7310_v40, %v7309_v22  ;;  %v16586_v55 = vld [vmem:[#allocation81_spill] sm:$0xff]  ;;  %v16588_v22 = vld [vmem:[#allocation83_spill] sm:$0xff] }
 0x55e   : > { %11673 = vmatprep.mubr.f32.mxu0 %v15787_v18  ;;  %12525 = vmatpush3.bf16.msra.mxu0 %v12522_v9  ;;  %v7603_v18 = vld [vmem:[#allocation15 + $0x400] sm:$0xff]  ;;  %v7612_v9 = vld [vmem:[#allocation15 + $0x448] sm:$0xff] }
 0x55f   : > { %12527 = vmatprep.subr.bf16.mxu0 %v12526_v39  ;;  %v12554_v11 = vpack.c.bf16 %v7612_v9, %v7611_v50  ;;  %v7615_v40 = vld [vmem:[#allocation15 + $0x460] sm:$0xff] }
 0x560   : > { %11298 = vmatmul.mubr.f32.gmra.mrb[26].mxu1 %v8780_v34  ;;  %v8993_v34 = vld [vmem:[%s15597_s19 + $0x15a] sm:$0xff]  ;;  %v9014_v9 = vld [vmem:[%s15597_s19 + $0x202] sm:$0xff] }
 0x561   : > { %11674 = vmatmul.mubr.f32.gmra.mrb[10].mxu0 %v15797_v33  ;;  %11300 = vmatprep.mubr.f32.mxu1 %v8781_v3  ;;  %v15936_v33 = vpack.c.bf16 %v7604_v19, %v7603_v18  ;;  %v8994_v3 = vld [vmem:[%s15597_s19 + $0x162] sm:$0xff]  ;;  %v8996_v18 = vld [vmem:[%s15597_s19 + $0x172] sm:$0xff] }
 0x562   : > { %11676 = vmatprep.mubr.f32.mxu0 %v15803_v20  ;;  %12529 = vmatpush3.bf16.msra.mxu0 %v12526_v39  ;;  %v5321_v20 = vld [vmem:[#allocation15 + $0x98] sm:$0xff]  ;;  %v7613_v39 = vld [vmem:[#allocation15 + $0x450] sm:$0xff] }
 0x563   : > { %12531 = vmatprep.subr.bf16.mxu0 %v12530_v17  ;;  %v12382_v25 = vpack.c.bf16 %v5321_v20, %v5320_v37  ;;  %v7618_v37 = vld [vmem:[#allocation15 + $0x478] sm:$0xff] }
 0x564   : > { %11301 = vmatmul.mubr.f32.gmra.mrb[28].mxu1 %v8782_v36  ;;  %v7616_v36 = vld [vmem:[#allocation15 + $0x468] sm:$0xff]  ;;  %v16591_v20 = vld [vmem:[#allocation86_spill] sm:$0xff] }
 0x565   : > { %11677 = vmatmul.mubr.f32.gmra.mrb[12].mxu0 %v15813_v44  ;;  %11303 = vmatprep.mubr.f32.mxu1 %v8783_v26  ;;  %v5322_v44 = vld [vmem:[#allocation15 + $0xa0] sm:$0xff]  ;;  %v16589_v26 = vld [vmem:[#allocation84_spill] sm:$0xff]  ;;  %v12562_v19 = vpack.c.bf16 %v7616_v36, %v7615_v40  ;;  %v9021_v36 = vld [vmem:[%s15597_s19 + $0x133] sm:$0xff] }
 0x566   : > { %11679 = vmatprep.mubr.f32.mxu0 %v15817_v63  ;;  %12533 = vmatpush3.bf16.msra.mxu0 %v12530_v17  ;;  %v5323_v63 = vld [vmem:[#allocation15 + $0xa8] sm:$0xff]  ;;  %v12558_v17 = vpack.c.bf16 %v7614_v48, %v7613_v39  ;;  %v8800_v50 = vld [vmem:[%s15597_s19 + $0x15e] sm:$0xff]  ;;  %v16599_v39 = vld [vmem:[#allocation77_spill] sm:$0xff] }
 0x567   : > { %12535 = vmatprep.subr.bf16.mxu0 %v12534_v28  ;;  %v8803_v48 = vld [vmem:[%s15597_s19 + $0x176] sm:$0xff]  ;;  %v8806_v40 = vld [vmem:[%s15597_s19 + $0x18e] sm:$0xff] }
 0x568   : > { %11304 = vmatmul.mubr.f32.gmra.mrb[30].mxu1 %v8784_v60  ;;  %v16590_v60 = vld [vmem:[#allocation85_spill] sm:$0xff] }
 0x569   : > { %11680 = vmatmul.mubr.f32.gmra.mrb[14].mxu0 %v15826_v62  ;;  %11338 = vmatprep.mubr.f32.mxu1 %v15623_v4  ;;  %v12386_v62 = vpack.c.bf16 %v5323_v63, %v5322_v44  ;;  %v5324_v4 = vld [vmem:[#allocation15 + $0xb0] sm:$0xff]  ;;  %v8998_v63 = vld [vmem:[%s15597_s19 + $0x182] sm:$0xff] }
 0x56a   : > { %11682 = vmatprep.mubr.f32.mxu0 %v15830_v13  ;;  %12537 = vmatpush3.bf16.msra.mxu0 %v12534_v28  ;;  %v5325_v13 = vld [vmem:[#allocation15 + $0xb8] sm:$0xff]  ;;  %v8995_v28 = vld [vmem:[%s15597_s19 + $0x16a] sm:$0xff] }
 0x56b   : > { %12539 = vmatprep.subr.bf16.mxu0 %v15936_v33  ;;  %v8882_v44 = vld [vmem:[%s15597_s19 + $0x1ef] sm:$0xff] }
 0x56c   : > { %11339 = vmatmul.mubr.f32.vlgmr.msra.gmra.mrb[0].mxu1 %v15627_v43  ;;  %v12390_v43 = vpack.c.bf16 %v5325_v13, %v5324_v4  ;;  %v16592_v4 = vld [vmem:[#allocation87_spill] sm:$0xff]  ;;  %v8883_v13 = vld [vmem:[%s15597_s19 + $0x1f7] sm:$0xff] }
 0x56d   : > { %11683 = vmatmul.mubr.f32.gmra.mrb[16].mxu0 %v15838_v61  ;;  %12381 = vmatpush3.bf16.msra.mxu1 %v15901_v31  ;;  %v5327_v61 = vld [vmem:[#allocation15 + $0xc8] sm:$0xff] }
 0x56e   : > { %11341 = vmatprep.mubr.f32.mxu1 %v15632_v30  ;;  %11685 = vmatprep.mubr.f32.mxu0 %v15842_v5  ;;  %v5326_v30 = vld [vmem:[#allocation15 + $0xc0] sm:$0xff]  ;;  %v7609_v5 = vld [vmem:[#allocation15 + $0x430] sm:$0xff] }
 0x56f   : > { %12383 = vmatprep.subr.bf16.mxu1 %v12382_v25 }
 0x570   : > { %11342 = vmatmul.mubr.f32.gmra.mrb[2].mxu1 %v15638_v54  ;;  %v12394_v54 = vpack.c.bf16 %v5327_v61, %v5326_v30  ;;  %v8786_v30 = vld [vmem:[%s15597_s19 + $0xee] sm:$0xff] }
 0x571   : > { %11686 = vmatmul.mubr.f32.gmra.mrb[18].mxu0 %v15848_v2  ;;  %11344 = vmatprep.mubr.f32.mxu1 %v15642_v58  ;;  %v5328_v58 = vld [vmem:[#allocation15 + $0xd0] sm:$0xff]  ;;  %v7610_v2 = vld [vmem:[#allocation15 + $0x438] sm:$0xff] }
 0x572   : > { %11688 = vmatprep.mubr.f32.mxu0 %v15852_v16  ;;  %12385 = vmatpush3.bf16.msra.mxu1 %v12382_v25  ;;  %v5329_v16 = vld [vmem:[#allocation15 + $0xd8] sm:$0xff]  ;;  %v12550_v31 = vpack.c.bf16 %v7610_v2, %v7609_v5  ;;  %v8797_v5 = vld [vmem:[%s15597_s19 + $0x146] sm:$0xff] }
 0x573   : > { %12387 = vmatprep.subr.bf16.mxu1 %v12386_v62  ;;  %v8997_v25 = vld [vmem:[%s15597_s19 + $0x17a] sm:$0xff]  ;;  %v9000_v61 = vld [vmem:[%s15597_s19 + $0x192] sm:$0xff]  ;;  %v9011_v2 = vld [vmem:[%s15597_s19 + $0x1ea] sm:$0xff] }
 0x574   : > { %11345 = vmatmul.mubr.f32.gmra.mrb[4].mxu1 %v15648_v46  ;;  %v5330_v46 = vld [vmem:[#allocation15 + $0xe0] sm:$0xff] }
 0x575   : > { %11689 = vmatmul.mubr.f32.gmra.mrb[20].mxu0 %v15858_v29  ;;  %11347 = vmatprep.mubr.f32.mxu1 %v15652_v1  ;;  %v12398_v29 = vpack.c.bf16 %v5329_v16, %v5328_v58  ;;  %v5331_v1 = vld [vmem:[#allocation15 + $0xe8] sm:$0xff]  ;;  %v9001_v58 = vld [vmem:[%s15597_s19 + $0x19a] sm:$0xff] }
 0x576   : > { %11691 = vmatprep.mubr.f32.mxu0 %v15862_v47  ;;  %12389 = vmatpush3.bf16.msra.mxu1 %v12386_v62  ;;  %v8788_v16 = vld [vmem:[%s15597_s19 + $0xfe] sm:$0xff] }
 0x577   : > { %12391 = vmatprep.subr.bf16.mxu1 %v12390_v43 }
 0x578   : > { %11348 = vmatmul.mubr.f32.gmra.mrb[6].mxu1 %v15658_v38  ;;  %v12402_v38 = vpack.c.bf16 %v5331_v1, %v5330_v46  ;;  %v8789_v46 = vld [vmem:[%s15597_s19 + $0x106] sm:$0xff] }
 0x579   : > { %11692 = vmatmul.mubr.f32.gmra.mrb[22].mxu0 %v15868_v14  ;;  %11350 = vmatprep.mubr.f32.mxu1 %v15662_v32  ;;  %v5332_v32 = vld [vmem:[#allocation15 + $0xf0] sm:$0xff]  ;;  %v7608_v14 = vld [vmem:[#allocation15 + $0x428] sm:$0xff] }
 0x57a   : > { %11694 = vmatprep.mubr.f32.mxu0 %v15872_v0  ;;  %12393 = vmatpush3.bf16.msra.mxu1 %v12390_v43  ;;  %v5333_v0 = vld [vmem:[#allocation15 + $0xf8] sm:$0xff]  ;;  %v8999_v43 = vld [vmem:[%s15597_s19 + $0x18a] sm:$0xff] }
 0x57b   : > { %12395 = vmatprep.subr.bf16.mxu1 %v12394_v54  ;;  %v9003_v1 = vld [vmem:[%s15597_s19 + $0x1aa] sm:$0xff] }
 0x57c   : > { %11351 = vmatmul.mubr.f32.gmra.mrb[8].mxu1 %v15668_v57  ;;  %v8981_v57 = vld [vmem:[%s15597_s19 + $0x201] sm:$0xff] }
 0x57d   : > { %11695 = vmatmul.mubr.f32.gmra.mrb[24].mxu0 %v15878_v27  ;;  %11353 = vmatprep.mubr.f32.mxu1 %v15672_v23  ;;  %v12406_v23 = vpack.c.bf16 %v5333_v0, %v5332_v32  ;;  %v9004_v32 = vld [vmem:[%s15597_s19 + $0x1b2] sm:$0xff]  ;;  %v16593_v0 = vld [vmem:[#allocation71_spill] sm:$0xff] }
 0x57e   : > { %11697 = vmatprep.mubr.f32.mxu0 %v15882_v56  ;;  %12397 = vmatpush3.bf16.msra.mxu1 %v12394_v54  ;;  %v7606_v56 = vld [vmem:[#allocation15 + $0x418] sm:$0xff] }
 0x57f   : > { %12399 = vmatprep.subr.bf16.mxu1 %v12398_v29  ;;  %v8787_v54 = vld [vmem:[%s15597_s19 + $0xf6] sm:$0xff] }
 0x580   : > { %11354 = vmatmul.mubr.f32.gmra.mrb[10].mxu1 %v15678_v49  ;;  %v8982_v49 = vld [vmem:[%s15597_s19 + $0x209] sm:$0xff] }
 0x581   : > { %11698 = vmatmul.mubr.f32.gmra.mrb[26].mxu0 %v15888_v10  ;;  %11356 = vmatprep.mubr.f32.mxu1 %v15682_v8  ;;  %v8984_v10 = vld [vmem:[%s15597_s19 + $0x112] sm:$0xff] }
 0x582   : > { %11700 = vmatprep.mubr.f32.mxu0 %v15892_v52  ;;  %12401 = vmatpush3.bf16.msra.mxu1 %v12398_v29  ;;  %v7605_v8 = vld [vmem:[#allocation15 + $0x410] sm:$0xff]  ;;  %v8989_v52 = vld [vmem:[%s15597_s19 + $0x13a] sm:$0xff]  ;;  %v9002_v29 = vld [vmem:[%s15597_s19 + $0x1a2] sm:$0xff] }
 0x583   : > { %12403 = vmatprep.subr.bf16.mxu1 %v12402_v38  ;;  %v12542_v27 = vpack.c.bf16 %v7606_v56, %v7605_v8  ;;  %v8793_v8 = vld [vmem:[%s15597_s19 + $0x126] sm:$0xff] }
 0x584   : > { %11357 = vmatmul.mubr.f32.gmra.mrb[12].mxu1 %v15688_v6  ;;  %v8985_v6 = vld [vmem:[%s15597_s19 + $0x11a] sm:$0xff]  ;;  %v9007_v56 = vld [vmem:[%s15597_s19 + $0x1ca] sm:$0xff] }
 0x585   : > { %11701 = vmatmul.mubr.f32.gmra.mrb[28].mxu0 %v15898_v24  ;;  %11359 = vmatprep.mubr.f32.mxu1 %v15692_v35  ;;  %v8986_v24 = vld [vmem:[%s15597_s19 + $0x122] sm:$0xff] }
 0x586   : > { %11703 = vmatprep.mubr.f32.mxu0 %v8981_v57  ;;  %12405 = vmatpush3.bf16.msra.mxu1 %v12402_v38  ;;  %v7607_v35 = vld [vmem:[#allocation15 + $0x420] sm:$0xff]  ;;  %v8790_v38 = vld [vmem:[%s15597_s19 + $0x10e] sm:$0xff]  ;;  %v8791_v57 = vld [vmem:[%s15597_s19 + $0x116] sm:$0xff] }
 0x587   : > { %12407 = vmatprep.subr.bf16.mxu1 %v12406_v23  ;;  %v12546_v47 = vpack.c.bf16 %v7608_v14, %v7607_v35  ;;  %v8795_v35 = vld [vmem:[%s15597_s19 + $0x136] sm:$0xff] }
 0x588   : > { %11360 = vmatmul.mubr.f32.gmra.mrb[14].mxu1 %v15700_v45  ;;  %v8987_v45 = vld [vmem:[%s15597_s19 + $0x12a] sm:$0xff]  ;;  %v9009_v14 = vld [vmem:[%s15597_s19 + $0x1da] sm:$0xff] }
 0x589   : > { %11704 = vmatmul.mubr.f32.gmra.mrb[30].mxu0 %v8982_v49  ;;  %11362 = vmatprep.mubr.f32.mxu1 %v15704_v15  ;;  %v8988_v15 = vld [vmem:[%s15597_s19 + $0x132] sm:$0xff]  ;;  %v9006_v49 = vld [vmem:[%s15597_s19 + $0x1c2] sm:$0xff] }
 0x58a   : > { %11738 = vmatprep.mubr.f32.mxu0 %v8984_v10  ;;  %12409 = vmatpush3.bf16.msra.mxu1 %v12406_v23  ;;  %v9005_v23 = vld [vmem:[%s15597_s19 + $0x1ba] sm:$0xff]  ;;  %v16594_v10 = vld [vmem:[#allocation72_spill] sm:$0xff] }
 0x58b   : > { %12842 = vmatprep.subr.bf16.mxu1 %v15580_v7 }
 0x58c   : > { %11363 = vmatmul.mubr.f32.gmra.mrb[16].mxu1 %v15713_v53  ;;  %v16583_v53 = vld [vmem:[#allocation78_spill] sm:$0xff] }
 0x58d   : > { %11739 = vmatmul.mubr.f32.vlgmr.msra.gmra.mrb[0].mxu0 %v8985_v6  ;;  %11365 = vmatprep.mubr.f32.mxu1 %v15720_v21  ;;  %v8990_v21 = vld [vmem:[%s15597_s19 + $0x142] sm:$0xff]  ;;  %v8794_v6 = vld [vmem:[%s15597_s19 + $0x12e] sm:$0xff] }
 0x58e   : > { %12541 = vmatpush3.bf16.msra.mxu0 %v15936_v33  ;;  %11741 = vmatprep.mubr.f32.mxu0 %v8986_v24  ;;  %v7617_v33 = vld [vmem:[#allocation15 + $0x470] sm:$0xff] }
 0x58f   : > { %12543 = vmatprep.subr.bf16.mxu0 %v12542_v27  ;;  %v12566_v62 = vpack.c.bf16 %v7618_v37, %v7617_v33  ;;  %v9008_v24 = vld [vmem:[%s15597_s19 + $0x1d2] sm:$0xff] }
 0x590   : > { %11366 = vmatmul.mubr.f32.gmra.mrb[18].mxu1 %v15729_v42  ;;  %v16585_v42 = vld [vmem:[#allocation80_spill] sm:$0xff] }
 0x591   : > { %11742 = vmatmul.mubr.f32.gmra.mrb[2].mxu0 %v8987_v45  ;;  %11368 = vmatprep.mubr.f32.mxu1 %v16583_v53  ;;  %v8796_v45 = vld [vmem:[%s15597_s19 + $0x13e] sm:$0xff]  ;;  %v8798_v53 = vld [vmem:[%s15597_s19 + $0x14e] sm:$0xff] }
 0x592   : > { %11744 = vmatprep.mubr.f32.mxu0 %v8988_v15  ;;  %12545 = vmatpush3.bf16.msra.mxu0 %v12542_v27  ;;  %v16595_v27 = vld [vmem:[#allocation73_spill] sm:$0xff]  ;;  %v9010_v15 = vld [vmem:[%s15597_s19 + $0x1e2] sm:$0xff] }
 0x593   : > { %12547 = vmatprep.subr.bf16.mxu0 %v12546_v47  ;;  %v9024_v33 = vld [vmem:[%s15597_s19 + $0x14b] sm:$0xff] }
 0x594   : > { %11369 = vmatmul.mubr.f32.gmra.mrb[20].mxu1 %v16584_v41  ;;  %v9013_v41 = vld [vmem:[%s15597_s19 + $0x1fa] sm:$0xff]  ;;  %v8810_v37 = vld [vmem:[%s15597_s19 + $0x1ae] sm:$0xff] }
 0x595   : > { %11745 = vmatmul.mubr.f32.gmra.mrb[4].mxu0 %v8989_v52  ;;  %11371 = vmatprep.mubr.f32.mxu1 %v16585_v42  ;;  %v9012_v52 = vld [vmem:[%s15597_s19 + $0x1f2] sm:$0xff]  ;;  %v16598_v42 = vld [vmem:[#allocation76_spill] sm:$0xff] }
 0x596   : > { %11747 = vmatprep.mubr.f32.mxu0 %v8990_v21  ;;  %12549 = vmatpush3.bf16.msra.mxu0 %v12546_v47  ;;  %v16596_v47 = vld [vmem:[#allocation74_spill] sm:$0xff]  ;;  %v16597_v21 = vld [vmem:[#allocation75_spill] sm:$0xff] }
 0x597   : > { %12551 = vmatprep.subr.bf16.mxu0 %v12550_v31 }
 0x598   : > { %11372 = vmatmul.mubr.f32.gmra.mrb[22].mxu1 %v16586_v55  ;;  %v9017_v55 = vld [vmem:[%s15597_s19 + $0x113] sm:$0xff] }
 0x599   : > { %11748 = vmatmul.mubr.f32.gmra.mrb[6].mxu0 %v8991_v59  ;;  %11374 = vmatprep.mubr.f32.mxu1 %v16587_v51  ;;  %v8801_v59 = vld [vmem:[%s15597_s19 + $0x166] sm:$0xff]  ;;  %v9018_v51 = vld [vmem:[%s15597_s19 + $0x11b] sm:$0xff] }
 0x59a   : > { %11750 = vmatprep.mubr.f32.mxu0 %v8992_v12  ;;  %12553 = vmatpush3.bf16.msra.mxu0 %v12550_v31  ;;  %v8799_v31 = vld [vmem:[%s15597_s19 + $0x156] sm:$0xff]  ;;  %v9015_v12 = vld [vmem:[%s15597_s19 + $0x20a] sm:$0xff] }
 0x59b   : > { %12555 = vmatprep.subr.bf16.mxu0 %v12554_v11 }
 0x59c   : > { %11375 = vmatmul.mubr.f32.gmra.mrb[24].mxu1 %v16588_v22  ;;  %v9020_v22 = vld [vmem:[%s15597_s19 + $0x12b] sm:$0xff] }
 0x59d   : > { %11751 = vmatmul.mubr.f32.gmra.mrb[8].mxu0 %v8993_v34  ;;  %11377 = vmatprep.mubr.f32.mxu1 %v16589_v26  ;;  %v8804_v34 = vld [vmem:[%s15597_s19 + $0x17e] sm:$0xff]  ;;  %v8807_v26 = vld [vmem:[%s15597_s19 + $0x196] sm:$0xff] }
 0x59e   : > { %11753 = vmatprep.mubr.f32.mxu0 %v8994_v3  ;;  %12557 = vmatpush3.bf16.msra.mxu0 %v12554_v11  ;;  %v8802_v11 = vld [vmem:[%s15597_s19 + $0x16e] sm:$0xff]  ;;  %v9019_v3 = vld [vmem:[%s15597_s19 + $0x123] sm:$0xff] }
 0x59f   : > { %12559 = vmatprep.subr.bf16.mxu0 %v12558_v17 }
 0x5a0   : > { %11378 = vmatmul.mubr.f32.gmra.mrb[26].mxu1 %v16590_v60  ;;  %v8809_v60 = vld [vmem:[%s15597_s19 + $0x1a6] sm:$0xff] }
 0x5a1   : > { %11754 = vmatmul.mubr.f32.gmra.mrb[10].mxu0 %v8995_v28  ;;  %11380 = vmatprep.mubr.f32.mxu1 %v16591_v20  ;;  %v9022_v28 = vld [vmem:[%s15597_s19 + $0x13b] sm:$0xff]  ;;  %v9025_v20 = vld [vmem:[%s15597_s19 + $0x153] sm:$0xff] }
 0x5a2   : > { %11756 = vmatprep.mubr.f32.mxu0 %v8996_v18  ;;  %12561 = vmatpush3.bf16.msra.mxu0 %v12558_v17  ;;  %v8805_v17 = vld [vmem:[%s15597_s19 + $0x186] sm:$0xff]  ;;  %v8808_v18 = vld [vmem:[%s15597_s19 + $0x19e] sm:$0xff] }
 0x5a3   : > { %12563 = vmatprep.subr.bf16.mxu0 %v12562_v19 }
 0x5a4   : > { %11381 = vmatmul.mubr.f32.gmra.mrb[28].mxu1 %v16592_v4  ;;  %v8813_v4 = vld [vmem:[%s15597_s19 + $0x1c6] sm:$0xff] }
 0x5a5   : > { %11757 = vmatmul.mubr.f32.gmra.mrb[12].mxu0 %v8997_v25  ;;  %11383 = vmatprep.mubr.f32.mxu1 %v8882_v44  ;;  %v8811_v25 = vld [vmem:[%s15597_s19 + $0x1b6] sm:$0xff] }
 0x5a6   : > { %11759 = vmatprep.mubr.f32.mxu0 %v8998_v63  ;;  %12565 = vmatpush3.bf16.msra.mxu0 %v12562_v19  ;;  %v9023_v19 = vld [vmem:[%s15597_s19 + $0x143] sm:$0xff]  ;;  %v9026_v44 = vld [vmem:[%s15597_s19 + $0x15b] sm:$0xff] }
 0x5a7   : > { %12567 = vmatprep.subr.bf16.mxu0 %v12566_v62  ;;  %v8812_v63 = vld [vmem:[%s15597_s19 + $0x1be] sm:$0xff] }
 0x5a8   : > { %11384 = vmatmul.mubr.f32.gmra.mrb[30].mxu1 %v8883_v13  ;;  %v9028_v13 = vld [vmem:[%s15597_s19 + $0x16b] sm:$0xff] }
 0x5a9   : > { %11760 = vmatmul.mubr.f32.gmra.mrb[14].mxu0 %v8999_v43  ;;  %11418 = vmatprep.mubr.f32.mxu1 %v8786_v30  ;;  %v8814_v43 = vld [vmem:[%s15597_s19 + $0x1ce] sm:$0xff] }
 0x5aa   : > { %11762 = vmatprep.mubr.f32.mxu0 %v9000_v61  ;;  %12569 = vmatpush3.bf16.msra.mxu0 %v12566_v62  ;;  %v9027_v62 = vld [vmem:[%s15597_s19 + $0x163] sm:$0xff]  ;;  %v9029_v30 = vld [vmem:[%s15597_s19 + $0x173] sm:$0xff] }
 0x5ab   : > { %v8815_v61 = vld [vmem:[%s15597_s19 + $0x1d6] sm:$0xff] }
 0x5ac   : > { %11419 = vmatmul.mubr.f32.vlgmr.msra.gmra.mrb[0].mxu1 %v8787_v54  ;;  %v9030_v54 = vld [vmem:[%s15597_s19 + $0x17b] sm:$0xff] }
 0x5ad   : > { %11763 = vmatmul.mubr.f32.gmra.mrb[16].mxu0 %v9001_v58  ;;  %12850 = vmatpush3.bf16.msra.mxu1 %v15580_v7  ;;  %v8792_v7 = vld [vmem:[%s15597_s19 + $0x11e] sm:$0xff] }
 0x5ae   : > { %11421 = vmatprep.mubr.f32.mxu1 %v8788_v16  ;;  %11765 = vmatprep.mubr.f32.mxu0 %v9002_v29  ;;  %v8816_v58 = vld [vmem:[%s15597_s19 + $0x1de] sm:$0xff]  ;;  %v8817_v29 = vld [vmem:[%s15597_s19 + $0x1e6] sm:$0xff] }
 0x5af   : > { %12843 = vmatprep.subr.bf16.mxu1 %v16593_v0  ;;  %v9031_v16 = vld [vmem:[%s15597_s19 + $0x183] sm:$0xff] }
 0x5b0   : > { %11422 = vmatmul.mubr.f32.gmra.mrb[2].mxu1 %v8789_v46  ;;  %v9032_v46 = vld [vmem:[%s15597_s19 + $0x18b] sm:$0xff] }
 0x5b1   : > { %11766 = vmatmul.mubr.f32.gmra.mrb[18].mxu0 %v9003_v1  ;;  %11424 = vmatprep.mubr.f32.mxu1 %v8790_v38  ;;  %v8901_v1 = vld [vmem:[%s15597_s19 + $0x180] sm:$0xff]  ;;  %v9033_v38 = vld [vmem:[%s15597_s19 + $0x193] sm:$0xff] }
 0x5b2   : > { %11768 = vmatprep.mubr.f32.mxu0 %v9004_v32  ;;  %12851 = vmatpush3.bf16.msra.mxu1 %v16593_v0  ;;  %v8902_v32 = vld [vmem:[%s15597_s19 + $0x188] sm:$0xff]  ;;  %v9034_v0 = vld [vmem:[%s15597_s19 + $0x19b] sm:$0xff] }
 0x5b3   : > { %12844 = vmatprep.subr.bf16.mxu1 %v16594_v10 }
 0x5b4   : > { %11425 = vmatmul.mubr.f32.gmra.mrb[4].mxu1 %v8791_v57  ;;  %v8903_v57 = vld [vmem:[%s15597_s19 + $0x190] sm:$0xff] }
 0x5b5   : > { %11769 = vmatmul.mubr.f32.gmra.mrb[20].mxu0 %v9005_v23  ;;  %11427 = vmatprep.mubr.f32.mxu1 %v8792_v7  ;;  %v9035_v23 = vld [vmem:[%s15597_s19 + $0x1a3] sm:$0xff]  ;;  %v8904_v7 = vld [vmem:[%s15597_s19 + $0x198] sm:$0xff] }
 0x5b6   : > { %11771 = vmatprep.mubr.f32.mxu0 %v9006_v49  ;;  %12852 = vmatpush3.bf16.msra.mxu1 %v16594_v10  ;;  %v9036_v49 = vld [vmem:[%s15597_s19 + $0x1ab] sm:$0xff]  ;;  %v8905_v10 = vld [vmem:[%s15597_s19 + $0x1a0] sm:$0xff] }
 0x5b7   : > { %12845 = vmatprep.subr.bf16.mxu1 %v16595_v27 }
 0x5b8   : > { %11428 = vmatmul.mubr.f32.gmra.mrb[6].mxu1 %v8793_v8  ;;  %v9037_v8 = vld [vmem:[%s15597_s19 + $0x1b3] sm:$0xff] }
 0x5b9   : > { %11772 = vmatmul.mubr.f32.gmra.mrb[22].mxu0 %v9007_v56  ;;  %11430 = vmatprep.mubr.f32.mxu1 %v8794_v6  ;;  %v8906_v56 = vld [vmem:[%s15597_s19 + $0x1a8] sm:$0xff]  ;;  %v9038_v6 = vld [vmem:[%s15597_s19 + $0x1bb] sm:$0xff] }
 0x5ba   : > { %11774 = vmatprep.mubr.f32.mxu0 %v9008_v24  ;;  %12853 = vmatpush3.bf16.msra.mxu1 %v16595_v27  ;;  %v8907_v24 = vld [vmem:[%s15597_s19 + $0x1b0] sm:$0xff]  ;;  %v9039_v27 = vld [vmem:[%s15597_s19 + $0x1c3] sm:$0xff] }
 0x5bb   : > { %12846 = vmatprep.subr.bf16.mxu1 %v16596_v47 }
 0x5bc   : > { %11431 = vmatmul.mubr.f32.gmra.mrb[8].mxu1 %v8795_v35  ;;  %v8908_v35 = vld [vmem:[%s15597_s19 + $0x1b8] sm:$0xff] }
 0x5bd   : > { %11775 = vmatmul.mubr.f32.gmra.mrb[24].mxu0 %v9009_v14  ;;  %11433 = vmatprep.mubr.f32.mxu1 %v8796_v45  ;;  %v9040_v14 = vld [vmem:[%s15597_s19 + $0x1cb] sm:$0xff]  ;;  %v8909_v45 = vld [vmem:[%s15597_s19 + $0x1c0] sm:$0xff] }
 0x5be   : > { %11777 = vmatprep.mubr.f32.mxu0 %v9010_v15  ;;  %12854 = vmatpush3.bf16.msra.mxu1 %v16596_v47  ;;  %v9041_v15 = vld [vmem:[%s15597_s19 + $0x1d3] sm:$0xff]  ;;  %v8910_v47 = vld [vmem:[%s15597_s19 + $0x1c8] sm:$0xff] }
 0x5bf   : > { %12847 = vmatprep.subr.bf16.mxu1 %v16597_v21 }
 0x5c0   : > { %11434 = vmatmul.mubr.f32.gmra.mrb[10].mxu1 %v8797_v5  ;;  %v9042_v5 = vld [vmem:[%s15597_s19 + $0x1db] sm:$0xff] }
 0x5c1   : > { %11778 = vmatmul.mubr.f32.gmra.mrb[26].mxu0 %v9011_v2  ;;  %11436 = vmatprep.mubr.f32.mxu1 %v8798_v53  ;;  %v8911_v2 = vld [vmem:[%s15597_s19 + $0x1d0] sm:$0xff]  ;;  %v9043_v53 = vld [vmem:[%s15597_s19 + $0x1e3] sm:$0xff] }
 0x5c2   : > { %11780 = vmatprep.mubr.f32.mxu0 %v9012_v52  ;;  %12855 = vmatpush3.bf16.msra.mxu1 %v16597_v21  ;;  %v8912_v52 = vld [vmem:[%s15597_s19 + $0x1d8] sm:$0xff]  ;;  %v9044_v21 = vld [vmem:[%s15597_s19 + $0x1eb] sm:$0xff] }
 0x5c3   : > { %12848 = vmatprep.subr.bf16.mxu1 %v16598_v42 }
 0x5c4   : > { %11437 = vmatmul.mubr.f32.gmra.mrb[12].mxu1 %v8799_v31  ;;  %v8913_v31 = vld [vmem:[%s15597_s19 + $0x1e0] sm:$0xff] }
 0x5c5   : > { %11781 = vmatmul.mubr.f32.gmra.mrb[28].mxu0 %v9013_v41  ;;  %11439 = vmatprep.mubr.f32.mxu1 %v8800_v50  ;;  %v9045_v41 = vld [vmem:[%s15597_s19 + $0x1f3] sm:$0xff]  ;;  %v8914_v50 = vld [vmem:[%s15597_s19 + $0x1e8] sm:$0xff] }
 0x5c6   : > { %11783 = vmatprep.mubr.f32.mxu0 %v9014_v9  ;;  %12856 = vmatpush3.bf16.msra.mxu1 %v16598_v42  ;;  %v9046_v9 = vld [vmem:[%s15597_s19 + $0x1fb] sm:$0xff]  ;;  %v8915_v42 = vld [vmem:[%s15597_s19 + $0x1f0] sm:$0xff] }
 0x5c7   : > { %12849 = vmatprep.subr.bf16.mxu1 %v16599_v39 }
 0x5c8   : > { %11440 = vmatmul.mubr.f32.gmra.mrb[14].mxu1 %v8801_v59  ;;  %v9047_v59 = vld [vmem:[%s15597_s19 + $0x203] sm:$0xff] }
 0x5c9   : > { %11784 = vmatmul.mubr.f32.gmra.mrb[30].mxu0 %v9015_v12  ;;  %11442 = vmatprep.mubr.f32.mxu1 %v8802_v11  ;;  %v8916_v12 = vld [vmem:[%s15597_s19 + $0x1f8] sm:$0xff]  ;;  %v9048_v11 = vld [vmem:[%s15597_s19 + $0x20b] sm:$0xff] }
 0x5ca   : > { %11818 = vmatprep.mubr.f32.mxu0 %v9017_v55  ;;  %12857 = vmatpush3.bf16.msra.mxu1 %v16599_v39 }
 0x5cc   : > { %11443 = vmatmul.mubr.f32.gmra.mrb[16].mxu1 %v8803_v48 }
 0x5cd   : > { %11819 = vmatmul.mubr.f32.vlgmr.msra.gmra.mrb[0].mxu0 %v9018_v51  ;;  %11445 = vmatprep.mubr.f32.mxu1 %v8804_v34 }
 0x5ce   : > { %11821 = vmatprep.mubr.f32.mxu0 %v9019_v3 }
 0x5d0   : > { %11446 = vmatmul.mubr.f32.gmra.mrb[18].mxu1 %v8805_v17 }
 0x5d1   : > { %11822 = vmatmul.mubr.f32.gmra.mrb[2].mxu0 %v9020_v22  ;;  %11448 = vmatprep.mubr.f32.mxu1 %v8806_v40 }
 0x5d2   : > { %11824 = vmatprep.mubr.f32.mxu0 %v9021_v36 }
 0x5d4   : > { %11449 = vmatmul.mubr.f32.gmra.mrb[20].mxu1 %v8807_v26 }
 0x5d5   : > { %11825 = vmatmul.mubr.f32.gmra.mrb[4].mxu0 %v9022_v28  ;;  %11451 = vmatprep.mubr.f32.mxu1 %v8808_v18 }
 0x5d6   : > { %11827 = vmatprep.mubr.f32.mxu0 %v9023_v19 }
 0x5d8   : > { %11452 = vmatmul.mubr.f32.gmra.mrb[22].mxu1 %v8809_v60 }
 0x5d9   : > { %11828 = vmatmul.mubr.f32.gmra.mrb[6].mxu0 %v9024_v33  ;;  %11454 = vmatprep.mubr.f32.mxu1 %v8810_v37 }
 0x5da   : > { %11830 = vmatprep.mubr.f32.mxu0 %v9025_v20  ;;  %v7943_v20 = vld [vmem:[%s16135_s21 + $0x8] sm:$0xff] }
 0x5dc   : > { %11455 = vmatmul.mubr.f32.gmra.mrb[24].mxu1 %v8811_v25 }
 0x5dd   : > { %11831 = vmatmul.mubr.f32.gmra.mrb[8].mxu0 %v9026_v44  ;;  %11457 = vmatprep.mubr.f32.mxu1 %v8812_v63  ;;  %v7942_v63 = vld [vmem:[%s16135_s21] sm:$0xff] }
 0x5de   : > { %11833 = vmatprep.mubr.f32.mxu0 %v9027_v62 }
 0x5e0   : > { %11458 = vmatmul.mubr.f32.gmra.mrb[26].mxu1 %v8813_v4 }
 0x5e1   : > { %11834 = vmatmul.mubr.f32.gmra.mrb[10].mxu0 %v9028_v13  ;;  %11460 = vmatprep.mubr.f32.mxu1 %v8814_v43 }
 0x5e2   : > { %11836 = vmatprep.mubr.f32.mxu0 %v9029_v30 }
 0x5e4   : > { %11461 = vmatmul.mubr.f32.gmra.mrb[28].mxu1 %v8815_v61 }
 0x5e5   : > { %11837 = vmatmul.mubr.f32.gmra.mrb[12].mxu0 %v9030_v54  ;;  %11463 = vmatprep.mubr.f32.mxu1 %v8816_v58  ;;  %v7945_v54 = vld [vmem:[%s16135_s21 + $0x18] sm:$0xff] }
 0x5e6   : > { %11839 = vmatprep.mubr.f32.mxu0 %v9031_v16  ;;  %v7944_v16 = vld [vmem:[%s16135_s21 + $0x10] sm:$0xff] }
 0x5e8   : > { %11464 = vmatmul.mubr.f32.gmra.mrb[30].mxu1 %v8817_v29 }
 0x5e9   : > { %11840 = vmatmul.mubr.f32.gmra.mrb[14].mxu0 %v9032_v46  ;;  %11522 = vmatprep.mubr.f32.mxu1 %v8901_v1 }
 0x5ea   : > { %11842 = vmatprep.mubr.f32.mxu0 %v9033_v38 }
 0x5ec   : > { %11523 = vmatmul.mubr.f32.vlgmr.msra.gmra.mrb[16].mxu1 %v8902_v32 }
 0x5ed   : > { %11843 = vmatmul.mubr.f32.gmra.mrb[16].mxu0 %v9034_v0  ;;  %11525 = vmatprep.mubr.f32.mxu1 %v8903_v57 }
 0x5ee   : > { %11845 = vmatprep.mubr.f32.mxu0 %v9035_v23  ;;  %v7947_v23 = vld [vmem:[%s16135_s21 + $0x28] sm:$0xff] }
 0x5f0   : > { %11526 = vmatmul.mubr.f32.gmra.mrb[18].mxu1 %v8904_v7 }
 0x5f1   : > { %11846 = vmatmul.mubr.f32.gmra.mrb[18].mxu0 %v9036_v49  ;;  %11528 = vmatprep.mubr.f32.mxu1 %v8905_v10  ;;  %v7946_v10 = vld [vmem:[%s16135_s21 + $0x20] sm:$0xff] }
 0x5f2   : > { %11848 = vmatprep.mubr.f32.mxu0 %v9037_v8 }
 0x5f4   : > { %11529 = vmatmul.mubr.f32.gmra.mrb[20].mxu1 %v8906_v56 }
 0x5f5   : > { %11849 = vmatmul.mubr.f32.gmra.mrb[20].mxu0 %v9038_v6  ;;  %11531 = vmatprep.mubr.f32.mxu1 %v8907_v24 }
 0x5f6   : > { %11851 = vmatprep.mubr.f32.mxu0 %v9039_v27 }
 0x5f8   : > { %11532 = vmatmul.mubr.f32.gmra.mrb[22].mxu1 %v8908_v35 }
 0x5f9   : > { %11852 = vmatmul.mubr.f32.gmra.mrb[22].mxu0 %v9040_v14  ;;  %11534 = vmatprep.mubr.f32.mxu1 %v8909_v45 }
 0x5fa   : > { %11854 = vmatprep.mubr.f32.mxu0 %v9041_v15 }
 0x5fc   : > { %11535 = vmatmul.mubr.f32.gmra.mrb[24].mxu1 %v8910_v47 }
 0x5fd   : > { %11855 = vmatmul.mubr.f32.gmra.mrb[24].mxu0 %v9042_v5  ;;  %11537 = vmatprep.mubr.f32.mxu1 %v8911_v2  ;;  %v7949_v5 = vld [vmem:[%s16135_s21 + $0x38] sm:$0xff] }
 0x5fe   : > { %11857 = vmatprep.mubr.f32.mxu0 %v9043_v53  ;;  %v7948_v53 = vld [vmem:[%s16135_s21 + $0x30] sm:$0xff] }
 0x600   : > { %11538 = vmatmul.mubr.f32.gmra.mrb[26].mxu1 %v8912_v52 }
 0x601   : > { %11858 = vmatmul.mubr.f32.gmra.mrb[26].mxu0 %v9044_v21  ;;  %11540 = vmatprep.mubr.f32.mxu1 %v8913_v31 }
 0x602   : > { %11860 = vmatprep.mubr.f32.mxu0 %v9045_v41 }
 0x604   : > { %11541 = vmatmul.mubr.f32.gmra.mrb[28].mxu1 %v8914_v50 }
 0x605   : > { %11861 = vmatmul.mubr.f32.gmra.mrb[28].mxu0 %v9046_v9  ;;  %11543 = vmatprep.mubr.f32.mxu1 %v8915_v42 }
 0x606   : > { %11863 = vmatprep.mubr.f32.mxu0 %v9047_v59 }
 0x608   : > { %11544 = vmatmul.mubr.f32.gmra.mrb[30].mxu1 %v8916_v12 }
 0x609   : > { %11864 = vmatmul.mubr.f32.gmra.mrb[30].mxu0 %v9048_v11 }
 0x67f   : > { %v11420_v55 = vpop.f32.mrb[0].mxu1 }
 0x680   : > { %v6177_v39 = vpop.f32.mrb[1].mxu1 }
 0x683   : > { %v11423_v48 = vpop.f32.mrb[2].mxu1 }
 0x684   : > { %v6187_v51 = vpop.f32.mrb[3].mxu1 }
 0x687   : > { %v11426_v34 = vpop.f32.mrb[4].mxu1 }
 0x688   : > { %v6197_v3 = vpop.f32.mrb[5].mxu1 }
 0x68b   : > { %v11429_v17 = vpop.f32.mrb[6].mxu1 }
 0x68c   : > { %v6207_v22 = vpop.f32.mrb[7].mxu1 }
 0x68f   : > { %v16118_v40 = vpop.f32.mrb[8].mxu1 }
 0x690   : > { %v16120_v36 = vpop.f32.mrb[9].mxu1 }
 0x693   : > { %v16122_v26 = vpop.f32.mrb[10].mxu1 }
 0x694   : > { %v16124_v28 = vpop.f32.mrb[11].mxu1 }
 0x697   : > { %v16126_v18 = vpop.f32.mrb[12].mxu1 }
 0x698   : > { %v16128_v19 = vpop.f32.mrb[13].mxu1 }
 0x69b   : > { %v16130_v60 = vpop.f32.mrb[14].mxu1 }
 0x69c   : > { %v16132_v33 = vpop.f32.mrb[15].mxu1 }
 0x6a0   : > { %v11820_v37 = vpop.f32.mrb[0].mxu0 }
 0x6a1   : > { %v12858_v25 = vadd.f32 %v11820_v37, %v11420_v55  ;;  %v7685_v44 = vpop.f32.mrb[1].mxu0  ;;  %v7951_v55 = vld [vmem:[%s16135_s21 + $0x48] sm:$0xff] }
 0x6a2   : > { %v12859_v62 = vadd.f32 %v7685_v44, %v6177_v39 }
 0x6a3   : > { %7910 = vst [vmem:[%s16140_s23 + $0x8] sm:$0xff] %v12858_v25  ;;  %v7975_v4 = vmul.f32 %v12858_v25, %v7943_v20 }
 0x6a4   : > { %7909 = vst [vmem:[%s16140_s23] sm:$0xff] %v12859_v62  ;;  %v7974_v13 = vmul.f32 %v12859_v62, %v7942_v63  ;;  %v11823_v43 = vpop.f32.mrb[2].mxu0 }
 0x6a5   : > { %v8045_v30 = vmul.f32 %v7975_v4, %v7975_v4  ;;  %v12860_v61 = vadd.f32 %v11823_v43, %v11423_v48  ;;  %v7695_v58 = vpop.f32.mrb[3].mxu0  ;;  %v7952_v43 = vld [vmem:[%s16135_s21 + $0x50] sm:$0xff] }
 0x6a6   : > { %v8006_v29 = vadd.f32 %v7975_v4, %v7974_v13  ;;  %v8044_v46 = vmul.f32 %v7974_v13, %v7974_v13  ;;  %v12861_v1 = vadd.f32 %v7695_v58, %v6187_v51  ;;  %v7950_v51 = vld [vmem:[%s16135_s21 + $0x40] sm:$0xff]  ;;  %v7953_v4 = vld [vmem:[%s16135_s21 + $0x58] sm:$0xff] }
 0x6a7   : > { %7912 = vst [vmem:[%s16140_s23 + $0x18] sm:$0xff] %v12860_v61  ;;  %v7977_v32 = vmul.f32 %v12860_v61, %v7945_v54 }
 0x6a8   : > { %v8076_v38 = vadd.f32 %v8045_v30, %v8044_v46  ;;  %7911 = vst [vmem:[%s16140_s23 + $0x10] sm:$0xff] %v12861_v1  ;;  %v7976_v0 = vmul.f32 %v12861_v1, %v7944_v16  ;;  %v11826_v57 = vpop.f32.mrb[4].mxu0 }
 0x6a9   : > { %v12862_v7 = vadd.f32 %v11826_v57, %v11426_v34  ;;  %v7705_v49 = vpop.f32.mrb[5].mxu0  ;;  %v8047_v27 = vmul.f32 %v7977_v32, %v7977_v32  ;;  %v7954_v57 = vld [vmem:[%s16135_s21 + $0x60] sm:$0xff] }
 0x6aa   : > { %v8007_v8 = vadd.f32 %v8006_v29, %v7976_v0  ;;  %v8046_v56 = vmul.f32 %v7976_v0, %v7976_v0  ;;  %v12863_v6 = vadd.f32 %v7705_v49, %v6197_v3 }
 0x6ab   : > { %7914 = vst [vmem:[%s16140_s23 + $0x28] sm:$0xff] %v12862_v7  ;;  %v7979_v24 = vmul.f32 %v12862_v7, %v7947_v23 }
 0x6ac   : > { %v8077_v35 = vadd.f32 %v8076_v38, %v8046_v56  ;;  %7913 = vst [vmem:[%s16140_s23 + $0x20] sm:$0xff] %v12863_v6  ;;  %v7978_v14 = vmul.f32 %v12863_v6, %v7946_v10  ;;  %v8008_v45 = vadd.f32 %v8007_v8, %v7977_v32  ;;  %v11829_v15 = vpop.f32.mrb[6].mxu0  ;;  %v7955_v38 = vld [vmem:[%s16135_s21 + $0x68] sm:$0xff] }
 0x6ad   : > { %v12864_v47 = vadd.f32 %v11829_v15, %v11429_v17  ;;  %v7715_v2 = vpop.f32.mrb[7].mxu0  ;;  %v8049_v50 = vmul.f32 %v7979_v24, %v7979_v24 }
 0x6ae   : > { %v8009_v52 = vadd.f32 %v8008_v45, %v7978_v14  ;;  %v8048_v21 = vmul.f32 %v7978_v14, %v7978_v14  ;;  %v8078_v31 = vadd.f32 %v8077_v35, %v8047_v27  ;;  %v12865_v41 = vadd.f32 %v7715_v2, %v6207_v22  ;;  %v7957_v35 = vld [vmem:[%s16135_s21 + $0x78] sm:$0xff]  ;;  %v7956_v45 = vld [vmem:[%s16135_s21 + $0x70] sm:$0xff] }
 0x6af   : > { %7916 = vst [vmem:[%s16140_s23 + $0x38] sm:$0xff] %v12864_v47  ;;  %v7981_v42 = vmul.f32 %v12864_v47, %v7949_v5 }
 0x6b0   : > { %v8079_v9 = vadd.f32 %v8078_v31, %v8048_v21  ;;  %7915 = vst [vmem:[%s16140_s23 + $0x30] sm:$0xff] %v12865_v41  ;;  %v7980_v59 = vmul.f32 %v12865_v41, %v7948_v53  ;;  %v8010_v12 = vadd.f32 %v8009_v52, %v7979_v24  ;;  %v11832_v11 = vpop.f32.mrb[8].mxu0 }
 0x6b1   : > { %v12866_v39 = vadd.f32 %v11832_v11, %v16118_v40  ;;  %v7725_v48 = vpop.f32.mrb[9].mxu0  ;;  %v8051_v20 = vmul.f32 %v7981_v42, %v7981_v42 }
 0x6b2   : > { %v8011_v34 = vadd.f32 %v8010_v12, %v7980_v59  ;;  %v8050_v3 = vmul.f32 %v7980_v59, %v7980_v59  ;;  %v8080_v17 = vadd.f32 %v8079_v9, %v8049_v50  ;;  %v12867_v22 = vadd.f32 %v7725_v48, %v16120_v36  ;;  %v7959_v50 = vld [vmem:[%s16135_s21 + $0x88] sm:$0xff]  ;;  %v7958_v12 = vld [vmem:[%s16135_s21 + $0x80] sm:$0xff] }
 0x6b3   : > { %7918 = vst [vmem:[%s16140_s23 + $0x48] sm:$0xff] %v12866_v39  ;;  %v7983_v37 = vmul.f32 %v12866_v39, %v7951_v55 }
 0x6b4   : > { %v8081_v25 = vadd.f32 %v8080_v17, %v8050_v3  ;;  %7917 = vst [vmem:[%s16140_s23 + $0x40] sm:$0xff] %v12867_v22  ;;  %v7982_v44 = vmul.f32 %v12867_v22, %v7950_v51  ;;  %v8012_v63 = vadd.f32 %v8011_v34, %v7981_v42  ;;  %v11835_v62 = vpop.f32.mrb[10].mxu0 }
 0x6b5   : > { %v12868_v40 = vadd.f32 %v11835_v62, %v16122_v26  ;;  %v7735_v13 = vpop.f32.mrb[11].mxu0  ;;  %v8053_v58 = vmul.f32 %v7983_v37, %v7983_v37  ;;  %v7960_v62 = vld [vmem:[%s16135_s21 + $0x90] sm:$0xff] }
 0x6b6   : > { %v8013_v30 = vadd.f32 %v8012_v63, %v7982_v44  ;;  %v8052_v61 = vmul.f32 %v7982_v44, %v7982_v44  ;;  %v8082_v36 = vadd.f32 %v8081_v25, %v8051_v20  ;;  %v12869_v54 = vadd.f32 %v7735_v13, %v16124_v28  ;;  %v7961_v44 = vld [vmem:[%s16135_s21 + $0x98] sm:$0xff] }
 0x6b7   : > { %7920 = vst [vmem:[%s16140_s23 + $0x58] sm:$0xff] %v12868_v40  ;;  %v7985_v29 = vmul.f32 %v12868_v40, %v7953_v4 }
 0x6b8   : > { %v8083_v16 = vadd.f32 %v8082_v36, %v8052_v61  ;;  %7919 = vst [vmem:[%s16140_s23 + $0x50] sm:$0xff] %v12869_v54  ;;  %v7984_v46 = vmul.f32 %v12869_v54, %v7952_v43  ;;  %v8014_v1 = vadd.f32 %v8013_v30, %v7983_v37  ;;  %v11838_v26 = vpop.f32.mrb[12].mxu0 }
 0x6b9   : > { %v12870_v32 = vadd.f32 %v11838_v26, %v16126_v18  ;;  %v7745_v0 = vpop.f32.mrb[13].mxu0  ;;  %v8055_v8 = vmul.f32 %v7985_v29, %v7985_v29 }
 0x6ba   : > { %v8015_v23 = vadd.f32 %v8014_v1, %v7984_v46  ;;  %v8054_v7 = vmul.f32 %v7984_v46, %v7984_v46  ;;  %v8084_v28 = vadd.f32 %v8083_v16, %v8053_v58  ;;  %v12871_v49 = vadd.f32 %v7745_v0, %v16128_v19  ;;  %v7963_v46 = vld [vmem:[%s16135_s21 + $0xa8] sm:$0xff] }
 0x6bb   : > { %7922 = vst [vmem:[%s16140_s23 + $0x68] sm:$0xff] %v12870_v32  ;;  %v7987_v10 = vmul.f32 %v12870_v32, %v7955_v38  ;;  %v7962_v32 = vld [vmem:[%s16135_s21 + $0xa0] sm:$0xff] }
 0x6bc   : > { %v8085_v56 = vadd.f32 %v8084_v28, %v8054_v7  ;;  %7921 = vst [vmem:[%s16140_s23 + $0x60] sm:$0xff] %v12871_v49  ;;  %v7986_v6 = vmul.f32 %v12871_v49, %v7954_v57  ;;  %v8016_v24 = vadd.f32 %v8015_v23, %v7985_v29  ;;  %v11841_v27 = vpop.f32.mrb[14].mxu0 }
 0x6bd   : > { %v12872_v18 = vadd.f32 %v11841_v27, %v16130_v60  ;;  %v7755_v14 = vpop.f32.mrb[15].mxu0  ;;  %v8057_v2 = vmul.f32 %v7987_v10, %v7987_v10 }
 0x6be   : > { %v8017_v15 = vadd.f32 %v8016_v24, %v7986_v6  ;;  %v8056_v47 = vmul.f32 %v7986_v6, %v7986_v6  ;;  %v8086_v19 = vadd.f32 %v8085_v56, %v8055_v8  ;;  %v12873_v5 = vadd.f32 %v7755_v14, %v16132_v33 }
 0x6bf   : > { %7924 = vst [vmem:[%s16140_s23 + $0x78] sm:$0xff] %v12872_v18  ;;  %v11524_v53 = vpop.f32.mrb[16].mxu1  ;;  %v7989_v21 = vmul.f32 %v12872_v18, %v7957_v35  ;;  %v7965_v35 = vld [vmem:[%s16135_s21 + $0xb8] sm:$0xff] }
 0x6c0   : > { %v8087_v52 = vadd.f32 %v8086_v19, %v8056_v47  ;;  %7923 = vst [vmem:[%s16140_s23 + $0x70] sm:$0xff] %v12873_v5  ;;  %v7988_v31 = vmul.f32 %v12873_v5, %v7956_v45  ;;  %v8018_v41 = vadd.f32 %v8017_v15, %v7987_v10  ;;  %v11844_v60 = vpop.f32.mrb[16].mxu0  ;;  %v6533_v9 = vpop.f32.mrb[17].mxu1  ;;  %v7964_v45 = vld [vmem:[%s16135_s21 + $0xb0] sm:$0xff] }
 0x6c1   : > { %v12874_v42 = vadd.f32 %v11844_v60, %v11524_v53  ;;  %v7765_v59 = vpop.f32.mrb[17].mxu0  ;;  %v8059_v34 = vmul.f32 %v7989_v21, %v7989_v21 }
 0x6c2   : > { %v8019_v11 = vadd.f32 %v8018_v41, %v7988_v31  ;;  %v8058_v55 = vmul.f32 %v7988_v31, %v7988_v31  ;;  %v8088_v33 = vadd.f32 %v8087_v52, %v8057_v2  ;;  %v12875_v39 = vadd.f32 %v7765_v59, %v6533_v9 }
 0x6c3   : > { %7926 = vst [vmem:[%s16140_s23 + $0x88] sm:$0xff] %v12874_v42  ;;  %v7991_v48 = vmul.f32 %v12874_v42, %v7959_v50  ;;  %v11527_v51 = vpop.f32.mrb[18].mxu1  ;;  %v7967_v50 = vld [vmem:[%s16135_s21 + $0xc8] sm:$0xff] }
 0x6c4   : > { %v8089_v3 = vadd.f32 %v8088_v33, %v8058_v55  ;;  %7925 = vst [vmem:[%s16140_s23 + $0x80] sm:$0xff] %v12875_v39  ;;  %v7990_v17 = vmul.f32 %v12875_v39, %v7958_v12  ;;  %v8020_v22 = vadd.f32 %v8019_v11, %v7989_v21  ;;  %v11847_v37 = vpop.f32.mrb[18].mxu0  ;;  %v6543_v20 = vpop.f32.mrb[19].mxu1  ;;  %v7966_v12 = vld [vmem:[%s16135_s21 + $0xc0] sm:$0xff] }
 0x6c5   : > { %v12876_v25 = vadd.f32 %v11847_v37, %v11527_v51  ;;  %v7775_v63 = vpop.f32.mrb[19].mxu0  ;;  %v8061_v30 = vmul.f32 %v7991_v48, %v7991_v48 }
 0x6c6   : > { %v8021_v40 = vadd.f32 %v8020_v22, %v7990_v17  ;;  %v8060_v4 = vmul.f32 %v7990_v17, %v7990_v17  ;;  %v8090_v13 = vadd.f32 %v8089_v3, %v8059_v34  ;;  %v12877_v43 = vadd.f32 %v7775_v63, %v6543_v20 }
 0x6c7   : > { %7928 = vst [vmem:[%s16140_s23 + $0x98] sm:$0xff] %v12876_v25  ;;  %v11530_v61 = vpop.f32.mrb[20].mxu1  ;;  %v7993_v54 = vmul.f32 %v12876_v25, %v7961_v44  ;;  %v7969_v44 = vld [vmem:[%s16135_s21 + $0xd8] sm:$0xff] }
 0x6c8   : > { %v8091_v36 = vadd.f32 %v8090_v13, %v8060_v4  ;;  %7927 = vst [vmem:[%s16140_s23 + $0x90] sm:$0xff] %v12877_v43  ;;  %v7992_v58 = vmul.f32 %v12877_v43, %v7960_v62  ;;  %v8022_v16 = vadd.f32 %v8021_v40, %v7991_v48  ;;  %v11850_v29 = vpop.f32.mrb[20].mxu0  ;;  %v6553_v1 = vpop.f32.mrb[21].mxu1  ;;  %v7968_v62 = vld [vmem:[%s16135_s21 + $0xd0] sm:$0xff] }
 0x6c9   : > { %v12878_v26 = vadd.f32 %v11850_v29, %v11530_v61  ;;  %v7785_v38 = vpop.f32.mrb[21].mxu0  ;;  %v8063_v10 = vmul.f32 %v7993_v54, %v7993_v54 }
 0x6ca   : > { %v8023_v0 = vadd.f32 %v8022_v16, %v7992_v58  ;;  %v8062_v57 = vmul.f32 %v7992_v58, %v7992_v58  ;;  %v8092_v23 = vadd.f32 %v8091_v36, %v8061_v30  ;;  %v12879_v7 = vadd.f32 %v7785_v38, %v6553_v1 }
 0x6cb   : > { %7930 = vst [vmem:[%s16140_s23 + $0xa8] sm:$0xff] %v12878_v26  ;;  %v7995_v28 = vmul.f32 %v12878_v26, %v7963_v46  ;;  %v11533_v49 = vpop.f32.mrb[22].mxu1  ;;  %v7971_v46 = vld [vmem:[%s16135_s21 + $0xe8] sm:$0xff] }
 0x6cc   : > { %v8093_v8 = vadd.f32 %v8092_v23, %v8062_v57  ;;  %7929 = vst [vmem:[%s16140_s23 + $0xa0] sm:$0xff] %v12879_v7  ;;  %v7994_v56 = vmul.f32 %v12879_v7, %v7962_v32  ;;  %v8024_v6 = vadd.f32 %v8023_v0, %v7993_v54  ;;  %v11853_v24 = vpop.f32.mrb[22].mxu0  ;;  %v6563_v27 = vpop.f32.mrb[23].mxu1  ;;  %v7970_v32 = vld [vmem:[%s16135_s21 + $0xe0] sm:$0xff] }
 0x6cd   : > { %v12880_v18 = vadd.f32 %v11853_v24, %v11533_v49  ;;  %v7795_v14 = vpop.f32.mrb[23].mxu0  ;;  %v8065_v2 = vmul.f32 %v7995_v28, %v7995_v28 }
 0x6ce   : > { %v8025_v15 = vadd.f32 %v8024_v6, %v7994_v56  ;;  %v8064_v47 = vmul.f32 %v7994_v56, %v7994_v56  ;;  %v8094_v19 = vadd.f32 %v8093_v8, %v8063_v10  ;;  %v12881_v5 = vadd.f32 %v7795_v14, %v6563_v27 }
 0x6cf   : > { %7932 = vst [vmem:[%s16140_s23 + $0xb8] sm:$0xff] %v12880_v18  ;;  %v11536_v53 = vpop.f32.mrb[24].mxu1  ;;  %v7997_v21 = vmul.f32 %v12880_v18, %v7965_v35  ;;  %v7973_v35 = vld [vmem:[%s16135_s21 + $0xf8] sm:$0xff] }
 0x6d0   : > { %v8095_v52 = vadd.f32 %v8094_v19, %v8064_v47  ;;  %7931 = vst [vmem:[%s16140_s23 + $0xb0] sm:$0xff] %v12881_v5  ;;  %v7996_v31 = vmul.f32 %v12881_v5, %v7964_v45  ;;  %v8026_v41 = vadd.f32 %v8025_v15, %v7995_v28  ;;  %v11856_v60 = vpop.f32.mrb[24].mxu0  ;;  %v6573_v9 = vpop.f32.mrb[25].mxu1  ;;  %v7972_v45 = vld [vmem:[%s16135_s21 + $0xf0] sm:$0xff] }
 0x6d1   : > { %v12882_v42 = vadd.f32 %v11856_v60, %v11536_v53  ;;  %v7805_v59 = vpop.f32.mrb[25].mxu0  ;;  %v8067_v34 = vmul.f32 %v7997_v21, %v7997_v21 }
 0x6d2   : > { %v8027_v11 = vadd.f32 %v8026_v41, %v7996_v31  ;;  %v8066_v55 = vmul.f32 %v7996_v31, %v7996_v31  ;;  %v8096_v33 = vadd.f32 %v8095_v52, %v8065_v2  ;;  %v12883_v39 = vadd.f32 %v7805_v59, %v6573_v9 }
 0x6d3   : > { %7934 = vst [vmem:[%s16140_s23 + $0xc8] sm:$0xff] %v12882_v42  ;;  %v7999_v48 = vmul.f32 %v12882_v42, %v7967_v50  ;;  %v11539_v51 = vpop.f32.mrb[26].mxu1 }
 0x6d4   : > { %v8097_v3 = vadd.f32 %v8096_v33, %v8066_v55  ;;  %7933 = vst [vmem:[%s16140_s23 + $0xc0] sm:$0xff] %v12883_v39  ;;  %v7998_v17 = vmul.f32 %v12883_v39, %v7966_v12  ;;  %v8028_v22 = vadd.f32 %v8027_v11, %v7997_v21  ;;  %v11859_v37 = vpop.f32.mrb[26].mxu0  ;;  %v6583_v20 = vpop.f32.mrb[27].mxu1 }
 0x6d5   : > { %v12884_v25 = vadd.f32 %v11859_v37, %v11539_v51  ;;  %v7815_v63 = vpop.f32.mrb[27].mxu0  ;;  %v8069_v30 = vmul.f32 %v7999_v48, %v7999_v48 }
 0x6d6   : > { %v8029_v40 = vadd.f32 %v8028_v22, %v7998_v17  ;;  %v8068_v4 = vmul.f32 %v7998_v17, %v7998_v17  ;;  %v8098_v13 = vadd.f32 %v8097_v3, %v8067_v34  ;;  %v12885_v43 = vadd.f32 %v7815_v63, %v6583_v20  ;;  %v16600_v20 = vld [vmem:[#allocation70_spill] sm:$0xff]  ;;  %v16601_v63 = vld [vmem:[#allocation69_spill] sm:$0xff] }
 0x6d7   : > { %7936 = vst [vmem:[%s16140_s23 + $0xd8] sm:$0xff] %v12884_v25  ;;  %v11542_v61 = vpop.f32.mrb[28].mxu1  ;;  %v8001_v54 = vmul.f32 %v12884_v25, %v7969_v44 }
 0x6d8   : > { %v8099_v36 = vadd.f32 %v8098_v13, %v8068_v4  ;;  %7935 = vst [vmem:[%s16140_s23 + $0xd0] sm:$0xff] %v12885_v43  ;;  %v8000_v58 = vmul.f32 %v12885_v43, %v7968_v62  ;;  %v8030_v16 = vadd.f32 %v8029_v40, %v7999_v48  ;;  %v11862_v29 = vpop.f32.mrb[28].mxu0  ;;  %v6593_v1 = vpop.f32.mrb[29].mxu1 }
 0x6d9   : > { %v12886_v26 = vadd.f32 %v11862_v29, %v11542_v61  ;;  %v7825_v38 = vpop.f32.mrb[29].mxu0  ;;  %v8071_v10 = vmul.f32 %v8001_v54, %v8001_v54  ;;  %v8115_v61 = vld [vmem:[#allocation20] sm:$0x1] (%p5226_p0) }
 0x6da   : > { %v8031_v0 = vadd.f32 %v8030_v16, %v8000_v58  ;;  %v8070_v57 = vmul.f32 %v8000_v58, %v8000_v58  ;;  %v8100_v23 = vadd.f32 %v8099_v36, %v8069_v30  ;;  %v12887_v7 = vadd.f32 %v7825_v38, %v6593_v1  ;;  %v16223_v58 = vld [vmem:[#allocation21] sm:$0x1] (%p5226_p0) }
 0x6db   : > { %7938 = vst [vmem:[%s16140_s23 + $0xe8] sm:$0xff] %v12886_v26  ;;  %v8003_v28 = vmul.f32 %v12886_v26, %v7971_v46  ;;  %v11545_v49 = vpop.f32.mrb[30].mxu1 }
 0x6dc   : > { %v8101_v8 = vadd.f32 %v8100_v23, %v8070_v57  ;;  %7937 = vst [vmem:[%s16140_s23 + $0xe0] sm:$0xff] %v12887_v7  ;;  %v8002_v56 = vmul.f32 %v12887_v7, %v7970_v32  ;;  %v8032_v6 = vadd.f32 %v8031_v0, %v8001_v54  ;;  %v11865_v24 = vpop.f32.mrb[30].mxu0  ;;  %v6603_v27 = vpop.f32.mrb[31].mxu1 }
 0x6dd   : > { %v12888_v18 = vadd.f32 %v11865_v24, %v11545_v49  ;;  %v7835_v14 = vpop.f32.mrb[31].mxu0  ;;  %v8073_v2 = vmul.f32 %v8003_v28, %v8003_v28 }
 0x6de   : > { %v8033_v15 = vadd.f32 %v8032_v6, %v8002_v56  ;;  %v8072_v47 = vmul.f32 %v8002_v56, %v8002_v56  ;;  %v8102_v19 = vadd.f32 %v8101_v8, %v8071_v10  ;;  %v12889_v5 = vadd.f32 %v7835_v14, %v6603_v27 }
 0x6df   : > { %7940 = vst [vmem:[%s16140_s23 + $0xf8] sm:$0xff] %v12888_v18  ;;  %v8005_v52 = vmul.f32 %v12888_v18, %v7973_v35 }
 0x6e0   : > { %v8103_v53 = vadd.f32 %v8102_v19, %v8072_v47  ;;  %7939 = vst [vmem:[%s16140_s23 + $0xf0] sm:$0xff] %v12889_v5  ;;  %v8004_v21 = vmul.f32 %v12889_v5, %v7972_v45  ;;  %v8034_v31 = vadd.f32 %v8033_v15, %v8003_v28 }
 0x6e1   : > { %v8075_v9 = vmul.f32 %v8005_v52, %v8005_v52 }
 0x6e2   : > { %v8035_v41 = vadd.f32 %v8034_v31, %v8004_v21  ;;  %v8074_v60 = vmul.f32 %v8004_v21, %v8004_v21  ;;  %v8104_v50 = vadd.f32 %v8103_v53, %v8073_v2 }
 0x6e4   : > { %v8036_v42 = vadd.f32 %v8035_v41, %v8005_v52  ;;  %v8105_v59 = vadd.f32 %v8104_v50, %v8074_v60 }
 0x6e6   : > { %v8037_v12 = vrot.slane %v8036_v42, 4  ;;  %v8106_v11 = vadd.f32 %v8105_v59, %v8075_v9 }
 0x6e8   : > { %v8038_v55 = vadd.f32 %v8037_v12, %v8036_v42  ;;  %v8107_v33 = vrot.slane %v8106_v11, 4 }
 0x6ea   : > { %v8039_v39 = vrot.slane %v8038_v55, 2  ;;  %v8108_v48 = vadd.f32 %v8107_v33, %v8106_v11 }
 0x6ec   : > { %v8040_v51 = vadd.f32 %v8039_v39, %v8038_v55  ;;  %v8109_v34 = vrot.slane %v8108_v48, 2 }
 0x6ee   : > { %v8041_v3 = vrot.slane %v8040_v51, 1  ;;  %v8110_v17 = vadd.f32 %v8109_v34, %v8108_v48 }
 0x6f0   : > { %v8042_v22 = vadd.f32 %v8041_v3, %v8040_v51  ;;  %v8111_v37 = vrot.slane %v8110_v17, 1  ;;  %5228 = sbr.rel (!%p5226_p0) target bundleno = 1225 (0x4c9), region = 236 }
 0x6f2   : > { %v8043_v25 = vadd.f32 %v16600_v20, %v8042_v22   ;;  %v8112_v44 = vadd.f32 %v8111_v37, %v8110_v17 }
 0x6f4   : > { %v8113_v40 = vadd.f32 %v16601_v63, %v8112_v44   ;;  %v16603_v62 = vmov %v8043_v25 }
 0x6f5   :  { %v8114_v62 = vmul.f32 (%p5226_p0), 0.001953125, %v8043_v25 }
 0x6f6   : > { %v16602_v41 = vmov %v8113_v40  ;;  %v8116_v4 = vmul.f32 (%p5226_p0), 0.001953125, %v8113_v40 }
 0x6f7   :  { %v8117_v13 = vmul.f32 %v8114_v62, %v8114_v62 }
 0x6f9   :  { %v8118_v43 = vsub.f32 %v8116_v4, %v8117_v13 }
 0x6fb   :  { %v8119_v30 = vadd.f32 1e-05, %v8118_v43 }
 0x6fd   :  { %13222 = vrsqrt.f32 %v8119_v30 }
 0x707   :  { %v13223_v36 = vpop.eup %13222 }
 0x708   :  { %v16221_v54 = vmul.f32 %v13223_v36, %v8115_v61 }
 0x70a   :  { %v16226_v16 = vmul.f32 %v16221_v54, %v8114_v62 }
 0x70c   :  { %v8124_v29 = vsub.f32 %v16223_v58, %v16226_v16 }
 0x70d LB: > { %v16604_v46 = vld [vmem:[#allocation68_spill] sm:$0xff]  ;;  %s9049_s20 = sshll.u32 %s13558_s5, 8  ;;  %s8130_s5 = sadd.s32 1, %s13558_s5   ;;  %s13558_s5 = sphi %s16230_s5, %s8130_s5  }
 0x70e   : > { %v16237_v1 = vrot.slane %v16221_v54, %v16604_v46  ;;  %v16244_v26 = vrot.slane %v8124_v29, %v16604_v46  ;;  %s16248_s0 = scalar_lea.vmem [#allocation5], %s9049_s20  ;;  %s16283_s8 = scalar_lea.vmem [#allocation23], %s9049_s20 }
 0x70f   : > { %v8133_v38 = vld [vmem:[%s16248_s0] sm:$0xff]  ;;  %v8134_v32 = vld [vmem:[%s16248_s0 + $0x8] sm:$0xff]  ;;  %v8135_v0 = vld [vmem:[%s16248_s0 + $0x10] sm:$0xff]  ;;  %p8127_p1 = scmp.ge.s32.totalorder %s8130_s5, 3  }
 0x710   : > { %v8171_v57 = vmul.f32 %v16237_v1, %v8133_v38  ;;  %v8172_v23 = vmul.f32 %v16237_v1, %v8134_v32  ;;  %v8173_v7 = vmul.f32 %v16237_v1, %v8135_v0  ;;  %v8136_v28 = vld [vmem:[%s16248_s0 + $0x18] sm:$0xff]  ;;  %v8137_v49 = vld [vmem:[%s16248_s0 + $0x20] sm:$0xff]  ;;  %v8138_v10 = vld [vmem:[%s16248_s0 + $0x28] sm:$0xff]  ;;  %s13577_s4 = smov (%p8127_p1), [#allocation23]  }
 0x711   : > { %v8174_v8 = vmul.f32 %v16237_v1, %v8136_v28  ;;  %v8175_v56 = vmul.f32 %v16237_v1, %v8137_v49  ;;  %v8176_v6 = vmul.f32 %v16237_v1, %v8138_v10  ;;  %v8139_v24 = vld [vmem:[%s16248_s0 + $0x30] sm:$0xff]  ;;  %v8140_v27 = vld [vmem:[%s16248_s0 + $0x38] sm:$0xff]  ;;  %v8141_v2 = vld [vmem:[%s16248_s0 + $0x40] sm:$0xff]  ;;  %s8311_s24 = sshll.u32 (%p8127_p1), %s13577_s4, 4  ;;  %s8312_s24 = int_to_ptr.vmem [resolvable:$true] %s8311_s24 }
 0x712   : > { %v8209_v18 = vadd.f32 %v16244_v26, %v8171_v57  ;;  %v8210_v35 = vadd.f32 %v16244_v26, %v8172_v23  ;;  %v8211_v14 = vadd.f32 %v16244_v26, %v8173_v7  ;;  %v8177_v45 = vmul.f32 %v16237_v1, %v8139_v24  ;;  %v8142_v53 = vld [vmem:[%s16248_s0 + $0x48] sm:$0xff]  ;;  %v8143_v52 = vld [vmem:[%s16248_s0 + $0x50] sm:$0xff]  ;;  %v8144_v50 = vld [vmem:[%s16248_s0 + $0x58] sm:$0xff]  ;;  %s13444_s9 = scalar_lea.vmem (%p8127_p1), %s8312_s24, 12288  ;;  %p13449_p3 = scmp.lt.s32.totalorder (%p8127_p1), %s8312_s24, %s8312_s24 }
 0x713   : > { %v8212_v15 = vadd.f32 %v16244_v26, %v8174_v8  ;;  %v8213_v47 = vadd.f32 %v16244_v26, %v8175_v56  ;;  %v8214_v19 = vadd.f32 %v16244_v26, %v8176_v6  ;;  %v8178_v5 = vmul.f32 %v16237_v1, %v8140_v27  ;;  %v8145_v9 = vld [vmem:[%s16248_s0 + $0x60] sm:$0xff]  ;;  %v8146_v42 = vld [vmem:[%s16248_s0 + $0x68] sm:$0xff]  ;;  %v8147_v33 = vld [vmem:[%s16248_s0 + $0x70] sm:$0xff]  ;;  %p13445_p2 = scmp.ne.s32.totalorder (%p8127_p1), %s8312_s24, %s13444_s9  ;;  %p13450_p4 = scmp.lt.s32.totalorder (%p8127_p1), %s13444_s9, %s13444_s9 }
 0x714   : > { %v8241_v21 = vmax.f32 %v8209_v18, 0.0  ;;  %v8242_v31 = vmax.f32 %v8210_v35, 0.0  ;;  %v8243_v41 = vmax.f32 %v8211_v14, 0.0  ;;  %v8215_v60 = vadd.f32 %v16244_v26, %v8177_v45  ;;  %v8148_v3 = vld [vmem:[%s16248_s0 + $0x78] sm:$0xff]  ;;  %v8149_v30 = vld [vmem:[%s16248_s0 + $0x80] sm:$0xff]  ;;  %v8150_v61 = vld [vmem:[%s16248_s0 + $0x88] sm:$0xff] }
 0x715   : > { %v8244_v59 = vmax.f32 %v8212_v15, 0.0  ;;  %v8245_v12 = vmax.f32 %v8213_v47, 0.0  ;;  %v8246_v11 = vmax.f32 %v8214_v19, 0.0  ;;  %v8216_v55 = vadd.f32 %v16244_v26, %v8178_v5  ;;  %v8151_v36 = vld [vmem:[%s16248_s0 + $0x90] sm:$0xff]  ;;  %v8152_v23 = vld [vmem:[%s16248_s0 + $0x98] sm:$0xff]  ;;  %v8153_v7 = vld [vmem:[%s16248_s0 + $0xa0] sm:$0xff]  ;;  %p13451_p5 = por (%p8127_p1), %p13450_p4, %p13449_p3 }
 0x716   : > { %8274 = vst [vmem:[%s16283_s8] sm:$0xff] %v8241_v21  ;;  %8275 = vst [vmem:[%s16283_s8 + $0x8] sm:$0xff] %v8242_v31  ;;  %v8247_v39 = vmax.f32 %v8215_v60, 0.0  ;;  %v8179_v48 = vmul.f32 %v16237_v1, %v8141_v2  ;;  %v8180_v51 = vmul.f32 %v16237_v1, %v8142_v53  ;;  %v8181_v34 = vmul.f32 %v16237_v1, %v8143_v52  ;;  %v8154_v28 = vld [vmem:[%s16248_s0 + $0xa8] sm:$0xff]  ;;  %v8155_v6 = vld [vmem:[%s16248_s0 + $0xb0] sm:$0xff] }
 0x717   : > { %8276 = vst [vmem:[%s16283_s8 + $0x10] sm:$0xff] %v8243_v41  ;;  %8277 = vst [vmem:[%s16283_s8 + $0x18] sm:$0xff] %v8244_v59  ;;  %v8248_v17 = vmax.f32 %v8216_v55, 0.0  ;;  %v8182_v22 = vmul.f32 %v16237_v1, %v8144_v50  ;;  %v8183_v37 = vmul.f32 %v16237_v1, %v8145_v9  ;;  %v8184_v20 = vmul.f32 %v16237_v1, %v8146_v42  ;;  %v8156_v14 = vld [vmem:[%s16248_s0 + $0xb8] sm:$0xff]  ;;  %v8157_v50 = vld [vmem:[%s16248_s0 + $0xc0] sm:$0xff]  ;;  %p13452_p6 = pnand (%p8127_p1), %p13451_p5, %p13445_p2 }
 0x718   : > { %8278 = vst [vmem:[%s16283_s8 + $0x20] sm:$0xff] %v8245_v12  ;;  %8279 = vst [vmem:[%s16283_s8 + $0x28] sm:$0xff] %v8246_v11  ;;  %v8217_v25 = vadd.f32 %v16244_v26, %v8179_v48  ;;  %v8218_v44 = vadd.f32 %v16244_v26, %v8180_v51  ;;  %v8219_v63 = vadd.f32 %v16244_v26, %v8181_v34  ;;  %v8158_v9 = vld [vmem:[%s16248_s0 + $0xc8] sm:$0xff]  ;;  %v8159_v42 = vld [vmem:[%s16248_s0 + $0xd0] sm:$0xff] }
 0x719   : > { %8280 = vst [vmem:[%s16283_s8 + $0x30] sm:$0xff] %v8247_v39  ;;  %v8185_v40 = vmul.f32 %v16237_v1, %v8147_v33  ;;  %8281 = vst [vmem:[%s16283_s8 + $0x38] sm:$0xff] %v8248_v17  ;;  %v8220_v62 = vadd.f32 %v16244_v26, %v8182_v22  ;;  %v8221_v4 = vadd.f32 %v16244_v26, %v8183_v37  ;;  %v8160_v33 = vld [vmem:[%s16248_s0 + $0xd8] sm:$0xff]  ;;  %v8161_v39 = vld [vmem:[%s16248_s0 + $0xe0] sm:$0xff] }
 0x71a   : > { %v8222_v13 = vadd.f32 %v16244_v26, %v8184_v20  ;;  %v8186_v43 = vmul.f32 %v16237_v1, %v8148_v3  ;;  %v8249_v38 = vmax.f32 %v8217_v25, 0.0  ;;  %v8250_v32 = vmax.f32 %v8218_v44, 0.0  ;;  %v8162_v48 = vld [vmem:[%s16248_s0 + $0xe8] sm:$0xff]  ;;  %v8163_v22 = vld [vmem:[%s16248_s0 + $0xf0] sm:$0xff] }
 0x71b   : > { %v8251_v0 = vmax.f32 %v8219_v63, 0.0  ;;  %v8223_v57 = vadd.f32 %v16244_v26, %v8185_v40  ;;  %v8252_v49 = vmax.f32 %v8220_v62, 0.0  ;;  %v8253_v10 = vmax.f32 %v8221_v4, 0.0  ;;  %v8164_v63 = vld [vmem:[%s16248_s0 + $0xf8] sm:$0xff] }
 0x71c   : > { %v8254_v8 = vmax.f32 %v8222_v13, 0.0  ;;  %v8224_v56 = vadd.f32 %v16244_v26, %v8186_v43  ;;  %8282 = vst [vmem:[%s16283_s8 + $0x40] sm:$0xff] %v8249_v38  ;;  %8283 = vst [vmem:[%s16283_s8 + $0x48] sm:$0xff] %v8250_v32  ;;  %v8187_v27 = vmul.f32 %v16237_v1, %v8149_v30  ;;  %v8188_v18 = vmul.f32 %v16237_v1, %v8150_v61 }
 0x71d   : > { %8284 = vst [vmem:[%s16283_s8 + $0x50] sm:$0xff] %v8251_v0  ;;  %v8255_v24 = vmax.f32 %v8223_v57, 0.0  ;;  %v8189_v35 = vmul.f32 %v16237_v1, %v8151_v36  ;;  %8285 = vst [vmem:[%s16283_s8 + $0x58] sm:$0xff] %v8252_v49  ;;  %v8190_v15 = vmul.f32 %v16237_v1, %v8152_v23  ;;  %v8191_v47 = vmul.f32 %v16237_v1, %v8153_v7 }
 0x71e   : > { %8286 = vst [vmem:[%s16283_s8 + $0x60] sm:$0xff] %v8253_v10  ;;  %8287 = vst [vmem:[%s16283_s8 + $0x68] sm:$0xff] %v8254_v8  ;;  %v8256_v45 = vmax.f32 %v8224_v56, 0.0  ;;  %v8192_v19 = vmul.f32 %v16237_v1, %v8154_v28  ;;  %v8225_v5 = vadd.f32 %v16244_v26, %v8187_v27  ;;  %v8226_v2 = vadd.f32 %v16244_v26, %v8188_v18 }
 0x71f   : > { %8288 = vst [vmem:[%s16283_s8 + $0x70] sm:$0xff] %v8255_v24  ;;  %v8227_v53 = vadd.f32 %v16244_v26, %v8189_v35  ;;  %v8193_v52 = vmul.f32 %v16237_v1, %v8155_v6  ;;  %v8228_v21 = vadd.f32 %v16244_v26, %v8190_v15  ;;  %v8229_v31 = vadd.f32 %v16244_v26, %v8191_v47 }
 0x720   : > { %8289 = vst [vmem:[%s16283_s8 + $0x78] sm:$0xff] %v8256_v45  ;;  %v8230_v41 = vadd.f32 %v16244_v26, %v8192_v19  ;;  %v8194_v60 = vmul.f32 %v16237_v1, %v8156_v14  ;;  %v8257_v59 = vmax.f32 %v8225_v5, 0.0  ;;  %v8258_v12 = vmax.f32 %v8226_v2, 0.0 }
 0x721   : > { %v8259_v11 = vmax.f32 %v8227_v53, 0.0  ;;  %v8231_v55 = vadd.f32 %v16244_v26, %v8193_v52  ;;  %v8260_v51 = vmax.f32 %v8228_v21, 0.0  ;;  %v8261_v34 = vmax.f32 %v8229_v31, 0.0 }
 0x722   : > { %v8262_v3 = vmax.f32 %v8230_v41, 0.0  ;;  %v8232_v17 = vadd.f32 %v16244_v26, %v8194_v60  ;;  %8290 = vst [vmem:[%s16283_s8 + $0x80] sm:$0xff] %v8257_v59  ;;  %8291 = vst [vmem:[%s16283_s8 + $0x88] sm:$0xff] %v8258_v12  ;;  %v8195_v20 = vmul.f32 %v16237_v1, %v8157_v50  ;;  %v8196_v25 = vmul.f32 %v16237_v1, %v8158_v9 }
 0x723   : > { %8292 = vst [vmem:[%s16283_s8 + $0x90] sm:$0xff] %v8259_v11  ;;  %v8263_v37 = vmax.f32 %v8231_v55, 0.0  ;;  %v8197_v44 = vmul.f32 %v16237_v1, %v8159_v42  ;;  %8293 = vst [vmem:[%s16283_s8 + $0x98] sm:$0xff] %v8260_v51  ;;  %v8198_v62 = vmul.f32 %v16237_v1, %v8160_v33  ;;  %v8199_v4 = vmul.f32 %v16237_v1, %v8161_v39 }
 0x724   : > { %8294 = vst [vmem:[%s16283_s8 + $0xa0] sm:$0xff] %v8261_v34  ;;  %8295 = vst [vmem:[%s16283_s8 + $0xa8] sm:$0xff] %v8262_v3  ;;  %v8264_v40 = vmax.f32 %v8232_v17, 0.0  ;;  %v8200_v13 = vmul.f32 %v16237_v1, %v8162_v48  ;;  %v8233_v43 = vadd.f32 %v16244_v26, %v8195_v20  ;;  %v8234_v30 = vadd.f32 %v16244_v26, %v8196_v25 }
 0x725   : > { %8296 = vst [vmem:[%s16283_s8 + $0xb0] sm:$0xff] %v8263_v37  ;;  %v8235_v61 = vadd.f32 %v16244_v26, %v8197_v44  ;;  %v8201_v36 = vmul.f32 %v16237_v1, %v8163_v22  ;;  %v8236_v38 = vadd.f32 %v16244_v26, %v8198_v62  ;;  %v8237_v32 = vadd.f32 %v16244_v26, %v8199_v4 }
 0x726   : > { %8297 = vst [vmem:[%s16283_s8 + $0xb8] sm:$0xff] %v8264_v40  ;;  %v8238_v0 = vadd.f32 %v16244_v26, %v8200_v13  ;;  %v8202_v57 = vmul.f32 %v16237_v1, %v8164_v63  ;;  %v8265_v23 = vmax.f32 %v8233_v43, 0.0  ;;  %v8266_v7 = vmax.f32 %v8234_v30, 0.0  ;;  %8129 = sbr.rel (!%p8127_p1) target bundleno = 1805 (0x70d), region = 247 }
 0x727   : > { %v8267_v28 = vmax.f32 %v8235_v61, 0.0  ;;  %v8239_v49 = vadd.f32 %v16244_v26, %v8201_v36  ;;  %v8268_v10 = vmax.f32 %v8236_v38, 0.0  ;;  %v8269_v8 = vmax.f32 %v8237_v32, 0.0 }
 0x728   : > { %v8270_v56 = vmax.f32 %v8238_v0, 0.0  ;;  %v8240_v6 = vadd.f32 %v16244_v26, %v8202_v57  ;;  %8298 = vst [vmem:[%s16283_s8 + $0xc0] sm:$0xff] %v8265_v23  ;;  %8299 = vst [vmem:[%s16283_s8 + $0xc8] sm:$0xff] %v8266_v7 }
 0x729   : > { %8300 = vst [vmem:[%s16283_s8 + $0xd0] sm:$0xff] %v8267_v28  ;;  %v8271_v24 = vmax.f32 %v8239_v49, 0.0  ;;  %8301 = vst [vmem:[%s16283_s8 + $0xd8] sm:$0xff] %v8268_v10 }
 0x72a   : > { %8302 = vst [vmem:[%s16283_s8 + $0xe0] sm:$0xff] %v8269_v8  ;;  %8303 = vst [vmem:[%s16283_s8 + $0xe8] sm:$0xff] %v8270_v56  ;;  %v8272_v1 = vmax.f32 %v8240_v6, 0.0 }
 0x72b   : > { %8304 = vst [vmem:[%s16283_s8 + $0xf0] sm:$0xff] %v8271_v24 }
 0x72c   : > { %8305 = vst [vmem:[%s16283_s8 + $0xf8] sm:$0xff] %v8272_v1 }
 0x72d   :  { %13455 = shalt.err (!%p13452_p6)
}
 0x72e   :  { %s13456_s30 = scalar_lea.hbm %s16410_s10, 12288 }
 0x72f   :  { %p13457_p7 = scmp.ne.s32.totalorder %s16410_s10, %s13456_s30  ;;  %p13460_p8 = scmp.lt.u32.totalorder %s13456_s30, %s16410_s10 }
 0x731   :  { %p13462_p9 = pnand %p13460_p8, %p13457_p7 }
 0x733   :  { %13465 = shalt.err (!%p13462_p9)
}
 0x734   :  { %8317 = dma.vmem_to_hbm [thread:$0]  %s8312_s24, 12288, %s16410_s10, [#allocation8], %s13562_s25, %s13562_s25, %s13563_s26  }
 0x735   :  { %13518 = dma.done.wait [#allocation8], 12288  }
 0x736   :  { %13519 = vsyncadd [#allocation8], 4294955008 }
 0x737   :  { %8321 = vsyncpa [#allocation7], 1 }
 0x738   :  { %8322 = vsyncpa [#allocation10], 1 }
 0x739   :  { %8323 = vsyncpa [#allocation13], 1 }
 0x73a   :  { %8324 = vsyncpa [#allocation16], 1 }
 0x73b   :  { %8325 = vsyncpa [#allocation19], 1 }
 0x73c   :  { %8326 = vsyncpa [#allocation22], 1 }
 0x73d   :  { %8327 = vsyncpa [#allocation8], 1 }

</bundles_post_ra>
